<compile_context>
chip_gen: v7x
topology: tpu7x:2x2x1
jax: 0.10.0
libtpu: 0.0.40
codegen_flags: <defaults>
</compile_context>

<pallas_src>
import math

import jax
import jax.numpy as jnp
from jax.experimental import pallas as pl
from jax.experimental.pallas import tpu as pltpu


def _pos_embed_kernel(x_ref, coeff_ref, phase_ref, o_ref):
    # x_ref:     (tm, P)     f32  -- P flattened x elements per output row
    # coeff_ref: (P, P*F)    f32  -- row p holds scale/dim_t in lanes [p*F, (p+1)*F)
    # phase_ref: (1, P*F)    f32  -- [0, pi/2, 0, pi/2, ...] tiled P times
    # o_ref:     (tm, P*F)   f32
    x = x_ref[...]
    val = phase_ref[...]                        # (1, P*F), broadcasts up
    for p in range(x_ref.shape[1]):             # static, tiny (P <= 2), unrolled
        val = val + x[:, p:p + 1] * coeff_ref[p:p + 1, :]
    o_ref[...] = jnp.sin(val)                   # sin(v + pi/2) == cos(v)


def _choose_tm(n_rows, lane_width, target_bytes=2 << 20):
    """Rows per grid step: ~2 MiB output tiles, >= 2 grid steps when possible."""
    tm = max(8, target_bytes // (lane_width * 4))
    tm = min(tm, 8192)
    if n_rows >= 32:
        tm = min(tm, -(-n_rows // 2))           # keep >= 2 blocks (megacore)
    tm = max(8, (tm // 8) * 8)                  # sublane multiple of 8
    tm = min(tm, max(8, ((n_rows + 7) // 8) * 8))
    return tm


def position_embedding_simple(x, num_pos_feats=64, temperature=10000.0,
                              scale=1.0):
    """JAX/Pallas equivalent of PositionEmbeddingSimple.forward."""
    orig_shape = x.shape
    F = int(num_pos_feats)
    x_flat = x.reshape(-1).astype(jnp.float32)
    n_elems = x_flat.shape[0]

    # Pack 2 elements per output row when that makes the lane dim a multiple
    # of 128 (e.g. F=64 -> 128 lanes): unmasked, full-width lane stores.
    pack = 1
    if (F % 128) != 0 and (2 * F) % 128 == 0 and (n_elems % 2) == 0:
        pack = 2
    lane = pack * F
    n_rows = n_elems // pack
    x_packed = x_flat.reshape(n_rows, pack)

    # Tiny wrapper-side constants (computed once, outside the kernel).
    i = jnp.arange(F, dtype=jnp.float32)
    dim_t = jnp.float32(temperature) ** (2.0 * jnp.floor(i / 2.0) / F)
    coeff = (jnp.float32(scale) / dim_t).reshape(1, F)                  # (1, F)
    phase = jnp.where((jnp.arange(F) % 2) == 1,
                      jnp.float32(math.pi / 2.0), jnp.float32(0.0))     # (F,)
    coeff_packed = jnp.kron(jnp.eye(pack, dtype=jnp.float32), coeff)    # (P, P*F)
    phase_packed = jnp.tile(phase, pack).reshape(1, lane).astype(jnp.float32)

    tm = _choose_tm(n_rows, lane)
    grid = pl.cdiv(n_rows, tm)

    out = pl.pallas_call(
        _pos_embed_kernel,
        out_shape=jax.ShapeDtypeStruct((n_rows, lane), jnp.float32),
        grid_spec=pltpu.PrefetchScalarGridSpec(
            num_scalar_prefetch=0,
            grid=(grid,),
            in_specs=[
                pl.BlockSpec((tm, pack), lambda g: (g, 0)),
                pl.BlockSpec((pack, lane), lambda g: (0, 0)),
                pl.BlockSpec((1, lane), lambda g: (0, 0)),
            ],
            out_specs=pl.BlockSpec((tm, lane), lambda g: (g, 0)),
        ),
        compiler_params=pltpu.CompilerParams(
            dimension_semantics=("parallel",)),
    )(x_packed, coeff_packed, phase_packed)

    # (n_rows, pack*F) row-major is exactly the layout of (n_elems, F):
    # row r = [feats of elem pack*r, feats of elem pack*r+1, ...].
    return out.reshape(*orig_shape, F)


def _reference(x, num_pos_feats=64, temperature=10000.0, scale=1.0):
    """Pure-JAX mirror of the PyTorch forward, for verification."""
    i = jnp.arange(num_pos_feats, dtype=jnp.float32)
    dim_t = jnp.asarray(temperature, jnp.float32) ** (
        2.0 * jnp.floor(i / 2.0) / num_pos_feats)
    pos_x = (x.astype(jnp.float32) * scale)[..., None] / dim_t
    sin_part = jnp.sin(pos_x[..., 0::2])
    cos_part = jnp.cos(pos_x[..., 1::2])
    stacked = jnp.stack((sin_part, cos_part), axis=-1)
    return stacked.reshape(*x.shape, num_pos_feats)


if __name__ == "__main__":
    key = jax.random.PRNGKey(0)
    # NCHW-style input, as the module would see feature-map coordinates/values.
    x = jax.random.normal(key, (2, 4, 16, 16), dtype=jnp.float32)

    out = position_embedding_simple(x, num_pos_feats=64,
                                    temperature=10000.0, scale=1.0)
    out = jax.block_until_ready(out)

    ref = _reference(x, num_pos_feats=64, temperature=10000.0, scale=1.0)
    assert out.shape == (2, 4, 16, 16, 64), out.shape
    max_err = float(jnp.max(jnp.abs(out - ref)))
    # sin(v + pi/2) vs cos(v) differs only in the last few ulps for these
    # argument magnitudes; 2e-5 is still a tight functional check.
    assert jnp.allclose(out, ref, atol=2e-5, rtol=2e-5), max_err

    print("KERNEL_OK")
</pallas_src>

<mosaic_0001>
module attributes {stable_mosaic.version = 11 : i64} {
  func.func @_pos_embed_kernel(%arg0: i32, %arg1: memref<512x2xf32, #tpu.memory_space<vmem>>, %arg2: memref<2x128xf32, #tpu.memory_space<vmem>>, %arg3: memref<1x128xf32, #tpu.memory_space<vmem>>, %arg4: memref<512x128xf32, #tpu.memory_space<vmem>>) attributes {dimension_semantics = [#tpu.dimension_semantics<parallel>], iteration_bounds = array<i64: 2>, scalar_prefetch = 0 : i64, scratch_operands = 0 : i64, tpu.core_type = #tpu.core_type<tc>, window_params = [{transform_indices = @transform_0, window_bounds = array<i64: 512, 2>}, {pipeline_mode = #tpu.pipeline_mode<synchronous>, transform_indices = @transform_1, window_bounds = array<i64: 2, 128>}, {pipeline_mode = #tpu.pipeline_mode<synchronous>, transform_indices = @transform_2, window_bounds = array<i64: 1, 128>}, {transform_indices = @transform_3, window_bounds = array<i64: 512, 128>}]} {
    %c0 = arith.constant 0 : index
    %c0_0 = arith.constant 0 : index
    %0 = vector.load %arg1[%c0, %c0_0] : memref<512x2xf32, #tpu.memory_space<vmem>>, vector<512x2xf32>
    %c0_1 = arith.constant 0 : index
    %c0_2 = arith.constant 0 : index
    %1 = vector.load %arg3[%c0_1, %c0_2] : memref<1x128xf32, #tpu.memory_space<vmem>>, vector<1x128xf32>
    %2 = vector.extract_strided_slice %0 {offsets = [0, 0], sizes = [512, 1], strides = [1, 1]} : vector<512x2xf32> to vector<512x1xf32>
    %c0_3 = arith.constant 0 : index
    %c0_4 = arith.constant 0 : index
    %3 = vector.load %arg2[%c0_3, %c0_4] : memref<2x128xf32, #tpu.memory_space<vmem>>, vector<1x128xf32>
    %4 = vector.broadcast %2 : vector<512x1xf32> to vector<512x128xf32>
    %5 = vector.broadcast %3 : vector<1x128xf32> to vector<512x128xf32>
    %6 = arith.mulf %4, %5 : vector<512x128xf32>
    %7 = vector.broadcast %1 : vector<1x128xf32> to vector<512x128xf32>
    %8 = arith.addf %7, %6 : vector<512x128xf32>
    %9 = vector.extract_strided_slice %0 {offsets = [0, 1], sizes = [512, 1], strides = [1, 1]} : vector<512x2xf32> to vector<512x1xf32>
    %c1 = arith.constant 1 : index
    %c0_5 = arith.constant 0 : index
    %10 = vector.load %arg2[%c1, %c0_5] : memref<2x128xf32, #tpu.memory_space<vmem>>, vector<1x128xf32>
    %11 = vector.broadcast %9 : vector<512x1xf32> to vector<512x128xf32>
    %12 = vector.broadcast %10 : vector<1x128xf32> to vector<512x128xf32>
    %13 = arith.mulf %11, %12 : vector<512x128xf32>
    %14 = arith.addf %8, %13 : vector<512x128xf32>
    %15 = math.sin %14 : vector<512x128xf32>
    %c0_6 = arith.constant 0 : index
    %c0_7 = arith.constant 0 : index
    %16 = vector.load %arg4[%c0_6, %c0_7] : memref<512x128xf32, #tpu.memory_space<vmem>>, vector<512x128xf32>
    tpu.vector_store %arg4[%c0_6, %c0_7], %15 {strides = array<i32>} : memref<512x128xf32, #tpu.memory_space<vmem>>, vector<512x128xf32>,
    return
  }
  func.func @transform_0(%arg0: i32) -> (i32, i32) {
    %c0_i32 = arith.constant 0 : i32
    %c0_i32_0 = arith.constant 0 : i32
    return %arg0, %c0_i32 : i32, i32
  }
  func.func @transform_1(%arg0: i32) -> (i32, i32) {
    %c0_i32 = arith.constant 0 : i32
    %c0_i32_0 = arith.constant 0 : i32
    %c0_i32_1 = arith.constant 0 : i32
    return %c0_i32, %c0_i32_0 : i32, i32
  }
  func.func @transform_2(%arg0: i32) -> (i32, i32) {
    %c0_i32 = arith.constant 0 : i32
    %c0_i32_0 = arith.constant 0 : i32
    %c0_i32_1 = arith.constant 0 : i32
    return %c0_i32, %c0_i32_0 : i32, i32
  }
  func.func @transform_3(%arg0: i32) -> (i32, i32) {
    %c0_i32 = arith.constant 0 : i32
    %c0_i32_0 = arith.constant 0 : i32
    return %arg0, %c0_i32 : i32, i32
  }
}

</mosaic_0001>

<bundles_post_ra>
// kernel: tpu_custom_call.1
= control target key start
LH: loop header
LB: loop body
LE: loop exit
PB: predicated region body
PF: predicated region fallthrough
CT: control target
= control target key end

     0   :  { %8 = vsyncpa [#allocation3], 0  ;;  %s15170_s0 = inlined_call_operand.vmem [shape: f32[1024,2], index: 0, kind: input, shape index: {}]   ;;  %s15171_s1 = inlined_call_operand.vmem [shape: f32[2,128], index: 1, kind: input, shape index: {}]   ;;  %s15172_s2 = inlined_call_operand.vmem [shape: f32[1,128], index: 2, kind: input, shape index: {}]   ;;  %s15173_s3 = inlined_call_operand.hbm [shape: f32[1024,128], index: 3, kind: output, shape index: {}]  }
   0x1   :  { %10 = vsyncpa [#allocation3 + $0x1], 0  ;;  %s8844_s12 = smov 0   ;;  %s8846_s13 = smov 0  }
   0x2   :  { %s8848_s14 = smov 0   ;;  %s8850_s15 = smov 0  }
   0x3 LB: > { %s8865_s16 = sadd.s32 4294967295, %s8811_s15   ;;  %s7881_s17 = sadd.s32 4294967294, %s8811_s15   ;;  %s8811_s15 = sphi %s8850_s15, %s15441_s15   ;;  %s8807_s14 = sphi %s8848_s14, %s15440_s14   ;;  %s8803_s13 = sphi %s8846_s13, %s15439_s13   ;;  %s8799_s12 = sphi %s8844_s12, %s15438_s12  }
   0x4   : > { %s8869_s18 = sadd.s32 1, %s8811_s15   ;;  %s91_s19 = sadd.s32 1, %s8807_s14 }
   0x5   : > { %s88_s20 = ssub.s32 %s8811_s15, %s8869_s18  ;;  %p101_p0 = scmp.ne.s32.totalorder %s8807_s14, %s8803_s13 }
   0x6   : > { %p89_p1 = scmp.eq.s32.totalorder %s88_s20, 0  ;;  %p102_p2 = scmp.eq.s32.totalorder %s8865_s16, 1 }
   0x7   : > { %p107_p3 = scmp.ne.s32.totalorder %s8803_s13, %s8799_s12  ;;  %p108_p4 = scmp.eq.s32.totalorder %s7881_s17, 1 }
   0x8   : > { %s8880_s21 = scalar_select %p89_p1, %s8807_s14, %s91_s19  }
   0x9   : > { %p8882_p5 = por %p102_p2, %p101_p0  ;;  %p8886_p6 = por %p108_p4, %p107_p3 }
   0xa   : > { %p7884_p7 = scmp.ge.s32.totalorder %s8811_s15, 1  ;;  %p141_p8 = scmp.lt.s32.totalorder %s8811_s15, 3 }
   0xc   : > { %p142_p9 = pnand %p7884_p7, %p141_p8 }
   0xe   : > { %145 = sbr.rel (%p142_p9) target bundleno = 1974 (0x7b6), region = 32 }
  0x15   : > { %s7886_s24 = sshll.u32 %s8865_s16, 6  ;;  %v8813_v0 = vmov 0   ;;  %s162_s8 = sand.u32 1, %s8803_s13  }
  0x16   : > { %8459 = vset.pattern.permute.xlu1 %v8813_v0  ;;  %8458 = vset.pattern.permute.xlu0 %v8813_v0  ;;  %p166_p10 = scmp.lt.s32.totalorder %s7886_s24, 127  ;;  %s7885_s9 = sshll.u32 %s162_s8, 9 }
  0x17   : > { %s9666_s10 = scalar_lea.vmem [#allocation2], %s7885_s9  ;;  %s8152_s7 = sshll.u32 %s8865_s16, 13 }
  0x18   : > { %s15443_s24 = smov (!%p166_p10, %s7886_s24), 127  ;;  %s7819_s9 = sshll.u32 %s9666_s10, 4  ;;  %s15123_s9 = int_to_ptr.vmem [resolvable:$true] %s7819_s9 }
  0x19   : > { %s7887_s25 = sshll.u32 %s15443_s24, 3  ;;  %s15121_s19 = scalar_lea.hbm %s15173_s3, %s8152_s7 }
  0x1a   : > { %s8896_s28 = scalar_lea.vmem %s15170_s0, %s7887_s25  ;;  %s15129_s16 = scalar_lea.sflag [#allocation3], %s162_s8 }
  0x1b   : > { %v8899_v1 = vld [vmem:[%s8896_s28 + $0x10] sm:$0xff]  ;;  %v8902_v2 = vld [vmem:[%s8896_s28] sm:$0xff]  ;;  %v8907_v3 = vld [vmem:[%s8896_s28 + $0x18] sm:$0xff]  ;;  %s8749_s20 = scalar_lea.vmem %s15123_s9, 8192  ;;  %s8821_s24 = smov [#allocation2]  }
  0x1c   : > { %250 = vperm.xlu1 %8459, %v8899_v1   ;;  %240 = vperm.xlu0 %8458, %v8902_v2   ;;  %v8910_v4 = vld [vmem:[%s8896_s28 + $0x8] sm:$0xff]  ;;  %v8918_v6 = vld [vmem:[%s8896_s28 + $0x20] sm:$0xff]  ;;  %v8923_v7 = vld [vmem:[%s8896_s28 + $0x38] sm:$0xff]  ;;  %p8750_p11 = scmp.ne.s32.totalorder %s15123_s9, %s8749_s20  ;;  %s8753_s25 = sshll.u32 %s8821_s24, 4  ;;  %s8754_s25 = int_to_ptr.vmem [resolvable:$false] %s8753_s25 }
  0x1d   : > { %v8915_v5 = vld [vmem:[%s8896_s28 + $0x28] sm:$0xff]  ;;  %v8926_v8 = vld [vmem:[%s8896_s28 + $0x30] sm:$0xff]  ;;  %v8934_v10 = vld [vmem:[%s8896_s28 + $0x40] sm:$0xff]  ;;  %s8755_s26 = scalar_lea.vmem %s8754_s25, 16384  ;;  %p8756_p0 = scmp.lt.s32.totalorder %s15123_s9, %s8754_s25 }
  0x1e   : > { %v8931_v9 = vld [vmem:[%s8896_s28 + $0x48] sm:$0xff]  ;;  %v8939_v11 = vld [vmem:[%s8896_s28 + $0x58] sm:$0xff]  ;;  %v8942_v12 = vld [vmem:[%s8896_s28 + $0x50] sm:$0xff]  ;;  %p8751_p12 = pnand %p8750_p11, %p8882_p5  ;;  %p8757_p1 = scmp.lt.s32.totalorder %s8755_s26, %s8749_s20 }
  0x1f   : > { %v8947_v13 = vld [vmem:[%s8896_s28 + $0x68] sm:$0xff]  ;;  %v8950_v14 = vld [vmem:[%s8896_s28 + $0x60] sm:$0xff]  ;;  %v8955_v15 = vld [vmem:[%s8896_s28 + $0x78] sm:$0xff] }
  0x20   : > { %255 = vperm.xlu1 %8459, %v8907_v3   ;;  %245 = vperm.xlu0 %8458, %v8910_v4   ;;  %v8958_v16 = vld [vmem:[%s8896_s28 + $0x70] sm:$0xff]  ;;  %v8963_v17 = vld [vmem:[%s8896_s28 + $0x88] sm:$0xff]  ;;  %v8966_v18 = vld [vmem:[%s8896_s28 + $0x80] sm:$0xff]  ;;  %p8752_p13 = pneg %p8751_p12  ;;  %p8758_p2 = por %p8757_p1, %p8756_p0 }
  0x21   : > { %v8971_v19 = vld [vmem:[%s8896_s28 + $0x98] sm:$0xff]  ;;  %v8974_v20 = vld [vmem:[%s8896_s28 + $0x90] sm:$0xff]  ;;  %v8979_v21 = vld [vmem:[%s8896_s28 + $0xa8] sm:$0xff] }
  0x22   : > { %v8982_v22 = vld [vmem:[%s8896_s28 + $0xa0] sm:$0xff]  ;;  %v8987_v23 = vld [vmem:[%s8896_s28 + $0xb8] sm:$0xff]  ;;  %v8990_v24 = vld [vmem:[%s8896_s28 + $0xb0] sm:$0xff]  ;;  %p8759_p3 = pnand %p8758_p2, %p8752_p13 }
  0x23   : > { %v8995_v25 = vld [vmem:[%s8896_s28 + $0xc8] sm:$0xff]  ;;  %v8998_v26 = vld [vmem:[%s8896_s28 + $0xc0] sm:$0xff]  ;;  %v9003_v27 = vld [vmem:[%s8896_s28 + $0xd8] sm:$0xff] }
  0x24   : > { %265 = vperm.xlu1 %8459, %v8915_v5   ;;  %260 = vperm.xlu0 %8458, %v8918_v6   ;;  %v9006_v28 = vld [vmem:[%s8896_s28 + $0xd0] sm:$0xff]  ;;  %v9011_v29 = vld [vmem:[%s8896_s28 + $0xe8] sm:$0xff]  ;;  %v9014_v30 = vld [vmem:[%s8896_s28 + $0xe0] sm:$0xff] }
  0x25   : > { %v9019_v31 = vld [vmem:[%s8896_s28 + $0xf8] sm:$0xff]  ;;  %v9022_v32 = vld [vmem:[%s8896_s28 + $0xf0] sm:$0xff]  ;;  %v9027_v33 = vld [vmem:[%s8896_s28 + $0x108] sm:$0xff] }
  0x26   : > { %v9030_v34 = vld [vmem:[%s8896_s28 + $0x100] sm:$0xff]  ;;  %v9035_v35 = vld [vmem:[%s8896_s28 + $0x118] sm:$0xff]  ;;  %v9038_v36 = vld [vmem:[%s8896_s28 + $0x110] sm:$0xff] }
  0x27   : > { %v9043_v37 = vld [vmem:[%s8896_s28 + $0x128] sm:$0xff]  ;;  %v9046_v38 = vld [vmem:[%s8896_s28 + $0x120] sm:$0xff]  ;;  %v9051_v39 = vld [vmem:[%s8896_s28 + $0x138] sm:$0xff] }
  0x28   : > { %275 = vperm.xlu1 %8459, %v8923_v7   ;;  %270 = vperm.xlu0 %8458, %v8926_v8   ;;  %v9054_v40 = vld [vmem:[%s8896_s28 + $0x130] sm:$0xff]  ;;  %v9059_v41 = vld [vmem:[%s8896_s28 + $0x148] sm:$0xff]  ;;  %v9062_v42 = vld [vmem:[%s8896_s28 + $0x140] sm:$0xff] }
  0x29   : > { %v9067_v43 = vld [vmem:[%s8896_s28 + $0x158] sm:$0xff]  ;;  %v9070_v44 = vld [vmem:[%s8896_s28 + $0x150] sm:$0xff]  ;;  %v9075_v45 = vld [vmem:[%s8896_s28 + $0x168] sm:$0xff] }
  0x2a   : > { %v9078_v46 = vld [vmem:[%s8896_s28 + $0x160] sm:$0xff]  ;;  %v9083_v47 = vld [vmem:[%s8896_s28 + $0x178] sm:$0xff]  ;;  %v9086_v48 = vld [vmem:[%s8896_s28 + $0x170] sm:$0xff] }
  0x2b   : > { %v9091_v49 = vld [vmem:[%s8896_s28 + $0x188] sm:$0xff]  ;;  %v9094_v50 = vld [vmem:[%s8896_s28 + $0x180] sm:$0xff]  ;;  %v9099_v51 = vld [vmem:[%s8896_s28 + $0x198] sm:$0xff] }
  0x2c   : > { %285 = vperm.xlu1 %8459, %v8931_v9   ;;  %280 = vperm.xlu0 %8458, %v8934_v10   ;;  %v9102_v52 = vld [vmem:[%s8896_s28 + $0x190] sm:$0xff]  ;;  %v9107_v53 = vld [vmem:[%s8896_s28 + $0x1a8] sm:$0xff]  ;;  %v9110_v54 = vld [vmem:[%s8896_s28 + $0x1a0] sm:$0xff] }
  0x2d   : > { %v9115_v55 = vld [vmem:[%s8896_s28 + $0x1b8] sm:$0xff]  ;;  %v9118_v56 = vld [vmem:[%s8896_s28 + $0x1b0] sm:$0xff]  ;;  %v9123_v57 = vld [vmem:[%s8896_s28 + $0x1c8] sm:$0xff] }
  0x2e   : > { %15196 = vst [vmem:[#allocation5_spill] sm:$0xff] %v9123_v57  ;;  %v9126_v58 = vld [vmem:[%s8896_s28 + $0x1c0] sm:$0xff]  ;;  %v9131_v59 = vld [vmem:[%s8896_s28 + $0x1d8] sm:$0xff]  ;;  %v9134_v60 = vld [vmem:[%s8896_s28 + $0x1d0] sm:$0xff] }
  0x2f   : > { %15197 = vst [vmem:[#allocation6_spill] sm:$0xff] %v9131_v59  ;;  %15198 = vst [vmem:[#allocation7_spill] sm:$0xff] %v9134_v60  ;;  %v9139_v61 = vld [vmem:[%s8896_s28 + $0x1e8] sm:$0xff]  ;;  %v9142_v62 = vld [vmem:[%s8896_s28 + $0x1e0] sm:$0xff] }
  0x30   : > { %295 = vperm.xlu1 %8459, %v8939_v11   ;;  %290 = vperm.xlu0 %8458, %v8942_v12   ;;  %15199 = vst [vmem:[#allocation8_spill] sm:$0xff] %v9139_v61  ;;  %15200 = vst [vmem:[#allocation9_spill] sm:$0xff] %v9142_v62  ;;  %v9147_v63 = vld [vmem:[%s8896_s28 + $0x1f8] sm:$0xff]  ;;  %v9150_v0 = vld [vmem:[%s8896_s28 + $0x1f0] sm:$0xff] }
  0x31   : > { %15201 = vst [vmem:[#allocation10_spill] sm:$0xff] %v9147_v63 }
  0x34   : > { %305 = vperm.xlu1 %8459, %v8947_v13   ;;  %300 = vperm.xlu0 %8458, %v8950_v14  }
  0x38   : > { %315 = vperm.xlu1 %8459, %v8955_v15   ;;  %310 = vperm.xlu0 %8458, %v8958_v16  }
  0x3c   : > { %325 = vperm.xlu1 %8459, %v8963_v17   ;;  %320 = vperm.xlu0 %8458, %v8966_v18  }
  0x40   : > { %335 = vperm.xlu1 %8459, %v8971_v19   ;;  %330 = vperm.xlu0 %8458, %v8974_v20  }
  0x44   : > { %345 = vperm.xlu1 %8459, %v8979_v21   ;;  %340 = vperm.xlu0 %8458, %v8982_v22  }
  0x48   : > { %355 = vperm.xlu1 %8459, %v8987_v23   ;;  %350 = vperm.xlu0 %8458, %v8990_v24  }
  0x4c   : > { %365 = vperm.xlu1 %8459, %v8995_v25   ;;  %360 = vperm.xlu0 %8458, %v8998_v26  }
  0x50   : > { %375 = vperm.xlu1 %8459, %v9003_v27   ;;  %370 = vperm.xlu0 %8458, %v9006_v28  }
  0x54   : > { %385 = vperm.xlu1 %8459, %v9011_v29   ;;  %380 = vperm.xlu0 %8458, %v9014_v30  }
  0x58   : > { %395 = vperm.xlu1 %8459, %v9019_v31   ;;  %390 = vperm.xlu0 %8458, %v9022_v32  }
  0x5c   : > { %405 = vperm.xlu1 %8459, %v9027_v33   ;;  %400 = vperm.xlu0 %8458, %v9030_v34  }
  0x60   : > { %415 = vperm.xlu1 %8459, %v9035_v35   ;;  %410 = vperm.xlu0 %8458, %v9038_v36  }
  0x64   : > { %425 = vperm.xlu1 %8459, %v9043_v37   ;;  %420 = vperm.xlu0 %8458, %v9046_v38  }
  0x68   : > { %435 = vperm.xlu1 %8459, %v9051_v39   ;;  %430 = vperm.xlu0 %8458, %v9054_v40  }
  0x6c   : > { %445 = vperm.xlu1 %8459, %v9059_v41   ;;  %440 = vperm.xlu0 %8458, %v9062_v42  }
  0x70   : > { %455 = vperm.xlu1 %8459, %v9067_v43   ;;  %450 = vperm.xlu0 %8458, %v9070_v44  }
  0x74   : > { %465 = vperm.xlu1 %8459, %v9075_v45   ;;  %460 = vperm.xlu0 %8458, %v9078_v46  }
  0x78   : > { %475 = vperm.xlu1 %8459, %v9083_v47   ;;  %470 = vperm.xlu0 %8458, %v9086_v48  }
  0x7c   : > { %485 = vperm.xlu1 %8459, %v9091_v49   ;;  %480 = vperm.xlu0 %8458, %v9094_v50  }
  0x80   : > { %495 = vperm.xlu1 %8459, %v9099_v51   ;;  %490 = vperm.xlu0 %8458, %v9102_v52  }
  0x84   : > { %505 = vperm.xlu1 %8459, %v9107_v53   ;;  %500 = vperm.xlu0 %8458, %v9110_v54  }
  0x88   : > { %515 = vperm.xlu1 %8459, %v9115_v55   ;;  %510 = vperm.xlu0 %8458, %v9118_v56  }
  0x8c   : > { %525 = vperm.xlu1 %8459, %v9123_v57   ;;  %520 = vperm.xlu0 %8458, %v9126_v58  }
  0x90   : > { %535 = vperm.xlu1 %8459, %v9131_v59   ;;  %530 = vperm.xlu0 %8458, %v9134_v60   ;;  %v8814_v60 = vmov 1  }
  0x94   : > { %545 = vperm.xlu1 %8459, %v9139_v61   ;;  %540 = vperm.xlu0 %8458, %v9142_v62  }
  0x98   : > { %555 = vperm.xlu1 %8459, %v9147_v63   ;;  %550 = vperm.xlu0 %8458, %v9150_v0  }
  0x9b   : > { %v9154_v57 = vpop.permute.xlu1 %250  ;;  %v9156_v59 = vpop.permute.xlu0 %240 }
  0x9c   : > { %15202 = vst [vmem:[#allocation11_spill] sm:$0xff] %v9154_v57  ;;  %8461 = vset.pattern.permute.xlu1 %v8814_v60  ;;  %8460 = vset.pattern.permute.xlu0 %v8814_v60 }
  0x9d   : > { %702 = vperm.xlu1 %8461, %v8910_v4   ;;  %698 = vperm.xlu0 %8460, %v8902_v2  }
  0x9f   : > { %v9160_v61 = vpop.permute.xlu1 %255  ;;  %v9162_v62 = vpop.permute.xlu0 %245 }
  0xa1   : > { %706 = vperm.xlu1 %8461, %v8899_v1   ;;  %710 = vperm.xlu0 %8460, %v8907_v3  }
  0xa3   : > { %v9166_v63 = vpop.permute.xlu1 %265  ;;  %v9168_v57 = vpop.permute.xlu0 %260 }
  0xa5   : > { %714 = vperm.xlu1 %8461, %v8918_v6   ;;  %718 = vperm.xlu0 %8460, %v8915_v5  }
  0xa7   : > { %v9172_v60 = vpop.permute.xlu1 %275  ;;  %v9174_v4 = vpop.permute.xlu0 %270 }
  0xa9   : > { %722 = vperm.xlu1 %8461, %v8926_v8   ;;  %726 = vperm.xlu0 %8460, %v8923_v7  }
  0xab   : > { %v9178_v2 = vpop.permute.xlu1 %285  ;;  %v9180_v1 = vpop.permute.xlu0 %280 }
  0xad   : > { %730 = vperm.xlu1 %8461, %v8934_v10   ;;  %734 = vperm.xlu0 %8460, %v8931_v9  }
  0xaf   : > { %v9184_v3 = vpop.permute.xlu1 %295  ;;  %v9186_v6 = vpop.permute.xlu0 %290 }
  0xb1   : > { %738 = vperm.xlu1 %8461, %v8942_v12   ;;  %742 = vperm.xlu0 %8460, %v8939_v11  }
  0xb3   : > { %v9190_v5 = vpop.permute.xlu1 %305  ;;  %v9192_v8 = vpop.permute.xlu0 %300 }
  0xb5   : > { %746 = vperm.xlu1 %8461, %v8950_v14   ;;  %750 = vperm.xlu0 %8460, %v8947_v13  }
  0xb7   : > { %v9196_v7 = vpop.permute.xlu1 %315  ;;  %v9198_v10 = vpop.permute.xlu0 %310 }
  0xb9   : > { %754 = vperm.xlu1 %8461, %v8958_v16   ;;  %758 = vperm.xlu0 %8460, %v8955_v15  }
  0xbb   : > { %v9202_v9 = vpop.permute.xlu1 %325  ;;  %v9204_v12 = vpop.permute.xlu0 %320 }
  0xbd   : > { %762 = vperm.xlu1 %8461, %v8966_v18   ;;  %766 = vperm.xlu0 %8460, %v8963_v17  }
  0xbf   : > { %v9208_v11 = vpop.permute.xlu1 %335  ;;  %v9210_v14 = vpop.permute.xlu0 %330 }
  0xc0   : > { %15203 = vst [vmem:[#allocation12_spill] sm:$0xff] %v9208_v11  ;;  %15204 = vst [vmem:[#allocation13_spill] sm:$0xff] %v9210_v14 }
  0xc1   : > { %770 = vperm.xlu1 %8461, %v8974_v20   ;;  %774 = vperm.xlu0 %8460, %v8971_v19  }
  0xc3   : > { %v9214_v13 = vpop.permute.xlu1 %345  ;;  %v9216_v16 = vpop.permute.xlu0 %340 }
  0xc4   : > { %15205 = vst [vmem:[#allocation14_spill] sm:$0xff] %v9214_v13  ;;  %15206 = vst [vmem:[#allocation15_spill] sm:$0xff] %v9216_v16 }
  0xc5   : > { %778 = vperm.xlu1 %8461, %v8982_v22   ;;  %782 = vperm.xlu0 %8460, %v8979_v21  }
  0xc7   : > { %v9220_v15 = vpop.permute.xlu1 %355  ;;  %v9222_v18 = vpop.permute.xlu0 %350 }
  0xc8   : > { %15207 = vst [vmem:[#allocation16_spill] sm:$0xff] %v9220_v15  ;;  %15208 = vst [vmem:[#allocation17_spill] sm:$0xff] %v9222_v18 }
  0xc9   : > { %786 = vperm.xlu1 %8461, %v8990_v24   ;;  %790 = vperm.xlu0 %8460, %v8987_v23  }
  0xcb   : > { %v9226_v17 = vpop.permute.xlu1 %365  ;;  %v9228_v20 = vpop.permute.xlu0 %360 }
  0xcc   : > { %15209 = vst [vmem:[#allocation18_spill] sm:$0xff] %v9226_v17  ;;  %15210 = vst [vmem:[#allocation19_spill] sm:$0xff] %v9228_v20 }
  0xcd   : > { %794 = vperm.xlu1 %8461, %v8998_v26   ;;  %798 = vperm.xlu0 %8460, %v8995_v25  }
  0xcf   : > { %v9232_v19 = vpop.permute.xlu1 %375  ;;  %v9234_v22 = vpop.permute.xlu0 %370 }
  0xd0   : > { %15211 = vst [vmem:[#allocation20_spill] sm:$0xff] %v9232_v19  ;;  %15212 = vst [vmem:[#allocation21_spill] sm:$0xff] %v9234_v22 }
  0xd1   : > { %802 = vperm.xlu1 %8461, %v9006_v28   ;;  %806 = vperm.xlu0 %8460, %v9003_v27  }
  0xd3   : > { %v9238_v21 = vpop.permute.xlu1 %385  ;;  %v9240_v24 = vpop.permute.xlu0 %380 }
  0xd4   : > { %15213 = vst [vmem:[#allocation22_spill] sm:$0xff] %v9238_v21  ;;  %15214 = vst [vmem:[#allocation23_spill] sm:$0xff] %v9240_v24 }
  0xd5   : > { %810 = vperm.xlu1 %8461, %v9014_v30   ;;  %814 = vperm.xlu0 %8460, %v9011_v29  }
  0xd7   : > { %v9244_v23 = vpop.permute.xlu1 %395  ;;  %v9246_v26 = vpop.permute.xlu0 %390 }
  0xd8   : > { %15215 = vst [vmem:[#allocation24_spill] sm:$0xff] %v9244_v23  ;;  %15216 = vst [vmem:[#allocation25_spill] sm:$0xff] %v9246_v26 }
  0xd9   : > { %818 = vperm.xlu1 %8461, %v9022_v32   ;;  %822 = vperm.xlu0 %8460, %v9019_v31  }
  0xdb   : > { %v9250_v25 = vpop.permute.xlu1 %405  ;;  %v9252_v28 = vpop.permute.xlu0 %400 }
  0xdc   : > { %15217 = vst [vmem:[#allocation26_spill] sm:$0xff] %v9250_v25  ;;  %15218 = vst [vmem:[#allocation27_spill] sm:$0xff] %v9252_v28 }
  0xdd   : > { %826 = vperm.xlu1 %8461, %v9030_v34   ;;  %830 = vperm.xlu0 %8460, %v9027_v33  }
  0xdf   : > { %v9256_v27 = vpop.permute.xlu1 %415  ;;  %v9258_v30 = vpop.permute.xlu0 %410 }
  0xe0   : > { %15219 = vst [vmem:[#allocation28_spill] sm:$0xff] %v9256_v27  ;;  %15220 = vst [vmem:[#allocation29_spill] sm:$0xff] %v9258_v30 }
  0xe1   : > { %834 = vperm.xlu1 %8461, %v9038_v36   ;;  %838 = vperm.xlu0 %8460, %v9035_v35  }
  0xe3   : > { %v9262_v29 = vpop.permute.xlu1 %425  ;;  %v9264_v32 = vpop.permute.xlu0 %420 }
  0xe4   : > { %15221 = vst [vmem:[#allocation30_spill] sm:$0xff] %v9262_v29  ;;  %15222 = vst [vmem:[#allocation31_spill] sm:$0xff] %v9264_v32  ;;  %v15192_v32 = vmov 1326507024  }
  0xe5   : > { %842 = vperm.xlu1 %8461, %v9046_v38   ;;  %846 = vperm.xlu0 %8460, %v9043_v37  }
  0xe7   : > { %v9268_v31 = vpop.permute.xlu1 %435  ;;  %v9270_v34 = vpop.permute.xlu0 %430 }
  0xe8   : > { %15223 = vst [vmem:[#allocation32_spill] sm:$0xff] %v9268_v31  ;;  %15224 = vst [vmem:[#allocation33_spill] sm:$0xff] %v9270_v34 }
  0xe9   : > { %850 = vperm.xlu1 %8461, %v9054_v40   ;;  %854 = vperm.xlu0 %8460, %v9051_v39  }
  0xeb   : > { %v9274_v33 = vpop.permute.xlu1 %445  ;;  %v9276_v36 = vpop.permute.xlu0 %440 }
  0xec   : > { %15225 = vst [vmem:[#allocation34_spill] sm:$0xff] %v9274_v33  ;;  %15226 = vst [vmem:[#allocation35_spill] sm:$0xff] %v9276_v36  ;;  %v15184_v33 = vmov 2102212464  }
  0xed   : > { %858 = vperm.xlu1 %8461, %v9062_v42   ;;  %862 = vperm.xlu0 %8460, %v9059_v41  }
  0xef   : > { %v9280_v35 = vpop.permute.xlu1 %455  ;;  %v9282_v38 = vpop.permute.xlu0 %450 }
  0xf0   : > { %15227 = vst [vmem:[#allocation36_spill] sm:$0xff] %v9280_v35  ;;  %15228 = vst [vmem:[#allocation37_spill] sm:$0xff] %v9282_v38 }
  0xf1   : > { %866 = vperm.xlu1 %8461, %v9070_v44   ;;  %870 = vperm.xlu0 %8460, %v9067_v43  }
  0xf3   : > { %v9286_v37 = vpop.permute.xlu1 %465  ;;  %v9288_v40 = vpop.permute.xlu0 %460 }
  0xf4   : > { %15229 = vst [vmem:[#allocation38_spill] sm:$0xff] %v9286_v37  ;;  %15230 = vst [vmem:[#allocation39_spill] sm:$0xff] %v9288_v40 }
  0xf5   : > { %874 = vperm.xlu1 %8461, %v9078_v46   ;;  %878 = vperm.xlu0 %8460, %v9075_v45  }
  0xf7   : > { %v9292_v39 = vpop.permute.xlu1 %475  ;;  %v9294_v42 = vpop.permute.xlu0 %470 }
  0xf8   : > { %15231 = vst [vmem:[#allocation40_spill] sm:$0xff] %v9292_v39  ;;  %15232 = vst [vmem:[#allocation41_spill] sm:$0xff] %v9294_v42 }
  0xf9   : > { %882 = vperm.xlu1 %8461, %v9086_v48   ;;  %886 = vperm.xlu0 %8460, %v9083_v47  }
  0xfb   : > { %v9298_v41 = vpop.permute.xlu1 %485  ;;  %v9300_v44 = vpop.permute.xlu0 %480 }
  0xfc   : > { %15233 = vst [vmem:[#allocation42_spill] sm:$0xff] %v9298_v41  ;;  %15234 = vst [vmem:[#allocation43_spill] sm:$0xff] %v9300_v44 }
  0xfd   : > { %890 = vperm.xlu1 %8461, %v9094_v50   ;;  %894 = vperm.xlu0 %8460, %v9091_v49  }
  0xff   : > { %v9304_v43 = vpop.permute.xlu1 %495  ;;  %v9306_v46 = vpop.permute.xlu0 %490 }
 0x100   : > { %15235 = vst [vmem:[#allocation44_spill] sm:$0xff] %v9304_v43  ;;  %15236 = vst [vmem:[#allocation45_spill] sm:$0xff] %v9306_v46 }
 0x101   : > { %898 = vperm.xlu1 %8461, %v9102_v52   ;;  %902 = vperm.xlu0 %8460, %v9099_v51   ;;  %v15243_v51 = vld [vmem:[#allocation5_spill] sm:$0xff] }
 0x103   : > { %v9310_v45 = vpop.permute.xlu1 %505  ;;  %v9312_v48 = vpop.permute.xlu0 %500 }
 0x104   : > { %15237 = vst [vmem:[#allocation46_spill] sm:$0xff] %v9310_v45  ;;  %15238 = vst [vmem:[#allocation47_spill] sm:$0xff] %v9312_v48 }
 0x105   : > { %906 = vperm.xlu1 %8461, %v9110_v54   ;;  %910 = vperm.xlu0 %8460, %v9107_v53   ;;  %v15246_v53 = vld [vmem:[#allocation7_spill] sm:$0xff] }
 0x107   : > { %v9316_v47 = vpop.permute.xlu1 %515  ;;  %v9318_v50 = vpop.permute.xlu0 %510 }
 0x108   : > { %15239 = vst [vmem:[#allocation48_spill] sm:$0xff] %v9316_v47  ;;  %15240 = vst [vmem:[#allocation49_spill] sm:$0xff] %v9318_v50  ;;  %v15247_v47 = vld [vmem:[#allocation6_spill] sm:$0xff] }
 0x109   : > { %914 = vperm.xlu1 %8461, %v9118_v56   ;;  %918 = vperm.xlu0 %8460, %v9115_v55   ;;  %v15250_v55 = vld [vmem:[#allocation9_spill] sm:$0xff] }
 0x10b   : > { %v9322_v49 = vpop.permute.xlu1 %525  ;;  %v9324_v52 = vpop.permute.xlu0 %520 }
 0x10c   : > { %15241 = vst [vmem:[#allocation50_spill] sm:$0xff] %v9322_v49  ;;  %15242 = vst [vmem:[#allocation51_spill] sm:$0xff] %v9324_v52  ;;  %v15251_v49 = vld [vmem:[#allocation8_spill] sm:$0xff] }
 0x10d   : > { %922 = vperm.xlu1 %8461, %v9126_v58   ;;  %926 = vperm.xlu0 %8460, %v15243_v51   ;;  %v9343_v58 = vld [vmem:[%s15171_s1] ss:$0 sm:$0xff] }
 0x10f   : > { %v9328_v48 = vpop.permute.xlu1 %535  ;;  %v9330_v54 = vpop.permute.xlu0 %530 }
 0x110   : > { %15244 = vst [vmem:[#allocation5_spill] sm:$0xff] %v9328_v48  ;;  %15245 = vst [vmem:[#allocation52_spill] sm:$0xff] %v9330_v54 }
 0x111   : > { %930 = vperm.xlu1 %8461, %v15246_v53   ;;  %934 = vperm.xlu0 %8460, %v15247_v47   ;;  %v562_v47 = vmul.f32 %v9343_v58, %v9156_v59  ;;  %v563_v53 = vmul.f32 %v9343_v58, %v9162_v62 }
 0x113   : > { %v9334_v50 = vpop.permute.xlu1 %545  ;;  %v9336_v56 = vpop.permute.xlu0 %540 }
 0x114   : > { %15248 = vst [vmem:[#allocation7_spill] sm:$0xff] %v9334_v50  ;;  %15249 = vst [vmem:[#allocation6_spill] sm:$0xff] %v9336_v56  ;;  %v15255_v50 = vld [vmem:[#allocation11_spill] sm:$0xff] }
 0x115   : > { %938 = vperm.xlu1 %8461, %v15250_v55   ;;  %942 = vperm.xlu0 %8460, %v15251_v49   ;;  %v15254_v55 = vld [vmem:[#allocation10_spill] sm:$0xff]  ;;  %v9358_v49 = vld [vmem:[%s15172_s2] ss:$0 sm:$0xff]  ;;  %v564_v48 = vmul.f32 %v9343_v58, %v15255_v50 }
 0x116   : > { %v632_v59 = vadd.f32 %v9358_v49, %v562_v47  ;;  %v633_v62 = vadd.f32 %v9358_v49, %v563_v53 }
 0x117   : > { %v9345_v51 = vpop.permute.xlu1 %555  ;;  %v9347_v54 = vpop.permute.xlu0 %550 }
 0x118   : > { %15252 = vst [vmem:[#allocation9_spill] sm:$0xff] %v9345_v51  ;;  %15253 = vst [vmem:[#allocation8_spill] sm:$0xff] %v9347_v54  ;;  %v9363_v51 = vld [vmem:[%s15171_s1 + $0x1] ss:$0 sm:$0xff] }
 0x119   : > { %946 = vperm.xlu1 %8461, %v9150_v0   ;;  %950 = vperm.xlu0 %8460, %v15254_v55  }
 0x11c   : > { %v703_v54 = vpop.permute.xlu1 %702  ;;  %v699_v56 = vpop.permute.xlu0 %698 }
 0x11d   : > { %v958_v0 = vmul.f32 %v9363_v51, %v703_v54  ;;  %v957_v55 = vmul.f32 %v9363_v51, %v699_v56  ;;  %v634_v54 = vadd.f32 %v9358_v49, %v564_v48 }
 0x11f   : > { %v9371_v52 = vadd.f32 %v958_v0, %v633_v62  ;;  %v9373_v45 = vadd.f32 %v957_v55, %v632_v59 }
 0x120   : > { %v707_v46 = vpop.permute.xlu1 %706 }
 0x121   : > { %v15180_v43 = vand.u32 2147483647, %v9371_v52  ;;  %v1192_v44 = vand.u32 2139095040, %v9371_v52  ;;  %v15181_v47 = vand.u32 2147483647, %v9373_v45  ;;  %v1088_v53 = vand.u32 2139095040, %v9373_v45 }
 0x122   : > { %v959_v56 = vmul.f32 %v9363_v51, %v707_v46  ;;  %v9390_v46 = vmul.f32 %v9343_v58, %v9160_v61  ;;  %v15188_v61 = vmov 683565275   ;;  %vm1191_vm13 = vcmp.lt.s32.totalorder %v9371_v52, 0 }
 0x123   : > { %v1193_v41 = vshrl.u32 %v1192_v44, 23  ;;  %v1196_v50 = vand.u32 8388607, %v15180_v43  ;;  %v1089_v62 = vshrl.u32 %v1088_v53, 23  ;;  %v1092_v59 = vand.u32 8388607, %v15181_v47  ;;  %v711_v44 = vpop.permute.xlu0 %710 }
 0x124   : > { %v9385_v55 = vadd.f32 %v959_v56, %v634_v54  ;;  %v9393_v56 = vmul.f32 %v9363_v51, %v711_v44  ;;  %v15182_v44 = vmov 2131351028   ;;  %vm1087_vm14 = vcmp.lt.s32.totalorder %v9373_v45, 0 }
 0x125   : > { %v7895_v0 = vadd.s32 4294967169, %v1193_v41  ;;  %v7891_v42 = vadd.s32 4294967169, %v1089_v62  ;;  %v1197_v40 = vor.u32 8388608, %v1196_v50  ;;  %v1093_v37 = vor.u32 8388608, %v1092_v59 }
 0x126   : > { %v1296_v48 = vand.u32 2139095040, %v9385_v55 }
 0x127   : > { %v1199_v39 = vadd.s32 1, %v7895_v0  ;;  %v1095_v38 = vadd.s32 1, %v7891_v42  ;;  %v9395_v50 = vshll.u32 %v1197_v40, 8  ;;  %v9399_v62 = vshll.u32 %v1093_v37, 8 }
 0x128   : > { %v1297_v43 = vshrl.u32 %v1296_v48, 23  ;;  %v15190_v37 = vmov 920167782  }
 0x129   : > { %vm1200_vm0 = vcmp.gt.s32.totalorder %v1199_v39, 0  ;;  %vm1096_vm1 = vcmp.gt.s32.totalorder %v1095_v38, 0 }
 0x12a   : > { %v1201_v53 = vsel %vm1200_vm0, %v1199_v39, 0  ;;  %v1097_v54 = vsel %vm1096_vm1, %v1095_v38, 0  ;;  %v9403_v48 = vadd.s32 4294967169, %v1297_v43 }
 0x12b   : > { %v1202_v47 = vshrl.u32 %v1201_v53, 5  ;;  %v1203_v41 = vand.u32 31, %v1201_v53  ;;  %v9397_v42 = vshrl.u32 %v1097_v54, 5  ;;  %v1099_v35 = vand.u32 31, %v1097_v54 }
 0x12c   : > { %v15186_v53 = vmov 2475754826  }
 0x12d   : > { %v1204_v0 = vsub.s32 32, %v1203_v41  ;;  %v1206_v39 = vshll.u32 %v15188_v61, %v1203_v41  ;;  %v1209_v38 = vshll.u32 %v15186_v53, %v1203_v41  ;;  %v1212_v40 = vshll.u32 %v15182_v44, %v1203_v41 }
 0x12e   : > { %v1215_v36 = vshll.u32 %v15184_v33, %v1203_v41  ;;  %v1218_v31 = vshll.u32 %v15190_v37, %v1203_v41  ;;  %vm1221_vm2 = vcmp.lt.s32.totalorder %v1202_v47, 1  ;;  %vm1222_vm3 = vcmp.lt.s32.totalorder %v1202_v47, 2 }
 0x12f   : > { %v1207_v59 = vshrl.u32 %v15186_v53, %v1204_v0  ;;  %v1210_v34 = vshrl.u32 %v15182_v44, %v1204_v0  ;;  %v1213_v54 = vshrl.u32 %v15184_v33, %v1204_v0  ;;  %v1205_v43 = vshrl.u32 %v15188_v61, %v1204_v0 }
 0x130   : > { %v1216_v29 = vshrl.u32 %v15190_v37, %v1204_v0  ;;  %v1219_v30 = vshrl.u32 %v15192_v32, %v1204_v0  ;;  %v1100_v26 = vsub.s32 32, %v1099_v35  ;;  %vm1223_vm4 = vcmp.lt.s32.totalorder %v1202_v47, 3 }
 0x131   : > { %v1208_v27 = vor.u32 %v1207_v59, %v1206_v39  ;;  %v1211_v28 = vor.u32 %v1210_v34, %v1209_v38  ;;  %v1214_v25 = vor.u32 %v1213_v54, %v1212_v40  ;;  %vm1224_vm5 = vcmp.lt.s32.totalorder %v1202_v47, 4 }
 0x132   : > { %v1217_v41 = vor.u32 %v1216_v29, %v1215_v36  ;;  %v1220_v23 = vor.u32 %v1219_v30, %v1218_v31  ;;  %v15256_v0 = vmov 683565275   ;;  %v15257_v39 = vmov 2475754826  }
 0x133   : > { %v1225_v44 = vsel %vm1221_vm2, %v1205_v43, %v1208_v27  ;;  %v1226_v33 = vsel %vm1224_vm5, %v1214_v25, 2102212464  ;;  %v1229_v53 = vsel %vm1221_vm2, %v1208_v27, %v1211_v28  ;;  %v1233_v61 = vsel %vm1221_vm2, %v1211_v28, %v1214_v25 }
 0x134   : > { %v1227_v37 = vsel %vm1223_vm4, %v1211_v28, %v1226_v33  ;;  %v1230_v24 = vsel %vm1224_vm5, %v1217_v41, 920167782  ;;  %v1234_v21 = vsel %vm1224_vm5, %v1220_v23, 1326507024  ;;  %v1102_v32 = vshll.u32 %v15256_v0, %v1099_v35 }
 0x135   : > { %v1231_v59 = vsel %vm1223_vm4, %v1214_v25, %v1230_v24  ;;  %v1235_v34 = vsel %vm1223_vm4, %v1217_v41, %v1234_v21  ;;  %v1103_v38 = vshrl.u32 %v15257_v39, %v1100_v26  ;;  %v1105_v30 = vshll.u32 %v15257_v39, %v1099_v35 }
 0x136   : > { %v1228_v29 = vsel %vm1222_vm3, %v1225_v44, %v1227_v37  ;;  %v1232_v31 = vsel %vm1222_vm3, %v1229_v53, %v1231_v59  ;;  %v1236_v36 = vsel %vm1222_vm3, %v1233_v61, %v1235_v34  ;;  %v15258_v27 = vmov 2131351028  }
 0x137   : > { %v1106_v40 = vshrl.u32 %v15258_v27, %v1100_v26  ;;  %v9426_v28 = vmul.u32.u64.low %v9395_v50, %v1236_v36  ;;  %v9427_v33 = vmul.u32.u64.high %v9395_v50, %v1236_v36, %v9426_v28  ;;  %v1104_v21 = vor.u32 %v1103_v38, %v1102_v32 }
 0x138   : > { %v9430_v23 = vmul.u32.u64.low %v9395_v50, %v1232_v31  ;;  %v9431_v24 = vmul.u32.u64.high %v9395_v50, %v1232_v31, %v9430_v23  ;;  %v1108_v54 = vshll.u32 %v15258_v27, %v1099_v35  ;;  %v15259_v44 = vmov 2102212464  }
 0x139   : > { %v1107_v25 = vor.u32 %v1106_v40, %v1105_v30  ;;  %v1109_v37 = vshrl.u32 %v15259_v44, %v1100_v26  ;;  %v1101_v47 = vshrl.u32 %v15256_v0, %v1100_v26  ;;  %v1111_v61 = vshll.u32 %v15259_v44, %v1099_v35 }
 0x13a   : > { %v15260_v53 = vmov 920167782   ;;  %v15261_v41 = vmov 1326507024   ;;  %v1244_v34 = vmul.u32 %v9395_v50, %v1228_v29  ;;  %vm1117_vm6 = vcmp.lt.s32.totalorder %v9397_v42, 1 }
 0x13b   : > { %v1112_v43 = vshrl.u32 %v15260_v53, %v1100_v26  ;;  %v1115_v59 = vshrl.u32 %v15261_v41, %v1100_v26  ;;  %v1110_v36 = vor.u32 %v1109_v37, %v1108_v54  ;;  %v1114_v31 = vshll.u32 %v15260_v53, %v1099_v35 }
 0x13c   : > { %vm1246_vm7 = vc.u32 %v9427_v33, %v9430_v23  ;;  %v1247_v32 = vadd.s32 1, %v9431_v24  ;;  %vm1118_vm8 = vcmp.lt.s32.totalorder %v9397_v42, 2  ;;  %vm1119_vm9 = vcmp.lt.s32.totalorder %v9397_v42, 3 }
 0x13d   : > { %v1113_v38 = vor.u32 %v1112_v43, %v1111_v61  ;;  %v1116_v30 = vor.u32 %v1115_v59, %v1114_v31  ;;  %vm1120_vm10 = vcmp.lt.s32.totalorder %v9397_v42, 4  ;;  %v1125_v26 = vsel %vm1117_vm6, %v1104_v21, %v1107_v25  ;;  %v715_v42 = vpop.permute.xlu1 %714 }
 0x13e   : > { %v1248_v50 = vsel %vm1246_vm7, %v1247_v32, %v9431_v24  ;;  %v1122_v29 = vsel %vm1120_vm10, %v1110_v36, 2102212464  ;;  %v1129_v40 = vsel %vm1117_vm6, %v1107_v25, %v1110_v36  ;;  %v1121_v54 = vsel %vm1117_vm6, %v1101_v47, %v1104_v21 }
 0x13f   : > { %v1126_v35 = vsel %vm1120_vm10, %v1113_v38, 920167782  ;;  %v1249_v28 = vadd.s32 %v1248_v50, %v1244_v34  ;;  %v1130_v22 = vsel %vm1120_vm10, %v1116_v30, 1326507024  ;;  %v1123_v19 = vsel %vm1119_vm9, %v1107_v25, %v1122_v29 }
 0x140   : > { %v1127_v37 = vsel %vm1119_vm9, %v1110_v36, %v1126_v35  ;;  %v1131_v43 = vsel %vm1119_vm9, %v1113_v38, %v1130_v22  ;;  %v1303_v59 = vadd.s32 1, %v9403_v48  ;;  %v15262_v25 = vand.u32 2147483647, %v9385_v55 }
 0x141   : > { %v1128_v61 = vsel %vm1118_vm8, %v1125_v26, %v1127_v37  ;;  %v1250_v31 = vadd.s32 536870912, %v1249_v28  ;;  %v1132_v20 = vsel %vm1118_vm8, %v1129_v40, %v1131_v43  ;;  %v635_v22 = vadd.f32 %v9358_v49, %v9390_v46 }
 0x142   : > { %v9456_v24 = vmul.u32.u64.low %v9399_v62, %v1128_v61  ;;  %v9457_v32 = vmul.u32.u64.high %v9399_v62, %v1128_v61, %v9456_v24  ;;  %v9461_v21 = vmul.u32.u64.low %v9399_v62, %v1132_v20  ;;  %v9462_v47 = vmul.u32.u64.high %v9399_v62, %v1132_v20, %v9461_v21 }
 0x143   : > { %v1300_v34 = vand.u32 8388607, %v15262_v25  ;;  %vm1304_vm11 = vcmp.gt.s32.totalorder %v1303_v59, 0  ;;  %v1251_v48 = vshrl.u32 %v1250_v31, 30  ;;  %v1124_v36 = vsel %vm1118_vm8, %v1121_v54, %v1123_v19 }
 0x144   : > { %v1305_v38 = vsel %vm1304_vm11, %v1303_v59, 0  ;;  %v567_v30 = vmul.f32 %v9343_v58, %v9166_v63  ;;  %v1143_v20 = vadd.s32 1, %v9457_v32  ;;  %v9474_v29 = vadd.f32 %v9393_v56, %v635_v22 }
 0x145   : > { %v1307_v26 = vand.u32 31, %v1305_v38  ;;  %v1252_v50 = vshll.u32 %v1251_v48, 30  ;;  %v1140_v35 = vmul.u32 %v9399_v62, %v1124_v36  ;;  %vm1142_vm12 = vc.u32 %v9462_v47, %v9456_v24 }
 0x146   : > { %v1301_v46 = vor.u32 8388608, %v1300_v34  ;;  %v1144_v54 = vsel %vm1142_vm12, %v1143_v20, %v9457_v32  ;;  %v9483_v63 = vadd.f32 %v9358_v49, %v567_v30  ;;  %v9487_v37 = vmul.f32 %v9343_v58, %v9168_v57 }
 0x147   : > { %v1308_v40 = vsub.s32 32, %v1307_v26  ;;  %v9479_v19 = vsub.s32 %v1249_v28, %v1252_v50  ;;  %v1145_v56 = vadd.s32 %v1144_v54, %v1140_v35  ;;  %v1245_v62 = vadd.s32 %v9430_v23, %v9427_v33 }
 0x148   : > { %v9495_v43 = vmul.f32 %v9363_v51, %v715_v42  ;;  %v9498_v32 = vshll.u32 %v1301_v46, 8  ;;  %v1400_v57 = vand.u32 2139095040, %v9474_v29  ;;  %v9502_v25 = vshrl.u32 %v1305_v38, 5 }
 0x149   : > { %v1255_v61 = vsub.s32 0, %v9479_v19  ;;  %v1146_v59 = vadd.s32 536870912, %v1145_v56  ;;  %v1311_v31 = vshrl.u32 %v15257_v39, %v1308_v40  ;;  %v1314_v33 = vshrl.u32 %v15258_v27, %v1308_v40 }
 0x14a   : > { %v1317_v23 = vshrl.u32 %v15259_v44, %v1308_v40  ;;  %v1275_v34 = vsub.s32 4, %v1251_v48  ;;  %v1310_v36 = vshll.u32 %v15256_v0, %v1307_v26  ;;  %v1320_v30 = vshrl.u32 %v15260_v53, %v1308_v40 }
 0x14b   : > { %v7896_v21 = vmin.u32 %v1255_v61, %v9479_v19  ;;  %v1147_v22 = vshrl.u32 %v1146_v59, 30  ;;  %v1313_v20 = vshll.u32 %v15257_v39, %v1307_v26  ;;  %v1316_v35 = vshll.u32 %v15258_v27, %v1307_v26 }
 0x14c   : > { %v1323_v46 = vshrl.u32 %v15261_v41, %v1308_v40  ;;  %v1312_v38 = vor.u32 %v1311_v31, %v1310_v36  ;;  %v1319_v54 = vshll.u32 %v15259_v44, %v1307_v26  ;;  %v1401_v61 = vshrl.u32 %v1400_v57, 23 }
 0x14d   : > { %v1257_v50 = vclz %v7896_v21  ;;  %v1148_v42 = vshll.u32 %v1147_v22, 30  ;;  %v1315_v17 = vor.u32 %v1314_v33, %v1313_v20  ;;  %v1318_v15 = vor.u32 %v1317_v23, %v1316_v35 }
 0x14e   : > { %v1322_v59 = vshll.u32 %v15260_v53, %v1307_v26  ;;  %v9515_v18 = vsel %vm1191_vm13, %v1275_v34, %v1251_v48  ;;  %v1309_v16 = vshrl.u32 %v15256_v0, %v1308_v40  ;;  %v1321_v13 = vor.u32 %v1320_v30, %v1319_v54 }
 0x14f   : > { %v7897_v28 = vadd.s32 4294967294, %v1257_v50  ;;  %v9518_v21 = vsub.s32 %v1145_v56, %v1148_v42  ;;  %v1171_v31 = vsub.s32 4, %v1147_v22  ;;  %vm1325_vm0 = vcmp.lt.s32.totalorder %v9502_v25, 1 }
 0x150   : > { %v1324_v36 = vor.u32 %v1323_v46, %v1322_v59  ;;  %v15263_v57 = vand.u32 2147483647, %v9371_v52  ;;  %vm1327_vm2 = vcmp.lt.s32.totalorder %v9502_v25, 3  ;;  %vm1328_vm3 = vcmp.lt.s32.totalorder %v9502_v25, 4 }
 0x151   : > { %vm7898_vm15 = vcmp.lt.s32.totalorder %v7897_v28, 0  ;;  %v1151_v33 = vsub.s32 0, %v9518_v21  ;;  %v15266_v23 = vand.u32 2147483647, %v9373_v45  ;;  %v1330_v30 = vsel %vm1328_vm3, %v1318_v15, 2102212464 }
 0x152   : > { %vm9524_vm1 = vcmp.le.f32.partialorder %v15263_v57, 0.7853982  ;;  %v1260_v48 = vsel %vm7898_vm15, 0, %v7897_v28  ;;  %v1333_v50 = vsel %vm1325_vm0, %v1312_v38, %v1315_v17  ;;  %v1334_v35 = vsel %vm1328_vm3, %v1321_v13, 920167782 }
 0x153   : > { %v1261_v40 = vsub.s32 32, %v1260_v48  ;;  %v1265_v56 = vsub.s32 4294967266, %v1260_v48  ;;  %vm9533_vm4 = vcmp.le.f32.partialorder %v15266_v23, 0.7853982  ;;  %v1262_v28 = vshll.u32 %v9479_v19, %v1260_v48 }
 0x154   : > { %v7892_v20 = vmin.u32 %v1151_v33, %v9518_v21  ;;  %v1337_v46 = vsel %vm1325_vm0, %v1315_v17, %v1318_v15  ;;  %v1335_v59 = vsel %vm1327_vm2, %v1318_v15, %v1334_v35  ;;  %v1338_v57 = vsel %vm1328_vm3, %v1324_v36, 1326507024 }
 0x155   : > { %v1263_v42 = vshrl.u32 %v1245_v62, %v1261_v40  ;;  %v1266_v54 = vadd.s32 127, %v1265_v56  ;;  %vm1326_vm5 = vcmp.lt.s32.totalorder %v9502_v25, 2  ;;  %v1329_v14 = vsel %vm1325_vm0, %v1309_v16, %v1312_v38 }
 0x156   : > { %v1153_v23 = vclz %v7892_v20  ;;  %v1331_v19 = vsel %vm1327_vm2, %v1315_v17, %v1330_v30  ;;  %v1336_v11 = vsel %vm1326_vm5, %v1333_v50, %v1335_v59  ;;  %v1339_v62 = vsel %vm1327_vm2, %v1321_v13, %v1338_v57 }
 0x157   : > { %v1264_v48 = vor.u32 %v1263_v42, %v1262_v28  ;;  %v1267_v33 = vshll.u32 %v1266_v54, 23  ;;  %v1340_v56 = vsel %vm1326_vm5, %v1337_v46, %v1339_v62  ;;  %v1172_v35 = vsel %vm1087_vm14, %v1171_v31, %v1147_v22 }
 0x158   : > { %v7893_v40 = vadd.s32 4294967294, %v1153_v23  ;;  %v9553_v15 = vmul.u32.u64.low %v9498_v32, %v1336_v11  ;;  %v9554_v36 = vmul.u32.u64.high %v9498_v32, %v1336_v11, %v9553_v15  ;;  %v1141_v17 = vadd.s32 %v9456_v24, %v9462_v47 }
 0x159   : > { %v1268_v20 = vor.u32 4788187, %v1267_v33  ;;  %v9559_v16 = vmul.u32.u64.low %v9498_v32, %v1340_v56  ;;  %v9560_v38 = vmul.u32.u64.high %v9498_v32, %v1340_v56, %v9559_v16  ;;  %v1332_v25 = vsel %vm1326_vm5, %v1329_v14, %v1331_v19 }
 0x15a   : > { %vm7894_vm6 = vcmp.lt.s32.totalorder %v7893_v40, 0  ;;  %v7903_v13 = vadd.s32 4294967169, %v1401_v61  ;;  %v1271_v50 = vcvt.s32.f32 %v1264_v48  ;;  %v1278_v11 = vsel %vm9524_vm1, 0, %v9515_v18  ;;  %v719_v48 = vpop.permute.xlu0 %718 }
 0x15b   : > { %v1269_v30 = vand.u32 2147483647, %v1268_v20  ;;  %v1156_v28 = vsel %vm7894_vm6, 0, %v7893_v40  ;;  %v1174_v22 = vsel %vm9533_vm4, 0, %v1172_v35  ;;  %v1351_v31 = vadd.s32 1, %v9554_v36 }
 0x15c   : > { %v1157_v46 = vsub.s32 32, %v1156_v28  ;;  %v1161_v42 = vsub.s32 4294967266, %v1156_v28  ;;  %v1348_v24 = vmul.u32 %v9498_v32, %v1332_v25  ;;  %vm1350_vm7 = vc.u32 %v9560_v38, %v9553_v15 }
 0x15d   : > { %v1272_v54 = vmul.f32 %v1271_v50, %v1269_v30  ;;  %v1407_v14 = vadd.s32 1, %v7903_v13  ;;  %v1158_v47 = vshll.u32 %v9518_v21, %v1156_v28  ;;  %v1352_v18 = vsel %vm1350_vm7, %v1351_v31, %v9554_v36 }
 0x15e   : > { %v1159_v61 = vshrl.u32 %v1141_v17, %v1157_v46  ;;  %v1162_v59 = vadd.s32 127, %v1161_v42  ;;  %v1282_v23 = vadd.s32 3, %v1278_v11  ;;  %v1353_v19 = vadd.s32 %v1352_v18, %v1348_v24 }
 0x15f   : > { %v1273_v57 = vxor.u32 2147483648, %v1272_v54  ;;  %vm1408_vm8 = vcmp.gt.s32.totalorder %v1407_v14, 0  ;;  %v1178_v40 = vadd.s32 3, %v1174_v22  ;;  %v15269_v35 = vand.u32 2147483647, %v9474_v29 }
 0x160   : > { %v1160_v33 = vor.u32 %v1159_v61, %v1158_v47  ;;  %v1163_v62 = vshll.u32 %v1162_v59, 23  ;;  %v1409_v56 = vsel %vm1408_vm8, %v1407_v14, 0  ;;  %v1354_v20 = vadd.s32 536870912, %v1353_v19 }
 0x161   : > { %v1274_v32 = vsel %vm1191_vm13, %v1273_v57, %v1272_v54  ;;  %v1404_v21 = vand.u32 8388607, %v15269_v35  ;;  %v1411_v16 = vand.u32 31, %v1409_v56  ;;  %v636_v36 = vadd.f32 %v9358_v49, %v9487_v37 }
 0x162   : > { %v1277_v17 = vsel %vm9524_vm1, %v9371_v52, %v1274_v32  ;;  %v1164_v25 = vor.u32 4788187, %v1163_v62  ;;  %v9584_v13 = vmul.f32 %v9363_v51, %v719_v48  ;;  %v9586_v30 = vand.u32 3, %v1282_v23 }
 0x163   : > { %8462 = vcosq.f32 %v1277_v17  ;;  %vm1295_vm9 = vcmp.lt.s32.totalorder %v9385_v55, 0  ;;  %v1355_v50 = vshrl.u32 %v1354_v20, 30  ;;  %v1412_v11 = vsub.s32 32, %v1411_v16 }
 0x164   : > { %8464 = vsinq.f32 %v1277_v17  ;;  %v1165_v28 = vand.u32 2147483647, %v1164_v25  ;;  %v1167_v46 = vcvt.s32.f32 %v1160_v33  ;;  %v9589_v42 = vand.u32 3, %v1178_v40 }
 0x165   : > { %v1356_v37 = vshll.u32 %v1355_v50, 30  ;;  %v1405_v22 = vor.u32 8388608, %v1404_v21  ;;  %v1415_v26 = vshrl.u32 %v15257_v39, %v1412_v11  ;;  %v9593_v31 = vadd.f32 %v9495_v43, %v636_v36 }
 0x166   : > { %v1168_v54 = vmul.f32 %v1167_v46, %v1165_v28  ;;  %v9596_v24 = vadd.s32 %v9553_v15, %v9560_v38  ;;  %v1418_v14 = vshrl.u32 %v15258_v27, %v1412_v11  ;;  %v1421_v47 = vshrl.u32 %v15259_v44, %v1412_v11 }
 0x167   : > { %vm1288_vm10 = vcmp.eq.s32.totalorder %v9586_v30, 2  ;;  %v9601_v61 = vsub.s32 %v1353_v19, %v1356_v37  ;;  %v9603_v59 = vshrl.u32 %v1409_v56, 5  ;;  %v1414_v18 = vshll.u32 %v15256_v0, %v1411_v16 }
 0x168   : > { %v1424_v57 = vshrl.u32 %v15260_v53, %v1412_v11  ;;  %vm1285_vm11 = vcmp.eq.s32.totalorder %v9586_v30, 0  ;;  %v1169_v43 = vxor.u32 2147483648, %v1168_v54  ;;  %v1379_v15 = vsub.s32 4, %v1355_v50 }
 0x169   : > { %v1417_v38 = vshll.u32 %v15257_v39, %v1411_v16  ;;  %v1420_v23 = vshll.u32 %v15258_v27, %v1411_v16  ;;  %vm1284_vm12 = vcmp.lt.s32.totalorder %v9586_v30, 2  ;;  %v1359_v19 = vsub.s32 0, %v9601_v61 }
 0x16a   : > { %v1416_v48 = vor.u32 %v1415_v26, %v1414_v18  ;;  %v1423_v33 = vshll.u32 %v15259_v44, %v1411_v16  ;;  %v9613_v62 = vshll.u32 %v1405_v22, 8  ;;  %vm1281_vm13 = vweird.f32 %v9371_v52 }
 0x16b   : > { %v1170_v40 = vsel %vm1087_vm14, %v1169_v43, %v1168_v54  ;;  %v1419_v56 = vor.u32 %v1418_v14, %v1417_v38  ;;  %v1422_v32 = vor.u32 %v1421_v47, %v1420_v23  ;;  %v1427_v20 = vshrl.u32 %v15261_v41, %v1412_v11 }
 0x16c   : > { %v1173_v35 = vsel %vm9533_vm4, %v9373_v45, %v1170_v40  ;;  %v7900_v21 = vmin.u32 %v1359_v19, %v9601_v61  ;;  %v1425_v36 = vor.u32 %v1424_v57, %v1423_v33  ;;  %v1426_v17 = vshll.u32 %v15260_v53, %v1411_v16 }
 0x16d   : > { %8466 = vcosq.f32 %v1173_v35  ;;  %v9627_v25 = vsel %vm1295_vm9, %v1379_v15, %v1355_v50  ;;  %v1413_v28 = vshrl.u32 %v15256_v0, %v1412_v11  ;;  %vm1429_vm14 = vcmp.lt.s32.totalorder %v9603_v59, 1  ;;  %v8463_v46 = vpop.eup %8462 }
 0x16e   : > { %8468 = vsinq.f32 %v1173_v35  ;;  %v15270_v34 = vand.u32 2147483647, %v9385_v55  ;;  %v1361_v22 = vclz %v7900_v21  ;;  %v1428_v26 = vor.u32 %v1427_v20, %v1426_v17  ;;  %v8465_v16 = vpop.eup %8464 }
 0x16f   : > { %vm1430_vm0 = vcmp.lt.s32.totalorder %v9603_v59, 2  ;;  %v1289_v50 = vxor.u32 2147483648, %v8463_v46  ;;  %vm1431_vm1 = vcmp.lt.s32.totalorder %v9603_v59, 3  ;;  %vm1432_vm2 = vcmp.lt.s32.totalorder %v9603_v59, 4 }
 0x170   : > { %vm9633_vm15 = vcmp.le.f32.partialorder %v15270_v34, 0.7853982  ;;  %v1437_v11 = vsel %vm1429_vm14, %v1416_v48, %v1419_v56  ;;  %v1286_v54 = vxor.u32 2147483648, %v8465_v16  ;;  %v7901_v14 = vadd.s32 4294967294, %v1361_v22 }
 0x171   : > { %v1434_v47 = vsel %vm1432_vm2, %v1422_v32, 2102212464  ;;  %v1438_v18 = vsel %vm1432_vm2, %v1425_v36, 920167782  ;;  %v1290_v57 = vsel %vm1288_vm10, %v1289_v50, %v8465_v16  ;;  %v1433_v43 = vsel %vm1429_vm14, %v1413_v28, %v1416_v48 }
 0x172   : > { %v1439_v15 = vsel %vm1431_vm1, %v1422_v32, %v1438_v18  ;;  %v1441_v38 = vsel %vm1429_vm14, %v1419_v56, %v1422_v32  ;;  %v1287_v23 = vsel %vm1285_vm11, %v8463_v46, %v1286_v54  ;;  %vm7902_vm3 = vcmp.lt.s32.totalorder %v7901_v14, 0 }
 0x173   : > { %v1440_v19 = vsel %vm1430_vm0, %v1437_v11, %v1439_v15  ;;  %v1442_v33 = vsel %vm1432_vm2, %v1428_v26, 1326507024  ;;  %v1291_v40 = vsel %vm1284_vm12, %v1287_v23, %v1290_v57  ;;  %v1364_v20 = vsel %vm7902_vm3, 0, %v7901_v14 }
 0x174   : > { %v1435_v48 = vsel %vm1431_vm1, %v1419_v56, %v1434_v47  ;;  %v1443_v35 = vsel %vm1431_vm1, %v1425_v36, %v1442_v33  ;;  %v1292_v32 = vsel %vm1281_vm13, nan, %v1291_v40  ;;  %vm1177_vm4 = vweird.f32 %v9373_v45 }
 0x175   : > { %v1365_v21 = vsub.s32 32, %v1364_v20  ;;  %v1366_v17 = vshll.u32 %v9601_v61, %v1364_v20  ;;  %v1369_v28 = vsub.s32 4294967266, %v1364_v20  ;;  %7742 = vst [vmem:[%s9666_s10 + $0x8] sm:$0xff] %v1292_v32  ;;  %v1444_v30 = vsel %vm1430_vm0, %v1441_v38, %v1443_v35 }
 0x176   : > { %v9672_v56 = vmul.u32.u64.low %v9613_v62, %v1440_v19  ;;  %v9673_v46 = vmul.u32.u64.high %v9613_v62, %v1440_v19, %v9672_v56  ;;  %v1504_v52 = vand.u32 2139095040, %v9593_v31  ;;  %vm1180_vm5 = vcmp.lt.s32.totalorder %v9589_v42, 2 }
 0x177   : > { %v1367_v36 = vshrl.u32 %v9596_v24, %v1365_v21  ;;  %v1370_v34 = vadd.s32 127, %v1369_v28  ;;  %v9679_v61 = vmul.u32.u64.low %v9613_v62, %v1444_v30  ;;  %v9680_v22 = vmul.u32.u64.high %v9613_v62, %v1444_v30, %v9679_v61  ;;  %v8467_v26 = vpop.eup %8466 }
 0x178   : > { %vm1184_vm6 = vcmp.eq.s32.totalorder %v9589_v42, 2  ;;  %v1382_v16 = vsel %vm9633_vm15, 0, %v9627_v25  ;;  %v1505_v50 = vshrl.u32 %v1504_v52, 23  ;;  %v8469_v11 = vpop.eup %8468  ;;  %v1185_v54 = vxor.u32 2147483648, %v8467_v26 }
 0x179   : > { %v1368_v14 = vor.u32 %v1367_v36, %v1366_v17  ;;  %v1371_v47 = vshll.u32 %v1370_v34, 23  ;;  %v1436_v24 = vsel %vm1430_vm0, %v1433_v43, %v1435_v48  ;;  %v1182_v18 = vxor.u32 2147483648, %v8469_v11 }
 0x17a   : > { %v1455_v57 = vadd.s32 1, %v9673_v46  ;;  %v1501_v15 = vand.u32 2147483647, %v9593_v31  ;;  %v7907_v38 = vadd.s32 4294967169, %v1505_v50  ;;  %vm1181_vm7 = vcmp.eq.s32.totalorder %v9589_v42, 0 }
 0x17b   : > { %v1186_v23 = vsel %vm1184_vm6, %v1185_v54, %v8469_v11  ;;  %v1372_v19 = vor.u32 4788187, %v1371_v47  ;;  %v1386_v25 = vadd.s32 3, %v1382_v16  ;;  %v1183_v33 = vsel %vm1181_vm7, %v8467_v26, %v1182_v18 }
 0x17c   : > { %v1452_v40 = vmul.u32 %v9613_v62, %v1436_v24  ;;  %vm1454_vm8 = vc.u32 %v9680_v22, %v9672_v56  ;;  %v1511_v59 = vadd.s32 1, %v7907_v38  ;;  %v1187_v43 = vsel %vm1180_vm5, %v1183_v33, %v1186_v23 }
 0x17d   : > { %v1373_v20 = vand.u32 2147483647, %v1372_v19  ;;  %v1375_v48 = vcvt.s32.f32 %v1368_v14  ;;  %v1456_v35 = vsel %vm1454_vm8, %v1455_v57, %v9673_v46  ;;  %v1188_v32 = vsel %vm1177_vm4, nan, %v1187_v43 }
 0x17e   : > { %v1457_v21 = vadd.s32 %v1456_v35, %v1452_v40  ;;  %v1508_v17 = vand.u32 8388607, %v1501_v15  ;;  %vm1512_vm10 = vcmp.gt.s32.totalorder %v1511_v59, 0  ;;  %7741 = vst [vmem:[%s9666_s10] sm:$0xff] %v1188_v32  ;;  %v9705_v30 = vadd.f32 %v9584_v13, %v9483_v63 }
 0x17f   : > { %v1376_v62 = vmul.f32 %v1375_v48, %v1373_v20  ;;  %v1513_v28 = vsel %vm1512_vm10, %v1511_v59, 0  ;;  %v569_v46 = vmul.f32 %v9343_v58, %v9172_v60  ;;  %v9711_v45 = vmul.f32 %v9343_v58, %v9174_v4 }
 0x180   : > { %v1458_v42 = vadd.s32 536870912, %v1457_v21  ;;  %v1515_v52 = vand.u32 31, %v1513_v28  ;;  %v9713_v34 = vand.u32 3, %v1386_v25  ;;  %v1509_v26 = vor.u32 8388608, %v1508_v17 }
 0x181   : > { %v1377_v36 = vxor.u32 2147483648, %v1376_v62  ;;  %v9719_v13 = vshrl.u32 %v1513_v28, 5  ;;  %v1608_v60 = vand.u32 2139095040, %v9705_v30  ;;  %v9737_v23 = vadd.f32 %v9358_v49, %v569_v46 }
 0x182   : > { %v9715_v61 = vshrl.u32 %v1458_v42, 30  ;;  %v1516_v16 = vsub.s32 32, %v1515_v52  ;;  %v1518_v50 = vshll.u32 %v15256_v0, %v1515_v52  ;;  %v1521_v54 = vshll.u32 %v15257_v39, %v1515_v52 }
 0x183   : > { %v1378_v63 = vsel %vm1295_vm9, %v1377_v36, %v1376_v62  ;;  %v1524_v14 = vshll.u32 %v15258_v27, %v1515_v52  ;;  %v1527_v38 = vshll.u32 %v15259_v44, %v1515_v52  ;;  %v1530_v33 = vshll.u32 %v15260_v53, %v1515_v52 }
 0x184   : > { %v1381_v4 = vsel %vm9633_vm15, %v9385_v55, %v1378_v63  ;;  %v1460_v11 = vshll.u32 %v9715_v61, 30  ;;  %v1519_v47 = vshrl.u32 %v15257_v39, %v1516_v16  ;;  %v1522_v24 = vshrl.u32 %v15258_v27, %v1516_v16 }
 0x185   : > { %8470 = vcosq.f32 %v1381_v4  ;;  %v1525_v18 = vshrl.u32 %v15259_v44, %v1516_v16  ;;  %v1528_v37 = vshrl.u32 %v15260_v53, %v1516_v16  ;;  %v1531_v20 = vshrl.u32 %v15261_v41, %v1516_v16 }
 0x186   : > { %8472 = vsinq.f32 %v1381_v4  ;;  %v9732_v57 = vsub.s32 %v1457_v21, %v1460_v11  ;;  %v1520_v19 = vor.u32 %v1519_v47, %v1518_v50  ;;  %v1523_v25 = vor.u32 %v1522_v24, %v1521_v54 }
 0x187   : > { %v1526_v59 = vor.u32 %v1525_v18, %v1524_v14  ;;  %v1529_v43 = vor.u32 %v1528_v37, %v1527_v38  ;;  %vm1392_vm9 = vcmp.eq.s32.totalorder %v9713_v34, 2  ;;  %v1453_v48 = vadd.s32 %v9672_v56, %v9680_v22 }
 0x188   : > { %v1463_v40 = vsub.s32 0, %v9732_v57  ;;  %v9745_v35 = vshll.u32 %v1509_v26, 8  ;;  %v1605_v32 = vand.u32 2147483647, %v9705_v30  ;;  %v1609_v21 = vshrl.u32 %v1608_v60, 23 }
 0x189   : > { %vm1389_vm11 = vcmp.eq.s32.totalorder %v9713_v34, 0  ;;  %vm1399_vm12 = vcmp.lt.s32.totalorder %v9474_v29, 0  ;;  %v1532_v62 = vor.u32 %v1531_v20, %v1530_v33  ;;  %vm1533_vm13 = vcmp.lt.s32.totalorder %v9719_v13, 1 }
 0x18a   : > { %v7904_v17 = vmin.u32 %v1463_v40, %v9732_v57  ;;  %vm1536_vm14 = vcmp.lt.s32.totalorder %v9719_v13, 4  ;;  %vm1388_vm15 = vcmp.lt.s32.totalorder %v9713_v34, 2  ;;  %v1483_v56 = vsub.s32 4, %v9715_v61 }
 0x18b   : > { %v1517_v22 = vshrl.u32 %v15256_v0, %v1516_v16  ;;  %v1541_v28 = vsel %vm1533_vm13, %v1520_v19, %v1523_v25  ;;  %v1542_v42 = vsel %vm1536_vm14, %v1529_v43, 920167782  ;;  %vm1385_vm0 = vweird.f32 %v9385_v55 }
 0x18c   : > { %v1465_v52 = vclz %v7904_v17  ;;  %vm1535_vm1 = vcmp.lt.s32.totalorder %v9719_v13, 3  ;;  %v1538_v46 = vsel %vm1536_vm14, %v1526_v59, 2102212464  ;;  %v1545_v36 = vsel %vm1533_vm13, %v1523_v25, %v1526_v59 }
 0x18d   : > { %vm1534_vm2 = vcmp.lt.s32.totalorder %v9719_v13, 2  ;;  %v1543_v26 = vsel %vm1535_vm1, %v1526_v59, %v1542_v42  ;;  %v1546_v63 = vsel %vm1536_vm14, %v1532_v62, 1326507024  ;;  %v7911_v50 = vadd.s32 4294967169, %v1609_v21 }
 0x18e   : > { %v7905_v60 = vadd.s32 4294967294, %v1465_v52  ;;  %v1537_v16 = vsel %vm1533_vm13, %v1517_v22, %v1520_v19  ;;  %v1544_v4 = vsel %vm1534_vm2, %v1541_v28, %v1543_v26  ;;  %v1547_v11 = vsel %vm1535_vm1, %v1529_v43, %v1546_v63 }
 0x18f   : > { %v8471_v54 = vpop.eup %8470  ;;  %v1539_v14 = vsel %vm1535_vm1, %v1523_v25, %v1538_v46  ;;  %v1548_v47 = vsel %vm1534_vm2, %v1545_v36, %v1547_v11  ;;  %v9770_v24 = vmul.u32.u64.low %v9745_v35, %v1544_v4  ;;  %v9771_v18 = vmul.u32.u64.high %v9745_v35, %v1544_v4, %v9770_v24 }
 0x190   : > { %v8473_v38 = vpop.eup %8472  ;;  %v1393_v37 = vxor.u32 2147483648, %v8471_v54  ;;  %vm7906_vm3 = vcmp.lt.s32.totalorder %v7905_v60, 0  ;;  %v9775_v33 = vmul.u32.u64.low %v9745_v35, %v1548_v47  ;;  %v9776_v19 = vmul.u32.u64.high %v9745_v35, %v1548_v47, %v9775_v33 }
 0x191   : > { %v1390_v40 = vxor.u32 2147483648, %v8473_v38  ;;  %v1468_v59 = vsel %vm7906_vm3, 0, %v7905_v60  ;;  %v9780_v25 = vand.u32 8388607, %v1605_v32  ;;  %v1615_v43 = vadd.s32 1, %v7911_v50 }
 0x192   : > { %v1394_v20 = vsel %vm1392_vm9, %v1393_v37, %v8473_v38  ;;  %v1469_v21 = vsub.s32 32, %v1468_v59  ;;  %v1473_v17 = vsub.s32 4294967266, %v1468_v59  ;;  %v1540_v62 = vsel %vm1534_vm2, %v1537_v16, %v1539_v14 }
 0x193   : > { %v1391_v22 = vsel %vm1389_vm11, %v8471_v54, %v1390_v40  ;;  %v1484_v28 = vsel %vm1399_vm12, %v1483_v56, %v9715_v61  ;;  %v1559_v42 = vadd.s32 1, %v9771_v18  ;;  %vm1616_vm4 = vcmp.gt.s32.totalorder %v1615_v43, 0  ;;  %v723_v61 = vpop.permute.xlu1 %722  ;;  %v727_v40 = vpop.permute.xlu0 %726 }
 0x194   : > { %v1395_v52 = vsel %vm1388_vm15, %v1391_v22, %v1394_v20  ;;  %v1470_v46 = vshll.u32 %v9732_v57, %v1468_v59  ;;  %v1471_v36 = vshrl.u32 %v1453_v48, %v1469_v21  ;;  %v1474_v26 = vadd.s32 127, %v1473_v17 }
 0x195   : > { %v1396_v13 = vsel %vm1385_vm0, nan, %v1395_v52  ;;  %v1556_v63 = vmul.u32 %v9745_v35, %v1540_v62  ;;  %vm1558_vm5 = vc.u32 %v9776_v19, %v9770_v24  ;;  %v1617_v50 = vsel %vm1616_vm4, %v1615_v43, 0 }
 0x196   : > { %v638_v56 = vadd.f32 %v9358_v49, %v9711_v45  ;;  %7743 = vst [vmem:[%s9666_s10 + $0x10] sm:$0xff] %v1396_v13  ;;  %v1472_v34 = vor.u32 %v1471_v36, %v1470_v46  ;;  %v1475_v60 = vshll.u32 %v1474_v26, 23  ;;  %v1560_v57 = vsel %vm1558_vm5, %v1559_v42, %v9771_v18 }
 0x197   : > { %v9806_v48 = vmul.f32 %v9343_v58, %v9180_v1  ;;  %v15273_v55 = vand.u32 2147483647, %v9474_v29  ;;  %v1561_v16 = vadd.s32 %v1560_v57, %v1556_v63  ;;  %v1619_v4 = vand.u32 31, %v1617_v50 }
 0x198   : > { %v1476_v11 = vor.u32 4788187, %v1475_v60  ;;  %v1613_v45 = vor.u32 8388608, %v9780_v25  ;;  %v963_v54 = vmul.f32 %v9363_v51, %v723_v61  ;;  %v1479_v14 = vcvt.s32.f32 %v1472_v34 }
 0x199   : > { %vm9810_vm6 = vcmp.le.f32.partialorder %v15273_v55, 0.7853982  ;;  %v1562_v47 = vadd.s32 536870912, %v1561_v16  ;;  %v1618_v1 = vshrl.u32 %v1617_v50, 5  ;;  %v1620_v58 = vsub.s32 32, %v1619_v4 }
 0x19a   : > { %v1486_v49 = vsel %vm9810_vm6, 0, %v1484_v28  ;;  %v1477_v18 = vand.u32 2147483647, %v1476_v11  ;;  %v1622_v38 = vshll.u32 %v15256_v0, %v1619_v4  ;;  %v1625_v37 = vshll.u32 %v15257_v39, %v1619_v4 }
 0x19b   : > { %v1628_v33 = vshll.u32 %v15258_v27, %v1619_v4  ;;  %v1563_v59 = vshrl.u32 %v1562_v47, 30  ;;  %v1623_v43 = vshrl.u32 %v15257_v39, %v1620_v58  ;;  %v1626_v20 = vshrl.u32 %v15258_v27, %v1620_v58 }
 0x19c   : > { %v1631_v25 = vshll.u32 %v15259_v44, %v1619_v4  ;;  %v1480_v21 = vmul.f32 %v1479_v14, %v1477_v18  ;;  %v1629_v17 = vshrl.u32 %v15259_v44, %v1620_v58  ;;  %v1632_v62 = vshrl.u32 %v15260_v53, %v1620_v58 }
 0x19d   : > { %v1635_v22 = vshrl.u32 %v15261_v41, %v1620_v58  ;;  %v1564_v28 = vshll.u32 %v1563_v59, 30  ;;  %v1624_v42 = vor.u32 %v1623_v43, %v1622_v38  ;;  %v1634_v52 = vshll.u32 %v15260_v53, %v1619_v4 }
 0x19e   : > { %v9829_v46 = vmul.f32 %v9363_v51, %v727_v40  ;;  %v1481_v36 = vxor.u32 2147483648, %v1480_v21  ;;  %vm1503_vm7 = vcmp.lt.s32.totalorder %v9593_v31, 0  ;;  %v1627_v26 = vor.u32 %v1626_v20, %v1625_v37 }
 0x19f   : > { %v1630_v13 = vor.u32 %v1629_v17, %v1628_v33  ;;  %v1633_v63 = vor.u32 %v1632_v62, %v1631_v25  ;;  %v1490_v50 = vadd.s32 3, %v1486_v49  ;;  %v9832_v61 = vsub.s32 %v1561_v16, %v1564_v28 }
 0x1a0   : > { %vm1637_vm8 = vcmp.lt.s32.totalorder %v1618_v1, 1  ;;  %v9834_v34 = vadd.f32 %v963_v54, %v638_v56  ;;  %v1482_v60 = vsel %vm1399_vm12, %v1481_v36, %v1480_v21  ;;  %v1621_v57 = vshrl.u32 %v15256_v0, %v1620_v58 }
 0x1a1   : > { %v1636_v55 = vor.u32 %v1635_v22, %v1634_v52  ;;  %vm1638_vm10 = vcmp.lt.s32.totalorder %v1618_v1, 2  ;;  %v1485_v51 = vsel %vm9810_vm6, %v9474_v29, %v1482_v60  ;;  %v1567_v4 = vsub.s32 0, %v9832_v61 }
 0x1a2   : > { %vm1639_vm9 = vcmp.lt.s32.totalorder %v1618_v1, 3  ;;  %vm1640_vm11 = vcmp.lt.s32.totalorder %v1618_v1, 4  ;;  %8474 = vcosq.f32 %v1485_v51  ;;  %vm9845_vm13 = vcmp.le.f32.partialorder %v1501_v15, 0.7853982 }
 0x1a3   : > { %v1642_v16 = vsel %vm1640_vm11, %v1630_v13, 2102212464  ;;  %v1645_v11 = vsel %vm1637_vm8, %v1624_v42, %v1627_v26  ;;  %v1646_v49 = vsel %vm1640_vm11, %v1633_v63, 920167782  ;;  %8476 = vsinq.f32 %v1485_v51 }
 0x1a4   : > { %v7908_v54 = vmin.u32 %v1567_v4, %v9832_v61  ;;  %v1587_v35 = vsub.s32 4, %v1563_v59  ;;  %v1647_v14 = vsel %vm1639_vm9, %v1630_v13, %v1646_v49  ;;  %v1649_v58 = vsel %vm1637_vm8, %v1627_v26, %v1630_v13 }
 0x1a5   : > { %v1648_v47 = vsel %vm1638_vm10, %v1645_v11, %v1647_v14  ;;  %v1650_v18 = vsel %vm1640_vm11, %v1636_v55, 1326507024  ;;  %v1653_v38 = vshll.u32 %v1613_v45, 8  ;;  %v1491_v15 = vand.u32 3, %v1490_v50 }
 0x1a6   : > { %v1569_v37 = vclz %v7908_v54  ;;  %v1641_v33 = vsel %vm1637_vm8, %v1621_v57, %v1624_v42  ;;  %v1643_v40 = vsel %vm1639_vm9, %v1627_v26, %v1642_v16  ;;  %v1651_v43 = vsel %vm1639_vm9, %v1633_v63, %v1650_v18 }
 0x1a7   : > { %v9857_v20 = vmul.u32.u64.low %v1653_v38, %v1648_v47  ;;  %v9858_v25 = vmul.u32.u64.high %v1653_v38, %v1648_v47, %v9857_v20  ;;  %v1712_v21 = vand.u32 2139095040, %v9834_v34  ;;  %v1588_v62 = vsel %vm1503_vm7, %v1587_v35, %v1563_v59 }
 0x1a8   : > { %v7909_v17 = vadd.s32 4294967294, %v1569_v37  ;;  %v1652_v45 = vsel %vm1638_vm10, %v1649_v58, %v1651_v43  ;;  %v1709_v22 = vand.u32 2147483647, %v9834_v34  ;;  %v1644_v28 = vsel %vm1638_vm10, %v1641_v33, %v1643_v40 }
 0x1a9   : > { %v9867_v42 = vmul.u32.u64.low %v1653_v38, %v1652_v45  ;;  %v9868_v52 = vmul.u32.u64.high %v1653_v38, %v1652_v45, %v9867_v42  ;;  %v1713_v36 = vshrl.u32 %v1712_v21, 23  ;;  %vm1492_vm12 = vcmp.lt.s32.totalorder %v1491_v15, 2  ;;  %v9886_v21 = vld [vmem:[%s15171_s1] ss:$0 sm:$0xff] }
 0x1aa   : > { %vm1493_vm14 = vcmp.eq.s32.totalorder %v1491_v15, 0  ;;  %vm1496_vm15 = vcmp.eq.s32.totalorder %v1491_v15, 2  ;;  %vm7910_vm0 = vcmp.lt.s32.totalorder %v7909_v17, 0  ;;  %v1557_v26 = vadd.s32 %v9770_v24, %v9776_v19  ;;  %v9897_v45 = vld [vmem:[%s15172_s2] ss:$0 sm:$0xff] }
 0x1ab   : > { %v1572_v13 = vsel %vm7910_vm0, 0, %v7909_v17  ;;  %v1663_v59 = vadd.s32 1, %v9858_v25  ;;  %v7915_v63 = vadd.s32 4294967169, %v1713_v36  ;;  %v1590_v1 = vsel %vm9845_vm13, 0, %v1588_v62 }
 0x1ac   : > { %v1573_v50 = vsub.s32 32, %v1572_v13  ;;  %v1577_v60 = vsub.s32 4294967266, %v1572_v13  ;;  %v1660_v57 = vmul.u32 %v1653_v38, %v1644_v28  ;;  %v8475_v55 = vpop.eup %8474  ;;  %v1574_v51 = vshll.u32 %v9832_v61, %v1572_v13 }
 0x1ad   : > { %vm1662_vm1 = vc.u32 %v9868_v52, %v9857_v20  ;;  %v1716_v4 = vand.u32 8388607, %v1709_v22  ;;  %v1719_v24 = vadd.s32 1, %v7915_v63  ;;  %v8477_v19 = vpop.eup %8476  ;;  %v1497_v16 = vxor.u32 2147483648, %v8475_v55 }
 0x1ae   : > { %v1575_v11 = vshrl.u32 %v1557_v26, %v1573_v50  ;;  %v1578_v49 = vadd.s32 127, %v1577_v60  ;;  %v1664_v54 = vsel %vm1662_vm1, %v1663_v59, %v9858_v25  ;;  %v1494_v35 = vxor.u32 2147483648, %v8477_v19 }
 0x1af   : > { %v1594_v14 = vadd.s32 3, %v1590_v1  ;;  %v1665_v47 = vadd.s32 %v1664_v54, %v1660_v57  ;;  %vm1720_vm2 = vcmp.gt.s32.totalorder %v1719_v24, 0  ;;  %v1498_v58 = vsel %vm1496_vm15, %v1497_v16, %v8477_v19 }
 0x1b0   : > { %v1576_v61 = vor.u32 %v1575_v11, %v1574_v51  ;;  %v1579_v18 = vshll.u32 %v1578_v49, 23  ;;  %v1721_v38 = vsel %vm1720_vm2, %v1719_v24, 0  ;;  %v1495_v37 = vsel %vm1493_vm14, %v8475_v55, %v1494_v35 }
 0x1b1   : > { %v1666_v33 = vadd.s32 536870912, %v1665_v47  ;;  %v1717_v40 = vor.u32 8388608, %v1716_v4  ;;  %v1723_v43 = vand.u32 31, %v1721_v38  ;;  %v9890_v25 = vmul.f32 %v9886_v21, %v9178_v2 }
 0x1b2   : > { %vm1489_vm3 = vweird.f32 %v9474_v29  ;;  %v1499_v17 = vsel %vm1492_vm12, %v1495_v37, %v1498_v58  ;;  %v1580_v62 = vor.u32 4788187, %v1579_v18  ;;  %v9901_v28 = vadd.f32 %v9897_v45, %v9806_v48 }
 0x1b3   : > { %v1500_v42 = vsel %vm1489_vm3, nan, %v1499_v17  ;;  %v1667_v36 = vshrl.u32 %v1666_v33, 30  ;;  %v1724_v26 = vsub.s32 32, %v1723_v43  ;;  %v1583_v13 = vcvt.s32.f32 %v1576_v61 }
 0x1b4   : > { %7744 = vst [vmem:[%s9666_s10 + $0x18] sm:$0xff] %v1500_v42  ;;  %v1581_v2 = vand.u32 2147483647, %v1580_v62  ;;  %v9904_v59 = vand.u32 3, %v1594_v14  ;;  %v9908_v29 = vadd.f32 %v9829_v46, %v9737_v23  ;;  %v1726_v63 = vshll.u32 %v15256_v0, %v1723_v43 }
 0x1b5   : > { %v1668_v15 = vshll.u32 %v1667_v36, 30  ;;  %v1727_v50 = vshrl.u32 %v15257_v39, %v1724_v26  ;;  %v9912_v60 = vshll.u32 %v1717_v40, 8  ;;  %v1730_v1 = vshrl.u32 %v15258_v27, %v1724_v26 }
 0x1b6   : > { %v1584_v48 = vmul.f32 %v1583_v13, %v1581_v2  ;;  %v1733_v57 = vshrl.u32 %v15259_v44, %v1724_v26  ;;  %v1736_v55 = vshrl.u32 %v15260_v53, %v1724_v26  ;;  %v1661_v51 = vadd.s32 %v9857_v20, %v9868_v52 }
 0x1b7   : > { %v9919_v4 = vsub.s32 %v1665_v47, %v1668_v15  ;;  %v1722_v23 = vshrl.u32 %v1721_v38, 5  ;;  %v1729_v46 = vshll.u32 %v15257_v39, %v1723_v43  ;;  %v1728_v19 = vor.u32 %v1727_v50, %v1726_v63 }
 0x1b8   : > { %v1585_v24 = vxor.u32 2147483648, %v1584_v48  ;;  %v1732_v16 = vshll.u32 %v15258_v27, %v1723_v43  ;;  %v1735_v11 = vshll.u32 %v15259_v44, %v1723_v43  ;;  %vm1607_vm4 = vcmp.lt.s32.totalorder %v9705_v30, 0 }
 0x1b9   : > { %v1671_v49 = vsub.s32 0, %v9919_v4  ;;  %v1731_v54 = vor.u32 %v1730_v1, %v1729_v46  ;;  %v1738_v35 = vshll.u32 %v15260_v53, %v1723_v43  ;;  %v1739_v20 = vshrl.u32 %v15261_v41, %v1724_v26 }
 0x1ba   : > { %v1586_v52 = vsel %vm1503_vm7, %v1585_v24, %v1584_v48  ;;  %v1734_v14 = vor.u32 %v1733_v57, %v1732_v16  ;;  %v1737_v47 = vor.u32 %v1736_v55, %v1735_v11  ;;  %v1816_v58 = vand.u32 2139095040, %v9908_v29 }
 0x1bb   : > { %v1589_v61 = vsel %vm9845_vm13, %v9593_v31, %v1586_v52  ;;  %v7912_v18 = vmin.u32 %v1671_v49, %v9919_v4  ;;  %v1691_v38 = vsub.s32 4, %v1667_v36  ;;  %v1740_v37 = vor.u32 %v1739_v20, %v1738_v35 }
 0x1bc   : > { %8478 = vcosq.f32 %v1589_v61  ;;  %v1725_v33 = vshrl.u32 %v15256_v0, %v1724_v26  ;;  %vm1741_vm5 = vcmp.lt.s32.totalorder %v1722_v23, 1  ;;  %vm1742_vm6 = vcmp.lt.s32.totalorder %v1722_v23, 2 }
 0x1bd   : > { %8480 = vsinq.f32 %v1589_v61  ;;  %v1673_v40 = vclz %v7912_v18  ;;  %vm1744_vm7 = vcmp.lt.s32.totalorder %v1722_v23, 4  ;;  %v1749_v43 = vsel %vm1741_vm5, %v1728_v19, %v1731_v54 }
 0x1be   : > { %vm1743_vm8 = vcmp.lt.s32.totalorder %v1722_v23, 3  ;;  %v1746_v17 = vsel %vm1744_vm7, %v1734_v14, 2102212464  ;;  %v1750_v62 = vsel %vm1744_vm7, %v1737_v47, 920167782  ;;  %v1753_v42 = vsel %vm1741_vm5, %v1731_v54, %v1734_v14 }
 0x1bf   : > { %v7913_v2 = vadd.s32 4294967294, %v1673_v40  ;;  %v1745_v56 = vsel %vm1741_vm5, %v1725_v33, %v1728_v19  ;;  %v1751_v13 = vsel %vm1743_vm8, %v1734_v14, %v1750_v62  ;;  %v1754_v15 = vsel %vm1744_vm7, %v1740_v37, 1326507024  ;;  %v731_v33 = vpop.permute.xlu1 %730 }
 0x1c0   : > { %v1747_v63 = vsel %vm1743_vm8, %v1731_v54, %v1746_v17  ;;  %v1752_v50 = vsel %vm1742_vm6, %v1749_v43, %v1751_v13  ;;  %v1755_v48 = vsel %vm1743_vm8, %v1737_v47, %v1754_v15  ;;  %v1817_v1 = vshrl.u32 %v1816_v58, 23 }
 0x1c1   : > { %vm7914_vm10 = vcmp.lt.s32.totalorder %v7913_v2, 0  ;;  %v1756_v26 = vsel %vm1742_vm6, %v1753_v42, %v1755_v48  ;;  %v9939_v57 = vmul.u32.u64.low %v9912_v60, %v1752_v50  ;;  %v9940_v55 = vmul.u32.u64.high %v9912_v60, %v1752_v50, %v9939_v57  ;;  %v735_v48 = vpop.permute.xlu0 %734 }
 0x1c2   : > { %v1676_v46 = vsel %vm7914_vm10, 0, %v7913_v2  ;;  %v1692_v24 = vsel %vm1607_vm4, %v1691_v38, %v1667_v36  ;;  %v9946_v19 = vmul.u32.u64.low %v9912_v60, %v1756_v26  ;;  %v9947_v16 = vmul.u32.u64.high %v9912_v60, %v1756_v26, %v9946_v19 }
 0x1c3   : > { %v1677_v11 = vsub.s32 32, %v1676_v46  ;;  %v1681_v49 = vsub.s32 4294967266, %v1676_v46  ;;  %v1748_v54 = vsel %vm1742_vm6, %v1745_v56, %v1747_v63  ;;  %v7919_v35 = vadd.s32 4294967169, %v1817_v1  ;;  %v9973_v63 = vld [vmem:[%s15171_s1 + $0x1] ss:$0 sm:$0xff] }
 0x1c4   : > { %vm1596_vm9 = vcmp.lt.s32.totalorder %v9904_v59, 2  ;;  %vm1597_vm11 = vcmp.eq.s32.totalorder %v9904_v59, 0  ;;  %vm9954_vm13 = vcmp.le.f32.partialorder %v1605_v32, 0.7853982  ;;  %v1678_v36 = vshll.u32 %v9919_v4, %v1676_v46 }
 0x1c5   : > { %v1679_v52 = vshrl.u32 %v1661_v51, %v1677_v11  ;;  %v1682_v14 = vadd.s32 127, %v1681_v49  ;;  %v1767_v47 = vadd.s32 1, %v9940_v55  ;;  %v1823_v58 = vadd.s32 1, %v7919_v35 }
 0x1c6   : > { %v8479_v23 = vpop.eup %8478  ;;  %vm1600_vm12 = vcmp.eq.s32.totalorder %v9904_v59, 2  ;;  %v1694_v61 = vsel %vm9954_vm13, 0, %v1692_v24  ;;  %v1764_v18 = vmul.u32 %v9912_v60, %v1748_v54  ;;  %vm1766_vm14 = vc.u32 %v9947_v16, %v9939_v57 }
 0x1c7   : > { %v8481_v32 = vpop.eup %8480  ;;  %v1601_v38 = vxor.u32 2147483648, %v8479_v23  ;;  %v1680_v37 = vor.u32 %v1679_v52, %v1678_v36  ;;  %v1683_v4 = vshll.u32 %v1682_v14, 23  ;;  %v1768_v51 = vsel %vm1766_vm14, %v1767_v47, %v9940_v55 }
 0x1c8   : > { %v1598_v40 = vxor.u32 2147483648, %v8481_v32  ;;  %v1769_v43 = vadd.s32 %v1768_v51, %v1764_v18  ;;  %v1813_v17 = vand.u32 2147483647, %v9908_v29  ;;  %vm1824_vm15 = vcmp.gt.s32.totalorder %v1823_v58, 0 }
 0x1c9   : > { %v1602_v62 = vsel %vm1600_vm12, %v1601_v38, %v8481_v32  ;;  %v1684_v42 = vor.u32 4788187, %v1683_v4  ;;  %v1698_v2 = vadd.s32 3, %v1694_v61  ;;  %v1825_v56 = vsel %vm1824_vm15, %v1823_v58, 0 }
 0x1ca   : > { %v1599_v60 = vsel %vm1597_vm11, %v8479_v23, %v1598_v40  ;;  %v1770_v13 = vadd.s32 536870912, %v1769_v43  ;;  %v1827_v15 = vand.u32 31, %v1825_v56  ;;  %v965_v50 = vmul.f32 %v9973_v63, %v731_v33 }
 0x1cb   : > { %vm1593_vm0 = vweird.f32 %v9593_v31  ;;  %v1603_v1 = vsel %vm1596_vm9, %v1599_v60, %v1602_v62  ;;  %v1685_v26 = vand.u32 2147483647, %v1684_v42  ;;  %v1687_v55 = vcvt.s32.f32 %v1680_v37 }
 0x1cc   : > { %v1604_v46 = vsel %vm1593_vm0, nan, %v1603_v1  ;;  %v1771_v24 = vshrl.u32 %v1770_v13, 30  ;;  %v1820_v19 = vand.u32 8388607, %v1813_v17  ;;  %v1828_v11 = vsub.s32 32, %v1827_v15 }
 0x1cd   : > { %v9983_v49 = vadd.f32 %v9897_v45, %v9890_v25  ;;  %7745 = vst [vmem:[%s9666_s10 + $0x20] sm:$0xff] %v1604_v46  ;;  %v1688_v54 = vmul.f32 %v1687_v55, %v1685_v26  ;;  %v9986_v35 = vand.u32 3, %v1698_v2  ;;  %v9989_v31 = vmul.f32 %v9973_v63, %v735_v48 }
 0x1ce   : > { %v1772_v59 = vshll.u32 %v1771_v24, 30  ;;  %v1830_v36 = vshll.u32 %v15256_v0, %v1827_v15  ;;  %v1831_v52 = vshrl.u32 %v15257_v39, %v1828_v11  ;;  %v9994_v14 = vadd.f32 %v965_v50, %v9901_v28 }
 0x1cf   : > { %v1689_v47 = vxor.u32 2147483648, %v1688_v54  ;;  %v1834_v58 = vshrl.u32 %v15258_v27, %v1828_v11  ;;  %v1837_v25 = vshrl.u32 %v15259_v44, %v1828_v11  ;;  %v1840_v23 = vshrl.u32 %v15260_v53, %v1828_v11 }
 0x1d0   : > { %v9999_v61 = vsub.s32 %v1769_v43, %v1772_v59  ;;  %v1821_v18 = vor.u32 8388608, %v1820_v19  ;;  %v1826_v32 = vshrl.u32 %v1825_v56, 5  ;;  %v1833_v38 = vshll.u32 %v15257_v39, %v1827_v15 }
 0x1d1   : > { %v1690_v37 = vsel %vm1607_vm4, %v1689_v47, %v1688_v54  ;;  %vm1711_vm1 = vcmp.lt.s32.totalorder %v9834_v34, 0  ;;  %v1832_v28 = vor.u32 %v1831_v52, %v1830_v36  ;;  %v1836_v4 = vshll.u32 %v15258_v27, %v1827_v15 }
 0x1d2   : > { %v1839_v51 = vshll.u32 %v15259_v44, %v1827_v15  ;;  %v1693_v33 = vsel %vm9954_vm13, %v9705_v30, %v1690_v37  ;;  %v1775_v40 = vsub.s32 0, %v9999_v61  ;;  %v1835_v43 = vor.u32 %v1834_v58, %v1833_v38 }
 0x1d3   : > { %v1842_v62 = vshll.u32 %v15260_v53, %v1827_v15  ;;  %8482 = vcosq.f32 %v1693_v33  ;;  %v1838_v42 = vor.u32 %v1837_v25, %v1836_v4  ;;  %v1843_v56 = vshrl.u32 %v15261_v41, %v1828_v11 }
 0x1d4   : > { %v1841_v2 = vor.u32 %v1840_v23, %v1839_v51  ;;  %8484 = vsinq.f32 %v1693_v33  ;;  %vm10015_vm2 = vcmp.le.f32.partialorder %v1709_v22, 0.7853982  ;;  %v7916_v20 = vmin.u32 %v1775_v40, %v9999_v61 }
 0x1d5   : > { %v1795_v13 = vsub.s32 4, %v1771_v24  ;;  %v1861_v50 = vshll.u32 %v1821_v18, 8  ;;  %v1829_v48 = vshrl.u32 %v15256_v0, %v1828_v11  ;;  %v1844_v1 = vor.u32 %v1843_v56, %v1842_v62 }
 0x1d6   : > { %vm1845_vm3 = vcmp.lt.s32.totalorder %v1826_v32, 1  ;;  %vm1846_vm4 = vcmp.lt.s32.totalorder %v1826_v32, 2  ;;  %v1777_v15 = vclz %v7916_v20  ;;  %vm1847_vm5 = vcmp.lt.s32.totalorder %v1826_v32, 3 }
 0x1d7   : > { %vm1848_vm6 = vcmp.lt.s32.totalorder %v1826_v32, 4  ;;  %v1853_v26 = vsel %vm1845_vm3, %v1832_v28, %v1835_v43  ;;  %v1857_v19 = vsel %vm1845_vm3, %v1835_v43, %v1838_v42  ;;  %vm1701_vm7 = vcmp.eq.s32.totalorder %v9986_v35, 0 }
 0x1d8   : > { %v1850_v55 = vsel %vm1848_vm6, %v1838_v42, 2102212464  ;;  %v1854_v46 = vsel %vm1848_vm6, %v1841_v2, 920167782  ;;  %v1858_v22 = vsel %vm1848_vm6, %v1844_v1, 1326507024  ;;  %v1849_v59 = vsel %vm1845_vm3, %v1829_v48, %v1832_v28 }
 0x1d9   : > { %v7917_v54 = vadd.s32 4294967294, %v1777_v15  ;;  %v1855_v36 = vsel %vm1847_vm5, %v1838_v42, %v1854_v46  ;;  %v1859_v52 = vsel %vm1847_vm5, %v1841_v2, %v1858_v22  ;;  %v1851_v47 = vsel %vm1847_vm5, %v1835_v43, %v1850_v55 }
 0x1da   : > { %v1856_v11 = vsel %vm1846_vm4, %v1853_v26, %v1855_v36  ;;  %v1860_v58 = vsel %vm1846_vm4, %v1857_v19, %v1859_v52  ;;  %v1920_v25 = vand.u32 2139095040, %v9994_v14  ;;  %v1796_v23 = vsel %vm1711_vm1, %v1795_v13, %v1771_v24 }
 0x1db   : > { %vm7918_vm8 = vcmp.lt.s32.totalorder %v7917_v54, 0  ;;  %v10027_v18 = vmul.u32.u64.low %v1861_v50, %v1860_v58  ;;  %v10028_v38 = vmul.u32.u64.high %v1861_v50, %v1860_v58, %v10027_v18  ;;  %v1765_v33 = vadd.s32 %v9939_v57, %v9947_v16 }
 0x1dc   : > { %v1780_v37 = vsel %vm7918_vm8, 0, %v7917_v54  ;;  %v10030_v4 = vmul.u32.u64.low %v1861_v50, %v1856_v11  ;;  %v10031_v51 = vmul.u32.u64.high %v1861_v50, %v1856_v11, %v10030_v4  ;;  %v1921_v28 = vshrl.u32 %v1920_v25, 23 }
 0x1dd   : > { %v1781_v40 = vsub.s32 32, %v1780_v37  ;;  %v1785_v43 = vsub.s32 4294967266, %v1780_v37  ;;  %v1852_v62 = vsel %vm1846_vm4, %v1849_v59, %v1851_v47  ;;  %v8483_v42 = vpop.eup %8482  ;;  %vm1704_vm10 = vcmp.eq.s32.totalorder %v9986_v35, 2 }
 0x1de   : > { %v1798_v24 = vsel %vm10015_vm2, 0, %v1796_v23  ;;  %v1917_v2 = vand.u32 2147483647, %v9994_v14  ;;  %v7923_v56 = vadd.s32 4294967169, %v1921_v28  ;;  %v8485_v20 = vpop.eup %8484  ;;  %v1705_v13 = vxor.u32 2147483648, %v8483_v42 }
 0x1df   : > { %v1782_v48 = vshll.u32 %v9999_v61, %v1780_v37  ;;  %v1783_v1 = vshrl.u32 %v1765_v33, %v1781_v40  ;;  %v1786_v15 = vadd.s32 127, %v1785_v43  ;;  %v1702_v57 = vxor.u32 2147483648, %v8485_v20 }
 0x1e0   : > { %v1868_v16 = vmul.u32 %v1861_v50, %v1852_v62  ;;  %vm1870_vm9 = vc.u32 %v10028_v38, %v10030_v4  ;;  %v1871_v32 = vadd.s32 1, %v10031_v51  ;;  %v1706_v26 = vsel %vm1704_vm10, %v1705_v13, %v8485_v20 }
 0x1e1   : > { %v1784_v55 = vor.u32 %v1783_v1, %v1782_v48  ;;  %v1787_v46 = vshll.u32 %v1786_v15, 23  ;;  %v1927_v19 = vadd.s32 1, %v7923_v56  ;;  %vm1697_vm11 = vweird.f32 %v9705_v30 }
 0x1e2   : > { %vm1700_vm13 = vcmp.lt.s32.totalorder %v9986_v35, 2  ;;  %v1703_v61 = vsel %vm1701_vm7, %v8483_v42, %v1702_v57  ;;  %v1872_v22 = vsel %vm1870_vm9, %v1871_v32, %v10031_v51  ;;  %v10052_v36 = vadd.f32 %v9989_v31, %v9983_v49 }
 0x1e3   : > { %v1707_v50 = vsel %vm1700_vm13, %v1703_v61, %v1706_v26  ;;  %v1788_v54 = vor.u32 4788187, %v1787_v46  ;;  %v1873_v59 = vadd.s32 %v1872_v22, %v1868_v16  ;;  %v1802_v47 = vadd.s32 3, %v1798_v24 }
 0x1e4   : > { %v1708_v52 = vsel %vm1697_vm11, nan, %v1707_v50  ;;  %v1924_v11 = vand.u32 8388607, %v1917_v2  ;;  %vm1928_vm12 = vcmp.gt.s32.totalorder %v1927_v19, 0  ;;  %v1791_v58 = vcvt.s32.f32 %v1784_v55 }
 0x1e5   : > { %7746 = vst [vmem:[%s9666_s10 + $0x28] sm:$0xff] %v1708_v52  ;;  %v1789_v30 = vand.u32 2147483647, %v1788_v54  ;;  %v1874_v35 = vadd.s32 536870912, %v1873_v59  ;;  %v1929_v25 = vsel %vm1928_vm12, %v1927_v19, 0  ;;  %v10059_v23 = vmul.f32 %v9886_v21, %v9184_v3 }
 0x1e6   : > { %v1931_v18 = vand.u32 31, %v1929_v25  ;;  %v10063_v49 = vmul.f32 %v9886_v21, %v9186_v6  ;;  %vm1815_vm14 = vcmp.lt.s32.totalorder %v9908_v29, 0  ;;  %v10066_v51 = vand.u32 3, %v1802_v47 }
 0x1e7   : > { %v1792_v31 = vmul.f32 %v1791_v58, %v1789_v30  ;;  %v1875_v37 = vshrl.u32 %v1874_v35, 30  ;;  %v1925_v28 = vor.u32 8388608, %v1924_v11  ;;  %v2024_v40 = vand.u32 2139095040, %v10052_v36 }
 0x1e8   : > { %v1932_v33 = vsub.s32 32, %v1931_v18  ;;  %v1930_v42 = vshrl.u32 %v1929_v25, 5  ;;  %v1934_v3 = vshll.u32 %v15256_v0, %v1931_v18  ;;  %v1937_v6 = vshll.u32 %v15257_v39, %v1931_v18 }
 0x1e9   : > { %v1793_v43 = vxor.u32 2147483648, %v1792_v31  ;;  %v1876_v62 = vshll.u32 %v1875_v37, 30  ;;  %v1940_v1 = vshll.u32 %v15258_v27, %v1931_v18  ;;  %v1899_v16 = vsub.s32 4, %v1875_v37 }
 0x1ea   : > { %v1935_v24 = vshrl.u32 %v15257_v39, %v1932_v33  ;;  %v1938_v56 = vshrl.u32 %v15258_v27, %v1932_v33  ;;  %v1941_v20 = vshrl.u32 %v15259_v44, %v1932_v33  ;;  %v1944_v15 = vshrl.u32 %v15260_v53, %v1932_v33 }
 0x1eb   : > { %v1794_v13 = vsel %vm1711_vm1, %v1793_v43, %v1792_v31  ;;  %v10076_v48 = vsub.s32 %v1873_v59, %v1876_v62  ;;  %v1943_v26 = vshll.u32 %v15259_v44, %v1931_v18  ;;  %v1946_v22 = vshll.u32 %v15260_v53, %v1931_v18 }
 0x1ec   : > { %v1797_v57 = vsel %vm10015_vm2, %v9834_v34, %v1794_v13  ;;  %v1936_v32 = vor.u32 %v1935_v24, %v1934_v3  ;;  %v1939_v46 = vor.u32 %v1938_v56, %v1937_v6  ;;  %v1942_v19 = vor.u32 %v1941_v20, %v1940_v1 }
 0x1ed   : > { %8486 = vcosq.f32 %v1797_v57  ;;  %v1879_v55 = vsub.s32 0, %v10076_v48  ;;  %v1945_v61 = vor.u32 %v1944_v15, %v1943_v26  ;;  %v1947_v50 = vshrl.u32 %v15261_v41, %v1932_v33 }
 0x1ee   : > { %8488 = vsinq.f32 %v1797_v57  ;;  %vm10089_vm15 = vcmp.le.f32.partialorder %v1813_v17, 0.7853982  ;;  %v1965_v59 = vshll.u32 %v1925_v28, 8  ;;  %v2021_v52 = vand.u32 2147483647, %v10052_v36 }
 0x1ef   : > { %v7920_v54 = vmin.u32 %v1879_v55, %v10076_v48  ;;  %v2025_v47 = vshrl.u32 %v2024_v40, 23  ;;  %v1900_v11 = vsel %vm1815_vm14, %v1899_v16, %v1875_v37  ;;  %v1933_v30 = vshrl.u32 %v15256_v0, %v1932_v33 }
 0x1f0   : > { %v1948_v58 = vor.u32 %v1947_v50, %v1946_v22  ;;  %vm1949_vm0 = vcmp.lt.s32.totalorder %v1930_v42, 1  ;;  %vm1808_vm1 = vcmp.eq.s32.totalorder %v10066_v51, 2  ;;  %vm1950_vm2 = vcmp.lt.s32.totalorder %v1930_v42, 2 }
 0x1f1   : > { %v1881_v35 = vclz %v7920_v54  ;;  %vm1951_vm3 = vcmp.lt.s32.totalorder %v1930_v42, 3  ;;  %vm1952_vm4 = vcmp.lt.s32.totalorder %v1930_v42, 4  ;;  %vm1805_vm5 = vcmp.eq.s32.totalorder %v10066_v51, 0 }
 0x1f2   : > { %v1954_v17 = vsel %vm1952_vm4, %v1942_v19, 2102212464  ;;  %v1957_v25 = vsel %vm1949_vm0, %v1936_v32, %v1939_v46  ;;  %v1958_v18 = vsel %vm1952_vm4, %v1945_v61, 920167782  ;;  %v1961_v31 = vsel %vm1949_vm0, %v1939_v46, %v1942_v19 }
 0x1f3   : > { %vm1804_vm6 = vcmp.lt.s32.totalorder %v10066_v51, 2  ;;  %v7921_v28 = vadd.s32 4294967294, %v1881_v35  ;;  %v1953_v37 = vsel %vm1949_vm0, %v1933_v30, %v1936_v32  ;;  %v1959_v40 = vsel %vm1951_vm3, %v1942_v19, %v1958_v18 }
 0x1f4   : > { %v1962_v33 = vsel %vm1952_vm4, %v1948_v58, 1326507024  ;;  %vm1801_vm7 = vweird.f32 %v9834_v34  ;;  %v1955_v43 = vsel %vm1951_vm3, %v1939_v46, %v1954_v17  ;;  %v1960_v62 = vsel %vm1950_vm2, %v1957_v25, %v1959_v40 }
 0x1f5   : > { %v1963_v3 = vsel %vm1951_vm3, %v1945_v61, %v1962_v33  ;;  %v7927_v24 = vadd.s32 4294967169, %v2025_v47  ;;  %vm7922_vm8 = vcmp.lt.s32.totalorder %v7921_v28, 0  ;;  %v1869_v13 = vadd.s32 %v10030_v4, %v10028_v38 }
 0x1f6   : > { %v1964_v6 = vsel %vm1950_vm2, %v1961_v31, %v1963_v3  ;;  %v10104_v56 = vmul.u32.u64.low %v1965_v59, %v1960_v62  ;;  %v10105_v20 = vmul.u32.u64.high %v1965_v59, %v1960_v62, %v10104_v56  ;;  %v1884_v1 = vsel %vm7922_vm8, 0, %v7921_v28 }
 0x1f7   : > { %v10110_v15 = vmul.u32.u64.low %v1965_v59, %v1964_v6  ;;  %v10111_v57 = vmul.u32.u64.high %v1965_v59, %v1964_v6, %v10110_v15  ;;  %v8487_v16 = vpop.eup %8486  ;;  %v1885_v32 = vsub.s32 32, %v1884_v1  ;;  %v1889_v26 = vsub.s32 4294967266, %v1884_v1 }
 0x1f8   : > { %v1956_v55 = vsel %vm1950_vm2, %v1953_v37, %v1955_v43  ;;  %v2031_v46 = vadd.s32 1, %v7927_v24  ;;  %v8489_v19 = vpop.eup %8488  ;;  %v1809_v61 = vxor.u32 2147483648, %v8487_v16  ;;  %v1886_v22 = vshll.u32 %v10076_v48, %v1884_v1  ;;  %v739_v37 = vpop.permute.xlu1 %738 }
 0x1f9   : > { %v1902_v50 = vsel %vm10089_vm15, 0, %v1900_v11  ;;  %v2028_v38 = vand.u32 8388607, %v2021_v52  ;;  %v1806_v4 = vxor.u32 2147483648, %v8489_v19  ;;  %v1887_v54 = vshrl.u32 %v1869_v13, %v1885_v32  ;;  %v743_v43 = vpop.permute.xlu0 %742 }
 0x1fa   : > { %v1890_v47 = vadd.s32 127, %v1889_v26  ;;  %v1975_v30 = vadd.s32 1, %v10105_v20  ;;  %v1810_v42 = vsel %vm1808_vm1, %v1809_v61, %v8489_v19  ;;  %v1972_v58 = vmul.u32 %v1965_v59, %v1956_v55 }
 0x1fb   : > { %vm1974_vm10 = vc.u32 %v10111_v57, %v10104_v56  ;;  %vm2032_vm9 = vcmp.gt.s32.totalorder %v2031_v46, 0  ;;  %v1807_v48 = vsel %vm1805_vm5, %v8487_v16, %v1806_v4  ;;  %v1888_v11 = vor.u32 %v1887_v54, %v1886_v22 }
 0x1fc   : > { %v1891_v35 = vshll.u32 %v1890_v47, 23  ;;  %v1976_v17 = vsel %vm1974_vm10, %v1975_v30, %v10105_v20  ;;  %v1811_v25 = vsel %vm1804_vm6, %v1807_v48, %v1810_v42  ;;  %v1906_v18 = vadd.s32 3, %v1902_v50 }
 0x1fd   : > { %v1977_v31 = vadd.s32 %v1976_v17, %v1972_v58  ;;  %v2033_v28 = vsel %vm2032_vm9, %v2031_v46, 0  ;;  %v1812_v59 = vsel %vm1801_vm7, nan, %v1811_v25  ;;  %v2029_v33 = vor.u32 8388608, %v2028_v38 }
 0x1fe   : > { %v1892_v40 = vor.u32 4788187, %v1891_v35  ;;  %v10133_v62 = vadd.f32 %v9897_v45, %v10059_v23  ;;  %v642_v3 = vadd.f32 %v9897_v45, %v10063_v49  ;;  %7747 = vst [vmem:[%s9666_s10 + $0x30] sm:$0xff] %v1812_v59  ;;  %v2035_v24 = vand.u32 31, %v2033_v28 }
 0x1ff   : > { %v1978_v51 = vadd.s32 536870912, %v1977_v31  ;;  %v10140_v6 = vmul.f32 %v9886_v21, %v9192_v8  ;;  %v1895_v34 = vcvt.s32.f32 %v1888_v11  ;;  %v967_v13 = vmul.f32 %v9973_v63, %v739_v37 }
 0x200   : > { %v1893_v20 = vand.u32 2147483647, %v1892_v40  ;;  %v10143_v1 = vand.u32 3, %v1906_v18  ;;  %v2036_v16 = vsub.s32 32, %v2035_v24  ;;  %v10146_v23 = vmul.f32 %v9973_v63, %v743_v43 }
 0x201   : > { %v1979_v15 = vshrl.u32 %v1978_v51, 30  ;;  %vm1919_vm11 = vcmp.lt.s32.totalorder %v9994_v14, 0  ;;  %v10149_v49 = vshrl.u32 %v2033_v28, 5  ;;  %v2038_v26 = vshll.u32 %v15256_v0, %v2035_v24 }
 0x202   : > { %v1896_v32 = vmul.f32 %v1895_v34, %v1893_v20  ;;  %v10152_v8 = vshll.u32 %v2029_v33, 8  ;;  %v2039_v55 = vshrl.u32 %v15257_v39, %v2036_v16  ;;  %v2041_v46 = vshll.u32 %v15257_v39, %v2035_v24 }
 0x203   : > { %v1980_v21 = vshll.u32 %v1979_v15, 30  ;;  %v2044_v19 = vshll.u32 %v15258_v27, %v2035_v24  ;;  %v2042_v22 = vshrl.u32 %v15258_v27, %v2036_v16  ;;  %v2045_v50 = vshrl.u32 %v15259_v44, %v2036_v16 }
 0x204   : > { %v1897_v61 = vxor.u32 2147483648, %v1896_v32  ;;  %v2048_v38 = vshrl.u32 %v15260_v53, %v2036_v16  ;;  %v2047_v54 = vshll.u32 %v15259_v44, %v2035_v24  ;;  %v2050_v47 = vshll.u32 %v15260_v53, %v2035_v24 }
 0x205   : > { %v10160_v4 = vsub.s32 %v1977_v31, %v1980_v21  ;;  %v2051_v30 = vshrl.u32 %v15261_v41, %v2036_v16  ;;  %vm10169_vm13 = vcmp.le.f32.partialorder %v1917_v2, 0.7853982  ;;  %v2040_v48 = vor.u32 %v2039_v55, %v2038_v26 }
 0x206   : > { %v1898_v42 = vsel %vm1815_vm14, %v1897_v61, %v1896_v32  ;;  %v2043_v11 = vor.u32 %v2042_v22, %v2041_v46  ;;  %v2046_v35 = vor.u32 %v2045_v50, %v2044_v19  ;;  %v2003_v18 = vsub.s32 4, %v1979_v15 }
 0x207   : > { %v1901_v17 = vsel %vm10089_vm15, %v9908_v29, %v1898_v42  ;;  %v1983_v25 = vsub.s32 0, %v10160_v4  ;;  %v2049_v31 = vor.u32 %v2048_v38, %v2047_v54  ;;  %v2052_v28 = vor.u32 %v2051_v30, %v2050_v47 }
 0x208   : > { %8490 = vcosq.f32 %v1901_v17  ;;  %vm2053_vm12 = vcmp.lt.s32.totalorder %v10149_v49, 1  ;;  %v10178_v37 = vadd.f32 %v967_v13, %v642_v3  ;;  %vm2054_vm14 = vcmp.lt.s32.totalorder %v10149_v49, 2 }
 0x209   : > { %8492 = vsinq.f32 %v1901_v17  ;;  %v7924_v2 = vmin.u32 %v1983_v25, %v10160_v4  ;;  %vm2056_vm0 = vcmp.lt.s32.totalorder %v10149_v49, 4  ;;  %v2037_v60 = vshrl.u32 %v15256_v0, %v2036_v16 }
 0x20a   : > { %v2058_v59 = vsel %vm2056_vm0, %v2046_v35, 2102212464  ;;  %v2061_v40 = vsel %vm2053_vm12, %v2040_v48, %v2043_v11  ;;  %v2062_v33 = vsel %vm2056_vm0, %v2049_v31, 920167782  ;;  %v2004_v51 = vsel %vm1919_vm11, %v2003_v18, %v1979_v15 }
 0x20b   : > { %v1985_v43 = vclz %v7924_v2  ;;  %vm2055_vm15 = vcmp.lt.s32.totalorder %v10149_v49, 3  ;;  %v2065_v3 = vsel %vm2053_vm12, %v2043_v11, %v2046_v35  ;;  %v2057_v24 = vsel %vm2053_vm12, %v2037_v60, %v2040_v48 }
 0x20c   : > { %v2063_v20 = vsel %vm2055_vm15, %v2046_v35, %v2062_v33  ;;  %v2066_v34 = vsel %vm2056_vm0, %v2052_v28, 1326507024  ;;  %v2128_v13 = vand.u32 2139095040, %v10178_v37  ;;  %vm1909_vm1 = vcmp.eq.s32.totalorder %v10143_v1, 0 }
 0x20d   : > { %v7925_v32 = vadd.s32 4294967294, %v1985_v43  ;;  %v2059_v26 = vsel %vm2055_vm15, %v2043_v11, %v2058_v59  ;;  %v2064_v16 = vsel %vm2054_vm14, %v2061_v40, %v2063_v20  ;;  %v2067_v21 = vsel %vm2055_vm15, %v2049_v31, %v2066_v34 }
 0x20e   : > { %vm1908_vm2 = vcmp.lt.s32.totalorder %v10143_v1, 2  ;;  %v2068_v15 = vsel %vm2054_vm14, %v2065_v3, %v2067_v21  ;;  %v10195_v55 = vmul.u32.u64.low %v10152_v8, %v2064_v16  ;;  %v10196_v46 = vmul.u32.u64.high %v10152_v8, %v2064_v16, %v10195_v55 }
 0x20f   : > { %v2129_v19 = vshrl.u32 %v2128_v13, 23  ;;  %vm7926_vm3 = vcmp.lt.s32.totalorder %v7925_v32, 0  ;;  %v2006_v61 = vsel %vm10169_vm13, 0, %v2004_v51  ;;  %vm1912_vm4 = vcmp.eq.s32.totalorder %v10143_v1, 2 }
 0x210   : > { %v10202_v22 = vmul.u32.u64.low %v10152_v8, %v2068_v15  ;;  %v10203_v50 = vmul.u32.u64.high %v10152_v8, %v2068_v15, %v10202_v22  ;;  %v1988_v38 = vsel %vm7926_vm3, 0, %v7925_v32  ;;  %v10208_v47 = vadd.f32 %v10146_v23, %v10133_v62 }
 0x211   : > { %v7931_v54 = vadd.s32 4294967169, %v2129_v19  ;;  %v1973_v30 = vadd.s32 %v10104_v56, %v10111_v57  ;;  %v1989_v42 = vsub.s32 32, %v1988_v38  ;;  %v1993_v48 = vsub.s32 4294967266, %v1988_v38 }
 0x212   : > { %v2060_v11 = vsel %vm2054_vm14, %v2057_v24, %v2059_v26  ;;  %v8491_v35 = vpop.eup %8490  ;;  %v2010_v17 = vadd.s32 3, %v2006_v61  ;;  %v2079_v25 = vadd.s32 1, %v10196_v46  ;;  %v2125_v18 = vand.u32 2147483647, %v10178_v37 }
 0x213   : > { %v2135_v31 = vadd.s32 1, %v7931_v54  ;;  %v8493_v28 = vpop.eup %8492  ;;  %v1913_v2 = vxor.u32 2147483648, %v8491_v35  ;;  %v1990_v62 = vshll.u32 %v10160_v4, %v1988_v38  ;;  %v1991_v23 = vshrl.u32 %v1973_v30, %v1989_v42 }
 0x214   : > { %v1994_v60 = vadd.s32 127, %v1993_v48  ;;  %v1910_v59 = vxor.u32 2147483648, %v8493_v28  ;;  %v2076_v56 = vmul.u32 %v10152_v8, %v2060_v11  ;;  %vm2078_vm5 = vc.u32 %v10203_v50, %v10195_v55 }
 0x215   : > { %vm2136_vm6 = vcmp.gt.s32.totalorder %v2135_v31, 0  ;;  %v1914_v57 = vsel %vm1912_vm4, %v1913_v2, %v8493_v28  ;;  %v1992_v49 = vor.u32 %v1991_v23, %v1990_v62  ;;  %v2080_v33 = vsel %vm2078_vm5, %v2079_v25, %v10196_v46 }
 0x216   : > { %v1995_v40 = vshll.u32 %v1994_v60, 23  ;;  %v1911_v4 = vsel %vm1909_vm1, %v8491_v35, %v1910_v59  ;;  %v2081_v43 = vadd.s32 %v2080_v33, %v2076_v56  ;;  %v2132_v51 = vand.u32 8388607, %v2125_v18 }
 0x217   : > { %v2137_v8 = vsel %vm2136_vm6, %v2135_v31, 0  ;;  %vm1905_vm7 = vweird.f32 %v9908_v29  ;;  %v1915_v3 = vsel %vm1908_vm2, %v1911_v4, %v1914_v57  ;;  %v2232_v20 = vand.u32 2139095040, %v10208_v47 }
 0x218   : > { %v1996_v24 = vor.u32 4788187, %v1995_v40  ;;  %v1916_v34 = vsel %vm1905_vm7, nan, %v1915_v3  ;;  %v2082_v13 = vadd.s32 536870912, %v2081_v43  ;;  %v2139_v32 = vand.u32 31, %v2137_v8 }
 0x219   : > { %v10233_v26 = vadd.f32 %v9897_v45, %v10140_v6  ;;  %7748 = vst [vmem:[%s9666_s10 + $0x38] sm:$0xff] %v1916_v34  ;;  %v1999_v21 = vcvt.s32.f32 %v1992_v49  ;;  %v10236_v15 = vand.u32 3, %v2010_v17  ;;  %v2133_v29 = vor.u32 8388608, %v2132_v51 }
 0x21a   : > { %v1997_v16 = vand.u32 2147483647, %v1996_v24  ;;  %v2083_v46 = vshrl.u32 %v2082_v13, 30  ;;  %v2140_v19 = vsub.s32 32, %v2139_v32  ;;  %v2138_v61 = vshrl.u32 %v2137_v8, 5 }
 0x21b   : > { %v2142_v22 = vshll.u32 %v15256_v0, %v2139_v32  ;;  %v2233_v38 = vshrl.u32 %v2232_v20, 23  ;;  %v2145_v42 = vshll.u32 %v15257_v39, %v2139_v32  ;;  %v2148_v45 = vshll.u32 %v15258_v27, %v2139_v32 }
 0x21c   : > { %v2000_v1 = vmul.f32 %v1999_v21, %v1997_v16  ;;  %v2084_v54 = vshll.u32 %v2083_v46, 30  ;;  %v2143_v30 = vshrl.u32 %v15257_v39, %v2140_v19  ;;  %vm2023_vm8 = vcmp.lt.s32.totalorder %v10052_v36, 0 }
 0x21d   : > { %v2146_v48 = vshrl.u32 %v15258_v27, %v2140_v19  ;;  %v2149_v11 = vshrl.u32 %v15259_v44, %v2140_v19  ;;  %v2152_v35 = vshrl.u32 %v15260_v53, %v2140_v19  ;;  %v2151_v25 = vshll.u32 %v15259_v44, %v2139_v32 }
 0x21e   : > { %v2001_v6 = vxor.u32 2147483648, %v2000_v1  ;;  %v10246_v17 = vsub.s32 %v2081_v43, %v2084_v54  ;;  %v2154_v31 = vshll.u32 %v15260_v53, %v2139_v32  ;;  %v2155_v28 = vshrl.u32 %v15261_v41, %v2140_v19 }
 0x21f   : > { %v2144_v62 = vor.u32 %v2143_v30, %v2142_v22  ;;  %v2147_v23 = vor.u32 %v2146_v48, %v2145_v42  ;;  %v2150_v60 = vor.u32 %v2149_v11, %v2148_v45  ;;  %v2153_v57 = vor.u32 %v2152_v35, %v2151_v25 }
 0x220   : > { %v2002_v2 = vsel %vm1919_vm11, %v2001_v6, %v2000_v1  ;;  %v2087_v56 = vsub.s32 0, %v10246_v17  ;;  %vm2157_vm10 = vcmp.lt.s32.totalorder %v2138_v61, 1  ;;  %v2107_v49 = vsub.s32 4, %v2083_v46 }
 0x221   : > { %v2005_v59 = vsel %vm10169_vm13, %v9994_v14, %v2002_v2  ;;  %v2156_v40 = vor.u32 %v2155_v28, %v2154_v31  ;;  %vm2160_vm9 = vcmp.lt.s32.totalorder %v2138_v61, 4  ;;  %vm10259_vm12 = vcmp.le.f32.partialorder %v2021_v52, 0.7853982 }
 0x222   : > { %8494 = vcosq.f32 %v2005_v59  ;;  %v7928_v4 = vmin.u32 %v2087_v56, %v10246_v17  ;;  %v2141_v58 = vshrl.u32 %v15256_v0, %v2140_v19  ;;  %v2162_v43 = vsel %vm2160_vm9, %v2150_v60, 2102212464 }
 0x223   : > { %8496 = vsinq.f32 %v2005_v59  ;;  %vm2159_vm11 = vcmp.lt.s32.totalorder %v2138_v61, 3  ;;  %v2165_v51 = vsel %vm2157_vm10, %v2144_v62, %v2147_v23  ;;  %v2166_v8 = vsel %vm2160_vm9, %v2153_v57, 920167782 }
 0x224   : > { %v2173_v3 = vshll.u32 %v2133_v29, 8  ;;  %v2089_v24 = vclz %v7928_v4  ;;  %v2161_v20 = vsel %vm2157_vm10, %v2141_v58, %v2144_v62  ;;  %v2163_v34 = vsel %vm2159_vm11, %v2147_v23, %v2162_v43 }
 0x225   : > { %v2169_v52 = vsel %vm2157_vm10, %v2147_v23, %v2150_v60  ;;  %vm2158_vm13 = vcmp.lt.s32.totalorder %v2138_v61, 2  ;;  %v2167_v13 = vsel %vm2159_vm11, %v2150_v60, %v2166_v8  ;;  %v2170_v32 = vsel %vm2160_vm9, %v2156_v40, 1326507024 }
 0x226   : > { %v7935_v16 = vadd.s32 4294967169, %v2233_v38  ;;  %v7929_v21 = vadd.s32 4294967294, %v2089_v24  ;;  %v2108_v19 = vsel %vm2023_vm8, %v2107_v49, %v2083_v46  ;;  %v2168_v1 = vsel %vm2158_vm13, %v2165_v51, %v2167_v13 }
 0x227   : > { %v2171_v22 = vsel %vm2159_vm11, %v2153_v57, %v2170_v32  ;;  %v2164_v54 = vsel %vm2158_vm13, %v2161_v20, %v2163_v34  ;;  %v10273_v29 = vmul.u32.u64.low %v2173_v3, %v2168_v1  ;;  %v10274_v42 = vmul.u32.u64.high %v2173_v3, %v2168_v1, %v10273_v29 }
 0x228   : > { %v2172_v30 = vsel %vm2158_vm13, %v2169_v52, %v2171_v22  ;;  %vm7930_vm14 = vcmp.lt.s32.totalorder %v7929_v21, 0  ;;  %v2239_v48 = vadd.s32 1, %v7935_v16  ;;  %vm2013_vm0 = vcmp.eq.s32.totalorder %v10236_v15, 0 }
 0x229   : > { %v10277_v45 = vmul.u32.u64.low %v2173_v3, %v2172_v30  ;;  %v10278_v6 = vmul.u32.u64.high %v2173_v3, %v2172_v30, %v10277_v45  ;;  %vm2016_vm15 = vcmp.eq.s32.totalorder %v10236_v15, 2  ;;  %v2092_v61 = vsel %vm7930_vm14, 0, %v7929_v21 }
 0x22a   : > { %v2229_v46 = vand.u32 2147483647, %v10208_v47  ;;  %v2077_v38 = vadd.s32 %v10195_v55, %v10203_v50  ;;  %v2093_v11 = vsub.s32 32, %v2092_v61  ;;  %v2097_v35 = vsub.s32 4294967266, %v2092_v61 }
 0x22b   : > { %vm2240_vm1 = vcmp.gt.s32.totalorder %v2239_v48, 0  ;;  %v2110_v31 = vsel %vm10259_vm12, 0, %v2108_v19  ;;  %v2180_v28 = vmul.u32 %v2173_v3, %v2164_v54  ;;  %v2183_v2 = vadd.s32 1, %v10274_v42  ;;  %v747_v3 = vpop.permute.xlu1 %746 }
 0x22c   : > { %v8495_v25 = vpop.eup %8494  ;;  %v2241_v62 = vsel %vm2240_vm1, %v2239_v48, 0  ;;  %v2094_v59 = vshll.u32 %v10246_v17, %v2092_v61  ;;  %v2095_v56 = vshrl.u32 %v2077_v38, %v2093_v11  ;;  %v2098_v57 = vadd.s32 127, %v2097_v35 }
 0x22d   : > { %v8497_v23 = vpop.eup %8496  ;;  %v2017_v60 = vxor.u32 2147483648, %v8495_v25  ;;  %vm2182_vm2 = vc.u32 %v10278_v6, %v10273_v29  ;;  %v2236_v55 = vand.u32 8388607, %v2229_v46  ;;  %v2243_v50 = vand.u32 31, %v2241_v62 }
 0x22e   : > { %v2014_v49 = vxor.u32 2147483648, %v8497_v23  ;;  %v2096_v4 = vor.u32 %v2095_v56, %v2094_v59  ;;  %v2099_v58 = vshll.u32 %v2098_v57, 23  ;;  %v2184_v43 = vsel %vm2182_vm2, %v2183_v2, %v10274_v42 }
 0x22f   : > { %v2018_v40 = vsel %vm2016_vm15, %v2017_v60, %v8497_v23  ;;  %vm2012_vm3 = vcmp.lt.s32.totalorder %v10236_v15, 2  ;;  %v2185_v51 = vadd.s32 %v2184_v43, %v2180_v28  ;;  %v2244_v8 = vsub.s32 32, %v2243_v50 }
 0x230   : > { %v2015_v17 = vsel %vm2013_vm0, %v8495_v25, %v2014_v49  ;;  %vm2009_vm4 = vweird.f32 %v9994_v14  ;;  %v2100_v20 = vor.u32 4788187, %v2099_v58  ;;  %v2114_v34 = vadd.s32 3, %v2110_v31 }
 0x231   : > { %v2019_v24 = vsel %vm2012_vm3, %v2015_v17, %v2018_v40  ;;  %v2186_v13 = vadd.s32 536870912, %v2185_v51  ;;  %v2237_v32 = vor.u32 8388608, %v2236_v55  ;;  %v2247_v16 = vshrl.u32 %v15257_v39, %v2244_v8 }
 0x232   : > { %v2020_v52 = vsel %vm2009_vm4, nan, %v2019_v24  ;;  %v2101_v21 = vand.u32 2147483647, %v2100_v20  ;;  %v2103_v19 = vcvt.s32.f32 %v2096_v4  ;;  %v2250_v1 = vshrl.u32 %v15258_v27, %v2244_v8 }
 0x233   : > { %7749 = vst [vmem:[%s9666_s10 + $0x40] sm:$0xff] %v2020_v52  ;;  %v969_v15 = vmul.f32 %v9973_v63, %v747_v3  ;;  %v2187_v22 = vshrl.u32 %v2186_v13, 30  ;;  %v2246_v54 = vshll.u32 %v15256_v0, %v2243_v50  ;;  %v2253_v14 = vshrl.u32 %v15259_v44, %v2244_v8 }
 0x234   : > { %v2256_v30 = vshrl.u32 %v15260_v53, %v2244_v8  ;;  %v2104_v42 = vmul.f32 %v2103_v19, %v2101_v21  ;;  %v2242_v45 = vshrl.u32 %v2241_v62, 5  ;;  %v2249_v48 = vshll.u32 %v15257_v39, %v2243_v50 }
 0x235   : > { %v2255_v61 = vshll.u32 %v15259_v44, %v2243_v50  ;;  %v2188_v38 = vshll.u32 %v2187_v22, 30  ;;  %v2248_v11 = vor.u32 %v2247_v16, %v2246_v54  ;;  %v2252_v35 = vshll.u32 %v15258_v27, %v2243_v50 }
 0x236   : > { %v2259_v25 = vshrl.u32 %v15261_v41, %v2244_v8  ;;  %v2105_v63 = vxor.u32 2147483648, %v2104_v42  ;;  %v2251_v31 = vor.u32 %v2250_v1, %v2249_v48  ;;  %v2258_v2 = vshll.u32 %v15260_v53, %v2243_v50 }
 0x237   : > { %v2257_v28 = vor.u32 %v2256_v30, %v2255_v61  ;;  %v10312_v23 = vsub.s32 %v2185_v51, %v2188_v38  ;;  %v2254_v60 = vor.u32 %v2253_v14, %v2252_v35  ;;  %v10314_v59 = vshll.u32 %v2237_v32, 8 }
 0x238   : > { %v10317_v62 = vadd.f32 %v969_v15, %v10233_v26  ;;  %v2106_v56 = vsel %vm2023_vm8, %v2105_v63, %v2104_v42  ;;  %v2245_v57 = vshrl.u32 %v15256_v0, %v2244_v8  ;;  %v2260_v49 = vor.u32 %v2259_v25, %v2258_v2 }
 0x239   : > { %vm2261_vm5 = vcmp.lt.s32.totalorder %v2242_v45, 1  ;;  %v2109_v55 = vsel %vm10259_vm12, %v10052_v36, %v2106_v56  ;;  %v2191_v50 = vsub.s32 0, %v10312_v23  ;;  %vm2262_vm6 = vcmp.lt.s32.totalorder %v2242_v45, 2 }
 0x23a   : > { %vm2264_vm7 = vcmp.lt.s32.totalorder %v2242_v45, 4  ;;  %8498 = vcosq.f32 %v2109_v55  ;;  %vm2263_vm10 = vcmp.lt.s32.totalorder %v2242_v45, 3  ;;  %v2269_v26 = vsel %vm2261_vm5, %v2248_v11, %v2251_v31 }
 0x23b   : > { %v2270_v40 = vsel %vm2264_vm7, %v2257_v28, 920167782  ;;  %8500 = vsinq.f32 %v2109_v55  ;;  %v7932_v4 = vmin.u32 %v2191_v50, %v10312_v23  ;;  %v2266_v58 = vsel %vm2264_vm7, %v2254_v60, 2102212464 }
 0x23c   : > { %v2271_v43 = vsel %vm2263_vm10, %v2254_v60, %v2270_v40  ;;  %v2211_v17 = vsub.s32 4, %v2187_v22  ;;  %v2273_v33 = vsel %vm2261_vm5, %v2251_v31, %v2254_v60  ;;  %v2274_v8 = vsel %vm2264_vm7, %v2260_v49, 1326507024 }
 0x23d   : > { %v2272_v51 = vsel %vm2262_vm6, %v2269_v26, %v2271_v43  ;;  %v2115_v3 = vand.u32 3, %v2114_v34  ;;  %v2193_v24 = vclz %v7932_v4  ;;  %v2265_v20 = vsel %vm2261_vm5, %v2245_v57, %v2248_v11  ;;  %v10342_v34 = vld [vmem:[%s15171_s1] ss:$0 sm:$0xff] }
 0x23e   : > { %v2267_v52 = vsel %vm2263_vm10, %v2251_v31, %v2266_v58  ;;  %v2275_v13 = vsel %vm2263_vm10, %v2257_v28, %v2274_v8  ;;  %v10332_v32 = vmul.u32.u64.low %v10314_v59, %v2272_v51  ;;  %v10333_v16 = vmul.u32.u64.high %v10314_v59, %v2272_v51, %v10332_v32 }
 0x23f   : > { %vm2127_vm8 = vcmp.lt.s32.totalorder %v10178_v37, 0  ;;  %v7933_v21 = vadd.s32 4294967294, %v2193_v24  ;;  %v2276_v19 = vsel %vm2262_vm6, %v2273_v33, %v2275_v13  ;;  %v2336_v1 = vand.u32 2139095040, %v10317_v62 }
 0x240   : > { %v575_v15 = vmul.f32 %v10342_v34, %v9190_v5  ;;  %v2212_v54 = vsel %vm2127_vm8, %v2211_v17, %v2187_v22  ;;  %v10349_v14 = vmul.u32.u64.low %v10314_v59, %v2276_v19  ;;  %v10350_v30 = vmul.u32.u64.high %v10314_v59, %v2276_v19, %v10349_v14 }
 0x241   : > { %vm2113_vm9 = vweird.f32 %v10052_v36  ;;  %vm10355_vm12 = vcmp.le.f32.partialorder %v2125_v18, 0.7853982  ;;  %vm7934_vm11 = vcmp.lt.s32.totalorder %v7933_v21, 0  ;;  %v2268_v48 = vsel %vm2262_vm6, %v2265_v20, %v2267_v52  ;;  %v10379_v52 = vld [vmem:[%s15171_s1 + $0x1] ss:$0 sm:$0xff] }
 0x242   : > { %v2337_v61 = vshrl.u32 %v2336_v1, 23  ;;  %vm2116_vm13 = vcmp.lt.s32.totalorder %v2115_v3, 2  ;;  %v2181_v5 = vadd.s32 %v10273_v29, %v10278_v6  ;;  %v2196_v22 = vsel %vm7934_vm11, 0, %v7933_v21 }
 0x243   : > { %v2287_v38 = vadd.s32 1, %v10333_v16  ;;  %v2197_v11 = vsub.s32 32, %v2196_v22  ;;  %v2201_v35 = vsub.s32 4294967266, %v2196_v22  ;;  %v2214_v25 = vsel %vm10355_vm12, 0, %v2212_v54 }
 0x244   : > { %v7939_v18 = vadd.s32 4294967169, %v2337_v61  ;;  %v8499_v63 = vpop.eup %8498  ;;  %v2198_v31 = vshll.u32 %v10312_v23, %v2196_v22  ;;  %v2284_v45 = vmul.u32 %v10314_v59, %v2268_v48  ;;  %vm2286_vm14 = vc.u32 %v10350_v30, %v10332_v32  ;;  %v751_v59 = vpop.permute.xlu0 %750 }
 0x245   : > { %v2333_v28 = vand.u32 2147483647, %v10317_v62  ;;  %v8501_v29 = vpop.eup %8500  ;;  %v2121_v6 = vxor.u32 2147483648, %v8499_v63  ;;  %v2199_v2 = vshrl.u32 %v2181_v5, %v2197_v11  ;;  %v2202_v60 = vadd.s32 127, %v2201_v35 }
 0x246   : > { %v2288_v56 = vsel %vm2286_vm14, %v2287_v38, %v10333_v16  ;;  %v2118_v57 = vxor.u32 2147483648, %v8501_v29  ;;  %vm2120_vm0 = vcmp.eq.s32.totalorder %v2115_v3, 2  ;;  %v2343_v55 = vadd.s32 1, %v7939_v18 }
 0x247   : > { %v2289_v49 = vadd.s32 %v2288_v56, %v2284_v45  ;;  %vm2117_vm15 = vcmp.eq.s32.totalorder %v2115_v3, 0  ;;  %v2122_v50 = vsel %vm2120_vm0, %v2121_v6, %v8501_v29  ;;  %v2200_v23 = vor.u32 %v2199_v2, %v2198_v31  ;;  %v10385_v3 = vld [vmem:[%s15172_s2] ss:$0 sm:$0xff] }
 0x248   : > { %v2203_v26 = vshll.u32 %v2202_v60, 23  ;;  %v2119_v40 = vsel %vm2117_vm15, %v8499_v63, %v2118_v57  ;;  %v2218_v4 = vadd.s32 3, %v2214_v25  ;;  %vm2344_vm1 = vcmp.gt.s32.totalorder %v2343_v55, 0 }
 0x249   : > { %v2290_v58 = vadd.s32 536870912, %v2289_v49  ;;  %v2123_v43 = vsel %vm2116_vm13, %v2119_v40, %v2122_v50  ;;  %v2340_v51 = vand.u32 8388607, %v2333_v28  ;;  %v2345_v33 = vsel %vm2344_vm1, %v2343_v55, 0 }
 0x24a   : > { %v2204_v17 = vor.u32 4788187, %v2203_v26  ;;  %v2124_v8 = vsel %vm2113_vm9, nan, %v2123_v43  ;;  %v2347_v20 = vand.u32 31, %v2345_v33  ;;  %v970_v13 = vmul.f32 %v10379_v52, %v751_v59 }
 0x24b   : > { %v2291_v24 = vshrl.u32 %v2290_v58, 30  ;;  %v645_v16 = vadd.f32 %v10385_v3, %v575_v15  ;;  %7750 = vst [vmem:[%s9666_s10 + $0x48] sm:$0xff] %v2124_v8  ;;  %v2207_v36 = vcvt.s32.f32 %v2200_v23  ;;  %v10391_v19 = vmul.f32 %v10342_v34, %v9198_v10 }
 0x24c   : > { %v2205_v21 = vand.u32 2147483647, %v2204_v17  ;;  %vm2231_vm2 = vcmp.lt.s32.totalorder %v10208_v47, 0  ;;  %v2348_v54 = vsub.s32 32, %v2347_v20  ;;  %v10394_v48 = vand.u32 3, %v2218_v4 }
 0x24d   : > { %v2292_v1 = vshll.u32 %v2291_v24, 30  ;;  %v2285_v61 = vadd.s32 %v10332_v32, %v10350_v30  ;;  %v2341_v5 = vor.u32 8388608, %v2340_v51  ;;  %v10400_v15 = vshrl.u32 %v2345_v33, 5 }
 0x24e   : > { %v2208_v14 = vmul.f32 %v2207_v36, %v2205_v21  ;;  %v2351_v38 = vshrl.u32 %v15257_v39, %v2348_v54  ;;  %v10403_v11 = vadd.f32 %v970_v13, %v645_v16  ;;  %v2350_v35 = vshll.u32 %v15256_v0, %v2347_v20 }
 0x24f   : > { %v10398_v22 = vsub.s32 %v2289_v49, %v2292_v1  ;;  %v2354_v25 = vshrl.u32 %v15258_v27, %v2348_v54  ;;  %v2357_v18 = vshrl.u32 %v15259_v44, %v2348_v54  ;;  %v2353_v32 = vshll.u32 %v15257_v39, %v2347_v20 }
 0x250   : > { %v2209_v10 = vxor.u32 2147483648, %v2208_v14  ;;  %v2356_v30 = vshll.u32 %v15258_v27, %v2347_v20  ;;  %v2360_v31 = vshrl.u32 %v15260_v53, %v2348_v54  ;;  %v2315_v29 = vsub.s32 4, %v2291_v24 }
 0x251   : > { %v2295_v63 = vsub.s32 0, %v10398_v22  ;;  %v2352_v6 = vor.u32 %v2351_v38, %v2350_v35  ;;  %v2359_v2 = vshll.u32 %v15259_v44, %v2347_v20  ;;  %v2355_v57 = vor.u32 %v2354_v25, %v2353_v32 }
 0x252   : > { %v2210_v45 = vsel %vm2127_vm8, %v2209_v10, %v2208_v14  ;;  %v2358_v49 = vor.u32 %v2357_v18, %v2356_v30  ;;  %v2362_v50 = vshll.u32 %v15260_v53, %v2347_v20  ;;  %v2363_v23 = vshrl.u32 %v15261_v41, %v2348_v54 }
 0x253   : > { %v2213_v60 = vsel %vm10355_vm12, %v10178_v37, %v2210_v45  ;;  %v7936_v56 = vmin.u32 %v2295_v63, %v10398_v22  ;;  %v2361_v55 = vor.u32 %v2360_v31, %v2359_v2  ;;  %vm10423_vm3 = vcmp.le.f32.partialorder %v2229_v46, 0.7853982 }
 0x254   : > { %8502 = vcosq.f32 %v2213_v60  ;;  %v10427_v42 = vshll.u32 %v2341_v5, 8  ;;  %v2440_v40 = vand.u32 2139095040, %v10403_v11  ;;  %v2316_v4 = vsel %vm2231_vm2, %v2315_v29, %v2291_v24 }
 0x255   : > { %8504 = vsinq.f32 %v2213_v60  ;;  %v2297_v59 = vclz %v7936_v56  ;;  %v2349_v58 = vshrl.u32 %v15256_v0, %v2348_v54  ;;  %v2364_v43 = vor.u32 %v2363_v23, %v2362_v50 }
 0x256   : > { %vm2365_vm4 = vcmp.lt.s32.totalorder %v10400_v15, 1  ;;  %vm2367_vm5 = vcmp.lt.s32.totalorder %v10400_v15, 3  ;;  %vm2368_vm6 = vcmp.lt.s32.totalorder %v10400_v15, 4  ;;  %vm2366_vm10 = vcmp.lt.s32.totalorder %v10400_v15, 2 }
 0x257   : > { %v7937_v17 = vadd.s32 4294967294, %v2297_v59  ;;  %v2373_v46 = vsel %vm2365_vm4, %v2352_v6, %v2355_v57  ;;  %v2370_v51 = vsel %vm2368_vm6, %v2358_v49, 2102212464  ;;  %v2374_v33 = vsel %vm2368_vm6, %v2361_v55, 920167782 }
 0x258   : > { %v2377_v8 = vsel %vm2365_vm4, %v2355_v57, %v2358_v49  ;;  %v2378_v20 = vsel %vm2368_vm6, %v2364_v43, 1326507024  ;;  %v2375_v24 = vsel %vm2367_vm5, %v2358_v49, %v2374_v33  ;;  %vm2220_vm8 = vcmp.lt.s32.totalorder %v10394_v48, 2  ;;  %v755_v43 = vpop.permute.xlu1 %754 }
 0x259   : > { %vm7938_vm7 = vcmp.lt.s32.totalorder %v7937_v17, 0  ;;  %v2379_v13 = vsel %vm2367_vm5, %v2361_v55, %v2378_v20  ;;  %v2369_v21 = vsel %vm2365_vm4, %v2349_v58, %v2352_v6  ;;  %v2376_v36 = vsel %vm2366_vm10, %v2373_v46, %v2375_v24 }
 0x25a   : > { %v2300_v16 = vsel %vm7938_vm7, 0, %v7937_v17  ;;  %v2380_v1 = vsel %vm2366_vm10, %v2377_v8, %v2379_v13  ;;  %vm2217_vm9 = vweird.f32 %v10178_v37  ;;  %v2371_v5 = vsel %vm2367_vm5, %v2355_v57, %v2370_v51 }
 0x25b   : > { %v2301_v54 = vsub.s32 32, %v2300_v16  ;;  %v2305_v14 = vsub.s32 4294967266, %v2300_v16  ;;  %v2441_v38 = vshrl.u32 %v2440_v40, 23  ;;  %v2302_v63 = vshll.u32 %v10398_v22, %v2300_v16 }
 0x25c   : > { %v10450_v10 = vmul.u32.u64.low %v10427_v42, %v2380_v1  ;;  %v10451_v35 = vmul.u32.u64.high %v10427_v42, %v2380_v1, %v10450_v10  ;;  %v10454_v25 = vmul.u32.u64.low %v10427_v42, %v2376_v36  ;;  %v10455_v18 = vmul.u32.u64.high %v10427_v42, %v2376_v36, %v10454_v25 }
 0x25d   : > { %v2303_v32 = vshrl.u32 %v2285_v61, %v2301_v54  ;;  %v2306_v30 = vadd.s32 127, %v2305_v14  ;;  %v7943_v31 = vadd.s32 4294967169, %v2441_v38  ;;  %vm2221_vm12 = vcmp.eq.s32.totalorder %v10394_v48, 0 }
 0x25e   : > { %v8503_v45 = vpop.eup %8502  ;;  %vm2224_vm11 = vcmp.eq.s32.totalorder %v10394_v48, 2  ;;  %v2318_v29 = vsel %vm10423_vm3, 0, %v2316_v4  ;;  %v2372_v6 = vsel %vm2366_vm10, %v2369_v21, %v2371_v5  ;;  %vm2390_vm13 = vc.u32 %v10451_v35, %v10454_v25 }
 0x25f   : > { %v8505_v2 = vpop.eup %8504  ;;  %v2225_v60 = vxor.u32 2147483648, %v8503_v45  ;;  %v2304_v56 = vor.u32 %v2303_v32, %v2302_v63  ;;  %v2307_v57 = vshll.u32 %v2306_v30, 23  ;;  %v2447_v49 = vadd.s32 1, %v7943_v31 }
 0x260   : > { %v2222_v22 = vxor.u32 2147483648, %v8505_v2  ;;  %v2391_v61 = vadd.s32 1, %v10455_v18  ;;  %v2437_v55 = vand.u32 2147483647, %v10403_v11  ;;  %v2388_v59 = vmul.u32 %v10427_v42, %v2372_v6 }
 0x261   : > { %v2226_v50 = vsel %vm2224_vm11, %v2225_v60, %v8505_v2  ;;  %v2308_v23 = vor.u32 4788187, %v2307_v57  ;;  %vm2448_vm14 = vcmp.gt.s32.totalorder %v2447_v49, 0  ;;  %v2322_v40 = vadd.s32 3, %v2318_v29 }
 0x262   : > { %v2223_v15 = vsel %vm2221_vm12, %v8503_v45, %v2222_v22  ;;  %v2392_v4 = vsel %vm2390_vm13, %v2391_v61, %v10455_v18  ;;  %v2449_v58 = vsel %vm2448_vm14, %v2447_v49, 0  ;;  %v2311_v51 = vcvt.s32.f32 %v2304_v56 }
 0x263   : > { %v2227_v17 = vsel %vm2220_vm8, %v2223_v15, %v2226_v50  ;;  %v2309_v46 = vand.u32 2147483647, %v2308_v23  ;;  %v2393_v33 = vadd.s32 %v2392_v4, %v2388_v59  ;;  %v10477_v8 = vmul.f32 %v10342_v34, %v9196_v7 }
 0x264   : > { %v646_v42 = vadd.f32 %v10385_v3, %v10391_v19  ;;  %v2228_v20 = vsel %vm2217_vm9, nan, %v2227_v17  ;;  %v2451_v24 = vand.u32 31, %v2449_v58  ;;  %v10485_v13 = vmul.f32 %v10342_v34, %v9202_v9 }
 0x265   : > { %7751 = vst [vmem:[%s9666_s10 + $0x50] sm:$0xff] %v2228_v20  ;;  %v2312_v48 = vmul.f32 %v2311_v51, %v2309_v46  ;;  %v2394_v16 = vadd.s32 536870912, %v2393_v33  ;;  %v971_v21 = vmul.f32 %v10379_v52, %v755_v43  ;;  %v10489_v36 = vand.u32 3, %v2322_v40 }
 0x266   : > { %v2444_v7 = vand.u32 8388607, %v2437_v55  ;;  %v2450_v1 = vshrl.u32 %v2449_v58, 5  ;;  %v2452_v19 = vsub.s32 32, %v2451_v24  ;;  %v2454_v14 = vshll.u32 %v15256_v0, %v2451_v24 }
 0x267   : > { %v2313_v54 = vxor.u32 2147483648, %v2312_v48  ;;  %v10493_v37 = vshrl.u32 %v2394_v16, 30  ;;  %v2457_v9 = vshll.u32 %v15257_v39, %v2451_v24  ;;  %v2460_v10 = vshll.u32 %v15258_v27, %v2451_v24 }
 0x268   : > { %v2455_v5 = vshrl.u32 %v15257_v39, %v2452_v19  ;;  %v2458_v38 = vshrl.u32 %v15258_v27, %v2452_v19  ;;  %v2461_v18 = vshrl.u32 %v15259_v44, %v2452_v19  ;;  %v2463_v30 = vshll.u32 %v15259_v44, %v2451_v24 }
 0x269   : > { %v2314_v63 = vsel %vm2231_vm2, %v2313_v54, %v2312_v48  ;;  %v2396_v32 = vshll.u32 %v10493_v37, 30  ;;  %v2464_v31 = vshrl.u32 %v15260_v53, %v2452_v19  ;;  %v2445_v56 = vor.u32 8388608, %v2444_v7  ;;  %v759_v48 = vpop.permute.xlu0 %758 }
 0x26a   : > { %v2317_v45 = vsel %vm10423_vm3, %v10208_v47, %v2314_v63  ;;  %v2456_v29 = vor.u32 %v2455_v5, %v2454_v14  ;;  %v2459_v6 = vor.u32 %v2458_v38, %v2457_v9  ;;  %v2462_v2 = vor.u32 %v2461_v18, %v2460_v10 }
 0x26b   : > { %8506 = vcosq.f32 %v2317_v45  ;;  %v10509_v60 = vsub.s32 %v2393_v33, %v2396_v32  ;;  %v2465_v57 = vor.u32 %v2464_v31, %v2463_v30  ;;  %v2466_v49 = vshll.u32 %v15260_v53, %v2451_v24 }
 0x26c   : > { %8508 = vsinq.f32 %v2317_v45  ;;  %v2467_v22 = vshrl.u32 %v15261_v41, %v2452_v19  ;;  %v10513_v61 = vadd.f32 %v971_v21, %v646_v42  ;;  %vm2335_vm0 = vcmp.lt.s32.totalorder %v10317_v62, 0 }
 0x26d   : > { %v2399_v26 = vsub.s32 0, %v10509_v60  ;;  %vm2469_vm15 = vcmp.lt.s32.totalorder %v2450_v1, 1  ;;  %vm2471_vm1 = vcmp.lt.s32.totalorder %v2450_v1, 3  ;;  %vm2472_vm2 = vcmp.lt.s32.totalorder %v2450_v1, 4 }
 0x26e   : > { %v2468_v50 = vor.u32 %v2467_v22, %v2466_v49  ;;  %v2474_v23 = vsel %vm2472_vm2, %v2462_v2, 2102212464  ;;  %v2477_v59 = vsel %vm2469_vm15, %v2456_v29, %v2459_v6  ;;  %v2478_v15 = vsel %vm2472_vm2, %v2465_v57, 920167782 }
 0x26f   : > { %v7940_v40 = vmin.u32 %v2399_v26, %v10509_v60  ;;  %v2453_v4 = vshrl.u32 %v15256_v0, %v2452_v19  ;;  %vm2470_vm3 = vcmp.lt.s32.totalorder %v2450_v1, 2  ;;  %v2479_v58 = vsel %vm2471_vm1, %v2462_v2, %v2478_v15 }
 0x270   : > { %v2480_v43 = vsel %vm2470_vm3, %v2477_v59, %v2479_v58  ;;  %v2481_v17 = vsel %vm2469_vm15, %v2459_v6, %v2462_v2  ;;  %v2482_v46 = vsel %vm2472_vm2, %v2468_v50, 1326507024  ;;  %v2485_v51 = vshll.u32 %v2445_v56, 8 }
 0x271   : > { %vm2324_vm4 = vcmp.lt.s32.totalorder %v10489_v36, 2  ;;  %vm2325_vm5 = vcmp.eq.s32.totalorder %v10489_v36, 0  ;;  %vm10527_vm6 = vcmp.le.f32.partialorder %v2333_v28, 0.7853982  ;;  %v2401_v42 = vclz %v7940_v40 }
 0x272   : > { %v2473_v20 = vsel %vm2469_vm15, %v2453_v4, %v2456_v29  ;;  %v2475_v24 = vsel %vm2471_vm1, %v2459_v6, %v2474_v23  ;;  %vm2321_vm7 = vweird.f32 %v10208_v47  ;;  %v2419_v16 = vsub.s32 4, %v10493_v37  ;;  %v763_v47 = vpop.permute.xlu1 %762 }
 0x273   : > { %v2483_v21 = vsel %vm2471_vm1, %v2465_v57, %v2482_v46  ;;  %v10536_v7 = vmul.u32.u64.low %v2485_v51, %v2480_v43  ;;  %v10537_v19 = vmul.u32.u64.high %v2485_v51, %v2480_v43, %v10536_v7  ;;  %vm2328_vm10 = vcmp.eq.s32.totalorder %v10489_v36, 2 }
 0x274   : > { %v7941_v28 = vadd.s32 4294967294, %v2401_v42  ;;  %v2484_v54 = vsel %vm2470_vm3, %v2481_v17, %v2483_v21  ;;  %v2544_v14 = vand.u32 2139095040, %v10513_v61  ;;  %v2476_v9 = vsel %vm2470_vm3, %v2473_v20, %v2475_v24 }
 0x275   : > { %v10544_v5 = vmul.u32.u64.low %v2485_v51, %v2484_v54  ;;  %v10545_v38 = vmul.u32.u64.high %v2485_v51, %v2484_v54, %v10544_v5  ;;  %v972_v10 = vmul.f32 %v10379_v52, %v759_v48  ;;  %v8507_v18 = vpop.eup %8506  ;;  %v2389_v63 = vadd.s32 %v10454_v25, %v10451_v35  ;;  %v15294_v54 = vld [vmem:[#allocation12_spill] sm:$0xff] }
 0x276   : > { %vm7942_vm8 = vcmp.lt.s32.totalorder %v7941_v28, 0  ;;  %v2541_v32 = vand.u32 2147483647, %v10513_v61  ;;  %v2545_v30 = vshrl.u32 %v2544_v14, 23  ;;  %v8509_v31 = vpop.eup %8508  ;;  %v2329_v45 = vxor.u32 2147483648, %v8507_v18 }
 0x277   : > { %v2404_v29 = vsel %vm7942_vm8, 0, %v7941_v28  ;;  %v2420_v1 = vsel %vm2335_vm0, %v2419_v16, %v10493_v37  ;;  %v2495_v6 = vadd.s32 1, %v10537_v19  ;;  %v2326_v2 = vxor.u32 2147483648, %v8509_v31 }
 0x278   : > { %v2405_v56 = vsub.s32 32, %v2404_v29  ;;  %v2409_v57 = vsub.s32 4294967266, %v2404_v29  ;;  %v2492_v49 = vmul.u32 %v2485_v51, %v2476_v9  ;;  %v2330_v35 = vsel %vm2328_vm10, %v2329_v45, %v8509_v31  ;;  %v15295_v9 = vld [vmem:[#allocation13_spill] sm:$0xff] }
 0x279   : > { %v2406_v25 = vshll.u32 %v10509_v60, %v2404_v29  ;;  %vm2494_vm9 = vc.u32 %v10545_v38, %v10536_v7  ;;  %v7947_v22 = vadd.s32 4294967169, %v2545_v30  ;;  %v2327_v26 = vsel %vm2325_vm5, %v8507_v18, %v2326_v2 }
 0x27a   : > { %v2407_v37 = vshrl.u32 %v2389_v63, %v2405_v56  ;;  %v2410_v50 = vadd.s32 127, %v2409_v57  ;;  %v2496_v23 = vsel %vm2494_vm9, %v2495_v6, %v10537_v19  ;;  %v2331_v59 = vsel %vm2324_vm4, %v2327_v26, %v2330_v35 }
 0x27b   : > { %v2422_v15 = vsel %vm10527_vm6, 0, %v2420_v1  ;;  %v2497_v40 = vadd.s32 %v2496_v23, %v2492_v49  ;;  %v2551_v60 = vadd.s32 1, %v7947_v22  ;;  %v578_v4 = vmul.f32 %v10342_v34, %v9204_v12 }
 0x27c   : > { %v2332_v58 = vsel %vm2321_vm7, nan, %v2331_v59  ;;  %v2408_v43 = vor.u32 %v2407_v37, %v2406_v25  ;;  %v2411_v17 = vshll.u32 %v2410_v50, 23  ;;  %v647_v46 = vadd.f32 %v10385_v3, %v10477_v8 }
 0x27d   : > { %7752 = vst [vmem:[%s9666_s10 + $0x58] sm:$0xff] %v2332_v58  ;;  %v2498_v51 = vadd.s32 536870912, %v2497_v40  ;;  %vm2552_vm12 = vcmp.gt.s32.totalorder %v2551_v60, 0  ;;  %v2426_v42 = vadd.s32 3, %v2422_v15  ;;  %v2548_v20 = vand.u32 8388607, %v2541_v32 }
 0x27e   : > { %v2412_v36 = vor.u32 4788187, %v2411_v17  ;;  %v2553_v24 = vsel %vm2552_vm12, %v2551_v60, 0  ;;  %v10578_v16 = vadd.f32 %v972_v10, %v647_v46  ;;  %v10582_v21 = vadd.f32 %v10385_v3, %v10485_v13 }
 0x27f   : > { %v10576_v48 = vshrl.u32 %v2498_v51, 30  ;;  %v2555_v12 = vand.u32 31, %v2553_v24  ;;  %v10585_v8 = vadd.f32 %v10385_v3, %v578_v4  ;;  %v2415_v28 = vcvt.s32.f32 %v2408_v43 }
 0x280   : > { %v2413_v19 = vand.u32 2147483647, %v2412_v36  ;;  %v10589_v14 = vmul.f32 %v10342_v34, %v15294_v54  ;;  %v10593_v5 = vmul.f32 %v10342_v34, %v15295_v9  ;;  %v10596_v30 = vand.u32 3, %v2426_v42 }
 0x281   : > { %v2500_v10 = vshll.u32 %v10576_v48, 30  ;;  %v2556_v18 = vsub.s32 32, %v2555_v12  ;;  %v2549_v13 = vor.u32 8388608, %v2548_v20  ;;  %v10599_v31 = vmul.f32 %v10379_v52, %v763_v47 }
 0x282   : > { %v2416_v63 = vmul.f32 %v2415_v28, %v2413_v19  ;;  %v2493_v45 = vadd.s32 %v10536_v7, %v10545_v38  ;;  %v2648_v6 = vand.u32 2139095040, %v10578_v16  ;;  %v2558_v56 = vshll.u32 %v15256_v0, %v2555_v12 }
 0x283   : > { %v10603_v29 = vsub.s32 %v2497_v40, %v2500_v10  ;;  %v2559_v1 = vshrl.u32 %v15257_v39, %v2556_v18  ;;  %v2562_v57 = vshrl.u32 %v15258_v27, %v2556_v18  ;;  %v2565_v49 = vshrl.u32 %v15259_v44, %v2556_v18 }
 0x284   : > { %v2417_v2 = vxor.u32 2147483648, %v2416_v63  ;;  %v2561_v25 = vshll.u32 %v15257_v39, %v2555_v12  ;;  %v2564_v22 = vshll.u32 %v15258_v27, %v2555_v12  ;;  %v2568_v7 = vshrl.u32 %v15260_v53, %v2556_v18 }
 0x285   : > { %v2503_v35 = vsub.s32 0, %v10603_v29  ;;  %v2554_v26 = vshrl.u32 %v2553_v24, 5  ;;  %v2560_v37 = vor.u32 %v2559_v1, %v2558_v56  ;;  %v2567_v50 = vshll.u32 %v15259_v44, %v2555_v12 }
 0x286   : > { %v2418_v38 = vsel %vm2335_vm0, %v2417_v2, %v2416_v63  ;;  %v2563_v15 = vor.u32 %v2562_v57, %v2561_v25  ;;  %v2566_v40 = vor.u32 %v2565_v49, %v2564_v22  ;;  %v2570_v4 = vshll.u32 %v15260_v53, %v2555_v12 }
 0x287   : > { %v2421_v23 = vsel %vm10527_vm6, %v10317_v62, %v2418_v38  ;;  %v7944_v59 = vmin.u32 %v2503_v35, %v10603_v29  ;;  %v2569_v60 = vor.u32 %v2568_v7, %v2567_v50  ;;  %v2571_v58 = vshrl.u32 %v15261_v41, %v2556_v18 }
 0x288   : > { %8510 = vcosq.f32 %v2421_v23  ;;  %vm2439_vm11 = vcmp.lt.s32.totalorder %v10403_v11, 0  ;;  %v10624_v17 = vshll.u32 %v2549_v13, 8  ;;  %v2649_v46 = vshrl.u32 %v2648_v6, 23 }
 0x289   : > { %8512 = vsinq.f32 %v2421_v23  ;;  %v2505_v43 = vclz %v7944_v59  ;;  %v2523_v33 = vsub.s32 4, %v10576_v48  ;;  %v2557_v51 = vshrl.u32 %v15256_v0, %v2556_v18 }
 0x28a   : > { %v2572_v36 = vor.u32 %v2571_v58, %v2570_v4  ;;  %vm2573_vm13 = vcmp.lt.s32.totalorder %v2554_v26, 1  ;;  %vm2575_vm14 = vcmp.lt.s32.totalorder %v2554_v26, 3  ;;  %vm2576_vm0 = vcmp.lt.s32.totalorder %v2554_v26, 4 }
 0x28b   : > { %v7945_v42 = vadd.s32 4294967294, %v2505_v43  ;;  %v2581_v20 = vsel %vm2573_vm13, %v2560_v37, %v2563_v15  ;;  %v2578_v24 = vsel %vm2576_vm0, %v2566_v40, 2102212464  ;;  %v2582_v12 = vsel %vm2576_vm0, %v2569_v60, 920167782 }
 0x28c   : > { %v2585_v47 = vsel %vm2573_vm13, %v2563_v15, %v2566_v40  ;;  %v2586_v19 = vsel %vm2576_vm0, %v2572_v36, 1326507024  ;;  %vm10632_vm15 = vcmp.le.f32.partialorder %v2437_v55, 0.7853982  ;;  %vm2574_vm2 = vcmp.lt.s32.totalorder %v2554_v26, 2 }
 0x28d   : > { %vm7946_vm1 = vcmp.lt.s32.totalorder %v7945_v42, 0  ;;  %v2583_v54 = vsel %vm2575_vm14, %v2566_v40, %v2582_v12  ;;  %v2587_v9 = vsel %vm2575_vm14, %v2569_v60, %v2586_v19  ;;  %vm2428_vm3 = vcmp.lt.s32.totalorder %v10596_v30, 2 }
 0x28e   : > { %v2508_v10 = vsel %vm7946_vm1, 0, %v7945_v42  ;;  %v2577_v18 = vsel %vm2573_vm13, %v2557_v51, %v2560_v37  ;;  %v2584_v63 = vsel %vm2574_vm2, %v2581_v20, %v2583_v54  ;;  %v2588_v13 = vsel %vm2574_vm2, %v2585_v47, %v2587_v9 }
 0x28f   : > { %vm2425_vm4 = vweird.f32 %v10317_v62  ;;  %v2509_v55 = vsub.s32 32, %v2508_v10  ;;  %v2513_v1 = vsub.s32 4294967266, %v2508_v10  ;;  %v2579_v6 = vsel %vm2575_vm14, %v2563_v15, %v2578_v24 }
 0x290   : > { %v7951_v2 = vadd.s32 4294967169, %v2649_v46  ;;  %v10645_v56 = vmul.u32.u64.low %v10624_v17, %v2588_v13  ;;  %v10646_v57 = vmul.u32.u64.high %v10624_v17, %v2588_v13, %v10645_v56  ;;  %v2510_v25 = vshll.u32 %v10603_v29, %v2508_v10 }
 0x291   : > { %v10649_v49 = vmul.u32.u64.low %v10624_v17, %v2584_v63  ;;  %v10650_v35 = vmul.u32.u64.high %v10624_v17, %v2584_v63, %v10649_v49  ;;  %v2511_v22 = vshrl.u32 %v2493_v45, %v2509_v55  ;;  %v2514_v7 = vadd.s32 127, %v2513_v1 }
 0x292   : > { %v2655_v38 = vadd.s32 1, %v7951_v2  ;;  %v8511_v37 = vpop.eup %8510  ;;  %vm2429_vm5 = vcmp.eq.s32.totalorder %v10596_v30, 0  ;;  %vm2432_vm6 = vcmp.eq.s32.totalorder %v10596_v30, 2  ;;  %v2524_v50 = vsel %vm2439_vm11, %v2523_v33, %v10576_v48 }
 0x293   : > { %v2580_v23 = vsel %vm2574_vm2, %v2577_v18, %v2579_v6  ;;  %v8513_v59 = vpop.eup %8512  ;;  %v2433_v15 = vxor.u32 2147483648, %v8511_v37  ;;  %v2512_v40 = vor.u32 %v2511_v22, %v2510_v25  ;;  %v2515_v60 = vshll.u32 %v2514_v7, 23 }
 0x294   : > { %vm2656_vm7 = vcmp.gt.s32.totalorder %v2655_v38, 0  ;;  %v2430_v29 = vxor.u32 2147483648, %v8513_v59  ;;  %vm2598_vm10 = vc.u32 %v10646_v57, %v10649_v49  ;;  %v2599_v45 = vadd.s32 1, %v10650_v35 }
 0x295   : > { %v2645_v4 = vand.u32 2147483647, %v10578_v16  ;;  %v2434_v58 = vsel %vm2432_vm6, %v2433_v15, %v8513_v59  ;;  %v2516_v43 = vor.u32 4788187, %v2515_v60  ;;  %v2596_v48 = vmul.u32 %v10624_v17, %v2580_v23 }
 0x296   : > { %v2657_v26 = vsel %vm2656_vm7, %v2655_v38, 0  ;;  %v2431_v46 = vsel %vm2429_vm5, %v8511_v37, %v2430_v29  ;;  %v2526_v33 = vsel %vm10632_vm15, 0, %v2524_v50  ;;  %v2600_v51 = vsel %vm2598_vm10, %v2599_v45, %v10650_v35 }
 0x297   : > { %v2659_v36 = vand.u32 31, %v2657_v26  ;;  %v2435_v42 = vsel %vm2428_vm3, %v2431_v46, %v2434_v58  ;;  %v2517_v20 = vand.u32 2147483647, %v2516_v43  ;;  %v2519_v24 = vcvt.s32.f32 %v2512_v40 }
 0x298   : > { %v2601_v12 = vadd.s32 %v2600_v51, %v2596_v48  ;;  %v2436_v47 = vsel %vm2425_vm4, nan, %v2435_v42  ;;  %v2652_v17 = vand.u32 8388607, %v2645_v4  ;;  %v10678_v54 = vadd.f32 %v10599_v31, %v10585_v8 }
 0x299   : > { %v2660_v19 = vsub.s32 32, %v2659_v36  ;;  %7753 = vst [vmem:[%s9666_s10 + $0x60] sm:$0xff] %v2436_v47  ;;  %v2520_v9 = vmul.f32 %v2519_v24, %v2517_v20  ;;  %v2530_v10 = vadd.s32 3, %v2526_v33  ;;  %v2658_v30 = vshrl.u32 %v2657_v26, 5 }
 0x29a   : > { %v2602_v18 = vadd.s32 536870912, %v2601_v12  ;;  %v2662_v63 = vshll.u32 %v15256_v0, %v2659_v36  ;;  %v2665_v2 = vshll.u32 %v15257_v39, %v2659_v36  ;;  %v2668_v31 = vshll.u32 %v15258_v27, %v2659_v36 }
 0x29b   : > { %v2663_v13 = vshrl.u32 %v15257_v39, %v2660_v19  ;;  %v2666_v62 = vshrl.u32 %v15258_v27, %v2660_v19  ;;  %v2669_v55 = vshrl.u32 %v15259_v44, %v2660_v19  ;;  %v2521_v1 = vxor.u32 2147483648, %v2520_v9 }
 0x29c   : > { %v10685_v6 = vshrl.u32 %v2602_v18, 30  ;;  %v2672_v8 = vshrl.u32 %v15260_v53, %v2660_v19  ;;  %v2671_v56 = vshll.u32 %v15259_v44, %v2659_v36  ;;  %v2674_v35 = vshll.u32 %v15260_v53, %v2659_v36 }
 0x29d   : > { %v2675_v25 = vshrl.u32 %v15261_v41, %v2660_v19  ;;  %v2522_v22 = vsel %vm2439_vm11, %v2521_v1, %v2520_v9  ;;  %v2664_v38 = vor.u32 %v2663_v13, %v2662_v63  ;;  %v2667_v37 = vor.u32 %v2666_v62, %v2665_v2 }
 0x29e   : > { %v2604_v7 = vshll.u32 %v10685_v6, 30  ;;  %v2525_v50 = vsel %vm10632_vm15, %v10403_v11, %v2522_v22  ;;  %v2670_v23 = vor.u32 %v2669_v55, %v2668_v31  ;;  %v2673_v59 = vor.u32 %v2672_v8, %v2671_v56 }
 0x29f   : > { %v2676_v15 = vor.u32 %v2675_v25, %v2674_v35  ;;  %v10701_v40 = vadd.f32 %v10385_v3, %v10589_v14  ;;  %8514 = vcosq.f32 %v2525_v50  ;;  %v10703_v60 = vand.u32 3, %v2530_v10 }
 0x2a0   : > { %v10705_v29 = vsub.s32 %v2601_v12, %v2604_v7  ;;  %8516 = vsinq.f32 %v2525_v50  ;;  %v2653_v45 = vor.u32 8388608, %v2652_v17  ;;  %vm2677_vm8 = vcmp.lt.s32.totalorder %v2658_v30, 1 }
 0x2a1   : > { %v2752_v58 = vand.u32 2139095040, %v10678_v54  ;;  %vm2679_vm9 = vcmp.lt.s32.totalorder %v2658_v30, 3  ;;  %vm2680_vm12 = vcmp.lt.s32.totalorder %v2658_v30, 4  ;;  %v2685_v43 = vsel %vm2677_vm8, %v2664_v38, %v2667_v37 }
 0x2a2   : > { %v2607_v28 = vsub.s32 0, %v10705_v29  ;;  %v2661_v48 = vshrl.u32 %v15256_v0, %v2660_v19  ;;  %v2682_v14 = vsel %vm2680_vm12, %v2670_v23, 2102212464  ;;  %v2686_v26 = vsel %vm2680_vm12, %v2673_v59, 920167782 }
 0x2a3   : > { %v2690_v46 = vsel %vm2680_vm12, %v2676_v15, 1326507024  ;;  %vm2678_vm11 = vcmp.lt.s32.totalorder %v2658_v30, 2  ;;  %v2687_v51 = vsel %vm2679_vm9, %v2670_v23, %v2686_v26  ;;  %v2689_v36 = vsel %vm2677_vm8, %v2667_v37, %v2670_v23 }
 0x2a4   : > { %v7948_v33 = vmin.u32 %v2607_v28, %v10705_v29  ;;  %v2688_v42 = vsel %vm2678_vm11, %v2685_v43, %v2687_v51  ;;  %v2691_v20 = vsel %vm2679_vm9, %v2673_v59, %v2690_v46  ;;  %v2693_v24 = vshll.u32 %v2653_v45, 8 }
 0x2a5   : > { %v2753_v12 = vshrl.u32 %v2752_v58, 23  ;;  %vm2543_vm13 = vcmp.lt.s32.totalorder %v10513_v61, 0  ;;  %v2681_v17 = vsel %vm2677_vm8, %v2661_v48, %v2664_v38  ;;  %v2683_v19 = vsel %vm2679_vm9, %v2667_v37, %v2682_v14  ;;  %v767_v48 = vpop.permute.xlu0 %766 }
 0x2a6   : > { %v2609_v47 = vclz %v7948_v33  ;;  %v2749_v9 = vand.u32 2147483647, %v10678_v54  ;;  %vm2529_vm14 = vweird.f32 %v10403_v11  ;;  %v2692_v10 = vsel %vm2678_vm11, %v2689_v36, %v2691_v20 }
 0x2a7   : > { %v10722_v18 = vmul.u32.u64.low %v2693_v24, %v2688_v42  ;;  %v10723_v63 = vmul.u32.u64.high %v2693_v24, %v2688_v42, %v10722_v18  ;;  %v7955_v13 = vadd.s32 4294967169, %v2753_v12  ;;  %vm2532_vm0 = vcmp.lt.s32.totalorder %v10703_v60, 2 }
 0x2a8   : > { %v7949_v62 = vadd.s32 4294967294, %v2609_v47  ;;  %v10727_v55 = vmul.u32.u64.low %v2693_v24, %v2692_v10  ;;  %v10728_v1 = vmul.u32.u64.high %v2693_v24, %v2692_v10, %v10727_v55  ;;  %vm2533_vm15 = vcmp.eq.s32.totalorder %v10703_v60, 0 }
 0x2a9   : > { %vm2536_vm1 = vcmp.eq.s32.totalorder %v10703_v60, 2  ;;  %v2684_v2 = vsel %vm2678_vm11, %v2681_v17, %v2683_v19  ;;  %v2759_v8 = vadd.s32 1, %v7955_v13  ;;  %v8515_v31 = vpop.eup %8514  ;;  %v2597_v56 = vadd.s32 %v10649_v49, %v10646_v57 }
 0x2aa   : > { %vm7950_vm2 = vcmp.lt.s32.totalorder %v7949_v62, 0  ;;  %v2627_v35 = vsub.s32 4, %v10685_v6  ;;  %v10738_v25 = vand.u32 8388607, %v2749_v9  ;;  %v8517_v22 = vpop.eup %8516  ;;  %v2537_v7 = vxor.u32 2147483648, %v8515_v31 }
 0x2ab   : > { %v2612_v38 = vsel %vm7950_vm2, 0, %v7949_v62  ;;  %v2703_v37 = vadd.s32 1, %v10723_v63  ;;  %vm2760_vm3 = vcmp.gt.s32.totalorder %v2759_v8, 0  ;;  %v2534_v30 = vxor.u32 2147483648, %v8517_v22 }
 0x2ac   : > { %v2613_v50 = vsub.s32 32, %v2612_v38  ;;  %v2617_v23 = vsub.s32 4294967266, %v2612_v38  ;;  %v2700_v59 = vmul.u32 %v2693_v24, %v2684_v2  ;;  %v2538_v57 = vsel %vm2536_vm1, %v2537_v7, %v8517_v22 }
 0x2ad   : > { %v2614_v49 = vshll.u32 %v10705_v29, %v2612_v38  ;;  %vm2702_vm4 = vc.u32 %v10728_v1, %v10722_v18  ;;  %v2761_v15 = vsel %vm2760_vm3, %v2759_v8, 0  ;;  %v2535_v45 = vsel %vm2533_vm15, %v8515_v31, %v2534_v30 }
 0x2ae   : > { %v2615_v58 = vshrl.u32 %v2597_v56, %v2613_v50  ;;  %v2618_v28 = vadd.s32 127, %v2617_v23  ;;  %v2704_v43 = vsel %vm2702_vm4, %v2703_v37, %v10723_v63  ;;  %v2539_v14 = vsel %vm2532_vm0, %v2535_v45, %v2538_v57  ;;  %v15300_v56 = vld [vmem:[#allocation14_spill] sm:$0xff] }
 0x2af   : > { %v2628_v29 = vsel %vm2543_vm13, %v2627_v35, %v10685_v6  ;;  %v2705_v26 = vadd.s32 %v2704_v43, %v2700_v59  ;;  %v2763_v46 = vand.u32 31, %v2761_v15  ;;  %v10756_v33 = vadd.f32 %v10385_v3, %v10593_v5 }
 0x2b0   : > { %v2540_v51 = vsel %vm2529_vm14, nan, %v2539_v14  ;;  %v2616_v36 = vor.u32 %v2615_v58, %v2614_v49  ;;  %v2619_v42 = vshll.u32 %v2618_v28, 23  ;;  %vm10763_vm5 = vcmp.le.f32.partialorder %v2541_v32, 0.7853982 }
 0x2b1   : > { %7754 = vst [vmem:[%s9666_s10 + $0x68] sm:$0xff] %v2540_v51  ;;  %v2706_v20 = vadd.s32 536870912, %v2705_v26  ;;  %v2764_v6 = vsub.s32 32, %v2763_v46  ;;  %v974_v24 = vmul.f32 %v10379_v52, %v767_v48  ;;  %v2630_v3 = vsel %vm10763_vm5, 0, %v2628_v29 }
 0x2b2   : > { %v2620_v12 = vor.u32 4788187, %v2619_v42  ;;  %v2757_v11 = vor.u32 8388608, %v10738_v25  ;;  %v2762_v5 = vshrl.u32 %v2761_v15, 5  ;;  %v2623_v47 = vcvt.s32.f32 %v2616_v36 }
 0x2b3   : > { %v2707_v17 = vshrl.u32 %v2706_v20, 30  ;;  %v2767_v19 = vshrl.u32 %v15257_v39, %v2764_v6  ;;  %v2770_v32 = vshrl.u32 %v15258_v27, %v2764_v6  ;;  %v2773_v63 = vshrl.u32 %v15259_v44, %v2764_v6 }
 0x2b4   : > { %v2621_v10 = vand.u32 2147483647, %v2620_v12  ;;  %v2775_v13 = vshll.u32 %v15259_v44, %v2763_v46  ;;  %v2776_v62 = vshrl.u32 %v15260_v53, %v2764_v6  ;;  %v2766_v2 = vshll.u32 %v15256_v0, %v2763_v46 }
 0x2b5   : > { %v2708_v55 = vshll.u32 %v2707_v17, 30  ;;  %v2769_v8 = vshll.u32 %v15257_v39, %v2763_v46  ;;  %v2772_v31 = vshll.u32 %v15258_v27, %v2763_v46  ;;  %v10781_v35 = vmul.f32 %v10342_v34, %v15300_v56 }
 0x2b6   : > { %v2624_v25 = vmul.f32 %v2623_v47, %v2621_v10  ;;  %v2777_v22 = vor.u32 %v2776_v62, %v2775_v13  ;;  %v2779_v7 = vshrl.u32 %v15261_v41, %v2764_v6  ;;  %vm2647_vm6 = vcmp.lt.s32.totalorder %v10578_v16, 0 }
 0x2b7   : > { %v10785_v38 = vsub.s32 %v2705_v26, %v2708_v55  ;;  %v2768_v37 = vor.u32 %v2767_v19, %v2766_v2  ;;  %v2771_v30 = vor.u32 %v2770_v32, %v2769_v8  ;;  %v2774_v50 = vor.u32 %v2773_v63, %v2772_v31 }
 0x2b8   : > { %v2625_v23 = vxor.u32 2147483648, %v2624_v25  ;;  %v2634_v59 = vadd.s32 3, %v2630_v3  ;;  %v2778_v57 = vshll.u32 %v15260_v53, %v2763_v46  ;;  %v10789_v49 = vadd.f32 %v974_v24, %v10582_v21 }
 0x2b9   : > { %v2711_v34 = vsub.s32 0, %v10785_v38  ;;  %vm2781_vm7 = vcmp.lt.s32.totalorder %v2762_v5, 1  ;;  %vm2784_vm10 = vcmp.lt.s32.totalorder %v2762_v5, 4  ;;  %v2797_v15 = vshll.u32 %v2757_v11, 8 }
 0x2ba   : > { %v2626_v45 = vsel %vm2543_vm13, %v2625_v23, %v2624_v25  ;;  %v2780_v58 = vor.u32 %v2779_v7, %v2778_v57  ;;  %vm2783_vm8 = vcmp.lt.s32.totalorder %v2762_v5, 3  ;;  %v2790_v28 = vsel %vm2784_vm10, %v2777_v22, 920167782 }
 0x2bb   : > { %v2629_v43 = vsel %vm10763_vm5, %v10513_v61, %v2626_v45  ;;  %v7952_v48 = vmin.u32 %v2711_v34, %v10785_v38  ;;  %v2786_v21 = vsel %vm2784_vm10, %v2774_v50, 2102212464  ;;  %v2789_v14 = vsel %vm2781_vm7, %v2768_v37, %v2771_v30 }
 0x2bc   : > { %8518 = vcosq.f32 %v2629_v43  ;;  %v2731_v29 = vsub.s32 4, %v2707_v17  ;;  %v2765_v26 = vshrl.u32 %v15256_v0, %v2764_v6  ;;  %v2791_v46 = vsel %vm2783_vm8, %v2774_v50, %v2790_v28  ;;  %v771_v6 = vpop.permute.xlu1 %770 }
 0x2bd   : > { %8520 = vsinq.f32 %v2629_v43  ;;  %v2713_v51 = vclz %v7952_v48  ;;  %vm2782_vm9 = vcmp.lt.s32.totalorder %v2762_v5, 2  ;;  %v2793_v36 = vsel %vm2781_vm7, %v2771_v30, %v2774_v50 }
 0x2be   : > { %v2785_v42 = vsel %vm2781_vm7, %v2765_v26, %v2768_v37  ;;  %v2787_v60 = vsel %vm2783_vm8, %v2771_v30, %v2786_v21  ;;  %v2792_v20 = vsel %vm2782_vm9, %v2789_v14, %v2791_v46  ;;  %v2794_v24 = vsel %vm2784_vm10, %v2780_v58, 1326507024  ;;  %v775_v26 = vpop.permute.xlu0 %774 }
 0x2bf   : > { %v7953_v12 = vadd.s32 4294967294, %v2713_v51  ;;  %v2795_v3 = vsel %vm2783_vm8, %v2777_v22, %v2794_v24  ;;  %v10808_v11 = vmul.u32.u64.low %v2797_v15, %v2792_v20  ;;  %v10809_v47 = vmul.u32.u64.high %v2797_v15, %v2792_v20, %v10808_v11  ;;  %v10846_v24 = vld [vmem:[%s15171_s1] ss:$0 sm:$0xff] }
 0x2c0   : > { %vm10814_vm12 = vcmp.le.f32.partialorder %v2645_v4, 0.7853982  ;;  %v2732_v32 = vsel %vm2647_vm6, %v2731_v29, %v2707_v17  ;;  %v2796_v10 = vsel %vm2782_vm9, %v2793_v36, %v2795_v3  ;;  %v2856_v63 = vand.u32 2139095040, %v10789_v49 }
 0x2c1   : > { %vm7954_vm11 = vcmp.lt.s32.totalorder %v7953_v12, 0  ;;  %v2788_v5 = vsel %vm2782_vm9, %v2785_v42, %v2787_v60  ;;  %v10821_v13 = vmul.u32.u64.low %v2797_v15, %v2796_v10  ;;  %v10822_v62 = vmul.u32.u64.high %v2797_v15, %v2796_v10, %v10821_v13 }
 0x2c2   : > { %v2635_v55 = vand.u32 3, %v2634_v59  ;;  %v2716_v2 = vsel %vm7954_vm11, 0, %v7953_v12  ;;  %v2857_v8 = vshrl.u32 %v2856_v63, 23  ;;  %v975_v31 = vmul.f32 %v10379_v52, %v771_v6  ;;  %v15303_v12 = vld [vmem:[#allocation15_spill] sm:$0xff] }
 0x2c3   : > { %vm2633_vm13 = vweird.f32 %v10513_v61  ;;  %v2701_v4 = vadd.s32 %v10722_v18, %v10728_v1  ;;  %v2717_v56 = vsub.s32 32, %v2716_v2  ;;  %v2721_v17 = vsub.s32 4294967266, %v2716_v2 }
 0x2c4   : > { %v2807_v25 = vadd.s32 1, %v10809_v47  ;;  %v2734_v22 = vsel %vm10814_vm12, 0, %v2732_v32  ;;  %v2804_v7 = vmul.u32 %v2797_v15, %v2788_v5  ;;  %v2853_v37 = vand.u32 2147483647, %v10789_v49  ;;  %v10857_v32 = vld [vmem:[%s15171_s1 + $0x1] ss:$0 sm:$0xff] }
 0x2c5   : > { %v7959_v30 = vadd.s32 4294967169, %v2857_v8  ;;  %v2718_v50 = vshll.u32 %v10785_v38, %v2716_v2  ;;  %v2719_v23 = vshrl.u32 %v2701_v4, %v2717_v56  ;;  %v2722_v52 = vadd.s32 127, %v2721_v17 }
 0x2c6   : > { %vm2806_vm14 = vc.u32 %v10822_v62, %v10808_v11  ;;  %v8519_v59 = vpop.eup %8518  ;;  %vm2637_vm0 = vcmp.eq.s32.totalorder %v2635_v55, 0  ;;  %v10837_v57 = vadd.f32 %v975_v31, %v10756_v33  ;;  %vm2640_vm15 = vcmp.eq.s32.totalorder %v2635_v55, 2 }
 0x2c7   : > { %v2808_v18 = vsel %vm2806_vm14, %v2807_v25, %v10809_v47  ;;  %v2863_v1 = vadd.s32 1, %v7959_v30  ;;  %v8521_v34 = vpop.eup %8520  ;;  %v2641_v15 = vxor.u32 2147483648, %v8519_v59  ;;  %v2720_v45 = vor.u32 %v2719_v23, %v2718_v50 }
 0x2c8   : > { %v2723_v58 = vshll.u32 %v2722_v52, 23  ;;  %v2809_v28 = vadd.s32 %v2808_v18, %v2804_v7  ;;  %v2638_v43 = vxor.u32 2147483648, %v8521_v34  ;;  %v2738_v38 = vadd.s32 3, %v2734_v22 }
 0x2c9   : > { %vm2864_vm1 = vcmp.gt.s32.totalorder %v2863_v1, 0  ;;  %v2642_v48 = vsel %vm2640_vm15, %v2641_v15, %v8521_v34  ;;  %v2860_v29 = vand.u32 8388607, %v2853_v37  ;;  %vm2636_vm2 = vcmp.lt.s32.totalorder %v2635_v55, 2 }
 0x2ca   : > { %v2724_v21 = vor.u32 4788187, %v2723_v58  ;;  %v2810_v14 = vadd.s32 536870912, %v2809_v28  ;;  %v2639_v33 = vsel %vm2637_vm0, %v8519_v59, %v2638_v43  ;;  %v2865_v46 = vsel %vm2864_vm1, %v2863_v1, 0 }
 0x2cb   : > { %v2960_v51 = vand.u32 2139095040, %v10837_v57  ;;  %v2643_v36 = vsel %vm2636_vm2, %v2639_v33, %v2642_v48  ;;  %v2727_v60 = vcvt.s32.f32 %v2720_v45  ;;  %v10850_v3 = vmul.f32 %v10846_v24, %v15303_v12 }
 0x2cc   : > { %v2725_v42 = vand.u32 2147483647, %v2724_v21  ;;  %v2811_v20 = vshrl.u32 %v2810_v14, 30  ;;  %v2644_v47 = vsel %vm2633_vm13, nan, %v2643_v36  ;;  %v2867_v6 = vand.u32 31, %v2865_v46 }
 0x2cd   : > { %v10860_v10 = vmul.f32 %v10857_v32, %v775_v26  ;;  %7755 = vst [vmem:[%s9666_s10 + $0x70] sm:$0xff] %v2644_v47  ;;  %v10863_v5 = vand.u32 3, %v2738_v38  ;;  %vm2751_vm3 = vcmp.lt.s32.totalorder %v10678_v54, 0  ;;  %v2861_v55 = vor.u32 8388608, %v2860_v29 }
 0x2ce   : > { %v2728_v63 = vmul.f32 %v2727_v60, %v2725_v42  ;;  %v2812_v13 = vshll.u32 %v2811_v20, 30  ;;  %v10868_v61 = vadd.s32 %v10808_v11, %v10822_v62  ;;  %v2868_v2 = vsub.s32 32, %v2867_v6 }
 0x2cf   : > { %v2957_v8 = vand.u32 2147483647, %v10837_v57  ;;  %v2961_v31 = vshrl.u32 %v2960_v51, 23  ;;  %v2835_v17 = vsub.s32 4, %v2811_v20  ;;  %v10873_v25 = vshrl.u32 %v2865_v46, 5 }
 0x2d0   : > { %v2729_v4 = vxor.u32 2147483648, %v2728_v63  ;;  %v10871_v56 = vsub.s32 %v2809_v28, %v2812_v13  ;;  %v2870_v22 = vshll.u32 %v15256_v0, %v2867_v6  ;;  %v2871_v7 = vshrl.u32 %v15257_v39, %v2868_v2 }
 0x2d1   : > { %v2873_v30 = vshll.u32 %v15257_v39, %v2867_v6  ;;  %v2874_v50 = vshrl.u32 %v15258_v27, %v2868_v2  ;;  %v2876_v23 = vshll.u32 %v15258_v27, %v2867_v6  ;;  %v2877_v52 = vshrl.u32 %v15259_v44, %v2868_v2 }
 0x2d2   : > { %v2730_v11 = vsel %vm2647_vm6, %v2729_v4, %v2728_v63  ;;  %v2815_v62 = vsub.s32 0, %v10871_v56  ;;  %v2872_v18 = vor.u32 %v2871_v7, %v2870_v22  ;;  %v2879_v1 = vshll.u32 %v15259_v44, %v2867_v6 }
 0x2d3   : > { %v2733_v59 = vsel %vm10814_vm12, %v10578_v16, %v2730_v11  ;;  %v2880_v34 = vshrl.u32 %v15260_v53, %v2868_v2  ;;  %v2875_v45 = vor.u32 %v2874_v50, %v2873_v30  ;;  %v2878_v58 = vor.u32 %v2877_v52, %v2876_v23 }
 0x2d4   : > { %8522 = vcosq.f32 %v2733_v59  ;;  %v7956_v15 = vmin.u32 %v2815_v62, %v10871_v56  ;;  %v2882_v43 = vshll.u32 %v15260_v53, %v2867_v6  ;;  %v2883_v38 = vshrl.u32 %v15261_v41, %v2868_v2 }
 0x2d5   : > { %8524 = vsinq.f32 %v2733_v59  ;;  %v2881_v28 = vor.u32 %v2880_v34, %v2879_v1  ;;  %v10892_v21 = vshll.u32 %v2861_v55, 8  ;;  %v7963_v19 = vadd.s32 4294967169, %v2961_v31 }
 0x2d6   : > { %v2817_v48 = vclz %v7956_v15  ;;  %v2964_v14 = vand.u32 8388607, %v2957_v8  ;;  %v10898_v29 = vsel %vm2751_vm3, %v2835_v17, %v2811_v20  ;;  %v2869_v26 = vshrl.u32 %v15256_v0, %v2868_v2 }
 0x2d7   : > { %v2884_v33 = vor.u32 %v2883_v38, %v2882_v43  ;;  %vm2885_vm4 = vcmp.lt.s32.totalorder %v10873_v25, 1  ;;  %vm10904_vm5 = vcmp.le.f32.partialorder %v2749_v9, 0.7853982  ;;  %vm2887_vm6 = vcmp.lt.s32.totalorder %v10873_v25, 3 }
 0x2d8   : > { %v7957_v51 = vadd.s32 4294967294, %v2817_v48  ;;  %vm2888_vm7 = vcmp.lt.s32.totalorder %v10873_v25, 4  ;;  %v2893_v36 = vsel %vm2885_vm4, %v2872_v18, %v2875_v45  ;;  %vm2741_vm10 = vcmp.eq.s32.totalorder %v10863_v5, 0 }
 0x2d9   : > { %v2890_v42 = vsel %vm2888_vm7, %v2878_v58, 2102212464  ;;  %v2894_v60 = vsel %vm2888_vm7, %v2881_v28, 920167782  ;;  %v2897_v20 = vsel %vm2885_vm4, %v2875_v45, %v2878_v58  ;;  %v2898_v12 = vsel %vm2888_vm7, %v2884_v33, 1326507024 }
 0x2da   : > { %vm2740_vm8 = vcmp.lt.s32.totalorder %v10863_v5, 2  ;;  %vm7958_vm9 = vcmp.lt.s32.totalorder %v7957_v51, 0  ;;  %vm2886_vm12 = vcmp.lt.s32.totalorder %v10873_v25, 2  ;;  %v2895_v9 = vsel %vm2887_vm6, %v2878_v58, %v2894_v60 }
 0x2db   : > { %v2899_v47 = vsel %vm2887_vm6, %v2881_v28, %v2898_v12  ;;  %vm2737_vm11 = vweird.f32 %v10578_v16  ;;  %v2820_v6 = vsel %vm7958_vm9, 0, %v7957_v51  ;;  %v2889_v63 = vsel %vm2885_vm4, %v2869_v26, %v2872_v18 }
 0x2dc   : > { %v2896_v13 = vsel %vm2886_vm12, %v2893_v36, %v2895_v9  ;;  %v2900_v55 = vsel %vm2886_vm12, %v2897_v20, %v2899_v47  ;;  %v2821_v2 = vsub.s32 32, %v2820_v6  ;;  %v2825_v31 = vsub.s32 4294967266, %v2820_v6 }
 0x2dd   : > { %v2891_v4 = vsel %vm2887_vm6, %v2875_v45, %v2890_v42  ;;  %v2967_v17 = vadd.s32 1, %v7963_v19  ;;  %v10931_v22 = vmul.u32.u64.low %v10892_v21, %v2900_v55  ;;  %v10932_v7 = vmul.u32.u64.high %v10892_v21, %v2900_v55, %v10931_v22 }
 0x2de   : > { %v10935_v30 = vmul.u32.u64.low %v10892_v21, %v2896_v13  ;;  %v10936_v50 = vmul.u32.u64.high %v10892_v21, %v2896_v13, %v10935_v30  ;;  %v8523_v11 = vpop.eup %8522  ;;  %v2822_v62 = vshll.u32 %v10871_v56, %v2820_v6  ;;  %v2823_v23 = vshrl.u32 %v10868_v61, %v2821_v2 }
 0x2df   : > { %v2826_v52 = vadd.s32 127, %v2825_v31  ;;  %vm2968_vm13 = vcmp.gt.s32.totalorder %v2967_v17, 0  ;;  %v8525_v59 = vpop.eup %8524  ;;  %v2745_v18 = vxor.u32 2147483648, %v8523_v11  ;;  %v2892_v1 = vsel %vm2886_vm12, %v2889_v63, %v2891_v4 }
 0x2e0   : > { %v2965_v34 = vor.u32 8388608, %v2964_v14  ;;  %v2969_v15 = vsel %vm2968_vm13, %v2967_v17, 0  ;;  %v2742_v45 = vxor.u32 2147483648, %v8525_v59  ;;  %vm2744_vm14 = vcmp.eq.s32.totalorder %v10863_v5, 2 }
 0x2e1   : > { %v2824_v58 = vor.u32 %v2823_v23, %v2822_v62  ;;  %v2827_v28 = vshll.u32 %v2826_v52, 23  ;;  %v2746_v43 = vsel %vm2744_vm14, %v2745_v18, %v8525_v59  ;;  %v2838_v61 = vsel %vm10904_vm5, 0, %v10898_v29 }
 0x2e2   : > { %vm2910_vm0 = vc.u32 %v10932_v7, %v10935_v30  ;;  %v2911_v56 = vadd.s32 1, %v10936_v50  ;;  %v2743_v25 = vsel %vm2741_vm10, %v8523_v11, %v2742_v45  ;;  %v2908_v48 = vmul.u32 %v10892_v21, %v2892_v1 }
 0x2e3   : > { %v2828_v38 = vor.u32 4788187, %v2827_v28  ;;  %v2971_v19 = vand.u32 31, %v2969_v15  ;;  %v2747_v14 = vsel %vm2740_vm8, %v2743_v25, %v2746_v43  ;;  %v2831_v26 = vcvt.s32.f32 %v2824_v58 }
 0x2e4   : > { %v2912_v33 = vsel %vm2910_vm0, %v2911_v56, %v10936_v50  ;;  %v10956_v51 = vshll.u32 %v2965_v34, 8  ;;  %v2748_v29 = vsel %vm2737_vm11, nan, %v2747_v14  ;;  %v2842_v20 = vadd.s32 3, %v2838_v61 }
 0x2e5   : > { %v2829_v36 = vand.u32 2147483647, %v2828_v38  ;;  %v2913_v42 = vadd.s32 %v2912_v33, %v2908_v48  ;;  %v2972_v60 = vsub.s32 32, %v2971_v19  ;;  %7756 = vst [vmem:[%s9666_s10 + $0x78] sm:$0xff] %v2748_v29  ;;  %v2970_v12 = vshrl.u32 %v2969_v15, 5 }
 0x2e6   : > { %v2974_v21 = vshll.u32 %v15256_v0, %v2971_v19  ;;  %v2977_v9 = vshll.u32 %v15257_v39, %v2971_v19  ;;  %v2980_v63 = vshll.u32 %v15258_v27, %v2971_v19  ;;  %v2983_v55 = vshll.u32 %v15259_v44, %v2971_v19 }
 0x2e7   : > { %v2832_v5 = vmul.f32 %v2831_v26, %v2829_v36  ;;  %v2914_v47 = vadd.s32 536870912, %v2913_v42  ;;  %v2975_v6 = vshrl.u32 %v15257_v39, %v2972_v60  ;;  %v2978_v13 = vshrl.u32 %v15258_v27, %v2972_v60 }
 0x2e8   : > { %v2981_v16 = vshrl.u32 %v15259_v44, %v2972_v60  ;;  %v2984_v2 = vshrl.u32 %v15260_v53, %v2972_v60  ;;  %v2987_v22 = vshrl.u32 %v15261_v41, %v2972_v60  ;;  %v2986_v23 = vshll.u32 %v15260_v53, %v2971_v19 }
 0x2e9   : > { %v2833_v31 = vxor.u32 2147483648, %v2832_v5  ;;  %v2915_v4 = vshrl.u32 %v2914_v47, 30  ;;  %v2976_v17 = vor.u32 %v2975_v6, %v2974_v21  ;;  %v2979_v50 = vor.u32 %v2978_v13, %v2977_v9  ;;  %v11003_v21 = vld [vmem:[%s15172_s2] ss:$0 sm:$0xff] }
 0x2ea   : > { %v2982_v11 = vor.u32 %v2981_v16, %v2980_v63  ;;  %v2985_v62 = vor.u32 %v2984_v2, %v2983_v55  ;;  %vm2989_vm15 = vcmp.lt.s32.totalorder %v2970_v12, 1  ;;  %v10975_v18 = vadd.f32 %v10860_v10, %v10701_v40  ;;  %v779_v10 = vpop.permute.xlu1 %778 }
 0x2eb   : > { %v2834_v52 = vsel %vm2751_vm3, %v2833_v31, %v2832_v5  ;;  %v2916_v59 = vshll.u32 %v2915_v4, 30  ;;  %v2973_v34 = vshrl.u32 %v15256_v0, %v2972_v60  ;;  %v2988_v15 = vor.u32 %v2987_v22, %v2986_v23 }
 0x2ec   : > { %v2837_v1 = vsel %vm10904_vm5, %v10678_v54, %v2834_v52  ;;  %vm2992_vm1 = vcmp.lt.s32.totalorder %v2970_v12, 4  ;;  %v2997_v28 = vsel %vm2989_vm15, %v2976_v17, %v2979_v50  ;;  %vm2990_vm2 = vcmp.lt.s32.totalorder %v2970_v12, 2 }
 0x2ed   : > { %8526 = vcosq.f32 %v2837_v1  ;;  %v10981_v45 = vsub.s32 %v2913_v42, %v2916_v59  ;;  %v2994_v58 = vsel %vm2992_vm1, %v2982_v11, 2102212464  ;;  %vm2991_vm3 = vcmp.lt.s32.totalorder %v2970_v12, 3 }
 0x2ee   : > { %8528 = vsinq.f32 %v2837_v1  ;;  %v2998_v40 = vsel %vm2992_vm1, %v2985_v62, 920167782  ;;  %v2939_v43 = vsub.s32 4, %v2915_v4  ;;  %v2993_v61 = vsel %vm2989_vm15, %v2973_v34, %v2976_v17 }
 0x2ef   : > { %v2919_v46 = vsub.s32 0, %v10981_v45  ;;  %v2999_v56 = vsel %vm2991_vm3, %v2982_v11, %v2998_v40  ;;  %v2995_v25 = vsel %vm2991_vm3, %v2979_v50, %v2994_v58  ;;  %v3001_v48 = vsel %vm2989_vm15, %v2979_v50, %v2982_v11 }
 0x2f0   : > { %v3000_v38 = vsel %vm2990_vm2, %v2997_v28, %v2999_v56  ;;  %v3002_v19 = vsel %vm2992_vm1, %v2988_v15, 1326507024  ;;  %v2843_v14 = vand.u32 3, %v2842_v20  ;;  %v977_v29 = vmul.f32 %v10857_v32, %v779_v10 }
 0x2f1   : > { %v7960_v26 = vmin.u32 %v2919_v46, %v10981_v45  ;;  %v3003_v33 = vsel %vm2991_vm3, %v2985_v62, %v3002_v19  ;;  %vm2855_vm4 = vcmp.lt.s32.totalorder %v10789_v49, 0  ;;  %v652_v20 = vadd.f32 %v11003_v21, %v10850_v3 }
 0x2f2   : > { %v3004_v36 = vsel %vm2990_vm2, %v3001_v48, %v3003_v33  ;;  %v10996_v42 = vmul.u32.u64.low %v10956_v51, %v3000_v38  ;;  %v10997_v60 = vmul.u32.u64.high %v10956_v51, %v3000_v38, %v10996_v42  ;;  %v2940_v5 = vsel %vm2855_vm4, %v2939_v43, %v2915_v4 }
 0x2f3   : > { %v2921_v9 = vclz %v7960_v26  ;;  %v2996_v47 = vsel %vm2990_vm2, %v2993_v61, %v2995_v25  ;;  %v11011_v6 = vmul.u32.u64.low %v10956_v51, %v3004_v36  ;;  %v11012_v63 = vmul.u32.u64.high %v10956_v51, %v3004_v36, %v11011_v6 }
 0x2f4   : > { %v3061_v13 = vand.u32 2147483647, %v10975_v18  ;;  %v3064_v16 = vand.u32 2139095040, %v10975_v18  ;;  %vm2844_vm5 = vcmp.lt.s32.totalorder %v2843_v14, 2  ;;  %vm11018_vm6 = vcmp.le.f32.partialorder %v2853_v37, 0.7853982 }
 0x2f5   : > { %v7961_v3 = vadd.s32 4294967294, %v2921_v9  ;;  %v11022_v2 = vadd.f32 %v977_v29, %v652_v20  ;;  %vm2845_vm7 = vcmp.eq.s32.totalorder %v2843_v14, 0  ;;  %vm2848_vm10 = vcmp.eq.s32.totalorder %v2843_v14, 2  ;;  %v15308_v14 = vld [vmem:[#allocation17_spill] sm:$0xff] }
 0x2f6   : > { %v3015_v12 = vadd.s32 1, %v10997_v60  ;;  %v3065_v31 = vshrl.u32 %v3064_v16, 23  ;;  %v2909_v17 = vadd.s32 %v10935_v30, %v10932_v7  ;;  %v2942_v22 = vsel %vm11018_vm6, 0, %v2940_v5 }
 0x2f7   : > { %v8527_v4 = vpop.eup %8526  ;;  %vm7962_vm8 = vcmp.lt.s32.totalorder %v7961_v3, 0  ;;  %v3012_v37 = vmul.u32 %v10956_v51, %v2996_v47  ;;  %vm3014_vm9 = vc.u32 %v11012_v63, %v10996_v42  ;;  %v3068_v23 = vand.u32 8388607, %v3061_v13 }
 0x2f8   : > { %v8529_v50 = vpop.eup %8528  ;;  %v2849_v11 = vxor.u32 2147483648, %v8527_v4  ;;  %v2924_v62 = vsel %vm7962_vm8, 0, %v7961_v3  ;;  %v3168_v7 = vand.u32 2139095040, %v11022_v2  ;;  %v3016_v51 = vsel %vm3014_vm9, %v3015_v12, %v10997_v60 }
 0x2f9   : > { %v2846_v52 = vxor.u32 2147483648, %v8529_v50  ;;  %v2925_v59 = vsub.s32 32, %v2924_v62  ;;  %v2929_v1 = vsub.s32 4294967266, %v2924_v62  ;;  %v2926_v34 = vshll.u32 %v10981_v45, %v2924_v62 }
 0x2fa   : > { %v2850_v30 = vsel %vm2848_vm10, %v2849_v11, %v8529_v50  ;;  %v7967_v15 = vadd.s32 4294967169, %v3065_v31  ;;  %v3017_v10 = vadd.s32 %v3016_v51, %v3012_v37  ;;  %vm2841_vm12 = vweird.f32 %v10678_v54 }
 0x2fb   : > { %v2847_v58 = vsel %vm2845_vm7, %v8527_v4, %v2846_v52  ;;  %v2927_v28 = vshrl.u32 %v2909_v17, %v2925_v59  ;;  %v2930_v40 = vadd.s32 127, %v2929_v1  ;;  %v2946_v43 = vadd.s32 3, %v2942_v22 }
 0x2fc   : > { %v2851_v46 = vsel %vm2844_vm5, %v2847_v58, %v2850_v30  ;;  %v3071_v61 = vadd.s32 1, %v7967_v15  ;;  %v3018_v48 = vadd.s32 536870912, %v3017_v10  ;;  %v3069_v45 = vor.u32 8388608, %v3068_v23 }
 0x2fd   : > { %v2852_v56 = vsel %vm2841_vm12, nan, %v2851_v46  ;;  %v2928_v25 = vor.u32 %v2927_v28, %v2926_v34  ;;  %v2931_v38 = vshll.u32 %v2930_v40, 23  ;;  %v3165_v19 = vand.u32 2147483647, %v11022_v2 }
 0x2fe   : > { %7757 = vst [vmem:[%s9666_s10 + $0x80] sm:$0xff] %v2852_v56  ;;  %vm3072_vm11 = vcmp.gt.s32.totalorder %v3071_v61, 0  ;;  %v3019_v33 = vshrl.u32 %v3018_v48, 30  ;;  %v3169_v36 = vshrl.u32 %v3168_v7, 23  ;;  %v11045_v54 = vadd.f32 %v11003_v21, %v10781_v35 }
 0x2ff   : > { %v2932_v26 = vor.u32 4788187, %v2931_v38  ;;  %v3073_v29 = vsel %vm3072_vm11, %v3071_v61, 0  ;;  %v11049_v60 = vmul.f32 %v10846_v24, %v15308_v14  ;;  %v2935_v5 = vcvt.s32.f32 %v2928_v25 }
 0x300   : > { %v3075_v20 = vand.u32 31, %v3073_v29  ;;  %v11051_v47 = vand.u32 3, %v2946_v43  ;;  %vm2959_vm13 = vcmp.lt.s32.totalorder %v10837_v57, 0  ;;  %v3020_v6 = vshll.u32 %v3019_v33, 30 }
 0x301   : > { %v2933_v9 = vand.u32 2147483647, %v2932_v26  ;;  %v11056_v16 = vadd.s32 %v10996_v42, %v11012_v63  ;;  %v11058_v12 = vshll.u32 %v3069_v45, 8  ;;  %v11062_v35 = vand.u32 8388607, %v3165_v19 }
 0x302   : > { %v3076_v3 = vsub.s32 32, %v3075_v20  ;;  %v11064_v4 = vsub.s32 %v3017_v10, %v3020_v6  ;;  %v11066_v17 = vshrl.u32 %v3073_v29, 5  ;;  %v7971_v22 = vadd.s32 4294967169, %v3169_v36 }
 0x303   : > { %v2936_v31 = vmul.f32 %v2935_v5, %v2933_v9  ;;  %v3043_v37 = vsub.s32 4, %v3019_v33  ;;  %v3078_v50 = vshll.u32 %v15256_v0, %v3075_v20  ;;  %v3081_v23 = vshll.u32 %v15257_v39, %v3075_v20 }
 0x304   : > { %v3079_v11 = vshrl.u32 %v15257_v39, %v3076_v3  ;;  %v3082_v42 = vshrl.u32 %v15258_v27, %v3076_v3  ;;  %v3023_v62 = vsub.s32 0, %v11064_v4  ;;  %v3085_v52 = vshrl.u32 %v15259_v44, %v3076_v3 }
 0x305   : > { %v2937_v63 = vxor.u32 2147483648, %v2936_v31  ;;  %v3084_v1 = vshll.u32 %v15258_v27, %v3075_v20  ;;  %v3087_v7 = vshll.u32 %v15259_v44, %v3075_v20  ;;  %v3088_v30 = vshrl.u32 %v15260_v53, %v3076_v3 }
 0x306   : > { %v3080_v59 = vor.u32 %v3079_v11, %v3078_v50  ;;  %v7964_v51 = vmin.u32 %v3023_v62, %v11064_v4  ;;  %v3083_v15 = vor.u32 %v3082_v42, %v3081_v23  ;;  %v3090_v58 = vshll.u32 %v15260_v53, %v3075_v20 }
 0x307   : > { %v2938_v34 = vsel %vm2855_vm4, %v2937_v63, %v2936_v31  ;;  %v3086_v40 = vor.u32 %v3085_v52, %v3084_v1  ;;  %v3089_v10 = vor.u32 %v3088_v30, %v3087_v7  ;;  %v3091_v46 = vshrl.u32 %v15261_v41, %v3076_v3  ;;  %v783_v52 = vpop.permute.xlu0 %782 }
 0x308   : > { %v2941_v28 = vsel %vm11018_vm6, %v10789_v49, %v2938_v34  ;;  %v3025_v43 = vclz %v7964_v51  ;;  %v3173_v61 = vor.u32 8388608, %v11062_v35  ;;  %v3175_v56 = vadd.s32 1, %v7971_v22 }
 0x309   : > { %8530 = vcosq.f32 %v2941_v28  ;;  %vm11088_vm14 = vcmp.le.f32.partialorder %v2957_v8, 0.7853982  ;;  %v3044_v55 = vsel %vm2959_vm13, %v3043_v37, %v3019_v33  ;;  %v3077_v38 = vshrl.u32 %v15256_v0, %v3076_v3 }
 0x30a   : > { %8532 = vsinq.f32 %v2941_v28  ;;  %v3092_v48 = vor.u32 %v3091_v46, %v3090_v58  ;;  %v7965_v45 = vadd.s32 4294967294, %v3025_v43  ;;  %vm3093_vm0 = vcmp.lt.s32.totalorder %v11066_v17, 1  ;;  %v787_v58 = vpop.permute.xlu1 %786 }
 0x30b   : > { %vm3095_vm15 = vcmp.lt.s32.totalorder %v11066_v17, 3  ;;  %vm3096_vm1 = vcmp.lt.s32.totalorder %v11066_v17, 4  ;;  %v3101_v29 = vsel %vm3093_vm0, %v3080_v59, %v3083_v15  ;;  %v3105_v8 = vsel %vm3093_vm0, %v3083_v15, %v3086_v40 }
 0x30c   : > { %v3098_v26 = vsel %vm3096_vm1, %v3086_v40, 2102212464  ;;  %v3102_v36 = vsel %vm3096_vm1, %v3089_v10, 920167782  ;;  %vm7966_vm2 = vcmp.lt.s32.totalorder %v7965_v45, 0  ;;  %vm3094_vm3 = vcmp.lt.s32.totalorder %v11066_v17, 2 }
 0x30d   : > { %v3103_v33 = vsel %vm3095_vm15, %v3086_v40, %v3102_v36  ;;  %v3106_v14 = vsel %vm3096_vm1, %v3092_v48, 1326507024  ;;  %vm2949_vm4 = vcmp.eq.s32.totalorder %v11051_v47, 0  ;;  %v3028_v20 = vsel %vm7966_vm2, 0, %v7965_v45 }
 0x30e   : > { %v3097_v9 = vsel %vm3093_vm0, %v3077_v38, %v3080_v59  ;;  %v3104_v5 = vsel %vm3094_vm3, %v3101_v29, %v3103_v33  ;;  %v3107_v6 = vsel %vm3095_vm15, %v3089_v10, %v3106_v14  ;;  %vm2948_vm5 = vcmp.lt.s32.totalorder %v11051_v47, 2 }
 0x30f   : > { %v3029_v3 = vsub.s32 32, %v3028_v20  ;;  %v3033_v35 = vsub.s32 4294967266, %v3028_v20  ;;  %v3099_v31 = vsel %vm3095_vm15, %v3083_v15, %v3098_v26  ;;  %v3108_v22 = vsel %vm3094_vm3, %v3105_v8, %v3107_v6 }
 0x310   : > { %vm2945_vm6 = vweird.f32 %v10789_v49  ;;  %v11113_v37 = vmul.u32.u64.low %v11058_v12, %v3108_v22  ;;  %v11114_v50 = vmul.u32.u64.high %v11058_v12, %v3108_v22, %v11113_v37  ;;  %v3030_v63 = vshll.u32 %v11064_v4, %v3028_v20 }
 0x311   : > { %v11117_v11 = vmul.u32.u64.low %v11058_v12, %v3104_v5  ;;  %v11118_v42 = vmul.u32.u64.high %v11058_v12, %v3104_v5, %v11117_v11  ;;  %v3031_v62 = vshrl.u32 %v11056_v16, %v3029_v3  ;;  %v3034_v23 = vadd.s32 127, %v3033_v35 }
 0x312   : > { %vm3176_vm7 = vcmp.gt.s32.totalorder %v3175_v56, 0  ;;  %vm2952_vm10 = vcmp.eq.s32.totalorder %v11051_v47, 2  ;;  %v3100_v59 = vsel %vm3094_vm3, %v3097_v9, %v3099_v31  ;;  %v11126_v7 = vshll.u32 %v3173_v61, 8 }
 0x313   : > { %v3177_v1 = vsel %vm3176_vm7, %v3175_v56, 0  ;;  %v8531_v30 = vpop.eup %8530  ;;  %v3032_v34 = vor.u32 %v3031_v62, %v3030_v63  ;;  %v3035_v51 = vshll.u32 %v3034_v23, 23  ;;  %v3046_v15 = vsel %vm11088_vm14, 0, %v3044_v55 }
 0x314   : > { %v3179_v4 = vand.u32 31, %v3177_v1  ;;  %v8533_v16 = vpop.eup %8532  ;;  %v2953_v28 = vxor.u32 2147483648, %v8531_v30  ;;  %vm3118_vm8 = vc.u32 %v11114_v50, %v11117_v11  ;;  %v3119_v40 = vadd.s32 1, %v11118_v42 }
 0x315   : > { %v978_v17 = vmul.f32 %v10857_v32, %v783_v52  ;;  %v2950_v10 = vxor.u32 2147483648, %v8533_v16  ;;  %v3036_v46 = vor.u32 4788187, %v3035_v51  ;;  %v3116_v43 = vmul.u32 %v11058_v12, %v3100_v59 }
 0x316   : > { %v3180_v61 = vsub.s32 32, %v3179_v4  ;;  %v2954_v56 = vsel %vm2952_vm10, %v2953_v28, %v8533_v16  ;;  %v3050_v55 = vadd.s32 3, %v3046_v15  ;;  %v3120_v38 = vsel %vm3118_vm8, %v3119_v40, %v11118_v42 }
 0x317   : > { %v11139_v48 = vmul.f32 %v10857_v32, %v787_v58  ;;  %v2951_v45 = vsel %vm2949_vm4, %v8531_v30, %v2950_v10  ;;  %v3037_v26 = vand.u32 2147483647, %v3036_v46  ;;  %v3039_v29 = vcvt.s32.f32 %v3032_v34 }
 0x318   : > { %v3121_v36 = vadd.s32 %v3120_v38, %v3116_v43  ;;  %v2955_v12 = vsel %vm2948_vm5, %v2951_v45, %v2954_v56  ;;  %v3182_v8 = vshll.u32 %v15256_v0, %v3179_v4  ;;  %v3183_v33 = vshrl.u32 %v15257_v39, %v3180_v61 }
 0x319   : > { %v3186_v14 = vshrl.u32 %v15258_v27, %v3180_v61  ;;  %v2956_v20 = vsel %vm2945_vm6, nan, %v2955_v12  ;;  %v3040_v9 = vmul.f32 %v3039_v29, %v3037_v26  ;;  %v3189_v6 = vshrl.u32 %v15259_v44, %v3180_v61  ;;  %v15311_v26 = vld [vmem:[#allocation16_spill] sm:$0xff] }
 0x31a   : > { %v3122_v5 = vadd.s32 536870912, %v3121_v36  ;;  %7758 = vst [vmem:[%s9666_s10 + $0x88] sm:$0xff] %v2956_v20  ;;  %v3178_v3 = vshrl.u32 %v3177_v1, 5  ;;  %v3185_v35 = vshll.u32 %v15257_v39, %v3179_v4  ;;  %v3188_v47 = vshll.u32 %v15258_v27, %v3179_v4 }
 0x31b   : > { %v3192_v31 = vshrl.u32 %v15260_v53, %v3180_v61  ;;  %v3041_v22 = vxor.u32 2147483648, %v3040_v9  ;;  %v3184_v42 = vor.u32 %v3183_v33, %v3182_v8  ;;  %v3191_v63 = vshll.u32 %v15259_v44, %v3179_v4 }
 0x31c   : > { %v3123_v37 = vshrl.u32 %v3122_v5, 30  ;;  %v3187_v62 = vor.u32 %v3186_v14, %v3185_v35  ;;  %v3190_v49 = vor.u32 %v3189_v6, %v3188_v47  ;;  %v3194_v23 = vshll.u32 %v15260_v53, %v3179_v4 }
 0x31d   : > { %v3195_v52 = vshrl.u32 %v15261_v41, %v3180_v61  ;;  %v3042_v59 = vsel %vm2959_vm13, %v3041_v22, %v3040_v9  ;;  %v11160_v1 = vand.u32 3, %v3050_v55  ;;  %v3193_v34 = vor.u32 %v3192_v31, %v3191_v63 }
 0x31e   : > { %v3124_v30 = vshll.u32 %v3123_v37, 30  ;;  %v3045_v51 = vsel %vm11088_vm14, %v10837_v57, %v3042_v59  ;;  %v3181_v15 = vshrl.u32 %v15256_v0, %v3180_v61  ;;  %v11167_v16 = vadd.f32 %v978_v17, %v11045_v54 }
 0x31f   : > { %v3196_v58 = vor.u32 %v3195_v52, %v3194_v23  ;;  %8534 = vcosq.f32 %v3045_v51  ;;  %vm3197_vm9 = vcmp.lt.s32.totalorder %v3178_v3, 1  ;;  %vm3200_vm12 = vcmp.lt.s32.totalorder %v3178_v3, 4 }
 0x320   : > { %v11169_v4 = vsub.s32 %v3121_v36, %v3124_v30  ;;  %8536 = vsinq.f32 %v3045_v51  ;;  %vm3198_vm11 = vcmp.lt.s32.totalorder %v3178_v3, 2  ;;  %v3202_v28 = vsel %vm3200_vm12, %v3190_v49, 2102212464 }
 0x321   : > { %v3205_v40 = vsel %vm3197_vm9, %v3184_v42, %v3187_v62  ;;  %v3147_v46 = vsub.s32 4, %v3123_v37  ;;  %vm3199_vm13 = vcmp.lt.s32.totalorder %v3178_v3, 3  ;;  %v3206_v25 = vsel %vm3200_vm12, %v3193_v34, 920167782 }
 0x322   : > { %v3127_v10 = vsub.s32 0, %v11169_v4  ;;  %v3201_v43 = vsel %vm3197_vm9, %v3181_v15, %v3184_v42  ;;  %v3207_v61 = vsel %vm3199_vm13, %v3190_v49, %v3206_v25  ;;  %v3209_v56 = vsel %vm3197_vm9, %v3187_v62, %v3190_v49 }
 0x323   : > { %v3210_v55 = vsel %vm3200_vm12, %v3196_v58, 1326507024  ;;  %v3203_v17 = vsel %vm3199_vm13, %v3187_v62, %v3202_v28  ;;  %v3208_v38 = vsel %vm3198_vm11, %v3205_v40, %v3207_v61  ;;  %v585_v29 = vmul.f32 %v10846_v24, %v15311_v26  ;;  %v15314_v26 = vld [vmem:[#allocation18_spill] sm:$0xff] }
 0x324   : > { %v7968_v54 = vmin.u32 %v3127_v10, %v11169_v4  ;;  %v3211_v45 = vsel %vm3199_vm13, %v3193_v34, %v3210_v55  ;;  %v11178_v12 = vmul.u32.u64.low %v11126_v7, %v3208_v38  ;;  %v11179_v8 = vmul.u32.u64.high %v11126_v7, %v3208_v38, %v11178_v12  ;;  %v791_v55 = vpop.permute.xlu0 %790 }
 0x325   : > { %v3212_v36 = vsel %vm3198_vm11, %v3209_v56, %v3211_v45  ;;  %v654_v33 = vadd.f32 %v11003_v21, %v11049_v60  ;;  %vm11186_vm14 = vcmp.le.f32.partialorder %v3061_v13, 0.7853982  ;;  %vm3063_vm0 = vcmp.lt.s32.totalorder %v10975_v18, 0 }
 0x326   : > { %v3129_v20 = vclz %v7968_v54  ;;  %v3148_v9 = vsel %vm3063_vm0, %v3147_v46, %v3123_v37  ;;  %v3204_v5 = vsel %vm3198_vm11, %v3201_v43, %v3203_v17  ;;  %vm3052_vm15 = vcmp.lt.s32.totalorder %v11160_v1, 2 }
 0x327   : > { %v11195_v6 = vmul.u32.u64.low %v11126_v7, %v3212_v36  ;;  %v11196_v35 = vmul.u32.u64.high %v11126_v7, %v3212_v36, %v11195_v6  ;;  %v3272_v13 = vand.u32 2139095040, %v11167_v16  ;;  %v11201_v47 = vadd.f32 %v11139_v48, %v654_v33 }
 0x328   : > { %v7969_v60 = vadd.s32 4294967294, %v3129_v20  ;;  %vm3053_vm1 = vcmp.eq.s32.totalorder %v11160_v1, 0  ;;  %vm3056_vm2 = vcmp.eq.s32.totalorder %v11160_v1, 2  ;;  %v3117_v3 = vadd.s32 %v11117_v11, %v11114_v50 }
 0x329   : > { %v3223_v31 = vadd.s32 1, %v11179_v8  ;;  %v8535_v22 = vpop.eup %8534  ;;  %v3150_v37 = vsel %vm11186_vm14, 0, %v3148_v9  ;;  %v3220_v42 = vmul.u32 %v11126_v7, %v3204_v5  ;;  %v3273_v63 = vshrl.u32 %v3272_v13, 23 }
 0x32a   : > { %vm7970_vm3 = vcmp.lt.s32.totalorder %v7969_v60, 0  ;;  %v8537_v62 = vpop.eup %8536  ;;  %v3057_v48 = vxor.u32 2147483648, %v8535_v22  ;;  %vm3222_vm4 = vc.u32 %v11196_v35, %v11178_v12  ;;  %v3269_v23 = vand.u32 2147483647, %v11167_v16 }
 0x32b   : > { %v3132_v49 = vsel %vm7970_vm3, 0, %v7969_v60  ;;  %v3054_v52 = vxor.u32 2147483648, %v8537_v62  ;;  %v3376_v59 = vand.u32 2139095040, %v11201_v47  ;;  %v3224_v7 = vsel %vm3222_vm4, %v3223_v31, %v11179_v8  ;;  %v15315_v8 = vld [vmem:[#allocation19_spill] sm:$0xff] }
 0x32c   : > { %v3133_v50 = vsub.s32 32, %v3132_v49  ;;  %v3137_v11 = vsub.s32 4294967266, %v3132_v49  ;;  %v3058_v30 = vsel %vm3056_vm2, %v3057_v48, %v8537_v62  ;;  %v3134_v34 = vshll.u32 %v11169_v4, %v3132_v49 }
 0x32d   : > { %v7975_v51 = vadd.s32 4294967169, %v3273_v63  ;;  %v3055_v15 = vsel %vm3053_vm1, %v8535_v22, %v3054_v52  ;;  %v3225_v40 = vadd.s32 %v3224_v7, %v3220_v42  ;;  %vm3049_vm5 = vweird.f32 %v10837_v57 }
 0x32e   : > { %v3135_v58 = vshrl.u32 %v3117_v3, %v3133_v50  ;;  %v3138_v28 = vadd.s32 127, %v3137_v11  ;;  %v3059_v10 = vsel %vm3052_vm15, %v3055_v15, %v3058_v30  ;;  %v3154_v46 = vadd.s32 3, %v3150_v37 }
 0x32f   : > { %v3279_v25 = vadd.s32 1, %v7975_v51  ;;  %v3060_v43 = vsel %vm3049_vm5, nan, %v3059_v10  ;;  %v3226_v56 = vadd.s32 536870912, %v3225_v40  ;;  %v11225_v54 = vadd.f32 %v11003_v21, %v585_v29 }
 0x330   : > { %v3136_v61 = vor.u32 %v3135_v58, %v3134_v34  ;;  %v3139_v4 = vshll.u32 %v3138_v28, 23  ;;  %7759 = vst [vmem:[%s9666_s10 + $0x90] sm:$0xff] %v3060_v43  ;;  %v3276_v17 = vand.u32 8388607, %v3269_v23  ;;  %v3377_v1 = vshrl.u32 %v3376_v59, 23 }
 0x331   : > { %vm3280_vm6 = vcmp.gt.s32.totalorder %v3279_v25, 0  ;;  %v3227_v57 = vshrl.u32 %v3226_v56, 30  ;;  %v11232_v36 = vmul.f32 %v10846_v24, %v15314_v26  ;;  %v11236_v33 = vmul.f32 %v10846_v24, %v15315_v8 }
 0x332   : > { %v3140_v38 = vor.u32 4788187, %v3139_v4  ;;  %v3281_v45 = vsel %vm3280_vm6, %v3279_v25, 0  ;;  %v11239_v29 = vmul.f32 %v10857_v32, %v791_v55  ;;  %v3143_v5 = vcvt.s32.f32 %v3136_v61 }
 0x333   : > { %v3283_v20 = vand.u32 31, %v3281_v45  ;;  %v11241_v6 = vand.u32 3, %v3154_v46  ;;  %vm3167_vm7 = vcmp.lt.s32.totalorder %v11022_v2, 0  ;;  %v3228_v60 = vshll.u32 %v3227_v57, 30 }
 0x334   : > { %v3141_v9 = vand.u32 2147483647, %v3140_v38  ;;  %v11246_v13 = vadd.s32 %v11178_v12, %v11196_v35  ;;  %v3277_v3 = vor.u32 8388608, %v3276_v17  ;;  %v3373_v24 = vand.u32 2147483647, %v11201_v47 }
 0x335   : > { %v3284_v31 = vsub.s32 32, %v3283_v20  ;;  %v11249_v37 = vsub.s32 %v3225_v40, %v3228_v60  ;;  %v11251_v32 = vshrl.u32 %v3281_v45, 5  ;;  %v7979_v42 = vadd.s32 4294967169, %v3377_v1 }
 0x336   : > { %v3144_v22 = vmul.f32 %v3143_v5, %v3141_v9  ;;  %v3251_v63 = vsub.s32 4, %v3227_v57  ;;  %v3286_v62 = vshll.u32 %v15256_v0, %v3283_v20  ;;  %v3289_v35 = vshll.u32 %v15257_v39, %v3283_v20 }
 0x337   : > { %v3287_v48 = vshrl.u32 %v15257_v39, %v3284_v31  ;;  %v3290_v49 = vshrl.u32 %v15258_v27, %v3284_v31  ;;  %v3231_v12 = vsub.s32 0, %v11249_v37  ;;  %v3293_v50 = vshrl.u32 %v15259_v44, %v3284_v31 }
 0x338   : > { %v3145_v52 = vxor.u32 2147483648, %v3144_v22  ;;  %v3292_v59 = vshll.u32 %v15258_v27, %v3283_v20  ;;  %v3295_v30 = vshll.u32 %v15259_v44, %v3283_v20  ;;  %v3296_v34 = vshrl.u32 %v15260_v53, %v3284_v31 }
 0x339   : > { %v3288_v11 = vor.u32 %v3287_v48, %v3286_v62  ;;  %v7972_v51 = vmin.u32 %v3231_v12, %v11249_v37  ;;  %v3291_v15 = vor.u32 %v3290_v49, %v3289_v35  ;;  %v3298_v58 = vshll.u32 %v15260_v53, %v3283_v20 }
 0x33a   : > { %v3146_v7 = vsel %vm3063_vm0, %v3145_v52, %v3144_v22  ;;  %v3294_v40 = vor.u32 %v3293_v50, %v3292_v59  ;;  %v3297_v10 = vor.u32 %v3296_v34, %v3295_v30  ;;  %v3299_v46 = vshrl.u32 %v15261_v41, %v3284_v31 }
 0x33b   : > { %v3149_v28 = vsel %vm11186_vm14, %v10975_v18, %v3146_v7  ;;  %v3233_v25 = vclz %v7972_v51  ;;  %v11270_v43 = vshll.u32 %v3277_v3, 8  ;;  %v3383_v61 = vadd.s32 1, %v7979_v42 }
 0x33c   : > { %8538 = vcosq.f32 %v3149_v28  ;;  %vm11274_vm10 = vcmp.le.f32.partialorder %v3165_v19, 0.7853982  ;;  %v3252_v14 = vsel %vm3167_vm7, %v3251_v63, %v3227_v57  ;;  %v3285_v56 = vshrl.u32 %v15256_v0, %v3284_v31 }
 0x33d   : > { %8540 = vsinq.f32 %v3149_v28  ;;  %v3300_v55 = vor.u32 %v3299_v46, %v3298_v58  ;;  %v7973_v17 = vadd.s32 4294967294, %v3233_v25  ;;  %vm3301_vm8 = vcmp.lt.s32.totalorder %v11251_v32, 1 }
 0x33e   : > { %vm3303_vm9 = vcmp.lt.s32.totalorder %v11251_v32, 3  ;;  %vm3304_vm12 = vcmp.lt.s32.totalorder %v11251_v32, 4  ;;  %v3309_v45 = vsel %vm3301_vm8, %v3288_v11, %v3291_v15  ;;  %v3313_v19 = vsel %vm3301_vm8, %v3291_v15, %v3294_v40 }
 0x33f   : > { %v3306_v38 = vsel %vm3304_vm12, %v3294_v40, 2102212464  ;;  %v3310_v1 = vsel %vm3304_vm12, %v3297_v10, 920167782  ;;  %vm7974_vm11 = vcmp.lt.s32.totalorder %v7973_v17, 0  ;;  %vm3302_vm13 = vcmp.lt.s32.totalorder %v11251_v32, 2 }
 0x340   : > { %v3311_v57 = vsel %vm3303_vm9, %v3294_v40, %v3310_v1  ;;  %v3314_v26 = vsel %vm3304_vm12, %v3300_v55, 1326507024  ;;  %vm3157_vm14 = vcmp.eq.s32.totalorder %v11241_v6, 0  ;;  %v3236_v8 = vsel %vm7974_vm11, 0, %v7973_v17 }
 0x341   : > { %v3305_v20 = vsel %vm3301_vm8, %v3285_v56, %v3288_v11  ;;  %v3312_v9 = vsel %vm3302_vm13, %v3309_v45, %v3311_v57  ;;  %v3315_v5 = vsel %vm3303_vm9, %v3297_v10, %v3314_v26  ;;  %vm3156_vm0 = vcmp.lt.s32.totalorder %v11241_v6, 2 }
 0x342   : > { %v3237_v60 = vsub.s32 32, %v3236_v8  ;;  %v3241_v3 = vsub.s32 4294967266, %v3236_v8  ;;  %v3307_v31 = vsel %vm3303_vm9, %v3291_v15, %v3306_v38  ;;  %v3316_v22 = vsel %vm3302_vm13, %v3313_v19, %v3315_v5 }
 0x343   : > { %vm3153_vm15 = vweird.f32 %v10975_v18  ;;  %v11299_v42 = vmul.u32.u64.low %v11270_v43, %v3316_v22  ;;  %v11300_v63 = vmul.u32.u64.high %v11270_v43, %v3316_v22, %v11299_v42  ;;  %v3238_v49 = vshll.u32 %v11249_v37, %v3236_v8 }
 0x344   : > { %v11303_v62 = vmul.u32.u64.low %v11270_v43, %v3312_v9  ;;  %v11304_v48 = vmul.u32.u64.high %v11270_v43, %v3312_v9, %v11303_v62  ;;  %v3239_v52 = vshrl.u32 %v11246_v13, %v3237_v60  ;;  %v3242_v12 = vadd.s32 127, %v3241_v3 }
 0x345   : > { %vm3384_vm1 = vcmp.gt.s32.totalorder %v3383_v61, 0  ;;  %vm3160_vm2 = vcmp.eq.s32.totalorder %v11241_v6, 2  ;;  %v3308_v35 = vsel %vm3302_vm13, %v3305_v20, %v3307_v31  ;;  %v3380_v50 = vand.u32 8388607, %v3373_v24 }
 0x346   : > { %v3385_v11 = vsel %vm3384_vm1, %v3383_v61, 0  ;;  %v8539_v59 = vpop.eup %8538  ;;  %v3240_v30 = vor.u32 %v3239_v52, %v3238_v49  ;;  %v3243_v34 = vshll.u32 %v3242_v12, 23  ;;  %v3254_v7 = vsel %vm11274_vm10, 0, %v3252_v14 }
 0x347   : > { %v3387_v37 = vand.u32 31, %v3385_v11  ;;  %v8541_v51 = vpop.eup %8540  ;;  %v3161_v13 = vxor.u32 2147483648, %v8539_v59  ;;  %vm3326_vm3 = vc.u32 %v11300_v63, %v11303_v62  ;;  %v3327_v15 = vadd.s32 1, %v11304_v48 }
 0x348   : > { %v11321_v32 = vadd.f32 %v11239_v29, %v11225_v54  ;;  %v3158_v58 = vxor.u32 2147483648, %v8541_v51  ;;  %v3244_v28 = vor.u32 4788187, %v3243_v34  ;;  %v3324_v40 = vmul.u32 %v11270_v43, %v3308_v35 }
 0x349   : > { %v3388_v10 = vsub.s32 32, %v3387_v37  ;;  %v3162_v46 = vsel %vm3160_vm2, %v3161_v13, %v8541_v51  ;;  %v3258_v25 = vadd.s32 3, %v3254_v7  ;;  %v3328_v61 = vsel %vm3326_vm3, %v3327_v15, %v11304_v48 }
 0x34a   : > { %v3381_v14 = vor.u32 8388608, %v3380_v50  ;;  %v3159_v56 = vsel %vm3157_vm14, %v8539_v59, %v3158_v58  ;;  %v3245_v55 = vand.u32 2147483647, %v3244_v28  ;;  %v3247_v17 = vcvt.s32.f32 %v3240_v30 }
 0x34b   : > { %v3329_v54 = vadd.s32 %v3328_v61, %v3324_v40  ;;  %v3163_v29 = vsel %vm3156_vm0, %v3159_v56, %v3162_v46  ;;  %v3390_v43 = vshll.u32 %v15256_v0, %v3387_v37  ;;  %v3391_v38 = vshrl.u32 %v15257_v39, %v3388_v10 }
 0x34c   : > { %v3394_v45 = vshrl.u32 %v15258_v27, %v3388_v10  ;;  %v3164_v1 = vsel %vm3153_vm15, nan, %v3163_v29  ;;  %v3248_v19 = vmul.f32 %v3247_v17, %v3245_v55  ;;  %v3397_v26 = vshrl.u32 %v15259_v44, %v3388_v10 }
 0x34d   : > { %v3330_v57 = vadd.s32 536870912, %v3329_v54  ;;  %7760 = vst [vmem:[%s9666_s10 + $0x98] sm:$0xff] %v3164_v1  ;;  %v3386_v8 = vshrl.u32 %v3385_v11, 5  ;;  %v3393_v20 = vshll.u32 %v15257_v39, %v3387_v37  ;;  %v3396_v6 = vshll.u32 %v15258_v27, %v3387_v37 }
 0x34e   : > { %v3400_v9 = vshrl.u32 %v15260_v53, %v3388_v10  ;;  %v3249_v5 = vxor.u32 2147483648, %v3248_v19  ;;  %v3392_v3 = vor.u32 %v3391_v38, %v3390_v43  ;;  %v3399_v31 = vshll.u32 %v15259_v44, %v3387_v37 }
 0x34f   : > { %v3331_v60 = vshrl.u32 %v3330_v57, 30  ;;  %vm3271_vm4 = vcmp.lt.s32.totalorder %v11167_v16, 0  ;;  %v3395_v18 = vor.u32 %v3394_v45, %v3393_v20  ;;  %v3398_v22 = vor.u32 %v3397_v26, %v3396_v6  ;;  %v11380_v26 = vld [vmem:[%s15171_s1] ss:$0 sm:$0xff]  ;;  %v15318_v20 = vld [vmem:[#allocation20_spill] sm:$0xff] }
 0x350   : > { %v3402_v42 = vshll.u32 %v15260_v53, %v3387_v37  ;;  %v3403_v48 = vshrl.u32 %v15261_v41, %v3388_v10  ;;  %v3250_v49 = vsel %vm3167_vm7, %v3249_v5, %v3248_v19  ;;  %v11347_v52 = vand.u32 3, %v3258_v25 }
 0x351   : > { %v3332_v12 = vshll.u32 %v3331_v60, 30  ;;  %v3401_v35 = vor.u32 %v3400_v9, %v3399_v31  ;;  %v3253_v50 = vsel %vm11274_vm10, %v11022_v2, %v3250_v49  ;;  %v3389_v11 = vshrl.u32 %v15256_v0, %v3388_v10 }
 0x352   : > { %v3404_v59 = vor.u32 %v3403_v48, %v3402_v42  ;;  %v11353_v30 = vshll.u32 %v3381_v14, 8  ;;  %8542 = vcosq.f32 %v3253_v50  ;;  %vm3405_vm5 = vcmp.lt.s32.totalorder %v3386_v8, 1 }
 0x353   : > { %v11355_v34 = vsub.s32 %v3329_v54, %v3332_v12  ;;  %vm3408_vm6 = vcmp.lt.s32.totalorder %v3386_v8, 4  ;;  %8544 = vsinq.f32 %v3253_v50  ;;  %vm3406_vm7 = vcmp.lt.s32.totalorder %v3386_v8, 2 }
 0x354   : > { %v3410_v7 = vsel %vm3408_vm6, %v3398_v22, 2102212464  ;;  %v3413_v37 = vsel %vm3405_vm5, %v3392_v3, %v3395_v18  ;;  %v3355_v13 = vsub.s32 4, %v3331_v60  ;;  %vm3407_vm8 = vcmp.lt.s32.totalorder %v3386_v8, 3 }
 0x355   : > { %v3335_v51 = vsub.s32 0, %v11355_v34  ;;  %v3414_v4 = vsel %vm3408_vm6, %v3401_v35, 920167782  ;;  %v3409_v15 = vsel %vm3405_vm5, %v3389_v11, %v3392_v3  ;;  %v3417_v28 = vsel %vm3405_vm5, %v3395_v18, %v3398_v22 }
 0x356   : > { %v3415_v58 = vsel %vm3407_vm8, %v3398_v22, %v3414_v4  ;;  %v3418_v40 = vsel %vm3408_vm6, %v3404_v59, 1326507024  ;;  %v3411_v46 = vsel %vm3407_vm8, %v3395_v18, %v3410_v7  ;;  %v3480_v17 = vand.u32 2139095040, %v11321_v32 }
 0x357   : > { %v7976_v10 = vmin.u32 %v3335_v51, %v11355_v34  ;;  %v3416_v25 = vsel %vm3406_vm7, %v3413_v37, %v3415_v58  ;;  %v3419_v61 = vsel %vm3407_vm8, %v3401_v35, %v3418_v40  ;;  %v656_v54 = vadd.f32 %v11003_v21, %v11236_v33 }
 0x358   : > { %v3420_v14 = vsel %vm3406_vm7, %v3417_v28, %v3419_v61  ;;  %v11362_v56 = vmul.u32.u64.low %v11353_v30, %v3416_v25  ;;  %v11363_v55 = vmul.u32.u64.high %v11353_v30, %v3416_v25, %v11362_v56  ;;  %v3356_v43 = vsel %vm3271_vm4, %v3355_v13, %v3331_v60  ;;  %v795_v60 = vpop.permute.xlu1 %794 }
 0x359   : > { %v3337_v29 = vclz %v7976_v10  ;;  %v3477_v38 = vand.u32 2147483647, %v11321_v32  ;;  %v3412_v45 = vsel %vm3406_vm7, %v3409_v15, %v3411_v46  ;;  %v3481_v57 = vshrl.u32 %v3480_v17, 23  ;;  %v15321_v15 = vld [vmem:[#allocation21_spill] sm:$0xff] }
 0x35a   : > { %v11374_v1 = vmul.u32.u64.low %v11353_v30, %v3420_v14  ;;  %v11375_v19 = vmul.u32.u64.high %v11353_v30, %v3420_v14, %v11374_v1  ;;  %v589_v33 = vmul.f32 %v11380_v26, %v15318_v20  ;;  %vm3260_vm10 = vcmp.lt.s32.totalorder %v11347_v52, 2 }
 0x35b   : > { %vm11387_vm9 = vcmp.le.f32.partialorder %v3269_v23, 0.7853982  ;;  %v7977_v6 = vadd.s32 4294967294, %v3337_v29  ;;  %vm3261_vm12 = vcmp.eq.s32.totalorder %v11347_v52, 0  ;;  %vm3264_vm11 = vcmp.eq.s32.totalorder %v11347_v52, 2 }
 0x35c   : > { %v3431_v9 = vadd.s32 1, %v11363_v55  ;;  %v7983_v5 = vadd.s32 4294967169, %v3481_v57  ;;  %v8543_v3 = vpop.eup %8542  ;;  %v3325_v31 = vadd.s32 %v11303_v62, %v11300_v63  ;;  %v3358_v23 = vsel %vm11387_vm9, 0, %v3356_v43  ;;  %v11406_v63 = vld [vmem:[%s15171_s1 + $0x1] ss:$0 sm:$0xff]  ;;  %v799_v43 = vpop.permute.xlu0 %798 }
 0x35d   : > { %vm7978_vm13 = vcmp.lt.s32.totalorder %v7977_v6, 0  ;;  %v3428_v18 = vmul.u32 %v11353_v30, %v3412_v45  ;;  %v8545_v22 = vpop.eup %8544  ;;  %v3265_v42 = vxor.u32 2147483648, %v8543_v3  ;;  %vm3430_vm14 = vc.u32 %v11375_v19, %v11362_v56 }
 0x35e   : > { %v3340_v48 = vsel %vm7978_vm13, 0, %v7977_v6  ;;  %v3484_v49 = vand.u32 8388607, %v3477_v38  ;;  %v3262_v12 = vxor.u32 2147483648, %v8545_v22  ;;  %v981_v62 = vmul.f32 %v11406_v63, %v795_v60 }
 0x35f   : > { %v3341_v35 = vsub.s32 32, %v3340_v48  ;;  %v3345_v50 = vsub.s32 4294967266, %v3340_v48  ;;  %v3266_v11 = vsel %vm3264_vm11, %v3265_v42, %v8545_v22  ;;  %v3342_v59 = vshll.u32 %v11355_v34, %v3340_v48 }
 0x360   : > { %v3432_v30 = vsel %vm3430_vm14, %v3431_v9, %v11363_v55  ;;  %v3487_v7 = vadd.s32 1, %v7983_v5  ;;  %v3263_v37 = vsel %vm3261_vm12, %v8543_v3, %v3262_v12  ;;  %v588_v58 = vmul.f32 %v11380_v26, %v15321_v15 }
 0x361   : > { %v3343_v51 = vshrl.u32 %v3325_v31, %v3341_v35  ;;  %v3346_v13 = vadd.s32 127, %v3345_v50  ;;  %v3433_v4 = vadd.s32 %v3432_v30, %v3428_v18  ;;  %vm3257_vm0 = vweird.f32 %v11022_v2 }
 0x362   : > { %v3267_v28 = vsel %vm3260_vm10, %v3263_v37, %v3266_v11  ;;  %vm3488_vm15 = vcmp.gt.s32.totalorder %v3487_v7, 0  ;;  %v3362_v25 = vadd.s32 3, %v3358_v23  ;;  %v3485_v17 = vor.u32 8388608, %v3484_v49 }
 0x363   : > { %v3268_v40 = vsel %vm3257_vm0, nan, %v3267_v28  ;;  %v3344_v34 = vor.u32 %v3343_v51, %v3342_v59  ;;  %v3347_v10 = vshll.u32 %v3346_v13, 23  ;;  %v3434_v46 = vadd.s32 536870912, %v3433_v4 }
 0x364   : > { %7761 = vst [vmem:[%s9666_s10 + $0xa0] sm:$0xff] %v3268_v40  ;;  %v3489_v61 = vsel %vm3488_vm15, %v3487_v7, 0  ;;  %v11423_v29 = vadd.f32 %v981_v62, %v656_v54  ;;  %v11427_v2 = vadd.f32 %v11003_v21, %v11232_v36  ;;  %v11430_v52 = vadd.f32 %v11003_v21, %v589_v33 }
 0x365   : > { %v3348_v14 = vor.u32 4788187, %v3347_v10  ;;  %v11421_v55 = vshrl.u32 %v3434_v46, 30  ;;  %v3491_v45 = vand.u32 31, %v3489_v61  ;;  %v11433_v1 = vadd.f32 %v11003_v21, %v588_v58 }
 0x366   : > { %v3351_v20 = vcvt.s32.f32 %v3344_v34  ;;  %v11436_v9 = vand.u32 3, %v3362_v25  ;;  %v3429_v54 = vadd.s32 %v11362_v56, %v11375_v19  ;;  %v11441_v36 = vmul.f32 %v11406_v63, %v799_v43 }
 0x367   : > { %v3349_v57 = vand.u32 2147483647, %v3348_v14  ;;  %v3436_v6 = vshll.u32 %v11421_v55, 30  ;;  %v3492_v5 = vsub.s32 32, %v3491_v45  ;;  %v11445_v3 = vshll.u32 %v3485_v17, 8 }
 0x368   : > { %v3584_v21 = vand.u32 2139095040, %v11423_v29  ;;  %v3490_v31 = vshrl.u32 %v3489_v61, 5  ;;  %v3494_v23 = vshll.u32 %v15256_v0, %v3491_v45  ;;  %v3497_v19 = vshll.u32 %v15257_v39, %v3491_v45 }
 0x369   : > { %v3352_v60 = vmul.f32 %v3351_v20, %v3349_v57  ;;  %v11443_v33 = vsub.s32 %v3433_v4, %v3436_v6  ;;  %v3495_v18 = vshrl.u32 %v15257_v39, %v3492_v5  ;;  %v3498_v22 = vshrl.u32 %v15258_v27, %v3492_v5 }
 0x36a   : > { %v3501_v48 = vshrl.u32 %v15259_v44, %v3492_v5  ;;  %v3500_v12 = vshll.u32 %v15258_v27, %v3491_v45  ;;  %v3503_v35 = vshll.u32 %v15259_v44, %v3491_v45  ;;  %v3504_v50 = vshrl.u32 %v15260_v53, %v3492_v5 }
 0x36b   : > { %v3353_v42 = vxor.u32 2147483648, %v3352_v60  ;;  %v3439_v56 = vsub.s32 0, %v11443_v33  ;;  %v3496_v49 = vor.u32 %v3495_v18, %v3494_v23  ;;  %v3499_v59 = vor.u32 %v3498_v22, %v3497_v19 }
 0x36c   : > { %v3506_v30 = vshll.u32 %v15260_v53, %v3491_v45  ;;  %v3502_v37 = vor.u32 %v3501_v48, %v3500_v12  ;;  %v3505_v51 = vor.u32 %v3504_v50, %v3503_v35  ;;  %v3507_v13 = vshrl.u32 %v15261_v41, %v3492_v5 }
 0x36d   : > { %v3354_v62 = vsel %vm3271_vm4, %v3353_v42, %v3352_v60  ;;  %v7980_v11 = vmin.u32 %v3439_v56, %v11443_v33  ;;  %v3581_v15 = vand.u32 2147483647, %v11423_v29  ;;  %v3585_v58 = vshrl.u32 %v3584_v21, 23 }
 0x36e   : > { %v3357_v7 = vsel %vm11387_vm9, %v11167_v16, %v3354_v62  ;;  %vm3375_vm1 = vcmp.lt.s32.totalorder %v11201_v47, 0  ;;  %v3493_v28 = vshrl.u32 %v15256_v0, %v3492_v5  ;;  %v3508_v40 = vor.u32 %v3507_v13, %v3506_v30 }
 0x36f   : > { %8546 = vcosq.f32 %v3357_v7  ;;  %v3441_v4 = vclz %v7980_v11  ;;  %vm3509_vm2 = vcmp.lt.s32.totalorder %v3490_v31, 1  ;;  %vm3511_vm3 = vcmp.lt.s32.totalorder %v3490_v31, 3 }
 0x370   : > { %8548 = vsinq.f32 %v3357_v7  ;;  %vm3512_vm4 = vcmp.lt.s32.totalorder %v3490_v31, 4  ;;  %v3517_v8 = vsel %vm3509_vm2, %v3496_v49, %v3499_v59  ;;  %v3521_v25 = vsel %vm3509_vm2, %v3499_v59, %v3502_v37 }
 0x371   : > { %v7981_v34 = vadd.s32 4294967294, %v3441_v4  ;;  %v3514_v10 = vsel %vm3512_vm4, %v3502_v37, 2102212464  ;;  %v3518_v46 = vsel %vm3512_vm4, %v3505_v51, 920167782  ;;  %vm3510_vm7 = vcmp.lt.s32.totalorder %v3490_v31, 2 }
 0x372   : > { %v3522_v61 = vsel %vm3512_vm4, %v3508_v40, 1326507024  ;;  %vm11472_vm5 = vcmp.le.f32.partialorder %v3373_v24, 0.7853982  ;;  %v3519_v17 = vsel %vm3511_vm3, %v3502_v37, %v3518_v46  ;;  %v3459_v57 = vsub.s32 4, %v11421_v55 }
 0x373   : > { %vm7982_vm6 = vcmp.lt.s32.totalorder %v7981_v34, 0  ;;  %v3523_v43 = vsel %vm3511_vm3, %v3505_v51, %v3522_v61  ;;  %v3520_v20 = vsel %vm3510_vm7, %v3517_v8, %v3519_v17  ;;  %vm3364_vm8 = vcmp.lt.s32.totalorder %v11436_v9, 2  ;;  %v15324_v8 = vld [vmem:[#allocation22_spill] sm:$0xff] }
 0x374   : > { %v3444_v45 = vsel %vm7982_vm6, 0, %v7981_v34  ;;  %v3524_v6 = vsel %vm3510_vm7, %v3521_v25, %v3523_v43  ;;  %v3513_v60 = vsel %vm3509_vm2, %v3493_v28, %v3496_v49  ;;  %v3515_v21 = vsel %vm3511_vm3, %v3499_v59, %v3514_v10 }
 0x375   : > { %v3445_v5 = vsub.s32 32, %v3444_v45  ;;  %v3449_v24 = vsub.s32 4294967266, %v3444_v45  ;;  %v11485_v23 = vmul.u32.u64.low %v11445_v3, %v3524_v6  ;;  %v11486_v18 = vmul.u32.u64.high %v11445_v3, %v3524_v6, %v11485_v23 }
 0x376   : > { %v11489_v22 = vmul.u32.u64.low %v11445_v3, %v3520_v20  ;;  %v11490_v42 = vmul.u32.u64.high %v11445_v3, %v3520_v20, %v11489_v22  ;;  %v3446_v56 = vshll.u32 %v11443_v33, %v3444_v45  ;;  %v7987_v12 = vadd.s32 4294967169, %v3585_v58 }
 0x377   : > { %v3447_v19 = vshrl.u32 %v3429_v54, %v3445_v5  ;;  %v3450_v48 = vadd.s32 127, %v3449_v24  ;;  %vm3365_vm10 = vcmp.eq.s32.totalorder %v11436_v9, 0  ;;  %vm3368_vm9 = vcmp.eq.s32.totalorder %v11436_v9, 2  ;;  %v803_v9 = vpop.permute.xlu1 %802 }
 0x378   : > { %v3516_v49 = vsel %vm3510_vm7, %v3513_v60, %v3515_v21  ;;  %v11499_v35 = vadd.f32 %v11441_v36, %v11427_v2  ;;  %v3460_v33 = vsel %vm3375_vm1, %v3459_v57, %v11421_v55  ;;  %v3591_v54 = vadd.s32 1, %v7987_v12 }
 0x379   : > { %v8547_v50 = vpop.eup %8546  ;;  %v3448_v62 = vor.u32 %v3447_v19, %v3446_v56  ;;  %v3451_v11 = vshll.u32 %v3450_v48, 23  ;;  %vm3534_vm12 = vc.u32 %v11486_v18, %v11489_v22  ;;  %v3535_v31 = vadd.s32 1, %v11490_v42 }
 0x37a   : > { %v8549_v59 = vpop.eup %8548  ;;  %v3369_v30 = vxor.u32 2147483648, %v8547_v50  ;;  %v3588_v7 = vand.u32 8388607, %v3581_v15  ;;  %v3532_v37 = vmul.u32 %v11445_v3, %v3516_v49  ;;  %vm3592_vm11 = vcmp.gt.s32.totalorder %v3591_v54, 0 }
 0x37b   : > { %v3366_v2 = vxor.u32 2147483648, %v8549_v59  ;;  %v3452_v36 = vor.u32 4788187, %v3451_v11  ;;  %v3462_v55 = vsel %vm11472_vm5, 0, %v3460_v33  ;;  %v3536_v13 = vsel %vm3534_vm12, %v3535_v31, %v11490_v42 }
 0x37c   : > { %v3370_v51 = vsel %vm3368_vm9, %v3369_v30, %v8549_v59  ;;  %v3593_v4 = vsel %vm3592_vm11, %v3591_v54, 0  ;;  %v3455_v40 = vcvt.s32.f32 %v3448_v62  ;;  %v3537_v34 = vadd.s32 %v3536_v13, %v3532_v37 }
 0x37d   : > { %v3367_v58 = vsel %vm3365_vm10, %v8547_v50, %v3366_v2  ;;  %v3453_v28 = vand.u32 2147483647, %v3452_v36  ;;  %v11519_v3 = vmul.f32 %v11380_v26, %v15324_v8  ;;  %vm3361_vm13 = vweird.f32 %v11167_v16 }
 0x37e   : > { %v3371_v10 = vsel %vm3364_vm8, %v3367_v58, %v3370_v51  ;;  %v3595_v46 = vand.u32 31, %v3593_v4  ;;  %v3538_v17 = vadd.s32 536870912, %v3537_v34  ;;  %v3589_v43 = vor.u32 8388608, %v3588_v7 }
 0x37f   : > { %v3372_v25 = vsel %vm3361_vm13, nan, %v3371_v10  ;;  %v3456_v61 = vmul.f32 %v3455_v40, %v3453_v28  ;;  %v3466_v45 = vadd.s32 3, %v3462_v55  ;;  %v3594_v57 = vshrl.u32 %v3593_v4, 5 }
 0x380   : > { %7762 = vst [vmem:[%s9666_s10 + $0xa8] sm:$0xff] %v3372_v25  ;;  %v3596_v20 = vsub.s32 32, %v3595_v46  ;;  %v3688_v6 = vand.u32 2139095040, %v11499_v35  ;;  %v11526_v24 = vshrl.u32 %v3538_v17, 30  ;;  %v3598_v60 = vshll.u32 %v15256_v0, %v3595_v46 }
 0x381   : > { %v3457_v5 = vxor.u32 2147483648, %v3456_v61  ;;  %v3601_v16 = vshll.u32 %v15257_v39, %v3595_v46  ;;  %v3604_v42 = vshll.u32 %v15258_v27, %v3595_v46  ;;  %v3607_v12 = vshll.u32 %v15259_v44, %v3595_v46 }
 0x382   : > { %v3599_v21 = vshrl.u32 %v15257_v39, %v3596_v20  ;;  %v3602_v23 = vshrl.u32 %v15258_v27, %v3596_v20  ;;  %v3605_v56 = vshrl.u32 %v15259_v44, %v3596_v20  ;;  %v3540_v48 = vshll.u32 %v11526_v24, 30 }
 0x383   : > { %v3458_v19 = vsel %vm3375_vm1, %v3457_v5, %v3456_v61  ;;  %v3608_v49 = vshrl.u32 %v15260_v53, %v3596_v20  ;;  %v11543_v33 = vmul.f32 %v11406_v63, %v803_v9  ;;  %v11547_v31 = vand.u32 3, %v3466_v45 }
 0x384   : > { %v3461_v50 = vsel %vm11472_vm5, %v11201_v47, %v3458_v19  ;;  %v3600_v62 = vor.u32 %v3599_v21, %v3598_v60  ;;  %v3606_v11 = vor.u32 %v3605_v56, %v3604_v42  ;;  %v11545_v54 = vsub.s32 %v3537_v34, %v3540_v48 }
 0x385   : > { %8550 = vcosq.f32 %v3461_v50  ;;  %v3603_v59 = vor.u32 %v3602_v23, %v3601_v16  ;;  %v3609_v30 = vor.u32 %v3608_v49, %v3607_v12  ;;  %v3610_v7 = vshll.u32 %v15260_v53, %v3595_v46 }
 0x386   : > { %8552 = vsinq.f32 %v3461_v50  ;;  %v3611_v2 = vshrl.u32 %v15261_v41, %v3596_v20  ;;  %vm3479_vm14 = vcmp.lt.s32.totalorder %v11321_v32, 0  ;;  %v3543_v14 = vsub.s32 0, %v11545_v54 }
 0x387   : > { %vm3616_vm0 = vcmp.lt.s32.totalorder %v3594_v57, 4  ;;  %v11553_v36 = vshll.u32 %v3589_v43, 8  ;;  %v3689_v37 = vshrl.u32 %v3688_v6, 23  ;;  %v3597_v51 = vshrl.u32 %v15256_v0, %v3596_v20 }
 0x388   : > { %v3612_v55 = vor.u32 %v3611_v2, %v3610_v7  ;;  %vm3613_vm15 = vcmp.lt.s32.totalorder %v3594_v57, 1  ;;  %v3618_v13 = vsel %vm3616_vm0, %v3606_v11, 2102212464  ;;  %v7984_v4 = vmin.u32 %v3543_v14, %v11545_v54 }
 0x389   : > { %vm3615_vm1 = vcmp.lt.s32.totalorder %v3594_v57, 3  ;;  %v3621_v58 = vsel %vm3613_vm15, %v3600_v62, %v3603_v59  ;;  %v3622_v28 = vsel %vm3616_vm0, %v3609_v30, 920167782  ;;  %vm3469_vm2 = vcmp.eq.s32.totalorder %v11547_v31, 0 }
 0x38a   : > { %v3623_v40 = vsel %vm3615_vm1, %v3606_v11, %v3622_v28  ;;  %v3625_v34 = vsel %vm3613_vm15, %v3603_v59, %v3606_v11  ;;  %v3626_v8 = vsel %vm3616_vm0, %v3612_v55, 1326507024  ;;  %v3685_v10 = vand.u32 2147483647, %v11499_v35 }
 0x38b   : > { %vm3468_vm3 = vcmp.lt.s32.totalorder %v11547_v31, 2  ;;  %v3545_v46 = vclz %v7984_v4  ;;  %vm3614_vm4 = vcmp.lt.s32.totalorder %v3594_v57, 2  ;;  %v3617_v25 = vsel %vm3613_vm15, %v3597_v51, %v3600_v62 }
 0x38c   : > { %v3619_v61 = vsel %vm3615_vm1, %v3603_v59, %v3618_v13  ;;  %vm3465_vm5 = vweird.f32 %v11201_v47  ;;  %v3563_v17 = vsub.s32 4, %v11526_v24  ;;  %v3624_v43 = vsel %vm3614_vm4, %v3621_v58, %v3623_v40  ;;  %v15327_v40 = vld [vmem:[#allocation23_spill] sm:$0xff] }
 0x38d   : > { %v3627_v45 = vsel %vm3615_vm1, %v3609_v30, %v3626_v8  ;;  %v7991_v20 = vadd.s32 4294967169, %v3689_v37  ;;  %v7985_v6 = vadd.s32 4294967294, %v3545_v46  ;;  %v3620_v9 = vsel %vm3614_vm4, %v3617_v25, %v3619_v61 }
 0x38e   : > { %v3628_v5 = vsel %vm3614_vm4, %v3625_v34, %v3627_v45  ;;  %v11566_v60 = vmul.u32.u64.low %v11553_v36, %v3624_v43  ;;  %v11567_v16 = vmul.u32.u64.high %v11553_v36, %v3624_v43, %v11566_v60  ;;  %vm3472_vm6 = vcmp.eq.s32.totalorder %v11547_v31, 2 }
 0x38f   : > { %v11571_v21 = vmul.u32.u64.low %v11553_v36, %v3628_v5  ;;  %v11572_v23 = vmul.u32.u64.high %v11553_v36, %v3628_v5, %v11571_v21  ;;  %v3695_v42 = vadd.s32 1, %v7991_v20  ;;  %v8551_v56 = vpop.eup %8550  ;;  %v3533_v57 = vadd.s32 %v11489_v22, %v11486_v18 }
 0x390   : > { %vm7986_vm7 = vcmp.lt.s32.totalorder %v7985_v6, 0  ;;  %v3692_v19 = vand.u32 8388607, %v3685_v10  ;;  %v8553_v48 = vpop.eup %8552  ;;  %v3473_v12 = vxor.u32 2147483648, %v8551_v56  ;;  %v3564_v50 = vsel %vm3479_vm14, %v3563_v17, %v11526_v24 }
 0x391   : > { %v3548_v49 = vsel %vm7986_vm7, 0, %v7985_v6  ;;  %vm3696_vm8 = vcmp.gt.s32.totalorder %v3695_v42, 0  ;;  %v3470_v62 = vxor.u32 2147483648, %v8553_v48  ;;  %v3636_v30 = vmul.u32 %v11553_v36, %v3620_v9 }
 0x392   : > { %v3549_v11 = vsub.s32 32, %v3548_v49  ;;  %v3553_v59 = vsub.s32 4294967266, %v3548_v49  ;;  %v3474_v7 = vsel %vm3472_vm6, %v3473_v12, %v8553_v48  ;;  %v3550_v18 = vshll.u32 %v11545_v54, %v3548_v49 }
 0x393   : > { %vm3638_vm10 = vc.u32 %v11572_v23, %v11566_v60  ;;  %v3639_v22 = vadd.s32 1, %v11567_v16  ;;  %v3471_v2 = vsel %vm3469_vm2, %v8551_v56, %v3470_v62  ;;  %v3697_v37 = vsel %vm3696_vm8, %v3695_v42, 0 }
 0x394   : > { %v3551_v14 = vshrl.u32 %v3533_v57, %v3549_v11  ;;  %v3554_v24 = vadd.s32 127, %v3553_v59  ;;  %v3475_v51 = vsel %vm3468_vm3, %v3471_v2, %v3474_v7  ;;  %vm11593_vm9 = vcmp.le.f32.partialorder %v3477_v38, 0.7853982 }
 0x395   : > { %v3640_v54 = vsel %vm3638_vm10, %v3639_v22, %v11567_v16  ;;  %v3699_v55 = vand.u32 31, %v3697_v37  ;;  %v3476_v13 = vsel %vm3465_vm5, nan, %v3475_v51  ;;  %v11602_v34 = vmul.f32 %v11380_v26, %v15327_v40 }
 0x396   : > { %v3552_v4 = vor.u32 %v3551_v14, %v3550_v18  ;;  %v3555_v58 = vshll.u32 %v3554_v24, 23  ;;  %v3641_v28 = vadd.s32 %v3640_v54, %v3636_v30  ;;  %7763 = vst [vmem:[%s9666_s10 + $0xb0] sm:$0xff] %v3476_v13  ;;  %v3566_v38 = vsel %vm11593_vm9, 0, %v3564_v50 }
 0x397   : > { %v3700_v31 = vsub.s32 32, %v3699_v55  ;;  %v11609_v8 = vadd.f32 %v11543_v33, %v11433_v1  ;;  %v3693_v47 = vor.u32 8388608, %v3692_v19  ;;  %v3702_v61 = vshll.u32 %v15256_v0, %v3699_v55 }
 0x398   : > { %v3556_v46 = vor.u32 4788187, %v3555_v58  ;;  %v3642_v25 = vadd.s32 536870912, %v3641_v28  ;;  %v3559_v17 = vcvt.s32.f32 %v3552_v4  ;;  %v3705_v26 = vshll.u32 %v15257_v39, %v3699_v55 }
 0x399   : > { %v3703_v43 = vshrl.u32 %v15257_v39, %v3700_v31  ;;  %v3706_v45 = vshrl.u32 %v15258_v27, %v3700_v31  ;;  %v3709_v5 = vshrl.u32 %v15259_v44, %v3700_v31  ;;  %v3712_v16 = vshrl.u32 %v15260_v53, %v3700_v31 }
 0x39a   : > { %v3557_v20 = vand.u32 2147483647, %v3556_v46  ;;  %v3643_v6 = vshrl.u32 %v3642_v25, 30  ;;  %vm3583_vm12 = vcmp.lt.s32.totalorder %v11423_v29, 0  ;;  %v3698_v1 = vshrl.u32 %v3697_v37, 5  ;;  %v807_v46 = vpop.permute.xlu0 %806 }
 0x39b   : > { %v3708_v33 = vshll.u32 %v15258_v27, %v3699_v55  ;;  %v3711_v9 = vshll.u32 %v15259_v44, %v3699_v55  ;;  %v3715_v21 = vshrl.u32 %v15261_v41, %v3700_v31  ;;  %v3704_v57 = vor.u32 %v3703_v43, %v3702_v61  ;;  %v11652_v43 = vld [vmem:[%s15172_s2] ss:$0 sm:$0xff] }
 0x39c   : > { %v3560_v42 = vmul.f32 %v3559_v17, %v3557_v20  ;;  %v3644_v56 = vshll.u32 %v3643_v6, 30  ;;  %v3707_v19 = vor.u32 %v3706_v45, %v3705_v26  ;;  %v3570_v48 = vadd.s32 3, %v3566_v38 }
 0x39d   : > { %v3713_v12 = vor.u32 %v3712_v16, %v3711_v9  ;;  %v3714_v49 = vshll.u32 %v15260_v53, %v3699_v55  ;;  %v3792_v50 = vand.u32 2139095040, %v11609_v8  ;;  %v3710_v59 = vor.u32 %v3709_v5, %v3708_v33 }
 0x39e   : > { %v3561_v62 = vxor.u32 2147483648, %v3560_v42  ;;  %v11623_v11 = vsub.s32 %v3641_v28, %v3644_v56  ;;  %v11625_v30 = vshll.u32 %v3693_v47, 8  ;;  %v3667_v7 = vsub.s32 4, %v3643_v6 }
 0x39f   : > { %v3701_v18 = vshrl.u32 %v15256_v0, %v3700_v31  ;;  %v3716_v22 = vor.u32 %v3715_v21, %v3714_v49  ;;  %vm3717_vm11 = vcmp.lt.s32.totalorder %v3698_v1, 1  ;;  %vm3720_vm13 = vcmp.lt.s32.totalorder %v3698_v1, 4 }
 0x3a0   : > { %v3562_v2 = vsel %vm3479_vm14, %v3561_v62, %v3560_v42  ;;  %v3647_v14 = vsub.s32 0, %v11623_v11  ;;  %v3725_v24 = vsel %vm3717_vm11, %v3704_v57, %v3707_v19  ;;  %vm3718_vm0 = vcmp.lt.s32.totalorder %v3698_v1, 2 }
 0x3a1   : > { %v3565_v37 = vsel %vm11593_vm9, %v11321_v32, %v3562_v2  ;;  %vm3719_vm15 = vcmp.lt.s32.totalorder %v3698_v1, 3  ;;  %v3726_v51 = vsel %vm3720_vm13, %v3713_v12, 920167782  ;;  %v3722_v55 = vsel %vm3720_vm13, %v3710_v59, 2102212464 }
 0x3a2   : > { %8554 = vcosq.f32 %v3565_v37  ;;  %v7988_v54 = vmin.u32 %v3647_v14, %v11623_v11  ;;  %v3727_v13 = vsel %vm3719_vm15, %v3710_v59, %v3726_v51  ;;  %v3729_v58 = vsel %vm3717_vm11, %v3707_v19, %v3710_v59 }
 0x3a3   : > { %8556 = vsinq.f32 %v3565_v37  ;;  %v3728_v4 = vsel %vm3718_vm0, %v3725_v24, %v3727_v13  ;;  %v3730_v28 = vsel %vm3720_vm13, %v3716_v22, 1326507024  ;;  %v3571_v40 = vand.u32 3, %v3570_v48 }
 0x3a4   : > { %v3649_v38 = vclz %v7988_v54  ;;  %v3668_v36 = vsel %vm3583_vm12, %v3667_v7, %v3643_v6  ;;  %v3721_v31 = vsel %vm3717_vm11, %v3701_v18, %v3704_v57  ;;  %v3723_v25 = vsel %vm3719_vm15, %v3707_v19, %v3722_v55 }
 0x3a5   : > { %v3731_v47 = vsel %vm3719_vm15, %v3713_v12, %v3730_v28  ;;  %v11645_v61 = vmul.u32.u64.low %v11625_v30, %v3728_v4  ;;  %v11646_v17 = vmul.u32.u64.high %v11625_v30, %v3728_v4, %v11645_v61  ;;  %v11656_v26 = vadd.f32 %v11652_v43, %v11602_v34 }
 0x3a6   : > { %v7989_v45 = vadd.s32 4294967294, %v3649_v38  ;;  %v3732_v20 = vsel %vm3718_vm0, %v3729_v58, %v3731_v47  ;;  %v3793_v6 = vshrl.u32 %v3792_v50, 23  ;;  %vm11661_vm14 = vcmp.le.f32.partialorder %v3581_v15, 0.7853982 }
 0x3a7   : > { %v11666_v16 = vmul.u32.u64.low %v11625_v30, %v3732_v20  ;;  %v11667_v33 = vmul.u32.u64.high %v11625_v30, %v3732_v20, %v11666_v16  ;;  %v984_v9 = vmul.f32 %v11406_v63, %v807_v46  ;;  %v3670_v34 = vsel %vm11661_vm14, 0, %v3668_v36 }
 0x3a8   : > { %vm7990_vm1 = vcmp.lt.s32.totalorder %v7989_v45, 0  ;;  %v3724_v21 = vsel %vm3718_vm0, %v3721_v31, %v3723_v25  ;;  %v7995_v42 = vadd.s32 4294967169, %v3793_v6  ;;  %vm3569_vm2 = vweird.f32 %v11321_v32 }
 0x3a9   : > { %vm3576_vm3 = vcmp.eq.s32.totalorder %v3571_v40, 2  ;;  %v3652_v15 = vsel %vm7990_vm1, 0, %v7989_v45  ;;  %v3743_v56 = vadd.s32 1, %v11646_v17  ;;  %v3789_v57 = vand.u32 2147483647, %v11609_v8 }
 0x3aa   : > { %v3637_v19 = vadd.s32 %v11566_v60, %v11572_v23  ;;  %v3653_v48 = vsub.s32 32, %v3652_v15  ;;  %v3657_v12 = vsub.s32 4294967266, %v3652_v15  ;;  %v3799_v49 = vadd.s32 1, %v7995_v42 }
 0x3ab   : > { %v3654_v50 = vshll.u32 %v11623_v11, %v3652_v15  ;;  %v3674_v62 = vadd.s32 3, %v3670_v34  ;;  %v3740_v1 = vmul.u32 %v11625_v30, %v3724_v21  ;;  %vm3742_vm4 = vc.u32 %v11667_v33, %v11645_v61 }
 0x3ac   : > { %v8555_v59 = vpop.eup %8554  ;;  %v3655_v7 = vshrl.u32 %v3637_v19, %v3653_v48  ;;  %v3658_v18 = vadd.s32 127, %v3657_v12  ;;  %v3744_v22 = vsel %vm3742_vm4, %v3743_v56, %v11646_v17  ;;  %vm3800_vm5 = vcmp.gt.s32.totalorder %v3799_v49, 0 }
 0x3ad   : > { %v8557_v2 = vpop.eup %8556  ;;  %v3577_v14 = vxor.u32 2147483648, %v8555_v59  ;;  %v3745_v60 = vadd.s32 %v3744_v22, %v3740_v1  ;;  %v3796_v23 = vand.u32 8388607, %v3789_v57  ;;  %v3801_v24 = vsel %vm3800_vm5, %v3799_v49, 0 }
 0x3ae   : > { %v3574_v11 = vxor.u32 2147483648, %v8557_v2  ;;  %v3656_v37 = vor.u32 %v3655_v7, %v3654_v50  ;;  %v3659_v51 = vshll.u32 %v3658_v18, 23  ;;  %v11686_v30 = vadd.f32 %v984_v9, %v11430_v52 }
 0x3af   : > { %vm3573_vm6 = vcmp.eq.s32.totalorder %v3571_v40, 0  ;;  %v3578_v54 = vsel %vm3576_vm3, %v3577_v14, %v8557_v2  ;;  %v3746_v55 = vadd.s32 536870912, %v3745_v60  ;;  %v3803_v13 = vand.u32 31, %v3801_v24 }
 0x3b0   : > { %vm3572_vm7 = vcmp.lt.s32.totalorder %v3571_v40, 2  ;;  %v3575_v4 = vsel %vm3573_vm6, %v8555_v59, %v3574_v11  ;;  %v3660_v58 = vor.u32 4788187, %v3659_v51  ;;  %v11689_v28 = vand.u32 3, %v3674_v62 }
 0x3b1   : > { %v3579_v38 = vsel %vm3572_vm7, %v3575_v4, %v3578_v54  ;;  %v3747_v36 = vshrl.u32 %v3746_v55, 30  ;;  %v3797_v31 = vor.u32 8388608, %v3796_v23  ;;  %v3804_v46 = vsub.s32 32, %v3803_v13 }
 0x3b2   : > { %v3580_v25 = vsel %vm3569_vm2, nan, %v3579_v38  ;;  %v3661_v52 = vand.u32 2147483647, %v3660_v58  ;;  %v3663_v47 = vcvt.s32.f32 %v3656_v37  ;;  %vm3687_vm8 = vcmp.lt.s32.totalorder %v11499_v35, 0 }
 0x3b3   : > { %v3893_v17 = vand.u32 2147483647, %v11686_v30  ;;  %7764 = vst [vmem:[%s9666_s10 + $0xb8] sm:$0xff] %v3580_v25  ;;  %v3748_v45 = vshll.u32 %v3747_v36, 30  ;;  %v3802_v40 = vshrl.u32 %v3801_v24, 5  ;;  %v3807_v20 = vshrl.u32 %v15257_v39, %v3804_v46 }
 0x3b4   : > { %v3896_v6 = vand.u32 2139095040, %v11686_v30  ;;  %v3664_v16 = vmul.f32 %v3663_v47, %v3661_v52  ;;  %v3806_v9 = vshll.u32 %v15256_v0, %v3803_v13  ;;  %v3810_v34 = vshrl.u32 %v15258_v27, %v3804_v46 }
 0x3b5   : > { %v3813_v32 = vshrl.u32 %v15259_v44, %v3804_v46  ;;  %v11701_v21 = vsub.s32 %v3745_v60, %v3748_v45  ;;  %v3809_v42 = vshll.u32 %v15257_v39, %v3803_v13  ;;  %v3812_v15 = vshll.u32 %v15258_v27, %v3803_v13 }
 0x3b6   : > { %v3816_v56 = vshrl.u32 %v15260_v53, %v3804_v46  ;;  %v3665_v19 = vxor.u32 2147483648, %v3664_v16  ;;  %v3771_v48 = vsub.s32 4, %v3747_v36  ;;  %v3815_v12 = vshll.u32 %v15259_v44, %v3803_v13 }
 0x3b7   : > { %v11707_v49 = vshll.u32 %v3797_v31, 8  ;;  %v3751_v50 = vsub.s32 0, %v11701_v21  ;;  %v3808_v62 = vor.u32 %v3807_v20, %v3806_v9  ;;  %v3811_v1 = vor.u32 %v3810_v34, %v3809_v42 }
 0x3b8   : > { %v3814_v59 = vor.u32 %v3813_v32, %v3812_v15  ;;  %v3666_v7 = vsel %vm3583_vm12, %v3665_v19, %v3664_v16  ;;  %vm11714_vm10 = vcmp.le.f32.partialorder %v3685_v10, 0.7853982  ;;  %v3817_v22 = vor.u32 %v3816_v56, %v3815_v12 }
 0x3b9   : > { %v3818_v2 = vshll.u32 %v15260_v53, %v3803_v13  ;;  %v3819_v14 = vshrl.u32 %v15261_v41, %v3804_v46  ;;  %v3669_v60 = vsel %vm11661_vm14, %v11423_v29, %v3666_v7  ;;  %v7992_v23 = vmin.u32 %v3751_v50, %v11701_v21 }
 0x3ba   : > { %vm3821_vm9 = vcmp.lt.s32.totalorder %v3802_v40, 1  ;;  %v3897_v24 = vshrl.u32 %v3896_v6, 23  ;;  %8558 = vcosq.f32 %v3669_v60  ;;  %v3805_v11 = vshrl.u32 %v15256_v0, %v3804_v46 }
 0x3bb   : > { %v3820_v10 = vor.u32 %v3819_v14, %v3818_v2  ;;  %vm3824_vm12 = vcmp.lt.s32.totalorder %v3802_v40, 4  ;;  %8560 = vsinq.f32 %v3669_v60  ;;  %v3753_v37 = vclz %v7992_v23  ;;  %v811_v14 = vpop.permute.xlu1 %810 }
 0x3bc   : > { %v3772_v51 = vsel %vm3687_vm8, %v3771_v48, %v3747_v36  ;;  %v3826_v54 = vsel %vm3824_vm12, %v3814_v59, 2102212464  ;;  %vm3822_vm11 = vcmp.lt.s32.totalorder %v3802_v40, 2  ;;  %vm3823_vm13 = vcmp.lt.s32.totalorder %v3802_v40, 3 }
 0x3bd   : > { %v3829_v5 = vsel %vm3821_vm9, %v3808_v62, %v3811_v1  ;;  %v3830_v55 = vsel %vm3824_vm12, %v3817_v22, 920167782  ;;  %v7993_v13 = vadd.s32 4294967294, %v3753_v37  ;;  %v3825_v4 = vsel %vm3821_vm9, %v3805_v11, %v3808_v62 }
 0x3be   : > { %v3831_v58 = vsel %vm3823_vm13, %v3814_v59, %v3830_v55  ;;  %v3833_v38 = vsel %vm3821_vm9, %v3811_v1, %v3814_v59  ;;  %v3827_v31 = vsel %vm3823_vm13, %v3811_v1, %v3826_v54  ;;  %v3834_v25 = vsel %vm3824_vm12, %v3820_v10, 1326507024 }
 0x3bf   : > { %v3832_v46 = vsel %vm3822_vm11, %v3829_v5, %v3831_v58  ;;  %v7999_v52 = vadd.s32 4294967169, %v3897_v24  ;;  %vm7994_vm0 = vcmp.lt.s32.totalorder %v7993_v13, 0  ;;  %v3835_v47 = vsel %vm3823_vm13, %v3817_v22, %v3834_v25 }
 0x3c0   : > { %v11732_v36 = vmul.u32.u64.low %v11707_v49, %v3832_v46  ;;  %v11733_v45 = vmul.u32.u64.high %v11707_v49, %v3832_v46, %v11732_v36  ;;  %v3741_v20 = vadd.s32 %v11645_v61, %v11667_v33  ;;  %v3756_v6 = vsel %vm7994_vm0, 0, %v7993_v13 }
 0x3c1   : > { %v3836_v16 = vsel %vm3822_vm11, %v3833_v38, %v3835_v47  ;;  %v3903_v9 = vadd.s32 1, %v7999_v52  ;;  %vm3673_vm15 = vweird.f32 %v11423_v29  ;;  %v3757_v34 = vsub.s32 32, %v3756_v6 }
 0x3c2   : > { %v3761_v32 = vsub.s32 4294967266, %v3756_v6  ;;  %v3774_v42 = vsel %vm11714_vm10, 0, %v3772_v51  ;;  %v3828_v15 = vsel %vm3822_vm11, %v3825_v4, %v3827_v31  ;;  %v3758_v56 = vshll.u32 %v11701_v21, %v3756_v6 }
 0x3c3   : > { %v11745_v19 = vmul.u32.u64.low %v11707_v49, %v3836_v16  ;;  %v11746_v48 = vmul.u32.u64.high %v11707_v49, %v3836_v16, %v11745_v19  ;;  %vm3904_vm14 = vcmp.gt.s32.totalorder %v3903_v9, 0  ;;  %v3759_v61 = vshrl.u32 %v3741_v20, %v3757_v34 }
 0x3c4   : > { %v3762_v33 = vadd.s32 127, %v3761_v32  ;;  %v3847_v12 = vadd.s32 1, %v11733_v45  ;;  %v3905_v50 = vsel %vm3904_vm14, %v3903_v9, 0  ;;  %v8559_v62 = vpop.eup %8558  ;;  %vm3676_vm1 = vcmp.lt.s32.totalorder %v11689_v28, 2 }
 0x3c5   : > { %vm3680_vm2 = vcmp.eq.s32.totalorder %v11689_v28, 2  ;;  %v3778_v1 = vadd.s32 3, %v3774_v42  ;;  %v3907_v40 = vand.u32 31, %v3905_v50  ;;  %v8561_v59 = vpop.eup %8560  ;;  %v3681_v7 = vxor.u32 2147483648, %v8559_v62 }
 0x3c6   : > { %v3760_v21 = vor.u32 %v3759_v61, %v3758_v56  ;;  %v3763_v22 = vshll.u32 %v3762_v33, 23  ;;  %v3900_v2 = vand.u32 8388607, %v3893_v17  ;;  %v3678_v60 = vxor.u32 2147483648, %v8561_v59 }
 0x3c7   : > { %v3844_v23 = vmul.u32 %v11707_v49, %v3828_v15  ;;  %vm3846_vm3 = vc.u32 %v11746_v48, %v11732_v36  ;;  %v3908_v24 = vsub.s32 32, %v3907_v40  ;;  %vm3677_vm4 = vcmp.eq.s32.totalorder %v11689_v28, 0 }
 0x3c8   : > { %v3682_v11 = vsel %vm3680_vm2, %v3681_v7, %v8561_v59  ;;  %v3764_v10 = vor.u32 4788187, %v3763_v22  ;;  %v3848_v37 = vsel %vm3846_vm3, %v3847_v12, %v11733_v45  ;;  %v3679_v51 = vsel %vm3677_vm4, %v8559_v62, %v3678_v60 }
 0x3c9   : > { %v11758_v54 = vand.u32 3, %v3778_v1  ;;  %v3849_v5 = vadd.s32 %v3848_v37, %v3844_v23  ;;  %v985_v55 = vmul.f32 %v11406_v63, %v811_v14  ;;  %v3683_v49 = vsel %vm3676_vm1, %v3679_v51, %v3682_v11 }
 0x3ca   : > { %v3765_v13 = vand.u32 2147483647, %v3764_v10  ;;  %v3767_v4 = vcvt.s32.f32 %v3760_v21  ;;  %v3901_v58 = vor.u32 8388608, %v3900_v2  ;;  %v3684_v38 = vsel %vm3673_vm15, nan, %v3683_v49 }
 0x3cb   : > { %v3850_v31 = vadd.s32 536870912, %v3849_v5  ;;  %v3911_v46 = vshrl.u32 %v15257_v39, %v3908_v24  ;;  %v3914_v25 = vshrl.u32 %v15258_v27, %v3908_v24  ;;  %7765 = vst [vmem:[%s9666_s10 + $0xc0] sm:$0xff] %v3684_v38  ;;  %v3906_v47 = vshrl.u32 %v3905_v50, 5 }
 0x3cc   : > { %v3768_v52 = vmul.f32 %v3767_v4, %v3765_v13  ;;  %v3910_v45 = vshll.u32 %v15256_v0, %v3907_v40  ;;  %v3917_v63 = vshrl.u32 %v15259_v44, %v3908_v24  ;;  %v3913_v20 = vshll.u32 %v15257_v39, %v3907_v40 }
 0x3cd   : > { %v3851_v28 = vshrl.u32 %v3850_v31, 30  ;;  %v3916_v6 = vshll.u32 %v15258_v27, %v3907_v40  ;;  %v3920_v29 = vshrl.u32 %v15260_v53, %v3908_v24  ;;  %vm3791_vm5 = vcmp.lt.s32.totalorder %v11609_v8, 0 }
 0x3ce   : > { %v3769_v16 = vxor.u32 2147483648, %v3768_v52  ;;  %v3919_v9 = vshll.u32 %v15259_v44, %v3907_v40  ;;  %v3922_v34 = vshll.u32 %v15260_v53, %v3907_v40  ;;  %v3923_v32 = vshrl.u32 %v15261_v41, %v3908_v24 }
 0x3cf   : > { %v3852_v42 = vshll.u32 %v3851_v28, 30  ;;  %v3912_v15 = vor.u32 %v3911_v46, %v3910_v45  ;;  %v3915_v56 = vor.u32 %v3914_v25, %v3913_v20  ;;  %v3918_v19 = vor.u32 %v3917_v63, %v3916_v6 }
 0x3d0   : > { %v3770_v61 = vsel %vm3687_vm8, %v3769_v16, %v3768_v52  ;;  %v3921_v33 = vor.u32 %v3920_v29, %v3919_v9  ;;  %v3924_v12 = vor.u32 %v3923_v32, %v3922_v34  ;;  %v3941_v50 = vshll.u32 %v3901_v58, 8 }
 0x3d1   : > { %v3773_v62 = vsel %vm11714_vm10, %v11499_v35, %v3770_v61  ;;  %v11782_v1 = vsub.s32 %v3849_v5, %v3852_v42  ;;  %v3909_v40 = vshrl.u32 %v15256_v0, %v3908_v24  ;;  %v11786_v59 = vadd.f32 %v985_v55, %v11656_v26 }
 0x3d2   : > { %8562 = vcosq.f32 %v3773_v62  ;;  %v3875_v7 = vsub.s32 4, %v3851_v28  ;;  %vm3925_vm6 = vcmp.lt.s32.totalorder %v3906_v47, 1  ;;  %vm3928_vm7 = vcmp.lt.s32.totalorder %v3906_v47, 4 }
 0x3d3   : > { %8564 = vsinq.f32 %v3773_v62  ;;  %v3855_v21 = vsub.s32 0, %v11782_v1  ;;  %v3930_v22 = vsel %vm3928_vm7, %v3918_v19, 2102212464  ;;  %v3933_v2 = vsel %vm3925_vm6, %v3912_v15, %v3915_v56 }
 0x3d4   : > { %vm3927_vm8 = vcmp.lt.s32.totalorder %v3906_v47, 3  ;;  %v3934_v14 = vsel %vm3928_vm7, %v3921_v33, 920167782  ;;  %v3937_v18 = vsel %vm3925_vm6, %v3915_v56, %v3918_v19  ;;  %v3938_v60 = vsel %vm3928_vm7, %v3924_v12, 1326507024 }
 0x3d5   : > { %v7996_v23 = vmin.u32 %v3855_v21, %v11782_v1  ;;  %vm3926_vm10 = vcmp.lt.s32.totalorder %v3906_v47, 2  ;;  %v3935_v24 = vsel %vm3927_vm8, %v3918_v19, %v3934_v14  ;;  %v3939_v11 = vsel %vm3927_vm8, %v3921_v33, %v3938_v60  ;;  %v815_v33 = vpop.permute.xlu0 %814 }
 0x3d6   : > { %v3929_v26 = vsel %vm3925_vm6, %v3909_v40, %v3912_v15  ;;  %v3931_v10 = vsel %vm3927_vm8, %v3915_v56, %v3930_v22  ;;  %v3936_v37 = vsel %vm3926_vm10, %v3933_v2, %v3935_v24  ;;  %v3940_v51 = vsel %vm3926_vm10, %v3937_v18, %v3939_v11  ;;  %v11827_v2 = vld [vmem:[%s15171_s1 + $0x1] ss:$0 sm:$0xff]  ;;  %v15334_v24 = vld [vmem:[#allocation24_spill] sm:$0xff] }
 0x3d7   : > { %v3857_v5 = vclz %v7996_v23  ;;  %v3876_v55 = vsel %vm3791_vm5, %v3875_v7, %v3851_v28  ;;  %v11792_v49 = vmul.u32.u64.low %v3941_v50, %v3940_v51  ;;  %v11793_v13 = vmul.u32.u64.high %v3941_v50, %v3940_v51, %v11792_v49  ;;  %v11836_v23 = vld [vmem:[%s15171_s1] ss:$0 sm:$0xff] }
 0x3d8   : > { %v11795_v4 = vmul.u32.u64.low %v3941_v50, %v3936_v37  ;;  %v11796_v58 = vmul.u32.u64.high %v3941_v50, %v3936_v37, %v11795_v4  ;;  %v3932_v31 = vsel %vm3926_vm10, %v3929_v26, %v3931_v10  ;;  %v4000_v46 = vand.u32 2139095040, %v11786_v59  ;;  %v15335_v26 = vld [vmem:[#allocation25_spill] sm:$0xff]  ;;  %v15336_v37 = vld [vmem:[#allocation26_spill] sm:$0xff] }
 0x3d9   : > { %v7997_v38 = vadd.s32 4294967294, %v3857_v5  ;;  %v661_v25 = vadd.f32 %v11652_v43, %v11519_v3  ;;  %vm3781_vm9 = vcmp.eq.s32.totalorder %v11758_v54, 0  ;;  %vm3784_vm12 = vcmp.eq.s32.totalorder %v11758_v54, 2 }
 0x3da   : > { %vm11805_vm11 = vcmp.le.f32.partialorder %v3789_v57, 0.7853982  ;;  %v3845_v47 = vadd.s32 %v11732_v36, %v11746_v48  ;;  %v4001_v63 = vshrl.u32 %v4000_v46, 23  ;;  %v3948_v20 = vmul.u32 %v3941_v50, %v3932_v31 }
 0x3db   : > { %vm7998_vm13 = vcmp.lt.s32.totalorder %v7997_v38, 0  ;;  %v3878_v45 = vsel %vm11805_vm11, 0, %v3876_v55  ;;  %vm3950_vm0 = vc.u32 %v11793_v13, %v11795_v4  ;;  %v3951_v6 = vadd.s32 1, %v11796_v58 }
 0x3dc   : > { %v8563_v28 = vpop.eup %8562  ;;  %v3860_v3 = vsel %vm7998_vm13, 0, %v7997_v38  ;;  %v3997_v34 = vand.u32 2147483647, %v11786_v59  ;;  %v8003_v42 = vadd.s32 4294967169, %v4001_v63  ;;  %vm3777_vm15 = vweird.f32 %v11499_v35 }
 0x3dd   : > { %v8565_v29 = vpop.eup %8564  ;;  %v3785_v57 = vxor.u32 2147483648, %v8563_v28  ;;  %v3861_v16 = vsub.s32 32, %v3860_v3  ;;  %v3865_v9 = vsub.s32 4294967266, %v3860_v3  ;;  %v3862_v36 = vshll.u32 %v11782_v1, %v3860_v3 }
 0x3de   : > { %v3782_v32 = vxor.u32 2147483648, %v8565_v29  ;;  %v3952_v48 = vsel %vm3950_vm0, %v3951_v6, %v11796_v58  ;;  %vm3780_vm14 = vcmp.lt.s32.totalorder %v11758_v54, 2  ;;  %v4007_v50 = vadd.s32 1, %v8003_v42 }
 0x3df   : > { %v3786_v15 = vsel %vm3784_vm12, %v3785_v57, %v8565_v29  ;;  %v3863_v56 = vshrl.u32 %v3845_v47, %v3861_v16  ;;  %v3866_v19 = vadd.s32 127, %v3865_v9  ;;  %v3953_v61 = vadd.s32 %v3952_v48, %v3948_v20 }
 0x3e0   : > { %v3783_v12 = vsel %vm3781_vm9, %v8563_v28, %v3782_v32  ;;  %v3882_v22 = vadd.s32 3, %v3878_v45  ;;  %vm4008_vm1 = vcmp.gt.s32.totalorder %v4007_v50, 0  ;;  %v986_v35 = vmul.f32 %v11827_v2, %v815_v33 }
 0x3e1   : > { %v3787_v62 = vsel %vm3780_vm14, %v3783_v12, %v3786_v15  ;;  %v3864_v1 = vor.u32 %v3863_v56, %v3862_v36  ;;  %v3867_v40 = vshll.u32 %v3866_v19, 23  ;;  %v3954_v7 = vadd.s32 536870912, %v3953_v61 }
 0x3e2   : > { %v3788_v21 = vsel %vm3777_vm15, nan, %v3787_v62  ;;  %v4004_v54 = vand.u32 8388607, %v3997_v34  ;;  %v4009_v60 = vsel %vm4008_vm1, %v4007_v50, 0  ;;  %v11840_v11 = vmul.f32 %v11836_v23, %v15334_v24 }
 0x3e3   : > { %7766 = vst [vmem:[%s9666_s10 + $0xc8] sm:$0xff] %v3788_v21  ;;  %v3868_v14 = vor.u32 4788187, %v3867_v40  ;;  %v3955_v18 = vshrl.u32 %v3954_v7, 30  ;;  %v11844_v10 = vmul.f32 %v11836_v23, %v15335_v26  ;;  %v11848_v51 = vmul.f32 %v11836_v23, %v15336_v37 }
 0x3e4   : > { %v4011_v5 = vand.u32 31, %v4009_v60  ;;  %v3871_v49 = vcvt.s32.f32 %v3864_v1  ;;  %vm3895_vm2 = vcmp.lt.s32.totalorder %v11686_v30, 0  ;;  %v11851_v38 = vand.u32 3, %v3882_v22 }
 0x3e5   : > { %v3869_v55 = vand.u32 2147483647, %v3868_v14  ;;  %v3956_v58 = vshll.u32 %v3955_v18, 30  ;;  %v3949_v31 = vadd.s32 %v11795_v4, %v11793_v13  ;;  %v11854_v47 = vadd.f32 %v986_v35, %v661_v25 }
 0x3e6   : > { %v4012_v46 = vsub.s32 32, %v4011_v5  ;;  %v4005_v28 = vor.u32 8388608, %v4004_v54  ;;  %v4010_v3 = vshrl.u32 %v4009_v60, 5  ;;  %v3979_v20 = vsub.s32 4, %v3955_v18 }
 0x3e7   : > { %v3872_v45 = vmul.f32 %v3871_v49, %v3869_v55  ;;  %v11856_v63 = vsub.s32 %v3953_v61, %v3956_v58  ;;  %v4014_v6 = vshll.u32 %v15256_v0, %v4011_v5  ;;  %v4017_v13 = vshll.u32 %v15257_v39, %v4011_v5 }
 0x3e8   : > { %v4015_v29 = vshrl.u32 %v15257_v39, %v4012_v46  ;;  %v4018_v57 = vshrl.u32 %v15258_v27, %v4012_v46  ;;  %v4021_v4 = vshrl.u32 %v15259_v44, %v4012_v46  ;;  %v4020_v32 = vshll.u32 %v15258_v27, %v4011_v5 }
 0x3e9   : > { %v3873_v16 = vxor.u32 2147483648, %v3872_v45  ;;  %v3959_v9 = vsub.s32 0, %v11856_v63  ;;  %v4023_v36 = vshll.u32 %v15259_v44, %v4011_v5  ;;  %v4024_v48 = vshrl.u32 %v15260_v53, %v4012_v46 }
 0x3ea   : > { %v4016_v25 = vor.u32 %v4015_v29, %v4014_v6  ;;  %v4019_v56 = vor.u32 %v4018_v57, %v4017_v13  ;;  %v4026_v19 = vshll.u32 %v15260_v53, %v4011_v5  ;;  %v4022_v33 = vor.u32 %v4021_v4, %v4020_v32 }
 0x3eb   : > { %v3874_v42 = vsel %vm3791_vm5, %v3873_v16, %v3872_v45  ;;  %v8000_v15 = vmin.u32 %v3959_v9, %v11856_v63  ;;  %v4025_v12 = vor.u32 %v4024_v48, %v4023_v36  ;;  %v4027_v50 = vshrl.u32 %v15261_v41, %v4012_v46 }
 0x3ec   : > { %v3877_v61 = vsel %vm11805_vm11, %v11609_v8, %v3874_v42  ;;  %v4045_v1 = vshll.u32 %v4005_v28, 8  ;;  %v4104_v40 = vand.u32 2139095040, %v11854_v47  ;;  %vm11878_vm3 = vcmp.le.f32.partialorder %v3893_v17, 0.7853982 }
 0x3ed   : > { %8566 = vcosq.f32 %v3877_v61  ;;  %v3961_v62 = vclz %v8000_v15  ;;  %v3980_v52 = vsel %vm3895_vm2, %v3979_v20, %v3955_v18  ;;  %v4013_v21 = vshrl.u32 %v15256_v0, %v4012_v46 }
 0x3ee   : > { %8568 = vsinq.f32 %v3877_v61  ;;  %v4028_v22 = vor.u32 %v4027_v50, %v4026_v19  ;;  %vm4029_vm4 = vcmp.lt.s32.totalorder %v4010_v3, 1  ;;  %vm4031_vm5 = vcmp.lt.s32.totalorder %v4010_v3, 3 }
 0x3ef   : > { %v8001_v35 = vadd.s32 4294967294, %v3961_v62  ;;  %vm4032_vm6 = vcmp.lt.s32.totalorder %v4010_v3, 4  ;;  %v4037_v54 = vsel %vm4029_vm4, %v4016_v25, %v4019_v56  ;;  %v4041_v24 = vsel %vm4029_vm4, %v4019_v56, %v4022_v33 }
 0x3f0   : > { %v4034_v14 = vsel %vm4032_vm6, %v4022_v33, 2102212464  ;;  %v4038_v60 = vsel %vm4032_vm6, %v4025_v12, 920167782  ;;  %vm4030_vm8 = vcmp.lt.s32.totalorder %v4010_v3, 2  ;;  %v4033_v5 = vsel %vm4029_vm4, %v4013_v21, %v4016_v25 }
 0x3f1   : > { %vm8002_vm7 = vcmp.lt.s32.totalorder %v8001_v35, 0  ;;  %v4039_v17 = vsel %vm4031_vm5, %v4022_v33, %v4038_v60  ;;  %v4042_v26 = vsel %vm4032_vm6, %v4028_v22, 1326507024  ;;  %v4035_v46 = vsel %vm4031_vm5, %v4019_v56, %v4034_v14 }
 0x3f2   : > { %v3964_v37 = vsel %vm8002_vm7, 0, %v8001_v35  ;;  %v4040_v18 = vsel %vm4030_vm8, %v4037_v54, %v4039_v17  ;;  %v4043_v55 = vsel %vm4031_vm5, %v4025_v12, %v4042_v26  ;;  %vm3881_vm10 = vweird.f32 %v11609_v8  ;;  %v819_v12 = vpop.permute.xlu1 %818 }
 0x3f3   : > { %v3965_v49 = vsub.s32 32, %v3964_v37  ;;  %v3969_v58 = vsub.s32 4294967266, %v3964_v37  ;;  %v4044_v45 = vsel %vm4030_vm8, %v4041_v24, %v4043_v55  ;;  %v3966_v57 = vshll.u32 %v11856_v63, %v3964_v37 }
 0x3f4   : > { %v11891_v28 = vmul.u32.u64.low %v4045_v1, %v4044_v45  ;;  %v11892_v20 = vmul.u32.u64.high %v4045_v1, %v4044_v45, %v11891_v28  ;;  %v11894_v6 = vmul.u32.u64.low %v4045_v1, %v4040_v18  ;;  %v11895_v29 = vmul.u32.u64.high %v4045_v1, %v4040_v18, %v11894_v6 }
 0x3f5   : > { %v3967_v16 = vshrl.u32 %v3949_v31, %v3965_v49  ;;  %v3970_v9 = vadd.s32 127, %v3969_v58  ;;  %v4105_v13 = vshrl.u32 %v4104_v40, 23  ;;  %vm3884_vm9 = vcmp.lt.s32.totalorder %v11851_v38, 2 }
 0x3f6   : > { %vm3885_vm12 = vcmp.eq.s32.totalorder %v11851_v38, 0  ;;  %vm3888_vm11 = vcmp.eq.s32.totalorder %v11851_v38, 2  ;;  %v4036_v4 = vsel %vm4030_vm8, %v4033_v5, %v4035_v46  ;;  %v3982_v48 = vsel %vm11878_vm3, 0, %v3980_v52  ;;  %v15339_v38 = vld [vmem:[#allocation27_spill] sm:$0xff] }
 0x3f7   : > { %v8567_v25 = vpop.eup %8566  ;;  %v3968_v32 = vor.u32 %v3967_v16, %v3966_v57  ;;  %v3971_v36 = vshll.u32 %v3970_v9, 23  ;;  %v8007_v42 = vadd.s32 4294967169, %v4105_v13  ;;  %vm4054_vm13 = vc.u32 %v11892_v20, %v11894_v6 }
 0x3f8   : > { %v8569_v15 = vpop.eup %8568  ;;  %v3889_v63 = vxor.u32 2147483648, %v8567_v25  ;;  %v4055_v31 = vadd.s32 1, %v11895_v29  ;;  %v4101_v56 = vand.u32 2147483647, %v11854_v47  ;;  %v4052_v33 = vmul.u32 %v4045_v1, %v4036_v4 }
 0x3f9   : > { %v3886_v19 = vxor.u32 2147483648, %v8569_v15  ;;  %v3972_v61 = vor.u32 4788187, %v3971_v36  ;;  %v4111_v3 = vadd.s32 1, %v8007_v42  ;;  %v3975_v62 = vcvt.s32.f32 %v3968_v32 }
 0x3fa   : > { %v3890_v50 = vsel %vm3888_vm11, %v3889_v63, %v8569_v15  ;;  %v3986_v40 = vadd.s32 3, %v3982_v48  ;;  %v4056_v52 = vsel %vm4054_vm13, %v4055_v31, %v11895_v29  ;;  %v4108_v1 = vand.u32 8388607, %v4101_v56 }
 0x3fb   : > { %v3887_v21 = vsel %vm3885_vm12, %v8567_v25, %v3886_v19  ;;  %v3973_v22 = vand.u32 2147483647, %v3972_v61  ;;  %v4057_v35 = vadd.s32 %v4056_v52, %v4052_v33  ;;  %vm4112_vm0 = vcmp.gt.s32.totalorder %v4111_v3, 0 }
 0x3fc   : > { %v3891_v14 = vsel %vm3884_vm9, %v3887_v21, %v3890_v50  ;;  %v4113_v54 = vsel %vm4112_vm0, %v4111_v3, 0  ;;  %v987_v60 = vmul.f32 %v11827_v2, %v819_v12  ;;  %v11921_v37 = vadd.f32 %v11652_v43, %v11840_v11 }
 0x3fd   : > { %v3892_v24 = vsel %vm3881_vm10, nan, %v3891_v14  ;;  %v3976_v17 = vmul.f32 %v3975_v62, %v3973_v22  ;;  %v4058_v26 = vadd.s32 536870912, %v4057_v35  ;;  %v662_v5 = vadd.f32 %v11652_v43, %v11844_v10 }
 0x3fe   : > { %v11927_v18 = vmul.f32 %v11836_v23, %v15339_v38  ;;  %7767 = vst [vmem:[%s9666_s10 + $0xd0] sm:$0xff] %v3892_v24  ;;  %v4115_v55 = vand.u32 31, %v4113_v54  ;;  %v11932_v49 = vadd.f32 %v11652_v43, %v11848_v51  ;;  %v11934_v58 = vand.u32 3, %v3986_v40 }
 0x3ff   : > { %v3977_v8 = vxor.u32 2147483648, %v3976_v17  ;;  %v4059_v46 = vshrl.u32 %v4058_v26, 30  ;;  %v11937_v11 = vadd.s32 %v11894_v6, %v11892_v20  ;;  %v4109_v45 = vor.u32 8388608, %v4108_v1 }
 0x400   : > { %v4116_v28 = vsub.s32 32, %v4115_v55  ;;  %v11939_v10 = vadd.f32 %v987_v60, %v662_v5  ;;  %v4114_v16 = vshrl.u32 %v4113_v54, 5  ;;  %v4118_v9 = vshll.u32 %v15256_v0, %v4115_v55 }
 0x401   : > { %v3978_v29 = vsel %vm3895_vm2, %v3977_v8, %v3976_v17  ;;  %v4060_v57 = vshll.u32 %v4059_v46, 30  ;;  %v4121_v20 = vshll.u32 %v15257_v39, %v4115_v55  ;;  %vm3999_vm15 = vcmp.lt.s32.totalorder %v11786_v59, 0 }
 0x402   : > { %v3981_v51 = vsel %vm11878_vm3, %v11686_v30, %v3978_v29  ;;  %v4119_v13 = vshrl.u32 %v15257_v39, %v4116_v28  ;;  %v4122_v6 = vshrl.u32 %v15258_v27, %v4116_v28  ;;  %v4124_v25 = vshll.u32 %v15258_v27, %v4115_v55 }
 0x403   : > { %8570 = vcosq.f32 %v3981_v51  ;;  %v11951_v4 = vsub.s32 %v4057_v35, %v4060_v57  ;;  %v4125_v32 = vshrl.u32 %v15259_v44, %v4116_v28  ;;  %v4127_v7 = vshll.u32 %v15259_v44, %v4115_v55 }
 0x404   : > { %8572 = vsinq.f32 %v3981_v51  ;;  %v4120_v36 = vor.u32 %v4119_v13, %v4118_v9  ;;  %v11956_v48 = vshll.u32 %v4109_v45, 8  ;;  %v4123_v15 = vor.u32 %v4122_v6, %v4121_v20 }
 0x405   : > { %v4063_v42 = vsub.s32 0, %v11951_v4  ;;  %v4126_v63 = vor.u32 %v4125_v32, %v4124_v25  ;;  %v4128_v31 = vshrl.u32 %v15260_v53, %v4116_v28  ;;  %v4130_v19 = vshll.u32 %v15260_v53, %v4115_v55 }
 0x406   : > { %v4131_v61 = vshrl.u32 %v15261_v41, %v4116_v28  ;;  %vm4133_vm14 = vcmp.lt.s32.totalorder %v4114_v16, 1  ;;  %v4208_v33 = vand.u32 2139095040, %v11939_v10  ;;  %vm3992_vm1 = vcmp.eq.s32.totalorder %v11934_v58, 2 }
 0x407   : > { %vm11966_vm2 = vcmp.le.f32.partialorder %v3997_v34, 0.7853982  ;;  %v8004_v12 = vmin.u32 %v4063_v42, %v11951_v4  ;;  %v4117_v50 = vshrl.u32 %v15256_v0, %v4116_v28  ;;  %v4129_v62 = vor.u32 %v4128_v31, %v4127_v7 }
 0x408   : > { %vm4136_vm3 = vcmp.lt.s32.totalorder %v4114_v16, 4  ;;  %vm3989_vm4 = vcmp.eq.s32.totalorder %v11934_v58, 0  ;;  %v4083_v40 = vsub.s32 4, %v4059_v46  ;;  %v4132_v52 = vor.u32 %v4131_v61, %v4130_v19 }
 0x409   : > { %vm4135_vm5 = vcmp.lt.s32.totalorder %v4114_v16, 3  ;;  %v4138_v21 = vsel %vm4136_vm3, %v4126_v63, 2102212464  ;;  %vm3988_vm6 = vcmp.lt.s32.totalorder %v11934_v58, 2  ;;  %v4065_v22 = vclz %v8004_v12  ;;  %v15342_v58 = vld [vmem:[#allocation28_spill] sm:$0xff] }
 0x40a   : > { %v4137_v34 = vsel %vm4133_vm14, %v4117_v50, %v4120_v36  ;;  %v4141_v35 = vsel %vm4133_vm14, %v4120_v36, %v4123_v15  ;;  %v4145_v14 = vsel %vm4133_vm14, %v4123_v15, %v4126_v63  ;;  %vm3985_vm7 = vweird.f32 %v11686_v30 }
 0x40b   : > { %v4139_v1 = vsel %vm4135_vm5, %v4123_v15, %v4138_v21  ;;  %v4142_v54 = vsel %vm4136_vm3, %v4129_v62, 920167782  ;;  %v4146_v60 = vsel %vm4136_vm3, %v4132_v52, 1326507024  ;;  %v4209_v24 = vshrl.u32 %v4208_v33, 23 }
 0x40c   : > { %v8005_v17 = vadd.s32 4294967294, %v4065_v22  ;;  %vm4134_vm8 = vcmp.lt.s32.totalorder %v4114_v16, 2  ;;  %v4143_v26 = vsel %vm4135_vm5, %v4126_v63, %v4142_v54  ;;  %v4147_v5 = vsel %vm4135_vm5, %v4129_v62, %v4146_v60 }
 0x40d   : > { %v4084_v38 = vsel %vm3999_vm15, %v4083_v40, %v4059_v46  ;;  %v4144_v55 = vsel %vm4134_vm8, %v4141_v35, %v4143_v26  ;;  %v4148_v8 = vsel %vm4134_vm8, %v4145_v14, %v4147_v5  ;;  %v8011_v45 = vadd.s32 4294967169, %v4209_v24  ;;  %v8571_v28 = vpop.eup %8570  ;;  %v15343_v14 = vld [vmem:[#allocation29_spill] sm:$0xff] }
 0x40e   : > { %vm8006_vm10 = vcmp.lt.s32.totalorder %v8005_v17, 0  ;;  %v4140_v29 = vsel %vm4134_vm8, %v4137_v34, %v4139_v1  ;;  %v11981_v57 = vmul.u32.u64.low %v11956_v48, %v4148_v8  ;;  %v11982_v9 = vmul.u32.u64.high %v11956_v48, %v4148_v8, %v11981_v57  ;;  %v8573_v51 = vpop.eup %8572 }
 0x40f   : > { %v3993_v13 = vxor.u32 2147483648, %v8571_v28  ;;  %v4068_v20 = vsel %vm8006_vm10, 0, %v8005_v17  ;;  %v11985_v16 = vmul.u32.u64.low %v11956_v48, %v4144_v55  ;;  %v11986_v6 = vmul.u32.u64.high %v11956_v48, %v4144_v55, %v11985_v16 }
 0x410   : > { %v3990_v25 = vxor.u32 2147483648, %v8573_v51  ;;  %v4069_v46 = vsub.s32 32, %v4068_v20  ;;  %v4073_v32 = vsub.s32 4294967266, %v4068_v20  ;;  %v4205_v36 = vand.u32 2147483647, %v11939_v10 }
 0x411   : > { %v3994_v7 = vsel %vm3992_vm1, %v3993_v13, %v8573_v51  ;;  %v4086_v42 = vsel %vm11966_vm2, 0, %v4084_v38  ;;  %v4156_v15 = vmul.u32 %v11956_v48, %v4140_v29  ;;  %v4215_v63 = vadd.s32 1, %v8011_v45  ;;  %v823_v48 = vpop.permute.xlu0 %822 }
 0x412   : > { %v3991_v31 = vsel %vm3989_vm4, %v8571_v28, %v3990_v25  ;;  %v4070_v19 = vshll.u32 %v11951_v4, %v4068_v20  ;;  %v4071_v61 = vshrl.u32 %v11937_v11, %v4069_v46  ;;  %v4074_v33 = vadd.s32 127, %v4073_v32  ;;  %v827_v4 = vpop.permute.xlu1 %826 }
 0x413   : > { %v3995_v12 = vsel %vm3988_vm6, %v3991_v31, %v3994_v7  ;;  %vm4158_vm9 = vc.u32 %v11982_v9, %v11985_v16  ;;  %v4159_v50 = vadd.s32 1, %v11986_v6  ;;  %vm4216_vm12 = vcmp.gt.s32.totalorder %v4215_v63, 0 }
 0x414   : > { %v3996_v62 = vsel %vm3985_vm7, nan, %v3995_v12  ;;  %v4072_v40 = vor.u32 %v4071_v61, %v4070_v19  ;;  %v4075_v52 = vshll.u32 %v4074_v33, 23  ;;  %v4217_v21 = vsel %vm4216_vm12, %v4215_v63, 0 }
 0x415   : > { %v12008_v11 = vadd.f32 %v11652_v43, %v11927_v18  ;;  %v12012_v22 = vmul.f32 %v11836_v23, %v15342_v58  ;;  %7768 = vst [vmem:[%s9666_s10 + $0xd8] sm:$0xff] %v3996_v62  ;;  %v4160_v34 = vsel %vm4158_vm9, %v4159_v50, %v11986_v6  ;;  %v4219_v35 = vand.u32 31, %v4217_v21 }
 0x416   : > { %v12018_v30 = vmul.f32 %v11836_v23, %v15343_v14  ;;  %v4076_v1 = vor.u32 4788187, %v4075_v52  ;;  %v4161_v54 = vadd.s32 %v4160_v34, %v4156_v15  ;;  %v988_v60 = vmul.f32 %v11827_v2, %v823_v48 }
 0x417   : > { %v4090_v24 = vadd.s32 3, %v4086_v42  ;;  %v4212_v43 = vand.u32 8388607, %v4205_v36  ;;  %v4220_v18 = vsub.s32 32, %v4219_v35  ;;  %v12024_v17 = vmul.f32 %v11827_v2, %v827_v4 }
 0x418   : > { %v4077_v26 = vand.u32 2147483647, %v4076_v1  ;;  %v4079_v5 = vcvt.s32.f32 %v4072_v40  ;;  %v4162_v38 = vadd.s32 536870912, %v4161_v54  ;;  %v4222_v55 = vshll.u32 %v15256_v0, %v4219_v35 }
 0x419   : > { %v4223_v23 = vshrl.u32 %v15257_v39, %v4220_v18  ;;  %v4225_v8 = vshll.u32 %v15257_v39, %v4219_v35  ;;  %v4226_v45 = vshrl.u32 %v15258_v27, %v4220_v18  ;;  %v4229_v28 = vshrl.u32 %v15259_v44, %v4220_v18 }
 0x41a   : > { %v4080_v29 = vmul.f32 %v4079_v5, %v4077_v26  ;;  %v12031_v57 = vshrl.u32 %v4162_v38, 30  ;;  %v4232_v51 = vshrl.u32 %v15260_v53, %v4220_v18  ;;  %v4235_v13 = vshrl.u32 %v15261_v41, %v4220_v18 }
 0x41b   : > { %v4218_v20 = vshrl.u32 %v4217_v21, 5  ;;  %v4228_v6 = vshll.u32 %v15258_v27, %v4219_v35  ;;  %v4231_v25 = vshll.u32 %v15259_v44, %v4219_v35  ;;  %v4234_v46 = vshll.u32 %v15260_v53, %v4219_v35 }
 0x41c   : > { %v4081_v32 = vxor.u32 2147483648, %v4080_v29  ;;  %v4164_v7 = vshll.u32 %v12031_v57, 30  ;;  %v4224_v42 = vor.u32 %v4223_v23, %v4222_v55  ;;  %v4227_v15 = vor.u32 %v4226_v45, %v4225_v8 }
 0x41d   : > { %v12039_v63 = vand.u32 3, %v4090_v24  ;;  %v4230_v31 = vor.u32 %v4229_v28, %v4228_v6  ;;  %v4233_v19 = vor.u32 %v4232_v51, %v4231_v25  ;;  %v12042_v61 = vadd.f32 %v988_v60, %v11921_v37 }
 0x41e   : > { %v4082_v33 = vsel %vm3999_vm15, %v4081_v32, %v4080_v29  ;;  %v12046_v12 = vsub.s32 %v4161_v54, %v4164_v7  ;;  %v4213_v50 = vor.u32 8388608, %v4212_v43  ;;  %v4236_v48 = vor.u32 %v4235_v13, %v4234_v46 }
 0x41f   : > { %v4085_v62 = vsel %vm11966_vm2, %v11786_v59, %v4082_v33  ;;  %v4221_v40 = vshrl.u32 %v15256_v0, %v4220_v18  ;;  %vm4237_vm11 = vcmp.lt.s32.totalorder %v4218_v20, 1  ;;  %vm4238_vm13 = vcmp.lt.s32.totalorder %v4218_v20, 2 }
 0x420   : > { %8574 = vcosq.f32 %v4085_v62  ;;  %v4167_v52 = vsub.s32 0, %v12046_v12  ;;  %vm4240_vm0 = vcmp.lt.s32.totalorder %v4218_v20, 4  ;;  %v4245_v37 = vsel %vm4237_vm11, %v4224_v42, %v4227_v15 }
 0x421   : > { %8576 = vsinq.f32 %v4085_v62  ;;  %vm4239_vm15 = vcmp.lt.s32.totalorder %v4218_v20, 3  ;;  %v4242_v21 = vsel %vm4240_vm0, %v4230_v31, 2102212464  ;;  %v4246_v4 = vsel %vm4240_vm0, %v4233_v19, 920167782 }
 0x422   : > { %v8008_v58 = vmin.u32 %v4167_v52, %v12046_v12  ;;  %v4247_v34 = vsel %vm4239_vm15, %v4230_v31, %v4246_v4  ;;  %v4249_v3 = vsel %vm4237_vm11, %v4227_v15, %v4230_v31  ;;  %v4250_v35 = vsel %vm4240_vm0, %v4236_v48, 1326507024 }
 0x423   : > { %v4248_v14 = vsel %vm4238_vm13, %v4245_v37, %v4247_v34  ;;  %v4251_v1 = vsel %vm4239_vm15, %v4233_v19, %v4250_v35  ;;  %v4253_v54 = vshll.u32 %v4213_v50, 8  ;;  %v4312_v60 = vand.u32 2139095040, %v12042_v61  ;;  %v831_v37 = vpop.permute.xlu0 %830 }
 0x424   : > { %vm4103_vm14 = vcmp.lt.s32.totalorder %v11854_v47, 0  ;;  %v4169_v24 = vclz %v8008_v58  ;;  %v4241_v43 = vsel %vm4237_vm11, %v4221_v40, %v4224_v42  ;;  %v4243_v18 = vsel %vm4239_vm15, %v4227_v15, %v4242_v21 }
 0x425   : > { %v4252_v26 = vsel %vm4238_vm13, %v4249_v3, %v4251_v1  ;;  %v12061_v5 = vmul.u32.u64.low %v4253_v54, %v4248_v14  ;;  %v12062_v38 = vmul.u32.u64.high %v4253_v54, %v4248_v14, %v12061_v5  ;;  %v4313_v55 = vshrl.u32 %v4312_v60, 23 }
 0x426   : > { %v8009_v23 = vadd.s32 4294967294, %v4169_v24  ;;  %v4187_v8 = vsub.s32 4, %v12031_v57  ;;  %v12066_v45 = vmul.u32.u64.low %v4253_v54, %v4252_v26  ;;  %v12067_v28 = vmul.u32.u64.high %v4253_v54, %v4252_v26, %v12066_v45 }
 0x427   : > { %vm4092_vm1 = vcmp.lt.s32.totalorder %v12039_v63, 2  ;;  %v4244_v29 = vsel %vm4238_vm13, %v4241_v43, %v4243_v18  ;;  %v8015_v51 = vadd.s32 4294967169, %v4313_v55  ;;  %v12073_v13 = vadd.f32 %v12024_v17, %v12008_v11 }
 0x428   : > { %vm4093_vm2 = vcmp.eq.s32.totalorder %v12039_v63, 0  ;;  %vm4096_vm3 = vcmp.eq.s32.totalorder %v12039_v63, 2  ;;  %vm8010_vm4 = vcmp.lt.s32.totalorder %v8009_v23, 0  ;;  %v4309_v6 = vand.u32 2147483647, %v12042_v61 }
 0x429   : > { %v4157_v25 = vadd.s32 %v11985_v16, %v11982_v9  ;;  %v4172_v46 = vsel %vm8010_vm4, 0, %v8009_v23  ;;  %v4263_v32 = vadd.s32 1, %v12062_v38  ;;  %v4319_v20 = vadd.s32 1, %v8015_v51 }
 0x42a   : > { %v8575_v7 = vpop.eup %8574  ;;  %v4173_v42 = vsub.s32 32, %v4172_v46  ;;  %v4177_v15 = vsub.s32 4294967266, %v4172_v46  ;;  %v4188_v11 = vsel %vm4103_vm14, %v4187_v8, %v12031_v57  ;;  %v4260_v17 = vmul.u32 %v4253_v54, %v4244_v29 }
 0x42b   : > { %v8577_v31 = vpop.eup %8576  ;;  %v4097_v19 = vxor.u32 2147483648, %v8575_v7  ;;  %v4174_v33 = vshll.u32 %v12046_v12, %v4172_v46  ;;  %vm4262_vm5 = vc.u32 %v12067_v28, %v12061_v5  ;;  %vm4320_vm6 = vcmp.gt.s32.totalorder %v4319_v20, 0 }
 0x42c   : > { %v4094_v9 = vxor.u32 2147483648, %v8577_v31  ;;  %v4175_v16 = vshrl.u32 %v4157_v25, %v4173_v42  ;;  %v4178_v50 = vadd.s32 127, %v4177_v15  ;;  %v4264_v48 = vsel %vm4262_vm5, %v4263_v32, %v12062_v38 }
 0x42d   : > { %v4098_v62 = vsel %vm4096_vm3, %v4097_v19, %v8577_v31  ;;  %v4265_v40 = vadd.s32 %v4264_v48, %v4260_v17  ;;  %v4316_v57 = vand.u32 8388607, %v4309_v6  ;;  %v4321_v52 = vsel %vm4320_vm6, %v4319_v20, 0 }
 0x42e   : > { %v4095_v12 = vsel %vm4093_vm2, %v8575_v7, %v4094_v9  ;;  %v4176_v21 = vor.u32 %v4175_v16, %v4174_v33  ;;  %v4179_v4 = vshll.u32 %v4178_v50, 23  ;;  %v4416_v58 = vand.u32 2139095040, %v12073_v13 }
 0x42f   : > { %vm4089_vm7 = vweird.f32 %v11786_v59  ;;  %v4099_v34 = vsel %vm4092_vm1, %v4095_v12, %v4098_v62  ;;  %v4266_v3 = vadd.s32 536870912, %v4265_v40  ;;  %v4323_v35 = vand.u32 31, %v4321_v52 }
 0x430   : > { %v4100_v14 = vsel %vm4089_vm7, nan, %v4099_v34  ;;  %vm12100_vm8 = vcmp.le.f32.partialorder %v4101_v56, 0.7853982  ;;  %v4180_v54 = vor.u32 4788187, %v4179_v4  ;;  %v12105_v60 = vmul.f32 %v11827_v2, %v831_v37 }
 0x431   : > { %7769 = vst [vmem:[%s9666_s10 + $0xe0] sm:$0xff] %v4100_v14  ;;  %v4190_v59 = vsel %vm12100_vm8, 0, %v4188_v11  ;;  %v12110_v24 = vshrl.u32 %v4266_v3, 30  ;;  %v4317_v63 = vor.u32 8388608, %v4316_v57  ;;  %v4324_v43 = vsub.s32 32, %v4323_v35 }
 0x432   : > { %v4181_v18 = vand.u32 2147483647, %v4180_v54  ;;  %v4183_v26 = vcvt.s32.f32 %v4176_v21  ;;  %v12112_v38 = vshrl.u32 %v4321_v52, 5  ;;  %v4417_v56 = vshrl.u32 %v4416_v58, 23 }
 0x433   : > { %v4268_v55 = vshll.u32 %v12110_v24, 30  ;;  %v4326_v23 = vshll.u32 %v15256_v0, %v4323_v35  ;;  %v4327_v2 = vshrl.u32 %v15257_v39, %v4324_v43  ;;  %v4329_v8 = vshll.u32 %v15257_v39, %v4323_v35 }
 0x434   : > { %v4184_v45 = vmul.f32 %v4183_v26, %v4181_v18  ;;  %v4330_v29 = vshrl.u32 %v15258_v27, %v4324_v43  ;;  %v4333_v51 = vshrl.u32 %v15259_v44, %v4324_v43  ;;  %v4336_v25 = vshrl.u32 %v15260_v53, %v4324_v43 }
 0x435   : > { %v12121_v46 = vsub.s32 %v4265_v40, %v4268_v55  ;;  %v4332_v32 = vshll.u32 %v15258_v27, %v4323_v35  ;;  %v4335_v20 = vshll.u32 %v15259_v44, %v4323_v35  ;;  %v4339_v7 = vshrl.u32 %v15261_v41, %v4324_v43 }
 0x436   : > { %v4185_v42 = vxor.u32 2147483648, %v4184_v45  ;;  %v4194_v15 = vadd.s32 3, %v4190_v59  ;;  %v4328_v11 = vor.u32 %v4327_v2, %v4326_v23  ;;  %v4331_v17 = vor.u32 %v4330_v29, %v4329_v8 }
 0x437   : > { %v4271_v31 = vsub.s32 0, %v12121_v46  ;;  %v4334_v19 = vor.u32 %v4333_v51, %v4332_v32  ;;  %v4337_v33 = vor.u32 %v4336_v25, %v4335_v20  ;;  %v4338_v9 = vshll.u32 %v15260_v53, %v4323_v35 }
 0x438   : > { %v4186_v16 = vsel %vm4103_vm14, %v4185_v42, %v4184_v45  ;;  %vm4341_vm10 = vcmp.lt.s32.totalorder %v12112_v38, 1  ;;  %v4357_v50 = vshll.u32 %v4317_v63, 8  ;;  %v8019_v48 = vadd.s32 4294967169, %v4417_v56 }
 0x439   : > { %v4189_v62 = vsel %vm12100_vm8, %v11854_v47, %v4186_v16  ;;  %v8012_v40 = vmin.u32 %v4271_v31, %v12121_v46  ;;  %v4340_v57 = vor.u32 %v4339_v7, %v4338_v9  ;;  %vm4344_vm9 = vcmp.lt.s32.totalorder %v12112_v38, 4 }
 0x43a   : > { %8578 = vcosq.f32 %v4189_v62  ;;  %v4325_v52 = vshrl.u32 %v15256_v0, %v4324_v43  ;;  %v4349_v37 = vsel %vm4341_vm10, %v4328_v11, %v4331_v17  ;;  %v4350_v12 = vsel %vm4344_vm9, %v4337_v33, 920167782 }
 0x43b   : > { %8580 = vsinq.f32 %v4189_v62  ;;  %vm12143_vm12 = vcmp.le.f32.partialorder %v4205_v36, 0.7853982  ;;  %v4273_v4 = vclz %v8012_v40  ;;  %vm4343_vm11 = vcmp.lt.s32.totalorder %v12112_v38, 3 }
 0x43c   : > { %v4346_v58 = vsel %vm4344_vm9, %v4334_v19, 2102212464  ;;  %v4291_v34 = vsub.s32 4, %v12110_v24  ;;  %vm4342_vm13 = vcmp.lt.s32.totalorder %v12112_v38, 2  ;;  %v4351_v3 = vsel %vm4343_vm11, %v4334_v19, %v4350_v12 }
 0x43d   : > { %v4353_v35 = vsel %vm4341_vm10, %v4331_v17, %v4334_v19  ;;  %v8013_v14 = vadd.s32 4294967294, %v4273_v4  ;;  %v4345_v36 = vsel %vm4341_vm10, %v4325_v52, %v4328_v11  ;;  %v4352_v1 = vsel %vm4342_vm13, %v4349_v37, %v4351_v3 }
 0x43e   : > { %v4354_v54 = vsel %vm4344_vm9, %v4340_v57, 1326507024  ;;  %v4347_v59 = vsel %vm4343_vm11, %v4331_v17, %v4346_v58  ;;  %v12160_v43 = vmul.u32.u64.low %v4357_v50, %v4352_v1  ;;  %v12161_v18 = vmul.u32.u64.high %v4357_v50, %v4352_v1, %v12160_v43 }
 0x43f   : > { %v4355_v63 = vsel %vm4343_vm11, %v4337_v33, %v4354_v54  ;;  %vm4207_vm0 = vcmp.lt.s32.totalorder %v11939_v10, 0  ;;  %vm8014_vm15 = vcmp.lt.s32.totalorder %v8013_v14, 0  ;;  %v4423_v56 = vadd.s32 1, %v8019_v48 }
 0x440   : > { %v4356_v26 = vsel %vm4342_vm13, %v4353_v35, %v4355_v63  ;;  %v4261_v55 = vadd.s32 %v12061_v5, %v12067_v28  ;;  %v4276_v23 = vsel %vm8014_vm15, 0, %v8013_v14  ;;  %vm4193_vm14 = vweird.f32 %v11854_v47 }
 0x441   : > { %v12169_v2 = vmul.u32.u64.low %v4357_v50, %v4356_v26  ;;  %v12170_v8 = vmul.u32.u64.high %v4357_v50, %v4356_v26, %v12169_v2  ;;  %v4277_v45 = vsub.s32 32, %v4276_v23  ;;  %v4281_v29 = vsub.s32 4294967266, %v4276_v23 }
 0x442   : > { %v4292_v51 = vsel %vm4207_vm0, %v4291_v34, %v12110_v24  ;;  %v4348_v25 = vsel %vm4342_vm13, %v4345_v36, %v4347_v59  ;;  %v4195_v32 = vand.u32 3, %v4194_v15  ;;  %v4367_v20 = vadd.s32 1, %v12161_v18 }
 0x443   : > { %v4413_v5 = vand.u32 2147483647, %v12073_v13  ;;  %vm4424_vm1 = vcmp.gt.s32.totalorder %v4423_v56, 0  ;;  %v4278_v28 = vshll.u32 %v12121_v46, %v4276_v23  ;;  %v4279_v7 = vshrl.u32 %v4261_v55, %v4277_v45 }
 0x444   : > { %v4282_v42 = vadd.s32 127, %v4281_v29  ;;  %v4425_v11 = vsel %vm4424_vm1, %v4423_v56, 0  ;;  %v8579_v17 = vpop.eup %8578  ;;  %v4294_v31 = vsel %vm12143_vm12, 0, %v4292_v51  ;;  %v4364_v19 = vmul.u32 %v4357_v50, %v4348_v25 }
 0x445   : > { %vm4366_vm2 = vc.u32 %v12170_v8, %v12160_v43  ;;  %v4427_v24 = vand.u32 31, %v4425_v11  ;;  %v8581_v38 = vpop.eup %8580  ;;  %v4201_v15 = vxor.u32 2147483648, %v8579_v17  ;;  %v4280_v33 = vor.u32 %v4279_v7, %v4278_v28 }
 0x446   : > { %v4283_v9 = vshll.u32 %v4282_v42, 23  ;;  %v4368_v16 = vsel %vm4366_vm2, %v4367_v20, %v12161_v18  ;;  %v4198_v48 = vxor.u32 2147483648, %v8581_v38  ;;  %vm4200_vm3 = vcmp.eq.s32.totalorder %v4195_v32, 2 }
 0x447   : > { %v4369_v46 = vadd.s32 %v4368_v16, %v4364_v19  ;;  %v4428_v62 = vsub.s32 32, %v4427_v24  ;;  %vm4196_vm4 = vcmp.lt.s32.totalorder %v4195_v32, 2  ;;  %vm4197_vm5 = vcmp.eq.s32.totalorder %v4195_v32, 0 }
 0x448   : > { %v4202_v40 = vsel %vm4200_vm3, %v4201_v15, %v8581_v38  ;;  %v4284_v57 = vor.u32 4788187, %v4283_v9  ;;  %v4199_v50 = vsel %vm4197_vm5, %v8579_v17, %v4198_v48  ;;  %v4298_v52 = vadd.s32 3, %v4294_v31 }
 0x449   : > { %v4370_v37 = vadd.s32 536870912, %v4369_v46  ;;  %v4420_v12 = vand.u32 8388607, %v4413_v5  ;;  %v4203_v4 = vsel %vm4196_vm4, %v4199_v50, %v4202_v40  ;;  %v4287_v34 = vcvt.s32.f32 %v4280_v33 }
 0x44a   : > { %v4285_v58 = vand.u32 2147483647, %v4284_v57  ;;  %v4431_v3 = vshrl.u32 %v15257_v39, %v4428_v62  ;;  %v4204_v35 = vsel %vm4193_vm14, nan, %v4203_v4  ;;  %v4434_v36 = vshrl.u32 %v15258_v27, %v4428_v62 }
 0x44b   : > { %v4371_v14 = vshrl.u32 %v4370_v37, 30  ;;  %v4437_v1 = vshrl.u32 %v15259_v44, %v4428_v62  ;;  %7770 = vst [vmem:[%s9666_s10 + $0xe8] sm:$0xff] %v4204_v35  ;;  %v4426_v59 = vshrl.u32 %v4425_v11, 5  ;;  %v4439_v63 = vshll.u32 %v15259_v44, %v4427_v24 }
 0x44c   : > { %v4288_v54 = vmul.f32 %v4287_v34, %v4285_v58  ;;  %v4440_v18 = vshrl.u32 %v15260_v53, %v4428_v62  ;;  %v4430_v56 = vshll.u32 %v15256_v0, %v4427_v24  ;;  %v4433_v55 = vshll.u32 %v15257_v39, %v4427_v24 }
 0x44d   : > { %v4372_v26 = vshll.u32 %v4371_v14, 30  ;;  %v4436_v47 = vshll.u32 %v15258_v27, %v4427_v24  ;;  %v4442_v45 = vshll.u32 %v15260_v53, %v4427_v24  ;;  %v4443_v29 = vshrl.u32 %v15261_v41, %v4428_v62 }
 0x44e   : > { %v4289_v23 = vxor.u32 2147483648, %v4288_v54  ;;  %v4441_v2 = vor.u32 %v4440_v18, %v4439_v63  ;;  %vm4311_vm6 = vcmp.lt.s32.totalorder %v12042_v61, 0  ;;  %v4432_v25 = vor.u32 %v4431_v3, %v4430_v56 }
 0x44f   : > { %v12202_v51 = vsub.s32 %v4369_v46, %v4372_v26  ;;  %v4435_v32 = vor.u32 %v4434_v36, %v4433_v55  ;;  %v4438_v20 = vor.u32 %v4437_v1, %v4436_v47  ;;  %v4421_v7 = vor.u32 8388608, %v4420_v12  ;;  %v12387_v36 = vld [vmem:[%s15171_s1] ss:$0 sm:$0xff] }
 0x450   : > { %v4290_v28 = vsel %vm4207_vm0, %v4289_v23, %v4288_v54  ;;  %v4444_v42 = vor.u32 %v4443_v29, %v4442_v45  ;;  %v12208_v11 = vadd.f32 %v12105_v60, %v11932_v49  ;;  %v4429_v19 = vshrl.u32 %v15256_v0, %v4428_v62 }
 0x451   : > { %v4293_v17 = vsel %vm12143_vm12, %v11939_v10, %v4290_v28  ;;  %v4375_v31 = vsub.s32 0, %v12202_v51  ;;  %vm4448_vm7 = vcmp.lt.s32.totalorder %v4426_v59, 4  ;;  %vm4445_vm8 = vcmp.lt.s32.totalorder %v4426_v59, 1 }
 0x452   : > { %8582 = vcosq.f32 %v4293_v17  ;;  %vm4447_vm10 = vcmp.lt.s32.totalorder %v4426_v59, 3  ;;  %v4454_v24 = vsel %vm4448_vm7, %v4441_v2, 920167782  ;;  %v4450_v15 = vsel %vm4448_vm7, %v4438_v20, 2102212464 }
 0x453   : > { %8584 = vsinq.f32 %v4293_v17  ;;  %v8016_v38 = vmin.u32 %v4375_v31, %v12202_v51  ;;  %v4453_v33 = vsel %vm4445_vm8, %v4432_v25, %v4435_v32  ;;  %v4395_v49 = vsub.s32 4, %v4371_v14 }
 0x454   : > { %v4455_v60 = vsel %vm4447_vm10, %v4438_v20, %v4454_v24  ;;  %v4457_v9 = vsel %vm4445_vm8, %v4435_v32, %v4438_v20  ;;  %v4458_v21 = vsel %vm4448_vm7, %v4444_v42, 1326507024  ;;  %v4299_v16 = vand.u32 3, %v4298_v52 }
 0x455   : > { %v4377_v48 = vclz %v8016_v38  ;;  %vm4446_vm9 = vcmp.lt.s32.totalorder %v4426_v59, 2  ;;  %v4461_v46 = vshll.u32 %v4421_v7, 8  ;;  %v4449_v62 = vsel %vm4445_vm8, %v4429_v19, %v4432_v25 }
 0x456   : > { %v4451_v40 = vsel %vm4447_vm10, %v4435_v32, %v4450_v15  ;;  %v4456_v57 = vsel %vm4446_vm9, %v4453_v33, %v4455_v60  ;;  %v4459_v50 = vsel %vm4447_vm10, %v4441_v2, %v4458_v21  ;;  %v4396_v52 = vsel %vm4311_vm6, %v4395_v49, %v4371_v14 }
 0x457   : > { %v8017_v37 = vadd.s32 4294967294, %v4377_v48  ;;  %v4460_v12 = vsel %vm4446_vm9, %v4457_v9, %v4459_v50  ;;  %v12221_v4 = vmul.u32.u64.low %v4461_v46, %v4456_v57  ;;  %v12222_v58 = vmul.u32.u64.high %v4461_v46, %v4456_v57, %v12221_v4  ;;  %v12257_v48 = vld [vmem:[%s15171_s1 + $0x1] ss:$0 sm:$0xff] }
 0x458   : > { %v12227_v34 = vmul.u32.u64.low %v4461_v46, %v4460_v12  ;;  %v12228_v3 = vmul.u32.u64.high %v4461_v46, %v4460_v12, %v12227_v34  ;;  %v4520_v35 = vand.u32 2139095040, %v12208_v11  ;;  %vm4297_vm12 = vweird.f32 %v11939_v10 }
 0x459   : > { %vm4300_vm11 = vcmp.lt.s32.totalorder %v4299_v16, 2  ;;  %vm12234_vm13 = vcmp.le.f32.partialorder %v4309_v6, 0.7853982  ;;  %vm8018_vm0 = vcmp.lt.s32.totalorder %v8017_v37, 0  ;;  %v4452_v1 = vsel %vm4446_vm9, %v4449_v62, %v4451_v40  ;;  %v839_v62 = vpop.permute.xlu0 %838 }
 0x45a   : > { %v4365_v14 = vadd.s32 %v12160_v43, %v12170_v8  ;;  %v4380_v54 = vsel %vm8018_vm0, 0, %v8017_v37  ;;  %v4517_v63 = vand.u32 2147483647, %v12208_v11  ;;  %v4521_v18 = vshrl.u32 %v4520_v35, 23 }
 0x45b   : > { %v4381_v26 = vsub.s32 32, %v4380_v54  ;;  %v4385_v56 = vsub.s32 4294967266, %v4380_v54  ;;  %v4398_v55 = vsel %vm12234_vm13, 0, %v4396_v52  ;;  %v4471_v6 = vadd.s32 1, %v12222_v58 }
 0x45c   : > { %v8583_v47 = vpop.eup %8582  ;;  %v4382_v23 = vshll.u32 %v12202_v51, %v4380_v54  ;;  %v4468_v2 = vmul.u32 %v4461_v46, %v4452_v1  ;;  %vm4470_vm15 = vc.u32 %v12228_v3, %v12221_v4  ;;  %v8023_v59 = vadd.s32 4294967169, %v4521_v18  ;;  %v835_v51 = vpop.permute.xlu1 %834 }
 0x45d   : > { %v8585_v43 = vpop.eup %8584  ;;  %v4305_v8 = vxor.u32 2147483648, %v8583_v47  ;;  %v4383_v45 = vshrl.u32 %v4365_v14, %v4381_v26  ;;  %v4386_v29 = vadd.s32 127, %v4385_v56  ;;  %v4472_v25 = vsel %vm4470_vm15, %v4471_v6, %v12222_v58 }
 0x45e   : > { %v4302_v32 = vxor.u32 2147483648, %v8585_v43  ;;  %vm4304_vm14 = vcmp.eq.s32.totalorder %v4299_v16, 2  ;;  %v4473_v20 = vadd.s32 %v4472_v25, %v4468_v2  ;;  %v4527_v28 = vadd.s32 1, %v8023_v59 }
 0x45f   : > { %vm4301_vm1 = vcmp.eq.s32.totalorder %v4299_v16, 0  ;;  %v4306_v7 = vsel %vm4304_vm14, %v4305_v8, %v8585_v43  ;;  %v4384_v42 = vor.u32 %v4383_v45, %v4382_v23  ;;  %v4387_v17 = vshll.u32 %v4386_v29, 23  ;;  %v12263_v16 = vld [vmem:[%s15172_s2] ss:$0 sm:$0xff] }
 0x460   : > { %v4303_v31 = vsel %vm4301_vm1, %v8583_v47, %v4302_v32  ;;  %v4402_v19 = vadd.s32 3, %v4398_v55  ;;  %v4474_v24 = vadd.s32 536870912, %v4473_v20  ;;  %vm4528_vm2 = vcmp.gt.s32.totalorder %v4527_v28, 0 }
 0x461   : > { %v4307_v38 = vsel %vm4300_vm11, %v4303_v31, %v4306_v7  ;;  %v4388_v15 = vor.u32 4788187, %v4387_v17  ;;  %v4524_v33 = vand.u32 8388607, %v4517_v63  ;;  %v4529_v49 = vsel %vm4528_vm2, %v4527_v28, 0 }
 0x462   : > { %v4308_v60 = vsel %vm4297_vm12, nan, %v4307_v38  ;;  %v4475_v9 = vshrl.u32 %v4474_v24, 30  ;;  %v4531_v21 = vand.u32 31, %v4529_v49  ;;  %v991_v46 = vmul.f32 %v12257_v48, %v835_v51 }
 0x463   : > { %v12267_v40 = vadd.f32 %v12263_v16, %v12012_v22  ;;  %v666_v10 = vadd.f32 %v12263_v16, %v12018_v30  ;;  %7771 = vst [vmem:[%s9666_s10 + $0xf0] sm:$0xff] %v4308_v60  ;;  %v4389_v57 = vand.u32 2147483647, %v4388_v15  ;;  %v4391_v50 = vcvt.s32.f32 %v4384_v42 }
 0x464   : > { %v12272_v37 = vand.u32 3, %v4402_v19  ;;  %vm4415_vm3 = vcmp.lt.s32.totalorder %v12073_v13, 0  ;;  %v4476_v12 = vshll.u32 %v4475_v9, 30  ;;  %v4532_v58 = vsub.s32 32, %v4531_v21 }
 0x465   : > { %v4392_v52 = vmul.f32 %v4391_v50, %v4389_v57  ;;  %v4469_v34 = vadd.s32 %v12221_v4, %v12228_v3  ;;  %v4525_v35 = vor.u32 8388608, %v4524_v33  ;;  %v12278_v22 = vmul.f32 %v12257_v48, %v839_v62 }
 0x466   : > { %v12280_v1 = vsub.s32 %v4473_v20, %v4476_v12  ;;  %v12282_v30 = vshrl.u32 %v4529_v49, 5  ;;  %v4535_v14 = vshrl.u32 %v15257_v39, %v4532_v58  ;;  %v12285_v54 = vadd.f32 %v991_v46, %v666_v10 }
 0x467   : > { %v4393_v18 = vxor.u32 2147483648, %v4392_v52  ;;  %v4534_v26 = vshll.u32 %v15256_v0, %v4531_v21  ;;  %v4538_v56 = vshrl.u32 %v15258_v27, %v4532_v58  ;;  %v4541_v55 = vshrl.u32 %v15259_v44, %v4532_v58 }
 0x468   : > { %v4479_v4 = vsub.s32 0, %v12280_v1  ;;  %v4537_v3 = vshll.u32 %v15257_v39, %v4531_v21  ;;  %v4540_v6 = vshll.u32 %v15258_v27, %v4531_v21  ;;  %v4544_v47 = vshrl.u32 %v15260_v53, %v4532_v58 }
 0x469   : > { %v4394_v23 = vsel %vm4311_vm6, %v4393_v18, %v4392_v52  ;;  %v4499_v2 = vsub.s32 4, %v4475_v9  ;;  %v4536_v59 = vor.u32 %v4535_v14, %v4534_v26  ;;  %v4543_v43 = vshll.u32 %v15259_v44, %v4531_v21 }
 0x46a   : > { %v4397_v8 = vsel %vm12234_vm13, %v12042_v61, %v4394_v23  ;;  %v8020_v45 = vmin.u32 %v4479_v4, %v12280_v1  ;;  %v4539_v29 = vor.u32 %v4538_v56, %v4537_v3  ;;  %v4542_v25 = vor.u32 %v4541_v55, %v4540_v6 }
 0x46b   : > { %8586 = vcosq.f32 %v4397_v8  ;;  %v4545_v32 = vor.u32 %v4544_v47, %v4543_v43  ;;  %v4546_v20 = vshll.u32 %v15260_v53, %v4531_v21  ;;  %v4547_v28 = vshrl.u32 %v15261_v41, %v4532_v58 }
 0x46c   : > { %8588 = vsinq.f32 %v4397_v8  ;;  %v4481_v7 = vclz %v8020_v45  ;;  %v4565_v42 = vshll.u32 %v4525_v35, 8  ;;  %v4624_v17 = vand.u32 2139095040, %v12285_v54 }
 0x46d   : > { %vm12306_vm4 = vcmp.le.f32.partialorder %v4413_v5, 0.7853982  ;;  %v4500_v51 = vsel %vm4415_vm3, %v4499_v2, %v4475_v9  ;;  %v4533_v31 = vshrl.u32 %v15256_v0, %v4532_v58  ;;  %v4548_v19 = vor.u32 %v4547_v28, %v4546_v20 }
 0x46e   : > { %vm4549_vm5 = vcmp.lt.s32.totalorder %v12282_v30, 1  ;;  %v8021_v24 = vadd.s32 4294967294, %v4481_v7  ;;  %vm4551_vm6 = vcmp.lt.s32.totalorder %v12282_v30, 3  ;;  %vm4552_vm7 = vcmp.lt.s32.totalorder %v12282_v30, 4 }
 0x46f   : > { %v4557_v38 = vsel %vm4549_vm5, %v4536_v59, %v4539_v29  ;;  %v4554_v15 = vsel %vm4552_vm7, %v4542_v25, 2102212464  ;;  %v4558_v33 = vsel %vm4552_vm7, %v4545_v32, 920167782  ;;  %v4561_v5 = vsel %vm4549_vm5, %v4539_v29, %v4542_v25 }
 0x470   : > { %v4562_v49 = vsel %vm4552_vm7, %v4548_v19, 1326507024  ;;  %vm8022_vm8 = vcmp.lt.s32.totalorder %v8021_v24, 0  ;;  %vm4550_vm10 = vcmp.lt.s32.totalorder %v12282_v30, 2  ;;  %v4559_v60 = vsel %vm4551_vm6, %v4542_v25, %v4558_v33 }
 0x471   : > { %v4563_v9 = vsel %vm4551_vm6, %v4545_v32, %v4562_v49  ;;  %vm4404_vm9 = vcmp.lt.s32.totalorder %v12272_v37, 2  ;;  %v4484_v21 = vsel %vm8022_vm8, 0, %v8021_v24  ;;  %v4553_v46 = vsel %vm4549_vm5, %v4533_v31, %v4536_v59 }
 0x472   : > { %v4560_v62 = vsel %vm4550_vm10, %v4557_v38, %v4559_v60  ;;  %v4564_v10 = vsel %vm4550_vm10, %v4561_v5, %v4563_v9  ;;  %vm4401_vm12 = vweird.f32 %v12042_v61  ;;  %v4485_v57 = vsub.s32 32, %v4484_v21 }
 0x473   : > { %v4489_v50 = vsub.s32 4294967266, %v4484_v21  ;;  %v4555_v12 = vsel %vm4551_vm6, %v4539_v29, %v4554_v15  ;;  %v4625_v58 = vshrl.u32 %v4624_v17, 23  ;;  %v4486_v26 = vshll.u32 %v12280_v1, %v4484_v21 }
 0x474   : > { %v12329_v52 = vmul.u32.u64.low %v4565_v42, %v4564_v10  ;;  %v12330_v35 = vmul.u32.u64.high %v4565_v42, %v4564_v10, %v12329_v52  ;;  %v12332_v14 = vmul.u32.u64.low %v4565_v42, %v4560_v62  ;;  %v12333_v18 = vmul.u32.u64.high %v4565_v42, %v4560_v62, %v12332_v14 }
 0x475   : > { %v4487_v56 = vshrl.u32 %v4469_v34, %v4485_v57  ;;  %v4490_v55 = vadd.s32 127, %v4489_v50  ;;  %v8027_v4 = vadd.s32 4294967169, %v4625_v58  ;;  %v8587_v3 = vpop.eup %8586  ;;  %vm4405_vm11 = vcmp.eq.s32.totalorder %v12272_v37, 0 }
 0x476   : > { %vm4408_vm13 = vcmp.eq.s32.totalorder %v12272_v37, 2  ;;  %v4556_v6 = vsel %vm4550_vm10, %v4553_v46, %v4555_v12  ;;  %v12343_v47 = vadd.f32 %v12278_v22, %v12267_v40  ;;  %v8589_v23 = vpop.eup %8588  ;;  %v4409_v2 = vxor.u32 2147483648, %v8587_v3 }
 0x477   : > { %v4488_v59 = vor.u32 %v4487_v56, %v4486_v26  ;;  %v4491_v43 = vshll.u32 %v4490_v55, 23  ;;  %v4502_v34 = vsel %vm12306_vm4, 0, %v4500_v51  ;;  %v4406_v1 = vxor.u32 2147483648, %v8589_v23 }
 0x478   : > { %vm4574_vm0 = vc.u32 %v12330_v35, %v12332_v14  ;;  %v4575_v8 = vadd.s32 1, %v12333_v18  ;;  %v4621_v30 = vand.u32 2147483647, %v12285_v54  ;;  %v4410_v45 = vsel %vm4408_vm13, %v4409_v2, %v8589_v23  ;;  %v15352_v23 = vld [vmem:[#allocation31_spill] sm:$0xff] }
 0x479   : > { %v4492_v29 = vor.u32 4788187, %v4491_v43  ;;  %v4572_v40 = vmul.u32 %v4565_v42, %v4556_v6  ;;  %v4631_v22 = vadd.s32 1, %v8027_v4  ;;  %v4407_v25 = vsel %vm4405_vm11, %v8587_v3, %v4406_v1  ;;  %v843_v4 = vpop.permute.xlu1 %842 }
 0x47a   : > { %v4495_v32 = vcvt.s32.f32 %v4488_v59  ;;  %v4506_v20 = vadd.s32 3, %v4502_v34  ;;  %v4576_v28 = vsel %vm4574_vm0, %v4575_v8, %v12333_v18  ;;  %v4411_v7 = vsel %vm4404_vm9, %v4407_v25, %v4410_v45 }
 0x47b   : > { %v4493_v17 = vand.u32 2147483647, %v4492_v29  ;;  %v4577_v51 = vadd.s32 %v4576_v28, %v4572_v40  ;;  %vm4632_vm15 = vcmp.gt.s32.totalorder %v4631_v22, 0  ;;  %v4412_v31 = vsel %vm4401_vm12, nan, %v4411_v7 }
 0x47c   : > { %v4628_v42 = vand.u32 8388607, %v4621_v30  ;;  %v4633_v19 = vsel %vm4632_vm15, %v4631_v22, 0  ;;  %v4728_v24 = vand.u32 2139095040, %v12343_v47  ;;  %7772 = vst [vmem:[%s9666_s10 + $0xf8] sm:$0xff] %v4412_v31  ;;  %v12362_v49 = vand.u32 3, %v4506_v20 }
 0x47d   : > { %v4496_v38 = vmul.f32 %v4495_v32, %v4493_v17  ;;  %v4578_v15 = vadd.s32 536870912, %v4577_v51  ;;  %v4635_v33 = vand.u32 31, %v4633_v19  ;;  %v12366_v21 = vshrl.u32 %v4633_v19, 5 }
 0x47e   : > { %v4629_v9 = vor.u32 8388608, %v4628_v42  ;;  %v4729_v46 = vshrl.u32 %v4728_v24, 23  ;;  %v12391_v2 = vmul.f32 %v12387_v36, %v15352_v23  ;;  %v12399_v29 = vmul.f32 %v12257_v48, %v843_v4 }
 0x47f   : > { %v4497_v5 = vxor.u32 2147483648, %v4496_v38  ;;  %v12364_v37 = vshrl.u32 %v4578_v15, 30  ;;  %v4636_v60 = vsub.s32 32, %v4635_v33  ;;  %v4638_v61 = vshll.u32 %v15256_v0, %v4635_v33 }
 0x480   : > { %v4641_v57 = vshll.u32 %v15257_v39, %v4635_v33  ;;  %v4644_v50 = vshll.u32 %v15258_v27, %v4635_v33  ;;  %v4647_v56 = vshll.u32 %v15259_v44, %v4635_v33  ;;  %v4650_v1 = vshll.u32 %v15260_v53, %v4635_v33 }
 0x481   : > { %v4498_v62 = vsel %vm4415_vm3, %v4497_v5, %v4496_v38  ;;  %v4580_v10 = vshll.u32 %v12364_v37, 30  ;;  %v4639_v58 = vshrl.u32 %v15257_v39, %v4636_v60  ;;  %v4642_v52 = vshrl.u32 %v15258_v27, %v4636_v60 }
 0x482   : > { %v4501_v12 = vsel %vm12306_vm4, %v12073_v13, %v4498_v62  ;;  %v4645_v18 = vshrl.u32 %v15259_v44, %v4636_v60  ;;  %v4648_v55 = vshrl.u32 %v15260_v53, %v4636_v60  ;;  %v4651_v8 = vshrl.u32 %v15261_v41, %v4636_v60 }
 0x483   : > { %8590 = vcosq.f32 %v4501_v12  ;;  %v12380_v26 = vsub.s32 %v4577_v51, %v4580_v10  ;;  %v4640_v3 = vor.u32 %v4639_v58, %v4638_v61  ;;  %v4643_v6 = vor.u32 %v4642_v52, %v4641_v57 }
 0x484   : > { %8592 = vsinq.f32 %v4501_v12  ;;  %v4646_v43 = vor.u32 %v4645_v18, %v4644_v50  ;;  %v4649_v34 = vor.u32 %v4648_v55, %v4647_v56  ;;  %v12396_v45 = vshll.u32 %v4629_v9, 8 }
 0x485   : > { %v4583_v59 = vsub.s32 0, %v12380_v26  ;;  %vm4512_vm14 = vcmp.eq.s32.totalorder %v12362_v49, 2  ;;  %vm4519_vm1 = vcmp.lt.s32.totalorder %v12208_v11, 0  ;;  %vm4653_vm2 = vcmp.lt.s32.totalorder %v12366_v21, 1 }
 0x486   : > { %vm4656_vm3 = vcmp.lt.s32.totalorder %v12366_v21, 4  ;;  %v8031_v22 = vadd.s32 4294967169, %v4729_v46  ;;  %vm4509_vm4 = vcmp.eq.s32.totalorder %v12362_v49, 0  ;;  %v4603_v25 = vsub.s32 4, %v12364_v37 }
 0x487   : > { %v8024_v40 = vmin.u32 %v4583_v59, %v12380_v26  ;;  %v4652_v32 = vor.u32 %v4651_v8, %v4650_v1  ;;  %v4661_v20 = vsel %vm4653_vm2, %v4640_v3, %v4643_v6  ;;  %v4662_v28 = vsel %vm4656_vm3, %v4649_v34, 920167782 }
 0x488   : > { %vm4508_vm5 = vcmp.lt.s32.totalorder %v12362_v49, 2  ;;  %v4637_v17 = vshrl.u32 %v15256_v0, %v4636_v60  ;;  %vm4655_vm6 = vcmp.lt.s32.totalorder %v12366_v21, 3  ;;  %v4658_v51 = vsel %vm4656_vm3, %v4646_v43, 2102212464 }
 0x489   : > { %v4585_v7 = vclz %v8024_v40  ;;  %vm4505_vm7 = vweird.f32 %v12073_v13  ;;  %vm4654_vm8 = vcmp.lt.s32.totalorder %v12366_v21, 2  ;;  %v4663_v31 = vsel %vm4655_vm6, %v4646_v43, %v4662_v28 }
 0x48a   : > { %v4665_v42 = vsel %vm4653_vm2, %v4643_v6, %v4646_v43  ;;  %v4666_v19 = vsel %vm4656_vm3, %v4652_v32, 1326507024  ;;  %vm12425_vm10 = vcmp.le.f32.partialorder %v4517_v63, 0.7853982  ;;  %v4657_v15 = vsel %vm4653_vm2, %v4637_v17, %v4640_v3 }
 0x48b   : > { %v8025_v38 = vadd.s32 4294967294, %v4585_v7  ;;  %v4664_v33 = vsel %vm4654_vm8, %v4661_v20, %v4663_v31  ;;  %v4667_v5 = vsel %vm4655_vm6, %v4649_v34, %v4666_v19  ;;  %v4659_v60 = vsel %vm4655_vm6, %v4643_v6, %v4658_v51  ;;  %v15355_v20 = vld [vmem:[#allocation30_spill] sm:$0xff]  ;;  %v15356_v7 = vld [vmem:[#allocation33_spill] sm:$0xff] }
 0x48c   : > { %v4668_v9 = vsel %vm4654_vm8, %v4665_v42, %v4667_v5  ;;  %v12436_v61 = vmul.u32.u64.low %v12396_v45, %v4664_v33  ;;  %v12437_v46 = vmul.u32.u64.high %v12396_v45, %v4664_v33, %v12436_v61  ;;  %v4735_v57 = vadd.s32 1, %v8031_v22 }
 0x48d   : > { %v8591_v63 = vpop.eup %8590  ;;  %vm8026_vm9 = vcmp.lt.s32.totalorder %v8025_v38, 0  ;;  %v12441_v62 = vmul.u32.u64.low %v12396_v45, %v4668_v9  ;;  %v12442_v10 = vmul.u32.u64.high %v12396_v45, %v4668_v9, %v12441_v62  ;;  %v4573_v58 = vadd.s32 %v12332_v14, %v12330_v35 }
 0x48e   : > { %v8593_v50 = vpop.eup %8592  ;;  %v4513_v12 = vxor.u32 2147483648, %v8591_v63  ;;  %v4588_v52 = vsel %vm8026_vm9, 0, %v8025_v38  ;;  %v4725_v18 = vand.u32 2147483647, %v12343_v47  ;;  %v4660_v3 = vsel %vm4654_vm8, %v4657_v15, %v4659_v60 }
 0x48f   : > { %v4510_v56 = vxor.u32 2147483648, %v8593_v50  ;;  %v4589_v55 = vsub.s32 32, %v4588_v52  ;;  %v4593_v4 = vsub.s32 4294967266, %v4588_v52  ;;  %v4604_v23 = vsel %vm4519_vm1, %v4603_v25, %v12364_v37 }
 0x490   : > { %v4514_v6 = vsel %vm4512_vm14, %v4513_v12, %v8593_v50  ;;  %v4679_v59 = vadd.s32 1, %v12437_v46  ;;  %vm4736_vm12 = vcmp.gt.s32.totalorder %v4735_v57, 0  ;;  %v4590_v14 = vshll.u32 %v12380_v26, %v4588_v52 }
 0x491   : > { %v4511_v35 = vsel %vm4509_vm4, %v8591_v63, %v4510_v56  ;;  %v4591_v43 = vshrl.u32 %v4573_v58, %v4589_v55  ;;  %v4594_v34 = vadd.s32 127, %v4593_v4  ;;  %v4676_v1 = vmul.u32 %v12396_v45, %v4660_v3 }
 0x492   : > { %v4515_v21 = vsel %vm4508_vm5, %v4511_v35, %v4514_v6  ;;  %vm4678_vm11 = vc.u32 %v12442_v10, %v12436_v61  ;;  %v4737_v37 = vsel %vm4736_vm12, %v4735_v57, 0  ;;  %v668_v26 = vadd.f32 %v12263_v16, %v12391_v2 }
 0x493   : > { %v4516_v8 = vsel %vm4505_vm7, nan, %v4515_v21  ;;  %v4592_v40 = vor.u32 %v4591_v43, %v4590_v14  ;;  %v4595_v22 = vshll.u32 %v4594_v34, 23  ;;  %v4680_v25 = vsel %vm4678_vm11, %v4679_v59, %v12437_v46 }
 0x494   : > { %7773 = vst [vmem:[%s9666_s10 + $0x100] sm:$0xff] %v4516_v8  ;;  %v4606_v49 = vsel %vm12425_vm10, 0, %v4604_v23  ;;  %v4681_v32 = vadd.s32 %v4680_v25, %v4676_v1  ;;  %v4739_v45 = vand.u32 31, %v4737_v37  ;;  %v12473_v28 = vmul.f32 %v12387_v36, %v15355_v20 }
 0x495   : > { %v12477_v13 = vmul.f32 %v12387_v36, %v15356_v7  ;;  %v4596_v17 = vor.u32 4788187, %v4595_v22  ;;  %v4732_v31 = vand.u32 8388607, %v4725_v18  ;;  %v12482_v42 = vadd.f32 %v12399_v29, %v668_v26 }
 0x496   : > { %v4682_v51 = vadd.s32 536870912, %v4681_v32  ;;  %v4740_v2 = vsub.s32 32, %v4739_v45  ;;  %v4599_v38 = vcvt.s32.f32 %v4592_v40  ;;  %v4610_v15 = vadd.s32 3, %v4606_v49 }
 0x497   : > { %v4597_v19 = vand.u32 2147483647, %v4596_v17  ;;  %v12484_v33 = vshrl.u32 %v4737_v37, 5  ;;  %v4751_v46 = vshll.u32 %v15259_v44, %v4739_v45  ;;  %v4742_v12 = vshll.u32 %v15256_v0, %v4739_v45 }
 0x498   : > { %v4683_v5 = vshrl.u32 %v4682_v51, 30  ;;  %v4743_v60 = vshrl.u32 %v15257_v39, %v4740_v2  ;;  %v4746_v9 = vshrl.u32 %v15258_v27, %v4740_v2  ;;  %v4749_v62 = vshrl.u32 %v15259_v44, %v4740_v2 }
 0x499   : > { %v4600_v63 = vmul.f32 %v4599_v38, %v4597_v19  ;;  %v4752_v57 = vshrl.u32 %v15260_v53, %v4740_v2  ;;  %v4755_v29 = vshrl.u32 %v15261_v41, %v4740_v2  ;;  %v4745_v58 = vshll.u32 %v15257_v39, %v4739_v45 }
 0x49a   : > { %v4684_v50 = vshll.u32 %v4683_v5, 30  ;;  %v4748_v52 = vshll.u32 %v15258_v27, %v4739_v45  ;;  %v4733_v55 = vor.u32 8388608, %v4732_v31  ;;  %v4754_v3 = vshll.u32 %v15260_v53, %v4739_v45 }
 0x49b   : > { %v4601_v56 = vxor.u32 2147483648, %v4600_v63  ;;  %v4753_v4 = vor.u32 %v4752_v57, %v4751_v46  ;;  %vm4623_vm13 = vcmp.lt.s32.totalorder %v12285_v54, 0  ;;  %v4744_v23 = vor.u32 %v4743_v60, %v4742_v12 }
 0x49c   : > { %v12497_v6 = vsub.s32 %v4681_v32, %v4684_v50  ;;  %v4747_v59 = vor.u32 %v4746_v9, %v4745_v58  ;;  %v4750_v35 = vor.u32 %v4749_v62, %v4748_v52  ;;  %v12501_v43 = vand.u32 3, %v4610_v15 }
 0x49d   : > { %v4602_v14 = vsel %vm4519_vm1, %v4601_v56, %v4600_v63  ;;  %v4756_v34 = vor.u32 %v4755_v29, %v4754_v3  ;;  %v4832_v21 = vand.u32 2139095040, %v12482_v42  ;;  %v4741_v8 = vshrl.u32 %v15256_v0, %v4740_v2 }
 0x49e   : > { %v4605_v1 = vsel %vm12425_vm10, %v12208_v11, %v4602_v14  ;;  %v4687_v37 = vsub.s32 0, %v12497_v6  ;;  %vm4760_vm0 = vcmp.lt.s32.totalorder %v12484_v33, 4  ;;  %vm12512_vm15 = vcmp.le.f32.partialorder %v4621_v30, 0.7853982 }
 0x49f   : > { %8594 = vcosq.f32 %v4605_v1  ;;  %vm4757_vm14 = vcmp.lt.s32.totalorder %v12484_v33, 1  ;;  %vm4759_vm1 = vcmp.lt.s32.totalorder %v12484_v33, 3  ;;  %v4766_v22 = vsel %vm4760_vm0, %v4753_v4, 920167782 }
 0x4a0   : > { %8596 = vsinq.f32 %v4605_v1  ;;  %v8028_v24 = vmin.u32 %v4687_v37, %v12497_v6  ;;  %v4762_v25 = vsel %vm4760_vm0, %v4750_v35, 2102212464  ;;  %v4765_v26 = vsel %vm4757_vm14, %v4744_v23, %v4747_v59 }
 0x4a1   : > { %v4707_v49 = vsub.s32 4, %v4683_v5  ;;  %v4767_v32 = vsel %vm4759_vm1, %v4750_v35, %v4766_v22  ;;  %v4769_v45 = vsel %vm4757_vm14, %v4747_v59, %v4750_v35  ;;  %v4770_v20 = vsel %vm4760_vm0, %v4756_v34, 1326507024  ;;  %v847_v34 = vpop.permute.xlu0 %846 }
 0x4a2   : > { %v4689_v30 = vclz %v8028_v24  ;;  %vm4758_vm2 = vcmp.lt.s32.totalorder %v12484_v33, 2  ;;  %v4761_v7 = vsel %vm4757_vm14, %v4741_v8, %v4744_v23  ;;  %v4773_v17 = vshll.u32 %v4733_v55, 8 }
 0x4a3   : > { %v4763_v51 = vsel %vm4759_vm1, %v4747_v59, %v4762_v25  ;;  %v4768_v31 = vsel %vm4758_vm2, %v4765_v26, %v4767_v32  ;;  %v4771_v2 = vsel %vm4759_vm1, %v4753_v4, %v4770_v20  ;;  %v4833_v19 = vshrl.u32 %v4832_v21, 23 }
 0x4a4   : > { %v8029_v38 = vadd.s32 4294967294, %v4689_v30  ;;  %v4772_v15 = vsel %vm4758_vm2, %v4769_v45, %v4771_v2  ;;  %v12530_v60 = vmul.u32.u64.low %v4773_v17, %v4768_v31  ;;  %v12531_v9 = vmul.u32.u64.high %v4773_v17, %v4768_v31, %v12530_v60 }
 0x4a5   : > { %vm4612_vm3 = vcmp.lt.s32.totalorder %v12501_v43, 2  ;;  %v4708_v46 = vsel %vm4623_vm13, %v4707_v49, %v4683_v5  ;;  %v12537_v63 = vmul.u32.u64.low %v4773_v17, %v4772_v15  ;;  %v12538_v62 = vmul.u32.u64.high %v4773_v17, %v4772_v15, %v12537_v63 }
 0x4a6   : > { %v8035_v57 = vadd.s32 4294967169, %v4833_v19  ;;  %vm4613_vm4 = vcmp.eq.s32.totalorder %v12501_v43, 0  ;;  %vm4616_vm5 = vcmp.eq.s32.totalorder %v12501_v43, 2  ;;  %vm8030_vm6 = vcmp.lt.s32.totalorder %v8029_v38, 0 }
 0x4a7   : > { %v4764_v29 = vsel %vm4758_vm2, %v4761_v7, %v4763_v51  ;;  %v4677_v50 = vadd.s32 %v12436_v61, %v12442_v10  ;;  %v4692_v12 = vsel %vm8030_vm6, 0, %v8029_v38  ;;  %v4829_v58 = vand.u32 2147483647, %v12482_v42 }
 0x4a8   : > { %v4839_v52 = vadd.s32 1, %v8035_v57  ;;  %v4693_v5 = vsub.s32 32, %v4692_v12  ;;  %v4697_v56 = vsub.s32 4294967266, %v4692_v12  ;;  %v4710_v55 = vsel %vm12512_vm15, 0, %v4708_v46 }
 0x4a9   : > { %v4783_v4 = vadd.s32 1, %v12531_v9  ;;  %v8595_v3 = vpop.eup %8594  ;;  %v4694_v23 = vshll.u32 %v12497_v6, %v4692_v12  ;;  %v4780_v59 = vmul.u32 %v4773_v17, %v4764_v29  ;;  %vm4782_vm7 = vc.u32 %v12538_v62, %v12530_v60 }
 0x4aa   : > { %vm4840_vm8 = vcmp.gt.s32.totalorder %v4839_v52, 0  ;;  %v8597_v61 = vpop.eup %8596  ;;  %v4617_v10 = vxor.u32 2147483648, %v8595_v3  ;;  %v4695_v33 = vshrl.u32 %v4677_v50, %v4693_v5  ;;  %v4698_v35 = vadd.s32 127, %v4697_v56 }
 0x4ab   : > { %v4784_v14 = vsel %vm4782_vm7, %v4783_v4, %v12531_v9  ;;  %v4614_v21 = vxor.u32 2147483648, %v8597_v61  ;;  %v4836_v37 = vand.u32 8388607, %v4829_v58  ;;  %v4841_v8 = vsel %vm4840_vm8, %v4839_v52, 0 }
 0x4ac   : > { %v4785_v1 = vadd.s32 %v4784_v14, %v4780_v59  ;;  %v4618_v6 = vsel %vm4616_vm5, %v4617_v10, %v8597_v61  ;;  %v4696_v22 = vor.u32 %v4695_v33, %v4694_v23  ;;  %v4699_v24 = vshll.u32 %v4698_v35, 23 }
 0x4ad   : > { %v4714_v25 = vadd.s32 3, %v4710_v55  ;;  %v4615_v26 = vsel %vm4613_vm4, %v8595_v3, %v4614_v21  ;;  %v4843_v32 = vand.u32 31, %v4841_v8  ;;  %v994_v45 = vmul.f32 %v12257_v48, %v847_v34 }
 0x4ae   : > { %v4786_v49 = vadd.s32 536870912, %v4785_v1  ;;  %v669_v20 = vadd.f32 %v12263_v16, %v12473_v28  ;;  %vm4609_vm10 = vweird.f32 %v12208_v11  ;;  %v4619_v30 = vsel %vm4612_vm3, %v4615_v26, %v4618_v6 }
 0x4af   : > { %v4700_v7 = vor.u32 4788187, %v4699_v24  ;;  %v12568_v17 = vadd.f32 %v12263_v16, %v12477_v13  ;;  %v4620_v51 = vsel %vm4609_vm10, nan, %v4619_v30  ;;  %v4844_v2 = vsub.s32 32, %v4843_v32 }
 0x4b0   : > { %v4787_v31 = vshrl.u32 %v4786_v49, 30  ;;  %7774 = vst [vmem:[%s9666_s10 + $0x108] sm:$0xff] %v4620_v51  ;;  %v4703_v38 = vcvt.s32.f32 %v4696_v22  ;;  %v12571_v15 = vand.u32 3, %v4714_v25  ;;  %v4837_v9 = vor.u32 8388608, %v4836_v37 }
 0x4b1   : > { %v4701_v19 = vand.u32 2147483647, %v4700_v7  ;;  %vm4727_vm9 = vcmp.lt.s32.totalorder %v12343_v47, 0  ;;  %v4846_v28 = vshll.u32 %v15256_v0, %v4843_v32  ;;  %v4847_v43 = vshrl.u32 %v15257_v39, %v4844_v2 }
 0x4b2   : > { %v4788_v11 = vshll.u32 %v4787_v31, 30  ;;  %v12576_v46 = vadd.f32 %v994_v45, %v669_v20  ;;  %v4850_v13 = vshrl.u32 %v15258_v27, %v4844_v2  ;;  %v4853_v63 = vshrl.u32 %v15259_v44, %v4844_v2 }
 0x4b3   : > { %v4704_v16 = vmul.f32 %v4703_v38, %v4701_v19  ;;  %v4856_v57 = vshrl.u32 %v15260_v53, %v4844_v2  ;;  %v4842_v50 = vshrl.u32 %v4841_v8, 5  ;;  %v4849_v12 = vshll.u32 %v15257_v39, %v4843_v32 }
 0x4b4   : > { %v12581_v29 = vsub.s32 %v4785_v1, %v4788_v11  ;;  %v4852_v52 = vshll.u32 %v15258_v27, %v4843_v32  ;;  %v4848_v56 = vor.u32 %v4847_v43, %v4846_v28  ;;  %v4855_v55 = vshll.u32 %v15259_v44, %v4843_v32 }
 0x4b5   : > { %v4705_v5 = vxor.u32 2147483648, %v4704_v16  ;;  %v4858_v4 = vshll.u32 %v15260_v53, %v4843_v32  ;;  %v4851_v23 = vor.u32 %v4850_v13, %v4849_v12  ;;  %v4859_v61 = vshrl.u32 %v15261_v41, %v4844_v2 }
 0x4b6   : > { %v4791_v3 = vsub.s32 0, %v12581_v29  ;;  %v4854_v59 = vor.u32 %v4853_v63, %v4852_v52  ;;  %v4811_v33 = vsub.s32 4, %v4787_v31  ;;  %v4857_v35 = vor.u32 %v4856_v57, %v4855_v55 }
 0x4b7   : > { %v4706_v10 = vsel %vm4623_vm13, %v4705_v5, %v4704_v16  ;;  %v4877_v14 = vshll.u32 %v4837_v9, 8  ;;  %vm12596_vm12 = vcmp.le.f32.partialorder %v4725_v18, 0.7853982  ;;  %v4860_v37 = vor.u32 %v4859_v61, %v4858_v4  ;;  %v851_v4 = vpop.permute.xlu1 %850 }
 0x4b8   : > { %v4709_v34 = vsel %vm12512_vm15, %v12285_v54, %v4706_v10  ;;  %v8032_v1 = vmin.u32 %v4791_v3, %v12581_v29  ;;  %v4933_v8 = vand.u32 2147483647, %v12576_v46  ;;  %v4845_v6 = vshrl.u32 %v15256_v0, %v4844_v2 }
 0x4b9   : > { %8598 = vcosq.f32 %v4709_v34  ;;  %vm4861_vm11 = vcmp.lt.s32.totalorder %v4842_v50, 1  ;;  %vm4864_vm13 = vcmp.lt.s32.totalorder %v4842_v50, 4  ;;  %v4812_v18 = vsel %vm4727_vm9, %v4811_v33, %v4787_v31 }
 0x4ba   : > { %8600 = vsinq.f32 %v4709_v34  ;;  %v4793_v22 = vclz %v8032_v1  ;;  %v4866_v40 = vsel %vm4864_vm13, %v4854_v59, 2102212464  ;;  %v4869_v24 = vsel %vm4861_vm11, %v4848_v56, %v4851_v23 }
 0x4bb   : > { %vm4863_vm0 = vcmp.lt.s32.totalorder %v4842_v50, 3  ;;  %v4870_v25 = vsel %vm4864_vm13, %v4857_v35, 920167782  ;;  %v4873_v26 = vsel %vm4861_vm11, %v4851_v23, %v4854_v59  ;;  %vm4862_vm15 = vcmp.lt.s32.totalorder %v4842_v50, 2 }
 0x4bc   : > { %v8033_v49 = vadd.s32 4294967294, %v4793_v22  ;;  %v4871_v32 = vsel %vm4863_vm0, %v4854_v59, %v4870_v25  ;;  %v4874_v45 = vsel %vm4864_vm13, %v4860_v37, 1326507024  ;;  %v4865_v20 = vsel %vm4861_vm11, %v4845_v6, %v4848_v56 }
 0x4bd   : > { %v4867_v30 = vsel %vm4863_vm0, %v4851_v23, %v4866_v40  ;;  %v4872_v7 = vsel %vm4862_vm15, %v4869_v24, %v4871_v32  ;;  %v4875_v51 = vsel %vm4863_vm0, %v4857_v35, %v4874_v45  ;;  %v4936_v28 = vand.u32 2139095040, %v12576_v46 }
 0x4be   : > { %vm8034_vm14 = vcmp.lt.s32.totalorder %v8033_v49, 0  ;;  %v4876_v2 = vsel %vm4862_vm15, %v4873_v26, %v4875_v51  ;;  %v12607_v19 = vmul.u32.u64.low %v4877_v14, %v4872_v7  ;;  %v12608_v38 = vmul.u32.u64.high %v4877_v14, %v4872_v7, %v12607_v19  ;;  %v855_v7 = vpop.permute.xlu0 %854 }
 0x4bf   : > { %v4796_v31 = vsel %vm8034_vm14, 0, %v8033_v49  ;;  %v12611_v9 = vmul.u32.u64.low %v4877_v14, %v4876_v2  ;;  %v12612_v11 = vmul.u32.u64.high %v4877_v14, %v4876_v2, %v12611_v9  ;;  %vm4713_vm1 = vweird.f32 %v12285_v54  ;;  %v15361_v2 = vld [vmem:[#allocation32_spill] sm:$0xff] }
 0x4c0   : > { %v4781_v43 = vadd.s32 %v12530_v60, %v12538_v62  ;;  %v4797_v16 = vsub.s32 32, %v4796_v31  ;;  %v4801_v13 = vsub.s32 4294967266, %v4796_v31  ;;  %v4868_v63 = vsel %vm4862_vm15, %v4865_v20, %v4867_v30 }
 0x4c1   : > { %vm4716_vm2 = vcmp.lt.s32.totalorder %v12571_v15, 2  ;;  %vm4720_vm3 = vcmp.eq.s32.totalorder %v12571_v15, 2  ;;  %v4814_v57 = vsel %vm12596_vm12, 0, %v4812_v18  ;;  %v4937_v12 = vshrl.u32 %v4936_v28, 23 }
 0x4c2   : > { %v4798_v52 = vshll.u32 %v12581_v29, %v4796_v31  ;;  %v4799_v5 = vshrl.u32 %v4781_v43, %v4797_v16  ;;  %v4802_v56 = vadd.s32 127, %v4801_v13  ;;  %v4887_v55 = vadd.s32 1, %v12608_v38 }
 0x4c3   : > { %v8599_v60 = vpop.eup %8598  ;;  %v4884_v62 = vmul.u32 %v4877_v14, %v4868_v63  ;;  %vm4886_vm4 = vc.u32 %v12612_v11, %v12607_v19  ;;  %v8039_v50 = vadd.s32 4294967169, %v4937_v12  ;;  %v4940_v3 = vand.u32 8388607, %v4933_v8 }
 0x4c4   : > { %v8601_v23 = vpop.eup %8600  ;;  %v4721_v59 = vxor.u32 2147483648, %v8599_v60  ;;  %v4800_v61 = vor.u32 %v4799_v5, %v4798_v52  ;;  %v4803_v10 = vshll.u32 %v4802_v56, 23  ;;  %v4888_v29 = vsel %vm4886_vm4, %v4887_v55, %v12608_v38 }
 0x4c5   : > { %v4718_v33 = vxor.u32 2147483648, %v8601_v23  ;;  %v4889_v35 = vadd.s32 %v4888_v29, %v4884_v62  ;;  %v4943_v34 = vadd.s32 1, %v8039_v50  ;;  %v995_v1 = vmul.f32 %v12257_v48, %v851_v4 }
 0x4c6   : > { %vm4717_vm5 = vcmp.eq.s32.totalorder %v12571_v15, 0  ;;  %v4722_v14 = vsel %vm4720_vm3, %v4721_v59, %v8601_v23  ;;  %v4804_v37 = vor.u32 4788187, %v4803_v10  ;;  %v4818_v6 = vadd.s32 3, %v4814_v57  ;;  %v15362_v15 = vld [vmem:[#allocation35_spill] sm:$0xff] }
 0x4c7   : > { %v4719_v22 = vsel %vm4717_vm5, %v8599_v60, %v4718_v33  ;;  %v4890_v40 = vadd.s32 536870912, %v4889_v35  ;;  %v4941_v24 = vor.u32 8388608, %v4940_v3  ;;  %vm4944_vm6 = vcmp.gt.s32.totalorder %v4943_v34, 0 }
 0x4c8   : > { %v4723_v18 = vsel %vm4716_vm2, %v4719_v22, %v4722_v14  ;;  %v4805_v25 = vand.u32 2147483647, %v4804_v37  ;;  %v4807_v26 = vcvt.s32.f32 %v4800_v61  ;;  %v4945_v49 = vsel %vm4944_vm6, %v4943_v34, 0 }
 0x4c9   : > { %v4724_v32 = vsel %vm4713_vm1, nan, %v4723_v18  ;;  %v12638_v45 = vshrl.u32 %v4890_v40, 30  ;;  %v4947_v20 = vand.u32 31, %v4945_v49  ;;  %v12641_v30 = vadd.f32 %v995_v1, %v12568_v17 }
 0x4ca   : > { %7775 = vst [vmem:[%s9666_s10 + $0x110] sm:$0xff] %v4724_v32  ;;  %v4808_v51 = vmul.f32 %v4807_v26, %v4805_v25  ;;  %v12646_v38 = vmul.f32 %v12387_v36, %v15361_v2  ;;  %v12650_v31 = vmul.f32 %v12387_v36, %v15362_v15  ;;  %v12653_v43 = vand.u32 3, %v4818_v6 }
 0x4cb   : > { %v4892_v54 = vshll.u32 %v12638_v45, 30  ;;  %v4948_v9 = vsub.s32 32, %v4947_v20  ;;  %v12655_v16 = vshll.u32 %v4941_v24, 8  ;;  %v12658_v17 = vmul.f32 %v12257_v48, %v855_v7 }
 0x4cc   : > { %v4809_v28 = vxor.u32 2147483648, %v4808_v51  ;;  %v4946_v63 = vshrl.u32 %v4945_v49, 5  ;;  %v5040_v12 = vand.u32 2139095040, %v12641_v30  ;;  %v4950_v5 = vshll.u32 %v15256_v0, %v4947_v20 }
 0x4cd   : > { %v12660_v13 = vsub.s32 %v4889_v35, %v4892_v54  ;;  %v4951_v57 = vshrl.u32 %v15257_v39, %v4948_v9  ;;  %v4954_v56 = vshrl.u32 %v15258_v27, %v4948_v9  ;;  %v4957_v55 = vshrl.u32 %v15259_v44, %v4948_v9 }
 0x4ce   : > { %v4810_v52 = vsel %vm4727_vm9, %v4809_v28, %v4808_v51  ;;  %v4953_v60 = vshll.u32 %v15257_v39, %v4947_v20  ;;  %v4956_v62 = vshll.u32 %v15258_v27, %v4947_v20  ;;  %vm4831_vm7 = vcmp.lt.s32.totalorder %v12482_v42, 0 }
 0x4cf   : > { %v4813_v48 = vsel %vm12596_vm12, %v12343_v47, %v4810_v52  ;;  %v4895_v4 = vsub.s32 0, %v12660_v13  ;;  %v4952_v50 = vor.u32 %v4951_v57, %v4950_v5  ;;  %v4959_v3 = vshll.u32 %v15259_v44, %v4947_v20 }
 0x4d0   : > { %8602 = vcosq.f32 %v4813_v48  ;;  %v4960_v23 = vshrl.u32 %v15260_v53, %v4948_v9  ;;  %v4955_v61 = vor.u32 %v4954_v56, %v4953_v60  ;;  %v4958_v21 = vor.u32 %v4957_v55, %v4956_v62 }
 0x4d1   : > { %8604 = vsinq.f32 %v4813_v48  ;;  %v8036_v59 = vmin.u32 %v4895_v4, %v12660_v13  ;;  %v4962_v29 = vshll.u32 %v15260_v53, %v4947_v20  ;;  %v4963_v33 = vshrl.u32 %v15261_v41, %v4948_v9 }
 0x4d2   : > { %v4961_v10 = vor.u32 %v4960_v23, %v4959_v3  ;;  %v5041_v35 = vshrl.u32 %v5040_v12, 23  ;;  %vm12683_vm8 = vcmp.le.f32.partialorder %v4829_v58, 0.7853982  ;;  %v4915_v14 = vsub.s32 4, %v12638_v45 }
 0x4d3   : > { %v4897_v1 = vclz %v8036_v59  ;;  %v4949_v37 = vshrl.u32 %v15256_v0, %v4948_v9  ;;  %vm4965_vm10 = vcmp.lt.s32.totalorder %v4946_v63, 1  ;;  %vm4824_vm9 = vcmp.eq.s32.totalorder %v12653_v43, 2 }
 0x4d4   : > { %v4964_v6 = vor.u32 %v4963_v33, %v4962_v29  ;;  %vm4966_vm12 = vcmp.lt.s32.totalorder %v4946_v63, 2  ;;  %vm4967_vm11 = vcmp.lt.s32.totalorder %v4946_v63, 3  ;;  %vm4968_vm13 = vcmp.lt.s32.totalorder %v4946_v63, 4 }
 0x4d5   : > { %vm4821_vm0 = vcmp.eq.s32.totalorder %v12653_v43, 0  ;;  %v8037_v22 = vadd.s32 4294967294, %v4897_v1  ;;  %v4970_v40 = vsel %vm4968_vm13, %v4958_v21, 2102212464  ;;  %v4973_v58 = vsel %vm4965_vm10, %v4952_v50, %v4955_v61 }
 0x4d6   : > { %v4974_v24 = vsel %vm4968_vm13, %v4961_v10, 920167782  ;;  %vm4820_vm15 = vcmp.lt.s32.totalorder %v12653_v43, 2  ;;  %v4969_v18 = vsel %vm4965_vm10, %v4949_v37, %v4952_v50  ;;  %v4977_v26 = vsel %vm4965_vm10, %v4955_v61, %v4958_v21  ;;  %v12731_v37 = vld [vmem:[%s15172_s2] ss:$0 sm:$0xff]  ;;  %v15365_v43 = vld [vmem:[#allocation34_spill] sm:$0xff] }
 0x4d7   : > { %v4975_v25 = vsel %vm4967_vm11, %v4958_v21, %v4974_v24  ;;  %v4978_v49 = vsel %vm4968_vm13, %v4964_v6, 1326507024  ;;  %vm4817_vm14 = vweird.f32 %v12343_v47  ;;  %vm8038_vm1 = vcmp.lt.s32.totalorder %v8037_v22, 0  ;;  %v12752_v47 = vld [vmem:[%s15171_s1 + $0x1] ss:$0 sm:$0xff] }
 0x4d8   : > { %v4971_v32 = vsel %vm4967_vm11, %v4955_v61, %v4970_v40  ;;  %v4976_v20 = vsel %vm4966_vm12, %v4973_v58, %v4975_v25  ;;  %v4979_v7 = vsel %vm4967_vm11, %v4961_v10, %v4978_v49  ;;  %v4900_v51 = vsel %vm8038_vm1, 0, %v8037_v22 }
 0x4d9   : > { %v4980_v2 = vsel %vm4966_vm12, %v4977_v26, %v4979_v7  ;;  %v12699_v15 = vmul.u32.u64.low %v12655_v16, %v4976_v20  ;;  %v12700_v54 = vmul.u32.u64.high %v12655_v16, %v4976_v20, %v12699_v15  ;;  %v4885_v9 = vadd.s32 %v12607_v19, %v12612_v11 }
 0x4da   : > { %v4901_v28 = vsub.s32 32, %v4900_v51  ;;  %v4905_v57 = vsub.s32 4294967266, %v4900_v51  ;;  %v4916_v12 = vsel %vm4831_vm7, %v4915_v14, %v12638_v45  ;;  %v8603_v52 = vpop.eup %8602  ;;  %v4972_v5 = vsel %vm4966_vm12, %v4969_v18, %v4971_v32  ;;  %v859_v14 = vpop.permute.xlu1 %858 }
 0x4db   : > { %v12710_v56 = vmul.u32.u64.low %v12655_v16, %v4980_v2  ;;  %v12711_v55 = vmul.u32.u64.high %v12655_v16, %v4980_v2, %v12710_v56  ;;  %v8043_v48 = vadd.s32 4294967169, %v5041_v35  ;;  %v8605_v4 = vpop.eup %8604  ;;  %v4825_v60 = vxor.u32 2147483648, %v8603_v52 }
 0x4dc   : > { %v4902_v62 = vshll.u32 %v12660_v13, %v4900_v51  ;;  %v4903_v50 = vshrl.u32 %v4885_v9, %v4901_v28  ;;  %v4906_v19 = vadd.s32 127, %v4905_v57  ;;  %v4822_v11 = vxor.u32 2147483648, %v8605_v4 }
 0x4dd   : > { %v4918_v3 = vsel %vm12683_vm8, 0, %v4916_v12  ;;  %v4991_v45 = vadd.s32 1, %v12700_v54  ;;  %v5047_v23 = vadd.s32 1, %v8043_v48  ;;  %v4826_v63 = vsel %vm4824_vm9, %v4825_v60, %v8605_v4 }
 0x4de   : > { %v4904_v59 = vor.u32 %v4903_v50, %v4902_v62  ;;  %v4907_v61 = vshll.u32 %v4906_v19, 23  ;;  %v5037_v21 = vand.u32 2147483647, %v12641_v30  ;;  %v4823_v13 = vsel %vm4821_vm0, %v8603_v52, %v4822_v11 }
 0x4df   : > { %v4988_v10 = vmul.u32 %v12655_v16, %v4972_v5  ;;  %vm4990_vm2 = vc.u32 %v12711_v55, %v12699_v15  ;;  %vm5048_vm3 = vcmp.gt.s32.totalorder %v5047_v23, 0  ;;  %v4827_v29 = vsel %vm4820_vm15, %v4823_v13, %v4826_v63 }
 0x4e0   : > { %v4908_v33 = vor.u32 4788187, %v4907_v61  ;;  %v4922_v35 = vadd.s32 3, %v4918_v3  ;;  %v4992_v1 = vsel %vm4990_vm2, %v4991_v45, %v12700_v54  ;;  %v671_v16 = vadd.f32 %v12731_v37, %v12646_v38 }
 0x4e1   : > { %v4828_v6 = vsel %vm4817_vm14, nan, %v4827_v29  ;;  %v4993_v22 = vadd.s32 %v4992_v1, %v4988_v10  ;;  %v5049_v40 = vsel %vm5048_vm3, %v5047_v23, 0  ;;  %v12739_v58 = vmul.f32 %v12387_v36, %v15365_v43 }
 0x4e2   : > { %7776 = vst [vmem:[%s9666_s10 + $0x118] sm:$0xff] %v4828_v6  ;;  %v4909_v24 = vand.u32 2147483647, %v4908_v33  ;;  %v4911_v18 = vcvt.s32.f32 %v4904_v59  ;;  %v5051_v25 = vand.u32 31, %v5049_v40  ;;  %v12744_v26 = vadd.f32 %v12731_v37, %v12650_v31 }
 0x4e3   : > { %v4994_v49 = vadd.s32 536870912, %v4993_v22  ;;  %v12747_v38 = vadd.f32 %v12658_v17, %v671_v16  ;;  %v12755_v32 = vmul.f32 %v12752_v47, %v859_v14  ;;  %v12757_v7 = vand.u32 3, %v4922_v35 }
 0x4e4   : > { %v4912_v20 = vmul.f32 %v4911_v18, %v4909_v24  ;;  %v5044_v51 = vand.u32 8388607, %v5037_v21  ;;  %v5052_v31 = vsub.s32 32, %v5051_v25  ;;  %v5050_v54 = vshrl.u32 %v5049_v40, 5 }
 0x4e5   : > { %v4995_v2 = vshrl.u32 %v4994_v49, 30  ;;  %v5054_v17 = vshll.u32 %v15256_v0, %v5051_v25  ;;  %v5057_v9 = vshll.u32 %v15257_v39, %v5051_v25  ;;  %vm4935_vm4 = vcmp.lt.s32.totalorder %v12576_v46, 0 }
 0x4e6   : > { %v4913_v28 = vxor.u32 2147483648, %v4912_v20  ;;  %v5055_v57 = vshrl.u32 %v15257_v39, %v5052_v31  ;;  %v5058_v12 = vshrl.u32 %v15258_v27, %v5052_v31  ;;  %v5060_v52 = vshll.u32 %v15258_v27, %v5051_v25 }
 0x4e7   : > { %v4996_v5 = vshll.u32 %v4995_v2, 30  ;;  %v5061_v56 = vshrl.u32 %v15259_v44, %v5052_v31  ;;  %v5063_v48 = vshll.u32 %v15259_v44, %v5051_v25  ;;  %v5064_v4 = vshrl.u32 %v15260_v53, %v5052_v31 }
 0x4e8   : > { %v4914_v60 = vsel %vm4831_vm7, %v4913_v28, %v4912_v20  ;;  %v5056_v62 = vor.u32 %v5055_v57, %v5054_v17  ;;  %v5066_v50 = vshll.u32 %v15260_v53, %v5051_v25  ;;  %v5067_v19 = vshrl.u32 %v15261_v41, %v5052_v31 }
 0x4e9   : > { %v4917_v11 = vsel %vm12683_vm8, %v12482_v42, %v4914_v60  ;;  %v12777_v3 = vsub.s32 %v4993_v22, %v4996_v5  ;;  %v5059_v45 = vor.u32 %v5058_v12, %v5057_v9  ;;  %v5062_v23 = vor.u32 %v5061_v56, %v5060_v52 }
 0x4ea   : > { %8606 = vcosq.f32 %v4917_v11  ;;  %v5045_v63 = vor.u32 8388608, %v5044_v51  ;;  %v5065_v59 = vor.u32 %v5064_v4, %v5063_v48  ;;  %v5068_v61 = vor.u32 %v5067_v19, %v5066_v50 }
 0x4eb   : > { %8608 = vsinq.f32 %v4917_v11  ;;  %vm12781_vm5 = vcmp.le.f32.partialorder %v4933_v8, 0.7853982  ;;  %v4999_v10 = vsub.s32 0, %v12777_v3  ;;  %v5019_v29 = vsub.s32 4, %v4995_v2 }
 0x4ec   : > { %v5053_v34 = vshrl.u32 %v15256_v0, %v5052_v31  ;;  %vm5069_vm6 = vcmp.lt.s32.totalorder %v5050_v54, 1  ;;  %vm5071_vm7 = vcmp.lt.s32.totalorder %v5050_v54, 3  ;;  %vm5072_vm8 = vcmp.lt.s32.totalorder %v5050_v54, 4 }
 0x4ed   : > { %v5144_v33 = vand.u32 2139095040, %v12747_v38  ;;  %v8040_v35 = vmin.u32 %v4999_v10, %v12777_v3  ;;  %v5074_v14 = vsel %vm5072_vm8, %v5062_v23, 2102212464  ;;  %v5077_v16 = vsel %vm5069_vm6, %v5056_v62, %v5059_v45 }
 0x4ee   : > { %v5073_v1 = vsel %vm5069_vm6, %v5053_v34, %v5056_v62  ;;  %v5075_v8 = vsel %vm5071_vm7, %v5059_v45, %v5074_v14  ;;  %v5078_v6 = vsel %vm5072_vm8, %v5065_v59, 920167782  ;;  %v5081_v22 = vsel %vm5069_vm6, %v5059_v45, %v5062_v23 }
 0x4ef   : > { %v5082_v40 = vsel %vm5072_vm8, %v5068_v61, 1326507024  ;;  %vm4925_vm10 = vcmp.eq.s32.totalorder %v12757_v7, 0  ;;  %v5001_v43 = vclz %v8040_v35  ;;  %v5020_v24 = vsel %vm4935_vm4, %v5019_v29, %v4995_v2 }
 0x4f0   : > { %v5085_v18 = vshll.u32 %v5045_v63, 8  ;;  %vm5070_vm9 = vcmp.lt.s32.totalorder %v5050_v54, 2  ;;  %v5079_v25 = vsel %vm5071_vm7, %v5062_v23, %v5078_v6  ;;  %v5083_v49 = vsel %vm5071_vm7, %v5065_v59, %v5082_v40  ;;  %v15368_v40 = vld [vmem:[#allocation36_spill] sm:$0xff] }
 0x4f1   : > { %v5145_v20 = vshrl.u32 %v5144_v33, 23  ;;  %v8041_v51 = vadd.s32 4294967294, %v5001_v43  ;;  %v5076_v31 = vsel %vm5070_vm9, %v5073_v1, %v5075_v8  ;;  %v5080_v17 = vsel %vm5070_vm9, %v5077_v16, %v5079_v25 }
 0x4f2   : > { %v5084_v9 = vsel %vm5070_vm9, %v5081_v22, %v5083_v49  ;;  %v12798_v12 = vmul.u32.u64.low %v5085_v18, %v5080_v17  ;;  %v12799_v52 = vmul.u32.u64.high %v5085_v18, %v5080_v17, %v12798_v12  ;;  %vm4928_vm12 = vcmp.eq.s32.totalorder %v12757_v7, 2 }
 0x4f3   : > { %v12795_v28 = vmul.u32.u64.low %v5085_v18, %v5084_v9  ;;  %v12796_v57 = vmul.u32.u64.high %v5085_v18, %v5084_v9, %v12795_v28  ;;  %vm8042_vm11 = vcmp.lt.s32.totalorder %v8041_v51, 0  ;;  %v5141_v2 = vand.u32 2147483647, %v12747_v38 }
 0x4f4   : > { %v8047_v5 = vadd.s32 4294967169, %v5145_v20  ;;  %v8607_v54 = vpop.eup %8606  ;;  %v4989_v56 = vadd.s32 %v12699_v15, %v12711_v55  ;;  %v5004_v48 = vsel %vm8042_vm11, 0, %v8041_v51  ;;  %v5022_v4 = vsel %vm12781_vm5, 0, %v5020_v24 }
 0x4f5   : > { %v12810_v60 = vadd.f32 %v12755_v32, %v12744_v26  ;;  %v8609_v62 = vpop.eup %8608  ;;  %v4929_v50 = vxor.u32 2147483648, %v8607_v54  ;;  %v5005_v19 = vsub.s32 32, %v5004_v48  ;;  %v5009_v11 = vsub.s32 4294967266, %v5004_v48 }
 0x4f6   : > { %v5092_v45 = vmul.u32 %v5085_v18, %v5076_v31  ;;  %v4926_v23 = vxor.u32 2147483648, %v8609_v62  ;;  %v5006_v63 = vshll.u32 %v12777_v3, %v5004_v48  ;;  %vm5094_vm13 = vc.u32 %v12796_v57, %v12798_v12 }
 0x4f7   : > { %v5095_v15 = vadd.s32 1, %v12799_v52  ;;  %v4930_v55 = vsel %vm4928_vm12, %v4929_v50, %v8609_v62  ;;  %v5007_v59 = vshrl.u32 %v4989_v56, %v5005_v19  ;;  %v5010_v26 = vadd.s32 127, %v5009_v11 }
 0x4f8   : > { %v5151_v32 = vadd.s32 1, %v8047_v5  ;;  %vm4921_vm0 = vweird.f32 %v12482_v42  ;;  %vm4924_vm15 = vcmp.lt.s32.totalorder %v12757_v7, 2  ;;  %v4927_v61 = vsel %vm4925_vm10, %v8607_v54, %v4926_v23 }
 0x4f9   : > { %v5096_v3 = vsel %vm5094_vm13, %v5095_v15, %v12799_v52  ;;  %v4931_v10 = vsel %vm4924_vm15, %v4927_v61, %v4930_v55  ;;  %v5008_v29 = vor.u32 %v5007_v59, %v5006_v63  ;;  %v5011_v34 = vshll.u32 %v5010_v26, 23 }
 0x4fa   : > { %v5097_v33 = vadd.s32 %v5096_v3, %v5092_v45  ;;  %v4932_v35 = vsel %vm4921_vm0, nan, %v4931_v10  ;;  %v5026_v1 = vadd.s32 3, %v5022_v4  ;;  %v5148_v14 = vand.u32 8388607, %v5141_v2 }
 0x4fb   : > { %vm5152_vm14 = vcmp.gt.s32.totalorder %v5151_v32, 0  ;;  %7777 = vst [vmem:[%s9666_s10 + $0x120] sm:$0xff] %v4932_v35  ;;  %v5012_v16 = vor.u32 4788187, %v5011_v34  ;;  %v5248_v6 = vand.u32 2139095040, %v12810_v60  ;;  %v12829_v7 = vadd.f32 %v12731_v37, %v12739_v58 }
 0x4fc   : > { %v5098_v42 = vadd.s32 536870912, %v5097_v33  ;;  %v5153_v8 = vsel %vm5152_vm14, %v5151_v32, 0  ;;  %v12833_v43 = vmul.f32 %v12387_v36, %v15368_v40  ;;  %v5015_v18 = vcvt.s32.f32 %v5008_v29 }
 0x4fd   : > { %v5155_v22 = vand.u32 31, %v5153_v8  ;;  %v5013_v24 = vand.u32 2147483647, %v5012_v16  ;;  %v12837_v49 = vand.u32 3, %v5026_v1  ;;  %v5149_v20 = vor.u32 8388608, %v5148_v14 }
 0x4fe   : > { %v12835_v25 = vshrl.u32 %v5098_v42, 30  ;;  %v5245_v31 = vand.u32 2147483647, %v12810_v60  ;;  %v5249_v28 = vshrl.u32 %v5248_v6, 23  ;;  %v5093_v50 = vadd.s32 %v12798_v12, %v12796_v57 }
 0x4ff   : > { %v5156_v51 = vsub.s32 32, %v5155_v22  ;;  %v5016_v17 = vmul.f32 %v5015_v18, %v5013_v24  ;;  %v5158_v58 = vshll.u32 %v15256_v0, %v5155_v22  ;;  %v5161_v36 = vshll.u32 %v15257_v39, %v5155_v22 }
 0x500   : > { %v5100_v9 = vshll.u32 %v12835_v25, 30  ;;  %v5164_v4 = vshll.u32 %v15258_v27, %v5155_v22  ;;  %v5154_v19 = vshrl.u32 %v5153_v8, 5  ;;  %v5167_v45 = vshll.u32 %v15259_v44, %v5155_v22 }
 0x501   : > { %v5159_v52 = vshrl.u32 %v15257_v39, %v5156_v51  ;;  %v5162_v5 = vshrl.u32 %v15258_v27, %v5156_v51  ;;  %v5165_v54 = vshrl.u32 %v15259_v44, %v5156_v51  ;;  %v5017_v56 = vxor.u32 2147483648, %v5016_v17 }
 0x502   : > { %v12846_v48 = vsub.s32 %v5097_v33, %v5100_v9  ;;  %v5168_v62 = vshrl.u32 %v15260_v53, %v5156_v51  ;;  %vm5039_vm1 = vcmp.lt.s32.totalorder %v12641_v30, 0  ;;  %v5170_v57 = vshll.u32 %v15260_v53, %v5155_v22 }
 0x503   : > { %v5160_v11 = vor.u32 %v5159_v52, %v5158_v58  ;;  %v5018_v23 = vsel %vm4935_vm4, %v5017_v56, %v5016_v17  ;;  %v5163_v15 = vor.u32 %v5162_v5, %v5161_v36  ;;  %v5166_v55 = vor.u32 %v5165_v54, %v5164_v4 }
 0x504   : > { %v5103_v63 = vsub.s32 0, %v12846_v48  ;;  %v5021_v59 = vsel %vm12781_vm5, %v12576_v46, %v5018_v23  ;;  %v5169_v26 = vor.u32 %v5168_v62, %v5167_v45  ;;  %v5171_v12 = vshrl.u32 %v15261_v41, %v5156_v51 }
 0x505   : > { %8610 = vcosq.f32 %v5021_v59  ;;  %v12863_v61 = vshll.u32 %v5149_v20, 8  ;;  %v8051_v3 = vadd.s32 4294967169, %v5249_v28  ;;  %v5123_v10 = vsub.s32 4, %v12835_v25 }
 0x506   : > { %v8044_v32 = vmin.u32 %v5103_v63, %v12846_v48  ;;  %8612 = vsinq.f32 %v5021_v59  ;;  %v5157_v29 = vshrl.u32 %v15256_v0, %v5156_v51  ;;  %v5172_v13 = vor.u32 %v5171_v12, %v5170_v57 }
 0x507   : > { %vm12869_vm2 = vcmp.le.f32.partialorder %v5037_v21, 0.7853982  ;;  %vm5173_vm3 = vcmp.lt.s32.totalorder %v5154_v19, 1  ;;  %vm5174_vm4 = vcmp.lt.s32.totalorder %v5154_v19, 2  ;;  %vm5176_vm5 = vcmp.lt.s32.totalorder %v5154_v19, 4 }
 0x508   : > { %v5105_v33 = vclz %v8044_v32  ;;  %vm5175_vm6 = vcmp.lt.s32.totalorder %v5154_v19, 3  ;;  %v5178_v35 = vsel %vm5176_vm5, %v5166_v55, 2102212464  ;;  %v5181_v1 = vsel %vm5173_vm3, %v5160_v11, %v5163_v15 }
 0x509   : > { %v5182_v14 = vsel %vm5176_vm5, %v5169_v26, 920167782  ;;  %vm5032_vm7 = vcmp.eq.s32.totalorder %v12837_v49, 2  ;;  %v5177_v42 = vsel %vm5173_vm3, %v5157_v29, %v5160_v11  ;;  %v5185_v6 = vsel %vm5173_vm3, %v5163_v15, %v5166_v55 }
 0x50a   : > { %v8045_v16 = vadd.s32 4294967294, %v5105_v33  ;;  %v5183_v8 = vsel %vm5175_vm6, %v5166_v55, %v5182_v14  ;;  %vm5029_vm8 = vcmp.eq.s32.totalorder %v12837_v49, 0  ;;  %v5179_v21 = vsel %vm5175_vm6, %v5163_v15, %v5178_v35 }
 0x50b   : > { %v5184_v22 = vsel %vm5174_vm4, %v5181_v1, %v5183_v8  ;;  %v5186_v40 = vsel %vm5176_vm5, %v5172_v13, 1326507024  ;;  %v5255_v24 = vadd.s32 1, %v8051_v3  ;;  %vm5028_vm10 = vcmp.lt.s32.totalorder %v12837_v49, 2 }
 0x50c   : > { %vm8046_vm9 = vcmp.lt.s32.totalorder %v8045_v16, 0  ;;  %v5187_v18 = vsel %vm5175_vm6, %v5169_v26, %v5186_v40  ;;  %v12881_v20 = vmul.u32.u64.low %v12863_v61, %v5184_v22  ;;  %v12882_v51 = vmul.u32.u64.high %v12863_v61, %v5184_v22, %v12881_v20  ;;  %v863_v22 = vpop.permute.xlu0 %862 }
 0x50d   : > { %vm5025_vm12 = vweird.f32 %v12576_v46  ;;  %v5108_v17 = vsel %vm8046_vm9, 0, %v8045_v16  ;;  %v5188_v9 = vsel %vm5174_vm4, %v5185_v6, %v5187_v18  ;;  %v12889_v58 = vand.u32 8388607, %v5245_v31  ;;  %v12931_v46 = vld [vmem:[%s15171_s1] ss:$0 sm:$0xff] }
 0x50e   : > { %vm5256_vm11 = vcmp.gt.s32.totalorder %v5255_v24, 0  ;;  %v5109_v28 = vsub.s32 32, %v5108_v17  ;;  %v5113_v52 = vsub.s32 4294967266, %v5108_v17  ;;  %v5124_v36 = vsel %vm5039_vm1, %v5123_v10, %v12835_v25 }
 0x50f   : > { %v5257_v5 = vsel %vm5256_vm11, %v5255_v24, 0  ;;  %v5180_v54 = vsel %vm5174_vm4, %v5177_v42, %v5179_v21  ;;  %v12896_v56 = vmul.u32.u64.low %v12863_v61, %v5188_v9  ;;  %v12897_v4 = vmul.u32.u64.high %v12863_v61, %v5188_v9, %v12896_v56  ;;  %v8611_v11 = vpop.eup %8610 }
 0x510   : > { %v5259_v62 = vand.u32 31, %v5257_v5  ;;  %v5110_v45 = vshll.u32 %v12846_v48, %v5108_v17  ;;  %v5111_v23 = vshrl.u32 %v5093_v50, %v5109_v28  ;;  %v5114_v63 = vadd.s32 127, %v5113_v52  ;;  %v8613_v55 = vpop.eup %8612  ;;  %v15371_v28 = vld [vmem:[#allocation37_spill] sm:$0xff] }
 0x511   : > { %v5199_v15 = vadd.s32 1, %v12882_v51  ;;  %v5033_v59 = vxor.u32 2147483648, %v8611_v11  ;;  %v5126_v25 = vsel %vm12869_vm2, 0, %v5124_v36  ;;  %v5253_v19 = vor.u32 8388608, %v12889_v58 }
 0x512   : > { %v5260_v26 = vsub.s32 32, %v5259_v62  ;;  %v5030_v57 = vxor.u32 2147483648, %v8613_v55  ;;  %v5112_v12 = vor.u32 %v5111_v23, %v5110_v45  ;;  %v5115_v32 = vshll.u32 %v5114_v63, 23 }
 0x513   : > { %v5196_v3 = vmul.u32 %v12863_v61, %v5180_v54  ;;  %v5034_v48 = vsel %vm5032_vm7, %v5033_v59, %v8613_v55  ;;  %vm5198_vm13 = vc.u32 %v12897_v4, %v12881_v20  ;;  %v12909_v50 = vshrl.u32 %v5257_v5, 5 }
 0x514   : > { %v5262_v10 = vshll.u32 %v15256_v0, %v5259_v62  ;;  %v5031_v29 = vsel %vm5029_vm8, %v8611_v11, %v5030_v57  ;;  %v5116_v13 = vor.u32 4788187, %v5115_v32  ;;  %v5200_v33 = vsel %vm5198_vm13, %v5199_v15, %v12882_v51 }
 0x515   : > { %v5265_v35 = vshll.u32 %v15257_v39, %v5259_v62  ;;  %v5035_v61 = vsel %vm5028_vm10, %v5031_v29, %v5034_v48  ;;  %v5201_v1 = vadd.s32 %v5200_v33, %v5196_v3  ;;  %v5263_v14 = vshrl.u32 %v15257_v39, %v5260_v26  ;;  %v867_v48 = vpop.permute.xlu1 %866 }
 0x516   : > { %v5266_v16 = vshrl.u32 %v15258_v27, %v5260_v26  ;;  %v5036_v42 = vsel %vm5025_vm12, nan, %v5035_v61  ;;  %v5117_v8 = vand.u32 2147483647, %v5116_v13  ;;  %v5119_v6 = vcvt.s32.f32 %v5112_v12 }
 0x517   : > { %v5269_v21 = vshrl.u32 %v15259_v44, %v5260_v26  ;;  %7778 = vst [vmem:[%s9666_s10 + $0x128] sm:$0xff] %v5036_v42  ;;  %v5202_v40 = vadd.s32 536870912, %v5201_v1  ;;  %v5268_v24 = vshll.u32 %v15258_v27, %v5259_v62  ;;  %v5271_v49 = vshll.u32 %v15259_v44, %v5259_v62 }
 0x518   : > { %v5272_v18 = vshrl.u32 %v15260_v53, %v5260_v26  ;;  %v5120_v51 = vmul.f32 %v5119_v6, %v5117_v8  ;;  %v5264_v17 = vor.u32 %v5263_v14, %v5262_v10  ;;  %v5267_v9 = vor.u32 %v5266_v16, %v5265_v35 }
 0x519   : > { %v5275_v58 = vshrl.u32 %v15261_v41, %v5260_v26  ;;  %v604_v52 = vmul.f32 %v12931_v46, %v15371_v28  ;;  %v5203_v36 = vshrl.u32 %v5202_v40, 30  ;;  %v998_v54 = vmul.f32 %v12752_v47, %v863_v22 }
 0x51a   : > { %v5273_v5 = vor.u32 %v5272_v18, %v5271_v49  ;;  %v5121_v56 = vxor.u32 2147483648, %v5120_v51  ;;  %v5130_v11 = vadd.s32 3, %v5126_v25  ;;  %v5270_v45 = vor.u32 %v5269_v21, %v5268_v24 }
 0x51b   : > { %v5274_v23 = vshll.u32 %v15260_v53, %v5259_v62  ;;  %v5204_v63 = vshll.u32 %v5203_v36, 30  ;;  %vm5277_vm0 = vcmp.lt.s32.totalorder %v12909_v50, 1  ;;  %vm5280_vm15 = vcmp.lt.s32.totalorder %v12909_v50, 4 }
 0x51c   : > { %v12939_v15 = vshll.u32 %v5253_v19, 8  ;;  %v5122_v55 = vsel %vm5039_vm1, %v5121_v56, %v5120_v51  ;;  %v5285_v57 = vsel %vm5277_vm0, %v5264_v17, %v5267_v9  ;;  %v5286_v25 = vsel %vm5280_vm15, %v5273_v5, 920167782 }
 0x51d   : > { %v5276_v59 = vor.u32 %v5275_v58, %v5274_v23  ;;  %v5125_v62 = vsel %vm12869_vm2, %v12641_v30, %v5122_v55  ;;  %v12950_v12 = vsub.s32 %v5201_v1, %v5204_v63  ;;  %v5261_v32 = vshrl.u32 %v15256_v0, %v5260_v26 }
 0x51e   : > { %vm5279_vm14 = vcmp.lt.s32.totalorder %v12909_v50, 3  ;;  %8614 = vcosq.f32 %v5125_v62  ;;  %vm5278_vm1 = vcmp.lt.s32.totalorder %v12909_v50, 2  ;;  %v5282_v19 = vsel %vm5280_vm15, %v5270_v45, 2102212464 }
 0x51f   : > { %v5287_v3 = vsel %vm5279_vm14, %v5270_v45, %v5286_v25  ;;  %8616 = vsinq.f32 %v5125_v62  ;;  %v5207_v34 = vsub.s32 0, %v12950_v12  ;;  %v5289_v26 = vsel %vm5277_vm0, %v5267_v9, %v5270_v45 }
 0x520   : > { %v5288_v10 = vsel %vm5278_vm1, %v5285_v57, %v5287_v3  ;;  %v5227_v29 = vsub.s32 4, %v5203_v36  ;;  %v5290_v13 = vsel %vm5280_vm15, %v5276_v59, 1326507024  ;;  %v12975_v14 = vadd.f32 %v998_v54, %v12829_v7 }
 0x521   : > { %v12967_v33 = vmul.u32.u64.low %v12939_v15, %v5288_v10  ;;  %v12968_v35 = vmul.u32.u64.high %v12939_v15, %v5288_v10, %v12967_v33  ;;  %v8048_v61 = vmin.u32 %v5207_v34, %v12950_v12  ;;  %v5291_v1 = vsel %vm5279_vm14, %v5273_v5, %v5290_v13  ;;  %v871_v13 = vpop.permute.xlu0 %870 }
 0x522   : > { %v999_v16 = vmul.f32 %v12752_v47, %v867_v48  ;;  %v5131_v42 = vand.u32 3, %v5130_v11  ;;  %v5281_v8 = vsel %vm5277_vm0, %v5261_v32, %v5264_v17  ;;  %v5283_v6 = vsel %vm5279_vm14, %v5267_v9, %v5282_v19 }
 0x523   : > { %v5292_v21 = vsel %vm5278_vm1, %v5289_v26, %v5291_v1  ;;  %v674_v22 = vadd.f32 %v12731_v37, %v604_v52  ;;  %vm5143_vm2 = vcmp.lt.s32.totalorder %v12747_v38, 0  ;;  %v5209_v40 = vclz %v8048_v61 }
 0x524   : > { %v12988_v7 = vadd.f32 %v12731_v37, %v12833_v43  ;;  %v5228_v24 = vsel %vm5143_vm2, %v5227_v29, %v5203_v36  ;;  %v12993_v49 = vmul.u32.u64.low %v12939_v15, %v5292_v21  ;;  %v12994_v18 = vmul.u32.u64.high %v12939_v15, %v5292_v21, %v12993_v49 }
 0x525   : > { %vm5129_vm3 = vweird.f32 %v12641_v30  ;;  %v8049_v51 = vadd.s32 4294967294, %v5209_v40  ;;  %v5284_v17 = vsel %vm5278_vm1, %v5281_v8, %v5283_v6  ;;  %v5352_v9 = vand.u32 2139095040, %v12975_v14 }
 0x526   : > { %v13000_v58 = vadd.f32 %v999_v16, %v674_v22  ;;  %vm5133_vm4 = vcmp.eq.s32.totalorder %v5131_v42, 0  ;;  %vm5136_vm5 = vcmp.eq.s32.totalorder %v5131_v42, 2  ;;  %vm13004_vm6 = vcmp.le.f32.partialorder %v5141_v2, 0.7853982  ;;  %v875_v16 = vpop.permute.xlu1 %874  ;;  %v15375_v22 = vld [vmem:[#allocation39_spill] sm:$0xff] }
 0x527   : > { %v5303_v28 = vadd.s32 1, %v12968_v35  ;;  %v5197_v52 = vadd.s32 %v12881_v20, %v12897_v4  ;;  %vm8050_vm7 = vcmp.lt.s32.totalorder %v8049_v51, 0  ;;  %v5230_v50 = vsel %vm13004_vm6, 0, %v5228_v24 }
 0x528   : > { %v5353_v36 = vshrl.u32 %v5352_v9, 23  ;;  %v8615_v5 = vpop.eup %8614  ;;  %v5212_v54 = vsel %vm8050_vm7, 0, %v8049_v51  ;;  %v5300_v56 = vmul.u32 %v12939_v15, %v5284_v17  ;;  %vm5302_vm8 = vc.u32 %v12994_v18, %v12967_v33 }
 0x529   : > { %v5349_v2 = vand.u32 2147483647, %v12975_v14  ;;  %v8617_v11 = vpop.eup %8616  ;;  %v5137_v45 = vxor.u32 2147483648, %v8615_v5  ;;  %v5213_v23 = vsub.s32 32, %v5212_v54  ;;  %v5217_v63 = vsub.s32 4294967266, %v5212_v54 }
 0x52a   : > { %v5456_v20 = vand.u32 2139095040, %v13000_v58  ;;  %v5134_v4 = vxor.u32 2147483648, %v8617_v11  ;;  %v5214_v55 = vshll.u32 %v12950_v12, %v5212_v54  ;;  %v5304_v59 = vsel %vm5302_vm8, %v5303_v28, %v12968_v35  ;;  %v15374_v12 = vld [vmem:[#allocation38_spill] sm:$0xff] }
 0x52b   : > { %v8055_v57 = vadd.s32 4294967169, %v5353_v36  ;;  %v5138_v25 = vsel %vm5136_vm5, %v5137_v45, %v8617_v11  ;;  %v5215_v15 = vshrl.u32 %v5197_v52, %v5213_v23  ;;  %v5218_v62 = vadd.s32 127, %v5217_v63 }
 0x52c   : > { %v5305_v32 = vadd.s32 %v5304_v59, %v5300_v56  ;;  %vm5132_vm10 = vcmp.lt.s32.totalorder %v5131_v42, 2  ;;  %v5135_v19 = vsel %vm5133_vm4, %v8615_v5, %v5134_v4  ;;  %v5234_v3 = vadd.s32 3, %v5230_v50 }
 0x52d   : > { %v5359_v48 = vadd.s32 1, %v8055_v57  ;;  %v5139_v34 = vsel %vm5132_vm10, %v5135_v19, %v5138_v25  ;;  %v5216_v10 = vor.u32 %v5215_v15, %v5214_v55  ;;  %v5219_v26 = vshll.u32 %v5218_v62, 23 }
 0x52e   : > { %v5306_v29 = vadd.s32 536870912, %v5305_v32  ;;  %v13024_v35 = vmul.f32 %v12931_v46, %v15374_v12  ;;  %v5140_v61 = vsel %vm5129_vm3, nan, %v5139_v34  ;;  %v5356_v1 = vand.u32 8388607, %v5349_v2 }
 0x52f   : > { %vm5360_vm9 = vcmp.gt.s32.totalorder %v5359_v48, 0  ;;  %7779 = vst [vmem:[%s9666_s10 + $0x130] sm:$0xff] %v5140_v61  ;;  %v5220_v42 = vor.u32 4788187, %v5219_v26  ;;  %v5457_v21 = vshrl.u32 %v5456_v20, 23  ;;  %v13033_v40 = vmul.f32 %v12931_v46, %v15375_v22 }
 0x530   : > { %v5307_v8 = vshrl.u32 %v5306_v29, 30  ;;  %v5361_v6 = vsel %vm5360_vm9, %v5359_v48, 0  ;;  %v13035_v24 = vand.u32 3, %v5234_v3  ;;  %v13038_v30 = vmul.f32 %v12752_v47, %v871_v13 }
 0x531   : > { %v5363_v49 = vand.u32 31, %v5361_v6  ;;  %v5221_v51 = vand.u32 2147483647, %v5220_v42  ;;  %v5223_v17 = vcvt.s32.f32 %v5216_v10  ;;  %vm5247_vm12 = vcmp.lt.s32.totalorder %v12810_v60, 0 }
 0x532   : > { %v5308_v9 = vshll.u32 %v5307_v8, 30  ;;  %v13042_v28 = vmul.f32 %v12752_v47, %v875_v16  ;;  %v5301_v52 = vadd.s32 %v12967_v33, %v12994_v18  ;;  %v5357_v50 = vor.u32 8388608, %v5356_v1 }
 0x533   : > { %v5364_v36 = vsub.s32 32, %v5363_v49  ;;  %v5453_v5 = vand.u32 2147483647, %v13000_v58  ;;  %v5224_v54 = vmul.f32 %v5223_v17, %v5221_v51  ;;  %v5362_v11 = vshrl.u32 %v5361_v6, 5 }
 0x534   : > { %v13047_v56 = vsub.s32 %v5305_v32, %v5308_v9  ;;  %v8059_v45 = vadd.s32 4294967169, %v5457_v21  ;;  %v5331_v23 = vsub.s32 4, %v5307_v8  ;;  %v5366_v63 = vshll.u32 %v15256_v0, %v5363_v49 }
 0x535   : > { %v5367_v20 = vshrl.u32 %v15257_v39, %v5364_v36  ;;  %v5370_v47 = vshrl.u32 %v15258_v27, %v5364_v36  ;;  %v5225_v4 = vxor.u32 2147483648, %v5224_v54  ;;  %v5369_v33 = vshll.u32 %v15257_v39, %v5363_v49 }
 0x536   : > { %v5311_v55 = vsub.s32 0, %v13047_v56  ;;  %v5373_v18 = vshrl.u32 %v15259_v44, %v5364_v36  ;;  %v5372_v57 = vshll.u32 %v15258_v27, %v5363_v49  ;;  %v5375_v25 = vshll.u32 %v15259_v44, %v5363_v49 }
 0x537   : > { %v5368_v59 = vor.u32 %v5367_v20, %v5366_v63  ;;  %v5376_v15 = vshrl.u32 %v15260_v53, %v5364_v36  ;;  %v5226_v62 = vsel %vm5143_vm2, %v5225_v4, %v5224_v54  ;;  %v5371_v19 = vor.u32 %v5370_v47, %v5369_v33 }
 0x538   : > { %v8052_v32 = vmin.u32 %v5311_v55, %v13047_v56  ;;  %v5378_v3 = vshll.u32 %v15260_v53, %v5363_v49  ;;  %v5229_v48 = vsel %vm13004_vm6, %v12747_v38, %v5226_v62  ;;  %v5374_v34 = vor.u32 %v5373_v18, %v5372_v57 }
 0x539   : > { %v5377_v10 = vor.u32 %v5376_v15, %v5375_v25  ;;  %v5379_v26 = vshrl.u32 %v15261_v41, %v5364_v36  ;;  %8618 = vcosq.f32 %v5229_v48  ;;  %v13066_v13 = vshll.u32 %v5357_v50, 8 }
 0x53a   : > { %v5313_v29 = vclz %v8052_v32  ;;  %v5463_v12 = vadd.s32 1, %v8059_v45  ;;  %8620 = vsinq.f32 %v5229_v48  ;;  %v5332_v61 = vsel %vm5247_vm12, %v5331_v23, %v5307_v8 }
 0x53b   : > { %v5365_v1 = vshrl.u32 %v15256_v0, %v5364_v36  ;;  %v5380_v16 = vor.u32 %v5379_v26, %v5378_v3  ;;  %vm13073_vm11 = vcmp.le.f32.partialorder %v5245_v31, 0.7853982  ;;  %vm5381_vm13 = vcmp.lt.s32.totalorder %v5362_v11, 1 }
 0x53c   : > { %v8053_v42 = vadd.s32 4294967294, %v5313_v29  ;;  %vm5383_vm0 = vcmp.lt.s32.totalorder %v5362_v11, 3  ;;  %vm5384_vm15 = vcmp.lt.s32.totalorder %v5362_v11, 4  ;;  %v5389_v21 = vsel %vm5381_vm13, %v5368_v59, %v5371_v19 }
 0x53d   : > { %v5386_v6 = vsel %vm5384_vm15, %v5374_v34, 2102212464  ;;  %v5390_v22 = vsel %vm5384_vm15, %v5377_v10, 920167782  ;;  %v5393_v49 = vsel %vm5381_vm13, %v5371_v19, %v5374_v34  ;;  %vm5382_vm1 = vcmp.lt.s32.totalorder %v5362_v11, 2 }
 0x53e   : > { %vm8054_vm14 = vcmp.lt.s32.totalorder %v8053_v42, 0  ;;  %v5391_v8 = vsel %vm5383_vm0, %v5374_v34, %v5390_v22  ;;  %v5394_v51 = vsel %vm5384_vm15, %v5380_v16, 1326507024  ;;  %v5385_v9 = vsel %vm5381_vm13, %v5365_v1, %v5368_v59 }
 0x53f   : > { %v5316_v17 = vsel %vm8054_vm14, 0, %v8053_v42  ;;  %v5392_v31 = vsel %vm5382_vm1, %v5389_v21, %v5391_v8  ;;  %v5395_v50 = vsel %vm5383_vm0, %v5377_v10, %v5394_v51  ;;  %vm5236_vm2 = vcmp.lt.s32.totalorder %v13035_v24, 2 }
 0x540   : > { %v5317_v36 = vsub.s32 32, %v5316_v17  ;;  %v5321_v54 = vsub.s32 4294967266, %v5316_v17  ;;  %v5387_v45 = vsel %vm5383_vm0, %v5371_v19, %v5386_v6  ;;  %v5396_v23 = vsel %vm5382_vm1, %v5393_v49, %v5395_v50 }
 0x541   : > { %vm5233_vm3 = vweird.f32 %v12747_v38  ;;  %v13085_v63 = vmul.u32.u64.low %v13066_v13, %v5396_v23  ;;  %v13086_v20 = vmul.u32.u64.high %v13066_v13, %v5396_v23, %v13085_v63  ;;  %v5318_v55 = vshll.u32 %v13047_v56, %v5316_v17 }
 0x542   : > { %v13089_v47 = vmul.u32.u64.low %v13066_v13, %v5392_v31  ;;  %v13090_v4 = vmul.u32.u64.high %v13066_v13, %v5392_v31, %v13089_v47  ;;  %v5319_v33 = vshrl.u32 %v5301_v52, %v5317_v36  ;;  %v5322_v18 = vadd.s32 127, %v5321_v54 }
 0x543   : > { %vm5464_vm4 = vcmp.gt.s32.totalorder %v5463_v12, 0  ;;  %vm5237_vm5 = vcmp.eq.s32.totalorder %v13035_v24, 0  ;;  %v5388_v59 = vsel %vm5382_vm1, %v5385_v9, %v5387_v45  ;;  %v5460_v57 = vand.u32 8388607, %v5453_v5  ;;  %v8619_v15 = vpop.eup %8618 }
 0x544   : > { %v5465_v25 = vsel %vm5464_vm4, %v5463_v12, 0  ;;  %vm5240_vm6 = vcmp.eq.s32.totalorder %v13035_v24, 2  ;;  %v5320_v62 = vor.u32 %v5319_v33, %v5318_v55  ;;  %v5323_v32 = vshll.u32 %v5322_v18, 23  ;;  %v8621_v3 = vpop.eup %8620 }
 0x545   : > { %v5467_v19 = vand.u32 31, %v5465_v25  ;;  %v5241_v48 = vxor.u32 2147483648, %v8619_v15  ;;  %v5334_v52 = vsel %vm13073_vm11, 0, %v5332_v61  ;;  %vm5406_vm7 = vc.u32 %v13086_v20, %v13089_v47 }
 0x546   : > { %v5407_v56 = vadd.s32 1, %v13090_v4  ;;  %v5238_v11 = vxor.u32 2147483648, %v8621_v3  ;;  %v5324_v34 = vor.u32 4788187, %v5323_v32  ;;  %v5404_v10 = vmul.u32 %v13066_v13, %v5388_v59 }
 0x547   : > { %v5468_v26 = vsub.s32 32, %v5467_v19  ;;  %v5242_v29 = vsel %vm5240_vm6, %v5241_v48, %v8621_v3  ;;  %v5461_v1 = vor.u32 8388608, %v5460_v57  ;;  %v13108_v16 = vadd.f32 %v13038_v30, %v12988_v7 }
 0x548   : > { %v5408_v12 = vsel %vm5406_vm7, %v5407_v56, %v13090_v4  ;;  %v5239_v61 = vsel %vm5237_vm5, %v8619_v15, %v5238_v11  ;;  %v5325_v42 = vand.u32 2147483647, %v5324_v34  ;;  %v5327_v6 = vcvt.s32.f32 %v5320_v62 }
 0x549   : > { %v5409_v21 = vadd.s32 %v5408_v12, %v5404_v10  ;;  %v5243_v22 = vsel %vm5236_vm2, %v5239_v61, %v5242_v29  ;;  %v5338_v13 = vadd.s32 3, %v5334_v52  ;;  %v5471_v49 = vshrl.u32 %v15257_v39, %v5468_v26 }
 0x54a   : > { %v5474_v8 = vshrl.u32 %v15258_v27, %v5468_v26  ;;  %v5244_v51 = vsel %vm5233_vm3, nan, %v5243_v22  ;;  %v5328_v17 = vmul.f32 %v5327_v6, %v5325_v42  ;;  %v5477_v30 = vshrl.u32 %v15259_v44, %v5468_v26 }
 0x54b   : > { %v5410_v7 = vadd.s32 536870912, %v5409_v21  ;;  %7780 = vst [vmem:[%s9666_s10 + $0x138] sm:$0xff] %v5244_v51  ;;  %v5466_v9 = vshrl.u32 %v5465_v25, 5  ;;  %v5470_v31 = vshll.u32 %v15256_v0, %v5467_v19  ;;  %v5473_v50 = vshll.u32 %v15257_v39, %v5467_v19 }
 0x54c   : > { %v5480_v24 = vshrl.u32 %v15260_v53, %v5468_v26  ;;  %v5329_v36 = vxor.u32 2147483648, %v5328_v17  ;;  %v5476_v45 = vshll.u32 %v15258_v27, %v5467_v19  ;;  %v5479_v23 = vshll.u32 %v15259_v44, %v5467_v19 }
 0x54d   : > { %v5411_v54 = vshrl.u32 %v5410_v7, 30  ;;  %v5472_v38 = vor.u32 %v5471_v49, %v5470_v31  ;;  %v5475_v63 = vor.u32 %v5474_v8, %v5473_v50  ;;  %v5482_v4 = vshll.u32 %v15260_v53, %v5467_v19 }
 0x54e   : > { %v5483_v55 = vshrl.u32 %v15261_v41, %v5468_v26  ;;  %v5330_v33 = vsel %vm5247_vm12, %v5329_v36, %v5328_v17  ;;  %v5478_v59 = vor.u32 %v5477_v30, %v5476_v45  ;;  %v5481_v57 = vor.u32 %v5480_v24, %v5479_v23 }
 0x54f   : > { %v5412_v18 = vshll.u32 %v5411_v54, 30  ;;  %v5333_v25 = vsel %vm13073_vm11, %v12810_v60, %v5330_v33  ;;  %v13132_v15 = vand.u32 3, %v5338_v13  ;;  %v13134_v32 = vshll.u32 %v5461_v1, 8 }
 0x550   : > { %v5484_v62 = vor.u32 %v5483_v55, %v5482_v4  ;;  %8622 = vcosq.f32 %v5333_v25  ;;  %v5469_v19 = vshrl.u32 %v15256_v0, %v5468_v26  ;;  %vm5485_vm8 = vcmp.lt.s32.totalorder %v5466_v9, 1 }
 0x551   : > { %v13136_v3 = vsub.s32 %v5409_v21, %v5412_v18  ;;  %8624 = vsinq.f32 %v5333_v25  ;;  %vm5486_vm10 = vcmp.lt.s32.totalorder %v5466_v9, 2  ;;  %vm5488_vm9 = vcmp.lt.s32.totalorder %v5466_v9, 4 }
 0x552   : > { %v5493_v48 = vsel %vm5485_vm8, %v5472_v38, %v5475_v63  ;;  %vm5487_vm12 = vcmp.lt.s32.totalorder %v5466_v9, 3  ;;  %v5490_v43 = vsel %vm5488_vm9, %v5478_v59, 2102212464  ;;  %v5494_v56 = vsel %vm5488_vm9, %v5481_v57, 920167782 }
 0x553   : > { %v5415_v52 = vsub.s32 0, %v13136_v3  ;;  %v5435_v11 = vsub.s32 4, %v5411_v54  ;;  %v5495_v34 = vsel %vm5487_vm12, %v5478_v59, %v5494_v56  ;;  %v5497_v10 = vsel %vm5485_vm8, %v5475_v63, %v5478_v59 }
 0x554   : > { %v5498_v29 = vsel %vm5488_vm9, %v5484_v62, 1326507024  ;;  %v5489_v1 = vsel %vm5485_vm8, %v5469_v19, %v5472_v38  ;;  %v5496_v61 = vsel %vm5486_vm10, %v5493_v48, %v5495_v34  ;;  %v5491_v42 = vsel %vm5487_vm12, %v5475_v63, %v5490_v43 }
 0x555   : > { %v8056_v12 = vmin.u32 %v5415_v52, %v13136_v3  ;;  %v5499_v26 = vsel %vm5487_vm12, %v5481_v57, %v5498_v29  ;;  %v13144_v21 = vmul.u32.u64.low %v13134_v32, %v5496_v61  ;;  %v13145_v22 = vmul.u32.u64.high %v13134_v32, %v5496_v61, %v13144_v21  ;;  %v15380_v61 = vld [vmem:[#allocation40_spill] sm:$0xff] }
 0x556   : > { %v5500_v6 = vsel %vm5486_vm10, %v5497_v10, %v5499_v26  ;;  %v676_v13 = vadd.f32 %v12731_v37, %v13033_v40  ;;  %vm13152_vm11 = vcmp.le.f32.partialorder %v5349_v2, 0.7853982  ;;  %vm5351_vm13 = vcmp.lt.s32.totalorder %v12975_v14, 0 }
 0x557   : > { %v5417_v8 = vclz %v8056_v12  ;;  %v5436_v51 = vsel %vm5351_vm13, %v5435_v11, %v5411_v54  ;;  %v13160_v17 = vmul.u32.u64.low %v13134_v32, %v5500_v6  ;;  %v13161_v7 = vmul.u32.u64.high %v13134_v32, %v5500_v6, %v13160_v17 }
 0x558   : > { %v5560_v30 = vand.u32 2139095040, %v13108_v16  ;;  %vm5340_vm0 = vcmp.lt.s32.totalorder %v13132_v15, 2  ;;  %v5492_v2 = vsel %vm5486_vm10, %v5489_v1, %v5491_v42  ;;  %v13167_v40 = vadd.f32 %v13042_v28, %v676_v13  ;;  %v15381_v42 = vld [vmem:[#allocation41_spill] sm:$0xff] }
 0x559   : > { %v8057_v37 = vadd.s32 4294967294, %v5417_v8  ;;  %vm5341_vm15 = vcmp.eq.s32.totalorder %v13132_v15, 0  ;;  %vm5344_vm14 = vcmp.eq.s32.totalorder %v13132_v15, 2  ;;  %v5511_v31 = vadd.s32 1, %v13145_v22 }
 0x55a   : > { %v5561_v50 = vshrl.u32 %v5560_v30, 23  ;;  %v8623_v24 = vpop.eup %8622  ;;  %v5405_v36 = vadd.s32 %v13089_v47, %v13086_v20  ;;  %v5438_v54 = vsel %vm13152_vm11, 0, %v5436_v51  ;;  %v5557_v9 = vand.u32 2147483647, %v13108_v16 }
 0x55b   : > { %vm8058_vm1 = vcmp.lt.s32.totalorder %v8057_v37, 0  ;;  %v8625_v45 = vpop.eup %8624  ;;  %v5345_v28 = vxor.u32 2147483648, %v8623_v24  ;;  %v5508_v38 = vmul.u32 %v13134_v32, %v5492_v2  ;;  %vm5510_vm2 = vc.u32 %v13161_v7, %v13144_v21 }
 0x55c   : > { %v5420_v23 = vsel %vm8058_vm1, 0, %v8057_v37  ;;  %v5342_v63 = vxor.u32 2147483648, %v8625_v45  ;;  %v5664_v33 = vand.u32 2139095040, %v13167_v40  ;;  %v5512_v18 = vsel %vm5510_vm2, %v5511_v31, %v13145_v22 }
 0x55d   : > { %v5421_v4 = vsub.s32 32, %v5420_v23  ;;  %v5425_v55 = vsub.s32 4294967266, %v5420_v23  ;;  %v5346_v20 = vsel %vm5344_vm14, %v5345_v28, %v8625_v45  ;;  %v5422_v47 = vshll.u32 %v13136_v3, %v5420_v23 }
 0x55e   : > { %v8063_v59 = vadd.s32 4294967169, %v5561_v50  ;;  %v5343_v57 = vsel %vm5341_vm15, %v8623_v24, %v5342_v63  ;;  %v5513_v32 = vadd.s32 %v5512_v18, %v5508_v38  ;;  %vm5337_vm3 = vweird.f32 %v12810_v60  ;;  %v13196_v60 = vld [vmem:[%s15172_s2] ss:$0 sm:$0xff] }
 0x55f   : > { %v5423_v25 = vshrl.u32 %v5405_v36, %v5421_v4  ;;  %v5426_v62 = vadd.s32 127, %v5425_v55  ;;  %v5347_v19 = vsel %vm5340_vm0, %v5343_v57, %v5346_v20  ;;  %v5442_v48 = vadd.s32 3, %v5438_v54 }
 0x560   : > { %v5567_v52 = vadd.s32 1, %v8063_v59  ;;  %v5348_v43 = vsel %vm5337_vm3, nan, %v5347_v19  ;;  %v5514_v3 = vadd.s32 536870912, %v5513_v32  ;;  %v5564_v34 = vand.u32 8388607, %v5557_v9 }
 0x561   : > { %v5424_v56 = vor.u32 %v5423_v25, %v5422_v47  ;;  %v5427_v11 = vshll.u32 %v5426_v62, 23  ;;  %7781 = vst [vmem:[%s9666_s10 + $0x140] sm:$0xff] %v5348_v43  ;;  %v5665_v1 = vshrl.u32 %v5664_v33, 23  ;;  %v13200_v15 = vadd.f32 %v13196_v60, %v13024_v35 }
 0x562   : > { %vm5568_vm4 = vcmp.gt.s32.totalorder %v5567_v52, 0  ;;  %v5515_v29 = vshrl.u32 %v5514_v3, 30  ;;  %v13204_v26 = vmul.f32 %v12931_v46, %v15380_v61  ;;  %v13208_v6 = vmul.f32 %v12931_v46, %v15381_v42 }
 0x563   : > { %v5428_v10 = vor.u32 4788187, %v5427_v11  ;;  %v5569_v12 = vsel %vm5568_vm4, %v5567_v52, 0  ;;  %v5431_v8 = vcvt.s32.f32 %v5424_v56  ;;  %v13210_v51 = vand.u32 3, %v5442_v48 }
 0x564   : > { %v5571_v22 = vand.u32 31, %v5569_v12  ;;  %vm5455_vm5 = vcmp.lt.s32.totalorder %v13000_v58, 0  ;;  %v5516_v17 = vshll.u32 %v5515_v29, 30  ;;  %v13215_v35 = vadd.s32 %v13144_v21, %v13161_v7 }
 0x565   : > { %v5429_v13 = vand.u32 2147483647, %v5428_v10  ;;  %v5565_v30 = vor.u32 8388608, %v5564_v34  ;;  %v5661_v2 = vand.u32 2147483647, %v13167_v40  ;;  %v13220_v46 = vshrl.u32 %v5569_v12, 5 }
 0x566   : > { %v5572_v37 = vsub.s32 32, %v5571_v22  ;;  %v13218_v50 = vsub.s32 %v5513_v32, %v5516_v17  ;;  %v8067_v24 = vadd.s32 4294967169, %v5665_v1  ;;  %v5539_v36 = vsub.s32 4, %v5515_v29 }
 0x567   : > { %v5432_v31 = vmul.f32 %v5431_v8, %v5429_v13  ;;  %v5574_v54 = vshll.u32 %v15256_v0, %v5571_v22  ;;  %v5577_v7 = vshll.u32 %v15257_v39, %v5571_v22  ;;  %v5580_v4 = vshll.u32 %v15258_v27, %v5571_v22 }
 0x568   : > { %v5575_v45 = vshrl.u32 %v15257_v39, %v5572_v37  ;;  %v5578_v28 = vshrl.u32 %v15258_v27, %v5572_v37  ;;  %v5519_v21 = vsub.s32 0, %v13218_v50  ;;  %v5581_v38 = vshrl.u32 %v15259_v44, %v5572_v37 }
 0x569   : > { %v5433_v23 = vxor.u32 2147483648, %v5432_v31  ;;  %v5583_v55 = vshll.u32 %v15259_v44, %v5571_v22  ;;  %v5584_v33 = vshrl.u32 %v15260_v53, %v5572_v37  ;;  %v5586_v59 = vshll.u32 %v15260_v53, %v5571_v22 }
 0x56a   : > { %v5576_v63 = vor.u32 %v5575_v45, %v5574_v54  ;;  %v8060_v47 = vmin.u32 %v5519_v21, %v13218_v50  ;;  %v5579_v18 = vor.u32 %v5578_v28, %v5577_v7  ;;  %v5582_v25 = vor.u32 %v5581_v38, %v5580_v4  ;;  %v883_v28 = vpop.permute.xlu1 %882 }
 0x56b   : > { %v5434_v20 = vsel %vm5351_vm13, %v5433_v23, %v5432_v31  ;;  %v5585_v62 = vor.u32 %v5584_v33, %v5583_v55  ;;  %v5587_v32 = vshrl.u32 %v15261_v41, %v5572_v37  ;;  %v13239_v48 = vshll.u32 %v5565_v30, 8  ;;  %v879_v31 = vpop.permute.xlu0 %878  ;;  %v13288_v55 = vld [vmem:[%s15171_s1 + $0x1] ss:$0 sm:$0xff] }
 0x56c   : > { %v5437_v57 = vsel %vm13152_vm11, %v12975_v14, %v5434_v20  ;;  %v5521_v19 = vclz %v8060_v47  ;;  %v5671_v52 = vadd.s32 1, %v8067_v24  ;;  %v13243_v43 = vsel %vm5455_vm5, %v5539_v36, %v5515_v29 }
 0x56d   : > { %8626 = vcosq.f32 %v5437_v57  ;;  %v5573_v56 = vshrl.u32 %v15256_v0, %v5572_v37  ;;  %v5588_v11 = vor.u32 %v5587_v32, %v5586_v59  ;;  %vm13248_vm6 = vcmp.le.f32.partialorder %v5453_v5, 0.7853982 }
 0x56e   : > { %8628 = vsinq.f32 %v5437_v57  ;;  %v8061_v3 = vadd.s32 4294967294, %v5521_v19  ;;  %vm5589_vm7 = vcmp.lt.s32.totalorder %v13220_v46, 1  ;;  %vm5591_vm8 = vcmp.lt.s32.totalorder %v13220_v46, 3 }
 0x56f   : > { %vm5592_vm10 = vcmp.lt.s32.totalorder %v13220_v46, 4  ;;  %v5597_v10 = vsel %vm5589_vm7, %v5576_v63, %v5579_v18  ;;  %v5601_v12 = vsel %vm5589_vm7, %v5579_v18, %v5582_v25  ;;  %vm5448_vm9 = vcmp.eq.s32.totalorder %v13210_v51, 2 }
 0x570   : > { %v5594_v34 = vsel %vm5592_vm10, %v5582_v25, 2102212464  ;;  %v5598_v29 = vsel %vm5592_vm10, %v5585_v62, 920167782  ;;  %vm8062_vm12 = vcmp.lt.s32.totalorder %v8061_v3, 0  ;;  %vm5590_vm11 = vcmp.lt.s32.totalorder %v13220_v46, 2 }
 0x571   : > { %v5599_v5 = vsel %vm5591_vm8, %v5582_v25, %v5598_v29  ;;  %v5602_v1 = vsel %vm5592_vm10, %v5588_v11, 1326507024  ;;  %vm5445_vm13 = vcmp.eq.s32.totalorder %v13210_v51, 0  ;;  %v5524_v61 = vsel %vm8062_vm12, 0, %v8061_v3 }
 0x572   : > { %v5593_v42 = vsel %vm5589_vm7, %v5573_v56, %v5576_v63  ;;  %v5600_v22 = vsel %vm5590_vm11, %v5597_v10, %v5599_v5  ;;  %v5603_v13 = vsel %vm5591_vm8, %v5585_v62, %v5602_v1  ;;  %vm5444_vm0 = vcmp.lt.s32.totalorder %v13210_v51, 2 }
 0x573   : > { %v5525_v8 = vsub.s32 32, %v5524_v61  ;;  %v5529_v17 = vsub.s32 4294967266, %v5524_v61  ;;  %v5595_v30 = vsel %vm5591_vm8, %v5579_v18, %v5594_v34  ;;  %v5604_v37 = vsel %vm5590_vm11, %v5601_v12, %v5603_v13 }
 0x574   : > { %vm5441_vm15 = vweird.f32 %v12975_v14  ;;  %v13271_v24 = vmul.u32.u64.low %v13239_v48, %v5604_v37  ;;  %v13272_v36 = vmul.u32.u64.high %v13239_v48, %v5604_v37, %v13271_v24  ;;  %v5526_v23 = vshll.u32 %v13218_v50, %v5524_v61 }
 0x575   : > { %v13275_v54 = vmul.u32.u64.low %v13239_v48, %v5600_v22  ;;  %v13276_v45 = vmul.u32.u64.high %v13239_v48, %v5600_v22, %v13275_v54  ;;  %v5527_v21 = vshrl.u32 %v13215_v35, %v5525_v8  ;;  %v5530_v7 = vadd.s32 127, %v5529_v17 }
 0x576   : > { %vm5672_vm14 = vcmp.gt.s32.totalorder %v5671_v52, 0  ;;  %v5596_v38 = vsel %vm5590_vm11, %v5593_v42, %v5595_v30  ;;  %v5668_v63 = vand.u32 8388607, %v5661_v2  ;;  %v1002_v33 = vmul.f32 %v13288_v55, %v879_v31 }
 0x577   : > { %v5673_v4 = vsel %vm5672_vm14, %v5671_v52, 0  ;;  %v8627_v20 = vpop.eup %8626  ;;  %v5528_v50 = vor.u32 %v5527_v21, %v5526_v23  ;;  %v5531_v47 = vshll.u32 %v5530_v7, 23  ;;  %v13292_v18 = vmul.f32 %v13288_v55, %v883_v28 }
 0x578   : > { %v5675_v35 = vand.u32 31, %v5673_v4  ;;  %v8629_v46 = vpop.eup %8628  ;;  %v5449_v59 = vxor.u32 2147483648, %v8627_v20  ;;  %v5542_v57 = vsel %vm13248_vm6, 0, %v13243_v43  ;;  %vm5614_vm1 = vc.u32 %v13272_v36, %v13275_v54 }
 0x579   : > { %v5615_v25 = vadd.s32 1, %v13276_v45  ;;  %v5446_v62 = vxor.u32 2147483648, %v8629_v46  ;;  %v5532_v32 = vor.u32 4788187, %v5531_v47  ;;  %v5612_v19 = vmul.u32 %v13239_v48, %v5596_v38 }
 0x57a   : > { %v5676_v52 = vsub.s32 32, %v5675_v35  ;;  %v5450_v56 = vsel %vm5448_vm9, %v5449_v59, %v8629_v46  ;;  %v5669_v3 = vor.u32 8388608, %v5668_v63  ;;  %v13305_v34 = vadd.f32 %v1002_v33, %v13200_v15 }
 0x57b   : > { %v5616_v11 = vsel %vm5614_vm1, %v5615_v25, %v13276_v45  ;;  %v5447_v43 = vsel %vm5445_vm13, %v8627_v20, %v5446_v62  ;;  %v5533_v10 = vand.u32 2147483647, %v5532_v32  ;;  %v5535_v29 = vcvt.s32.f32 %v5528_v50 }
 0x57c   : > { %v5617_v12 = vadd.s32 %v5616_v11, %v5612_v19  ;;  %v5451_v48 = vsel %vm5444_vm0, %v5447_v43, %v5450_v56  ;;  %v5546_v5 = vadd.s32 3, %v5542_v57  ;;  %v5679_v1 = vshrl.u32 %v15257_v39, %v5676_v52 }
 0x57d   : > { %v5682_v61 = vshrl.u32 %v15258_v27, %v5676_v52  ;;  %v5452_v42 = vsel %vm5441_vm15, nan, %v5451_v48  ;;  %v5536_v22 = vmul.f32 %v5535_v29, %v5533_v10  ;;  %v5685_v13 = vshrl.u32 %v15259_v44, %v5676_v52 }
 0x57e   : > { %v5618_v15 = vadd.s32 536870912, %v5617_v12  ;;  %7782 = vst [vmem:[%s9666_s10 + $0x148] sm:$0xff] %v5452_v42  ;;  %v5674_v8 = vshrl.u32 %v5673_v4, 5  ;;  %v5678_v17 = vshll.u32 %v15256_v0, %v5675_v35  ;;  %v5681_v30 = vshll.u32 %v15257_v39, %v5675_v35 }
 0x57f   : > { %v5688_v51 = vshrl.u32 %v15260_v53, %v5676_v52  ;;  %v5537_v37 = vxor.u32 2147483648, %v5536_v22  ;;  %v5684_v24 = vshll.u32 %v15258_v27, %v5675_v35  ;;  %v5687_v45 = vshll.u32 %v15259_v44, %v5675_v35 }
 0x580   : > { %v5619_v31 = vshrl.u32 %v5618_v15, 30  ;;  %v5680_v14 = vor.u32 %v5679_v1, %v5678_v17  ;;  %v5683_v28 = vor.u32 %v5682_v61, %v5681_v30  ;;  %v5690_v23 = vshll.u32 %v15260_v53, %v5675_v35 }
 0x581   : > { %v5691_v21 = vshrl.u32 %v15261_v41, %v5676_v52  ;;  %v5538_v7 = vsel %vm5455_vm5, %v5537_v37, %v5536_v22  ;;  %v5686_v63 = vor.u32 %v5685_v13, %v5684_v24  ;;  %v5689_v4 = vor.u32 %v5688_v51, %v5687_v45 }
 0x582   : > { %v5620_v38 = vshll.u32 %v5619_v31, 30  ;;  %v5541_v33 = vsel %vm13248_vm6, %v13000_v58, %v5538_v7  ;;  %v13329_v20 = vand.u32 3, %v5546_v5  ;;  %v13331_v47 = vshll.u32 %v5669_v3, 8 }
 0x583   : > { %v5692_v50 = vor.u32 %v5691_v21, %v5690_v23  ;;  %8630 = vcosq.f32 %v5541_v33  ;;  %v5677_v35 = vshrl.u32 %v15256_v0, %v5676_v52  ;;  %vm5693_vm2 = vcmp.lt.s32.totalorder %v5674_v8, 1 }
 0x584   : > { %v13333_v46 = vsub.s32 %v5617_v12, %v5620_v38  ;;  %8632 = vsinq.f32 %v5541_v33  ;;  %vm5694_vm3 = vcmp.lt.s32.totalorder %v5674_v8, 2  ;;  %vm5696_vm4 = vcmp.lt.s32.totalorder %v5674_v8, 4 }
 0x585   : > { %v5701_v59 = vsel %vm5693_vm2, %v5680_v14, %v5683_v28  ;;  %vm5695_vm5 = vcmp.lt.s32.totalorder %v5674_v8, 3  ;;  %v5698_v49 = vsel %vm5696_vm4, %v5686_v63, 2102212464  ;;  %v5702_v25 = vsel %vm5696_vm4, %v5689_v4, 920167782 }
 0x586   : > { %v5623_v57 = vsub.s32 0, %v13333_v46  ;;  %v5643_v62 = vsub.s32 4, %v5619_v31  ;;  %v5703_v32 = vsel %vm5695_vm5, %v5686_v63, %v5702_v25  ;;  %v5705_v19 = vsel %vm5693_vm2, %v5683_v28, %v5686_v63 }
 0x587   : > { %v5706_v56 = vsel %vm5696_vm4, %v5692_v50, 1326507024  ;;  %v5697_v3 = vsel %vm5693_vm2, %v5677_v35, %v5680_v14  ;;  %v5704_v43 = vsel %vm5694_vm3, %v5701_v59, %v5703_v32  ;;  %v5699_v10 = vsel %vm5695_vm5, %v5683_v28, %v5698_v49 }
 0x588   : > { %v8064_v11 = vmin.u32 %v5623_v57, %v13333_v46  ;;  %v5707_v52 = vsel %vm5695_vm5, %v5689_v4, %v5706_v56  ;;  %v13341_v12 = vmul.u32.u64.low %v13331_v47, %v5704_v43  ;;  %v13342_v48 = vmul.u32.u64.high %v13331_v47, %v5704_v43, %v13341_v12 }
 0x589   : > { %v5708_v29 = vsel %vm5694_vm3, %v5705_v19, %v5707_v52  ;;  %v678_v5 = vadd.f32 %v13196_v60, %v13208_v6  ;;  %vm13349_vm6 = vcmp.le.f32.partialorder %v5557_v9, 0.7853982  ;;  %vm5559_vm7 = vcmp.lt.s32.totalorder %v13108_v16, 0  ;;  %v15386_v52 = vld [vmem:[#allocation42_spill] sm:$0xff] }
 0x58a   : > { %v5625_v61 = vclz %v8064_v11  ;;  %v5644_v42 = vsel %vm5559_vm7, %v5643_v62, %v5619_v31  ;;  %v13357_v22 = vmul.u32.u64.low %v13331_v47, %v5708_v29  ;;  %v13358_v15 = vmul.u32.u64.high %v13331_v47, %v5708_v29, %v13357_v22  ;;  %v15387_v29 = vld [vmem:[#allocation43_spill] sm:$0xff] }
 0x58b   : > { %v5768_v13 = vand.u32 2139095040, %v13305_v34  ;;  %vm5548_vm8 = vcmp.lt.s32.totalorder %v13329_v20, 2  ;;  %v5700_v9 = vsel %vm5694_vm3, %v5697_v3, %v5699_v10  ;;  %v13364_v17 = vadd.f32 %v13292_v18, %v678_v5 }
 0x58c   : > { %v8065_v6 = vadd.s32 4294967294, %v5625_v61  ;;  %vm5549_vm10 = vcmp.eq.s32.totalorder %v13329_v20, 0  ;;  %vm5552_vm9 = vcmp.eq.s32.totalorder %v13329_v20, 2  ;;  %v5719_v30 = vadd.s32 1, %v13342_v48  ;;  %v13397_v20 = vld [vmem:[%s15171_s1] ss:$0 sm:$0xff] }
 0x58d   : > { %v5769_v51 = vshrl.u32 %v5768_v13, 23  ;;  %v8631_v37 = vpop.eup %8630  ;;  %v5613_v31 = vadd.s32 %v13275_v54, %v13272_v36  ;;  %v5646_v24 = vsel %vm13349_vm6, 0, %v5644_v42  ;;  %v5765_v8 = vand.u32 2147483647, %v13305_v34 }
 0x58e   : > { %vm8066_vm12 = vcmp.lt.s32.totalorder %v8065_v6, 0  ;;  %v8633_v45 = vpop.eup %8632  ;;  %v5553_v18 = vxor.u32 2147483648, %v8631_v37  ;;  %v5716_v28 = vmul.u32 %v13331_v47, %v5700_v9  ;;  %vm5718_vm11 = vc.u32 %v13358_v15, %v13341_v12 }
 0x58f   : > { %v5628_v14 = vsel %vm8066_vm12, 0, %v8065_v6  ;;  %v5550_v23 = vxor.u32 2147483648, %v8633_v45  ;;  %v5872_v38 = vand.u32 2139095040, %v13364_v17  ;;  %v5720_v63 = vsel %vm5718_vm11, %v5719_v30, %v13342_v48 }
 0x590   : > { %v5629_v21 = vsub.s32 32, %v5628_v14  ;;  %v5633_v7 = vsub.s32 4294967266, %v5628_v14  ;;  %v5554_v36 = vsel %vm5552_vm9, %v5553_v18, %v8633_v45  ;;  %v5630_v54 = vshll.u32 %v13333_v46, %v5628_v14 }
 0x591   : > { %v8071_v4 = vadd.s32 4294967169, %v5769_v51  ;;  %v5551_v33 = vsel %vm5549_vm10, %v8631_v37, %v5550_v23  ;;  %v5721_v35 = vadd.s32 %v5720_v63, %v5716_v28  ;;  %vm5545_vm13 = vweird.f32 %v13000_v58 }
 0x592   : > { %v5631_v50 = vshrl.u32 %v5613_v31, %v5629_v21  ;;  %v5634_v47 = vadd.s32 127, %v5633_v7  ;;  %v5555_v59 = vsel %vm5548_vm8, %v5551_v33, %v5554_v36  ;;  %v5650_v57 = vadd.s32 3, %v5646_v24 }
 0x593   : > { %v5775_v49 = vadd.s32 1, %v8071_v4  ;;  %v5556_v25 = vsel %vm5545_vm13, nan, %v5555_v59  ;;  %v5722_v46 = vadd.s32 536870912, %v5721_v35  ;;  %v5772_v19 = vand.u32 8388607, %v5765_v8 }
 0x594   : > { %v5632_v62 = vor.u32 %v5631_v50, %v5630_v54  ;;  %v5635_v32 = vshll.u32 %v5634_v47, 23  ;;  %7783 = vst [vmem:[%s9666_s10 + $0x150] sm:$0xff] %v5556_v25  ;;  %v5873_v43 = vshrl.u32 %v5872_v38, 23  ;;  %v13392_v58 = vadd.f32 %v13196_v60, %v13204_v26 }
 0x595   : > { %vm5776_vm0 = vcmp.gt.s32.totalorder %v5775_v49, 0  ;;  %v5723_v11 = vshrl.u32 %v5722_v46, 30  ;;  %v13401_v10 = vmul.f32 %v13397_v20, %v15386_v52  ;;  %v13405_v48 = vmul.f32 %v13397_v20, %v15387_v29 }
 0x596   : > { %v5636_v56 = vor.u32 4788187, %v5635_v32  ;;  %v5777_v3 = vsel %vm5776_vm0, %v5775_v49, 0  ;;  %v5639_v42 = vcvt.s32.f32 %v5632_v62  ;;  %v13407_v22 = vand.u32 3, %v5650_v57 }
 0x597   : > { %v5779_v5 = vand.u32 31, %v5777_v3  ;;  %vm5663_vm15 = vcmp.lt.s32.totalorder %v13167_v40, 0  ;;  %v5724_v26 = vshll.u32 %v5723_v11, 30  ;;  %v13412_v13 = vadd.s32 %v13341_v12, %v13358_v15 }
 0x598   : > { %v5637_v61 = vand.u32 2147483647, %v5636_v56  ;;  %v5773_v6 = vor.u32 8388608, %v5772_v19  ;;  %v5869_v30 = vand.u32 2147483647, %v13364_v17  ;;  %v13417_v31 = vshrl.u32 %v5777_v3, 5 }
 0x599   : > { %v5780_v9 = vsub.s32 32, %v5779_v5  ;;  %v13415_v37 = vsub.s32 %v5721_v35, %v5724_v26  ;;  %v8075_v24 = vadd.s32 4294967169, %v5873_v43  ;;  %v5747_v45 = vsub.s32 4, %v5723_v11 }
 0x59a   : > { %v5640_v51 = vmul.f32 %v5639_v42, %v5637_v61  ;;  %v5782_v18 = vshll.u32 %v15256_v0, %v5779_v5  ;;  %v5785_v15 = vshll.u32 %v15257_v39, %v5779_v5  ;;  %v5788_v38 = vshll.u32 %v15258_v27, %v5779_v5 }
 0x59b   : > { %v5783_v14 = vshrl.u32 %v15257_v39, %v5780_v9  ;;  %v5786_v28 = vshrl.u32 %v15258_v27, %v5780_v9  ;;  %v5727_v12 = vsub.s32 0, %v13415_v37  ;;  %v5789_v21 = vshrl.u32 %v15259_v44, %v5780_v9 }
 0x59c   : > { %v5641_v23 = vxor.u32 2147483648, %v5640_v51  ;;  %v5791_v36 = vshll.u32 %v15259_v44, %v5779_v5  ;;  %v5792_v54 = vshrl.u32 %v15260_v53, %v5780_v9  ;;  %v5794_v50 = vshll.u32 %v15260_v53, %v5779_v5 }
 0x59d   : > { %v5784_v7 = vor.u32 %v5783_v14, %v5782_v18  ;;  %v8068_v4 = vmin.u32 %v5727_v12, %v13415_v37  ;;  %v5787_v33 = vor.u32 %v5786_v28, %v5785_v15  ;;  %v5790_v35 = vor.u32 %v5789_v21, %v5788_v38  ;;  %v891_v12 = vpop.permute.xlu1 %890 }
 0x59e   : > { %v5642_v63 = vsel %vm5559_vm7, %v5641_v23, %v5640_v51  ;;  %v5793_v59 = vor.u32 %v5792_v54, %v5791_v36  ;;  %v5795_v57 = vshrl.u32 %v15261_v41, %v5780_v9  ;;  %v13436_v25 = vshll.u32 %v5773_v6, 8 }
 0x59f   : > { %v5645_v47 = vsel %vm13349_vm6, %v13108_v16, %v5642_v63  ;;  %v5729_v49 = vclz %v8068_v4  ;;  %v5879_v62 = vadd.s32 1, %v8075_v24  ;;  %v13440_v32 = vsel %vm5663_vm15, %v5747_v45, %v5723_v11  ;;  %v887_v45 = vpop.permute.xlu0 %886 }
 0x5a0   : > { %8634 = vcosq.f32 %v5645_v47  ;;  %v5781_v46 = vshrl.u32 %v15256_v0, %v5780_v9  ;;  %v5796_v19 = vor.u32 %v5795_v57, %v5794_v50  ;;  %vm13445_vm14 = vcmp.le.f32.partialorder %v5661_v2, 0.7853982 }
 0x5a1   : > { %8636 = vsinq.f32 %v5645_v47  ;;  %v8069_v56 = vadd.s32 4294967294, %v5729_v49  ;;  %vm5797_vm1 = vcmp.lt.s32.totalorder %v13417_v31, 1  ;;  %vm5799_vm2 = vcmp.lt.s32.totalorder %v13417_v31, 3 }
 0x5a2   : > { %vm5800_vm3 = vcmp.lt.s32.totalorder %v13417_v31, 4  ;;  %v5805_v43 = vsel %vm5797_vm1, %v5784_v7, %v5787_v33  ;;  %v5809_v52 = vsel %vm5797_vm1, %v5787_v33, %v5790_v35  ;;  %vm5656_vm4 = vcmp.eq.s32.totalorder %v13407_v22, 2 }
 0x5a3   : > { %v5802_v3 = vsel %vm5800_vm3, %v5790_v35, 2102212464  ;;  %v5806_v11 = vsel %vm5800_vm3, %v5793_v59, 920167782  ;;  %vm8070_vm5 = vcmp.lt.s32.totalorder %v8069_v56, 0  ;;  %vm5798_vm6 = vcmp.lt.s32.totalorder %v13417_v31, 2 }
 0x5a4   : > { %v5807_v2 = vsel %vm5799_vm2, %v5790_v35, %v5806_v11  ;;  %v5810_v29 = vsel %vm5800_vm3, %v5796_v19, 1326507024  ;;  %vm5653_vm7 = vcmp.eq.s32.totalorder %v13407_v22, 0  ;;  %v5732_v5 = vsel %vm8070_vm5, 0, %v8069_v56 }
 0x5a5   : > { %v5801_v61 = vsel %vm5797_vm1, %v5781_v46, %v5784_v7  ;;  %v5808_v42 = vsel %vm5798_vm6, %v5805_v43, %v5807_v2  ;;  %v5811_v26 = vsel %vm5799_vm2, %v5793_v59, %v5810_v29  ;;  %vm5652_vm8 = vcmp.lt.s32.totalorder %v13407_v22, 2 }
 0x5a6   : > { %v5733_v6 = vsub.s32 32, %v5732_v5  ;;  %v5737_v9 = vsub.s32 4294967266, %v5732_v5  ;;  %v5803_v51 = vsel %vm5799_vm2, %v5787_v33, %v5802_v3  ;;  %v5812_v24 = vsel %vm5798_vm6, %v5809_v52, %v5811_v26 }
 0x5a7   : > { %vm5649_vm10 = vweird.f32 %v13108_v16  ;;  %v13468_v18 = vmul.u32.u64.low %v13436_v25, %v5812_v24  ;;  %v13469_v14 = vmul.u32.u64.high %v13436_v25, %v5812_v24, %v13468_v18  ;;  %v5734_v15 = vshll.u32 %v13415_v37, %v5732_v5 }
 0x5a8   : > { %v13472_v28 = vmul.u32.u64.low %v13436_v25, %v5808_v42  ;;  %v13473_v23 = vmul.u32.u64.high %v13436_v25, %v5808_v42, %v13472_v28  ;;  %v5735_v21 = vshrl.u32 %v13412_v13, %v5733_v6  ;;  %v5738_v7 = vadd.s32 127, %v5737_v9 }
 0x5a9   : > { %vm5880_vm9 = vcmp.gt.s32.totalorder %v5879_v62, 0  ;;  %v5804_v38 = vsel %vm5798_vm6, %v5801_v61, %v5803_v51  ;;  %v5876_v36 = vand.u32 8388607, %v5869_v30  ;;  %v1004_v63 = vmul.f32 %v13288_v55, %v887_v45 }
 0x5aa   : > { %v5881_v54 = vsel %vm5880_vm9, %v5879_v62, 0  ;;  %v8635_v4 = vpop.eup %8634  ;;  %v5736_v33 = vor.u32 %v5735_v21, %v5734_v15  ;;  %v5739_v50 = vshll.u32 %v5738_v7, 23  ;;  %v13484_v35 = vmul.f32 %v13288_v55, %v891_v12 }
 0x5ab   : > { %v5883_v47 = vand.u32 31, %v5881_v54  ;;  %v8637_v37 = vpop.eup %8636  ;;  %v5657_v13 = vxor.u32 2147483648, %v8635_v4  ;;  %v5750_v31 = vsel %vm13445_vm14, 0, %v13440_v32  ;;  %vm5822_vm12 = vc.u32 %v13469_v14, %v13472_v28 }
 0x5ac   : > { %v5823_v59 = vadd.s32 1, %v13473_v23  ;;  %v5654_v57 = vxor.u32 2147483648, %v8637_v37  ;;  %v5740_v49 = vor.u32 4788187, %v5739_v50  ;;  %v5820_v62 = vmul.u32 %v13436_v25, %v5804_v38 }
 0x5ad   : > { %v5884_v46 = vsub.s32 32, %v5883_v47  ;;  %v5658_v19 = vsel %vm5656_vm4, %v5657_v13, %v8637_v37  ;;  %v5877_v3 = vor.u32 8388608, %v5876_v36  ;;  %v13497_v43 = vadd.f32 %v1004_v63, %v13392_v58 }
 0x5ae   : > { %v5824_v56 = vsel %vm5822_vm12, %v5823_v59, %v13473_v23  ;;  %v5655_v32 = vsel %vm5653_vm7, %v8635_v4, %v5654_v57  ;;  %v5741_v11 = vand.u32 2147483647, %v5740_v49  ;;  %v5743_v52 = vcvt.s32.f32 %v5736_v33 }
 0x5af   : > { %v5825_v2 = vadd.s32 %v5824_v56, %v5820_v62  ;;  %v5659_v25 = vsel %vm5652_vm8, %v5655_v32, %v5658_v19  ;;  %v5754_v29 = vadd.s32 3, %v5750_v31  ;;  %v5887_v5 = vshrl.u32 %v15257_v39, %v5884_v46 }
 0x5b0   : > { %v5890_v61 = vshrl.u32 %v15258_v27, %v5884_v46  ;;  %v5660_v42 = vsel %vm5649_vm10, nan, %v5659_v25  ;;  %v5744_v26 = vmul.f32 %v5743_v52, %v5741_v11  ;;  %v5893_v6 = vshrl.u32 %v15259_v44, %v5884_v46 }
 0x5b1   : > { %v5826_v58 = vadd.s32 536870912, %v5825_v2  ;;  %7784 = vst [vmem:[%s9666_s10 + $0x158] sm:$0xff] %v5660_v42  ;;  %v5882_v9 = vshrl.u32 %v5881_v54, 5  ;;  %v5886_v51 = vshll.u32 %v15256_v0, %v5883_v47  ;;  %v5889_v24 = vshll.u32 %v15257_v39, %v5883_v47 }
 0x5b2   : > { %v5896_v22 = vshrl.u32 %v15260_v53, %v5884_v46  ;;  %v5745_v45 = vxor.u32 2147483648, %v5744_v26  ;;  %v5892_v23 = vshll.u32 %v15258_v27, %v5883_v47  ;;  %v5895_v12 = vshll.u32 %v15259_v44, %v5883_v47 }
 0x5b3   : > { %v5827_v18 = vshrl.u32 %v5826_v58, 30  ;;  %v5888_v16 = vor.u32 %v5887_v5, %v5886_v51  ;;  %v5891_v15 = vor.u32 %v5890_v61, %v5889_v24  ;;  %v5898_v21 = vshll.u32 %v15260_v53, %v5883_v47 }
 0x5b4   : > { %v5899_v7 = vshrl.u32 %v15261_v41, %v5884_v46  ;;  %v5746_v38 = vsel %vm5663_vm15, %v5745_v45, %v5744_v26  ;;  %v5894_v54 = vor.u32 %v5893_v6, %v5892_v23  ;;  %v5897_v63 = vor.u32 %v5896_v22, %v5895_v12 }
 0x5b5   : > { %v5828_v36 = vshll.u32 %v5827_v18, 30  ;;  %v5749_v4 = vsel %vm13445_vm14, %v13167_v40, %v5746_v38  ;;  %v13521_v33 = vand.u32 3, %v5754_v29  ;;  %v13523_v37 = vshll.u32 %v5877_v3, 8 }
 0x5b6   : > { %v5900_v50 = vor.u32 %v5899_v7, %v5898_v21  ;;  %8638 = vcosq.f32 %v5749_v4  ;;  %v5885_v47 = vshrl.u32 %v15256_v0, %v5884_v46  ;;  %vm5901_vm11 = vcmp.lt.s32.totalorder %v5882_v9, 1 }
 0x5b7   : > { %v13525_v13 = vsub.s32 %v5825_v2, %v5828_v36  ;;  %8640 = vsinq.f32 %v5749_v4  ;;  %vm5902_vm13 = vcmp.lt.s32.totalorder %v5882_v9, 2  ;;  %vm5904_vm0 = vcmp.lt.s32.totalorder %v5882_v9, 4 }
 0x5b8   : > { %v5909_v31 = vsel %vm5901_vm11, %v5888_v16, %v5891_v15  ;;  %vm5903_vm15 = vcmp.lt.s32.totalorder %v5882_v9, 3  ;;  %v5906_v1 = vsel %vm5904_vm0, %v5894_v54, 2102212464  ;;  %v5910_v57 = vsel %vm5904_vm0, %v5897_v63, 920167782 }
 0x5b9   : > { %v5831_v59 = vsub.s32 0, %v13525_v13  ;;  %v5851_v49 = vsub.s32 4, %v5827_v18  ;;  %v5911_v62 = vsel %vm5903_vm15, %v5894_v54, %v5910_v57  ;;  %v5913_v19 = vsel %vm5901_vm11, %v5891_v15, %v5894_v54 }
 0x5ba   : > { %v5914_v56 = vsel %vm5904_vm0, %v5900_v50, 1326507024  ;;  %v5905_v32 = vsel %vm5901_vm11, %v5885_v47, %v5888_v16  ;;  %v5912_v11 = vsel %vm5902_vm13, %v5909_v31, %v5911_v62  ;;  %v5907_v52 = vsel %vm5903_vm15, %v5891_v15, %v5906_v1 }
 0x5bb   : > { %v8072_v3 = vmin.u32 %v5831_v59, %v13525_v13  ;;  %v5915_v46 = vsel %vm5903_vm15, %v5897_v63, %v5914_v56  ;;  %v13533_v25 = vmul.u32.u64.low %v13523_v37, %v5912_v11  ;;  %v13534_v29 = vmul.u32.u64.high %v13523_v37, %v5912_v11, %v13533_v25 }
 0x5bc   : > { %v5916_v2 = vsel %vm5902_vm13, %v5913_v19, %v5915_v46  ;;  %v680_v5 = vadd.f32 %v13196_v60, %v13405_v48  ;;  %vm13541_vm14 = vcmp.le.f32.partialorder %v5765_v8, 0.7853982  ;;  %vm5767_vm1 = vcmp.lt.s32.totalorder %v13305_v34, 0 }
 0x5bd   : > { %v5833_v42 = vclz %v8072_v3  ;;  %v5852_v26 = vsel %vm5767_vm1, %v5851_v49, %v5827_v18  ;;  %v13549_v58 = vmul.u32.u64.low %v13523_v37, %v5916_v2  ;;  %v13550_v6 = vmul.u32.u64.high %v13523_v37, %v5916_v2, %v13549_v58  ;;  %v15393_v2 = vld [vmem:[#allocation45_spill] sm:$0xff] }
 0x5be   : > { %v5976_v51 = vand.u32 2139095040, %v13497_v43  ;;  %vm5756_vm2 = vcmp.lt.s32.totalorder %v13521_v33, 2  ;;  %v5908_v8 = vsel %vm5902_vm13, %v5905_v32, %v5907_v52  ;;  %v13556_v24 = vadd.f32 %v13484_v35, %v680_v5 }
 0x5bf   : > { %v8073_v48 = vadd.s32 4294967294, %v5833_v42  ;;  %vm5757_vm3 = vcmp.eq.s32.totalorder %v13521_v33, 0  ;;  %vm5760_vm4 = vcmp.eq.s32.totalorder %v13521_v33, 2  ;;  %v5927_v22 = vadd.s32 1, %v13534_v29  ;;  %v15392_v33 = vld [vmem:[#allocation44_spill] sm:$0xff] }
 0x5c0   : > { %v5977_v45 = vshrl.u32 %v5976_v51, 23  ;;  %v8639_v18 = vpop.eup %8638  ;;  %v5821_v23 = vadd.s32 %v13472_v28, %v13469_v14  ;;  %v5854_v12 = vsel %vm13541_vm14, 0, %v5852_v26  ;;  %v5973_v9 = vand.u32 2147483647, %v13497_v43 }
 0x5c1   : > { %vm8074_vm5 = vcmp.lt.s32.totalorder %v8073_v48, 0  ;;  %v8641_v16 = vpop.eup %8640  ;;  %v5761_v35 = vxor.u32 2147483648, %v8639_v18  ;;  %v5924_v21 = vmul.u32 %v13523_v37, %v5908_v8  ;;  %vm5926_vm6 = vc.u32 %v13550_v6, %v13533_v25 }
 0x5c2   : > { %v5836_v15 = vsel %vm8074_vm5, 0, %v8073_v48  ;;  %v5758_v7 = vxor.u32 2147483648, %v8641_v16  ;;  %v6080_v54 = vand.u32 2139095040, %v13556_v24  ;;  %v5928_v63 = vsel %vm5926_vm6, %v5927_v22, %v13534_v29 }
 0x5c3   : > { %v5837_v38 = vsub.s32 32, %v5836_v15  ;;  %v5841_v36 = vsub.s32 4294967266, %v5836_v15  ;;  %v5762_v14 = vsel %vm5760_vm4, %v5761_v35, %v8641_v16  ;;  %v5838_v28 = vshll.u32 %v13525_v13, %v5836_v15 }
 0x5c4   : > { %v8079_v4 = vadd.s32 4294967169, %v5977_v45  ;;  %v5759_v50 = vsel %vm5757_vm3, %v8639_v18, %v5758_v7  ;;  %v5929_v31 = vadd.s32 %v5928_v63, %v5924_v21  ;;  %vm5753_vm7 = vweird.f32 %v13167_v40 }
 0x5c5   : > { %v5839_v37 = vshrl.u32 %v5821_v23, %v5837_v38  ;;  %v5842_v47 = vadd.s32 127, %v5841_v36  ;;  %v5763_v59 = vsel %vm5756_vm2, %v5759_v50, %v5762_v14  ;;  %v5858_v1 = vadd.s32 3, %v5854_v12 }
 0x5c6   : > { %v5983_v57 = vadd.s32 1, %v8079_v4  ;;  %v5764_v49 = vsel %vm5753_vm7, nan, %v5763_v59  ;;  %v5930_v13 = vadd.s32 536870912, %v5929_v31  ;;  %v5980_v56 = vand.u32 8388607, %v5973_v9 }
 0x5c7   : > { %v5840_v62 = vor.u32 %v5839_v37, %v5838_v28  ;;  %v5843_v19 = vshll.u32 %v5842_v47, 23  ;;  %7785 = vst [vmem:[%s9666_s10 + $0x160] sm:$0xff] %v5764_v49  ;;  %v6081_v46 = vshrl.u32 %v6080_v54, 23  ;;  %v13584_v40 = vadd.f32 %v13196_v60, %v13401_v10 }
 0x5c8   : > { %vm5984_vm8 = vcmp.gt.s32.totalorder %v5983_v57, 0  ;;  %v5931_v32 = vshrl.u32 %v5930_v13, 30  ;;  %v13588_v52 = vmul.f32 %v13397_v20, %v15392_v33  ;;  %v13592_v29 = vmul.f32 %v13397_v20, %v15393_v2 }
 0x5c9   : > { %v5844_v3 = vor.u32 4788187, %v5843_v19  ;;  %v5985_v11 = vsel %vm5984_vm8, %v5983_v57, 0  ;;  %v5847_v26 = vcvt.s32.f32 %v5840_v62  ;;  %v13594_v58 = vand.u32 3, %v5858_v1 }
 0x5ca   : > { %v5987_v5 = vand.u32 31, %v5985_v11  ;;  %vm5871_vm10 = vcmp.lt.s32.totalorder %v13364_v17, 0  ;;  %v5932_v51 = vshll.u32 %v5931_v32, 30  ;;  %v13599_v60 = vadd.s32 %v13533_v25, %v13550_v6 }
 0x5cb   : > { %v5845_v42 = vand.u32 2147483647, %v5844_v3  ;;  %v5981_v10 = vor.u32 8388608, %v5980_v56  ;;  %v6077_v8 = vand.u32 2147483647, %v13556_v24  ;;  %v13604_v18 = vshrl.u32 %v5985_v11, 5 }
 0x5cc   : > { %v5988_v48 = vsub.s32 32, %v5987_v5  ;;  %v13602_v45 = vsub.s32 %v5929_v31, %v5932_v51  ;;  %v8083_v23 = vadd.s32 4294967169, %v6081_v46  ;;  %v5955_v12 = vsub.s32 4, %v5931_v32 }
 0x5cd   : > { %v5848_v22 = vmul.f32 %v5847_v26, %v5845_v42  ;;  %v5990_v16 = vshll.u32 %v15256_v0, %v5987_v5  ;;  %v5993_v6 = vshll.u32 %v15257_v39, %v5987_v5  ;;  %v5996_v36 = vshll.u32 %v15258_v27, %v5987_v5 }
 0x5ce   : > { %v5991_v35 = vshrl.u32 %v15257_v39, %v5988_v48  ;;  %v5994_v15 = vshrl.u32 %v15258_v27, %v5988_v48  ;;  %v5935_v25 = vsub.s32 0, %v13602_v45  ;;  %v5997_v7 = vshrl.u32 %v15259_v44, %v5988_v48 }
 0x5cf   : > { %v5849_v21 = vxor.u32 2147483648, %v5848_v22  ;;  %v5999_v54 = vshll.u32 %v15259_v44, %v5987_v5  ;;  %v6000_v14 = vshrl.u32 %v15260_v53, %v5988_v48  ;;  %v6002_v50 = vshll.u32 %v15260_v53, %v5987_v5 }
 0x5d0   : > { %v5992_v38 = vor.u32 %v5991_v35, %v5990_v16  ;;  %v8076_v63 = vmin.u32 %v5935_v25, %v13602_v45  ;;  %v5995_v4 = vor.u32 %v5994_v15, %v5993_v6  ;;  %v5998_v47 = vor.u32 %v5997_v7, %v5996_v36 }
 0x5d1   : > { %v5850_v28 = vsel %vm5767_vm1, %v5849_v21, %v5848_v22  ;;  %v6001_v31 = vor.u32 %v6000_v14, %v5999_v54  ;;  %v6003_v59 = vshrl.u32 %v15261_v41, %v5988_v48  ;;  %v13623_v57 = vshll.u32 %v5981_v10, 8  ;;  %v899_v21 = vpop.permute.xlu1 %898 }
 0x5d2   : > { %v5853_v37 = vsel %vm13541_vm14, %v13305_v34, %v5850_v28  ;;  %v5937_v1 = vclz %v8076_v63  ;;  %v6087_v49 = vadd.s32 1, %v8083_v23  ;;  %v13627_v62 = vsel %vm5871_vm10, %v5955_v12, %v5931_v32  ;;  %v895_v23 = vpop.permute.xlu0 %894 }
 0x5d3   : > { %8642 = vcosq.f32 %v5853_v37  ;;  %v5989_v19 = vshrl.u32 %v15256_v0, %v5988_v48  ;;  %v6004_v13 = vor.u32 %v6003_v59, %v6002_v50  ;;  %vm13632_vm9 = vcmp.le.f32.partialorder %v5869_v30, 0.7853982 }
 0x5d4   : > { %8644 = vsinq.f32 %v5853_v37  ;;  %v8077_v56 = vadd.s32 4294967294, %v5937_v1  ;;  %vm6005_vm12 = vcmp.lt.s32.totalorder %v13604_v18, 1  ;;  %vm6007_vm11 = vcmp.lt.s32.totalorder %v13604_v18, 3 }
 0x5d5   : > { %vm6008_vm13 = vcmp.lt.s32.totalorder %v13604_v18, 4  ;;  %v6013_v11 = vsel %vm6005_vm12, %v5992_v38, %v5995_v4  ;;  %v6017_v46 = vsel %vm6005_vm12, %v5995_v4, %v5998_v47  ;;  %vm5864_vm0 = vcmp.eq.s32.totalorder %v13594_v58, 2 }
 0x5d6   : > { %v6010_v3 = vsel %vm6008_vm13, %v5998_v47, 2102212464  ;;  %v6014_v32 = vsel %vm6008_vm13, %v6001_v31, 920167782  ;;  %vm8078_vm15 = vcmp.lt.s32.totalorder %v8077_v56, 0  ;;  %vm6006_vm14 = vcmp.lt.s32.totalorder %v13604_v18, 2 }
 0x5d7   : > { %v6015_v30 = vsel %vm6007_vm11, %v5998_v47, %v6014_v32  ;;  %v6018_v33 = vsel %vm6008_vm13, %v6004_v13, 1326507024  ;;  %vm5861_vm1 = vcmp.eq.s32.totalorder %v13594_v58, 0  ;;  %v5940_v2 = vsel %vm8078_vm15, 0, %v8077_v56 }
 0x5d8   : > { %v6009_v5 = vsel %vm6005_vm12, %v5989_v19, %v5992_v38  ;;  %v6016_v42 = vsel %vm6006_vm14, %v6013_v11, %v6015_v30  ;;  %v6019_v26 = vsel %vm6007_vm11, %v6001_v31, %v6018_v33  ;;  %vm5860_vm2 = vcmp.lt.s32.totalorder %v13594_v58, 2 }
 0x5d9   : > { %v5941_v51 = vsub.s32 32, %v5940_v2  ;;  %v5945_v10 = vsub.s32 4294967266, %v5940_v2  ;;  %v6011_v48 = vsel %vm6007_vm11, %v5995_v4, %v6010_v3  ;;  %v6020_v22 = vsel %vm6006_vm14, %v6017_v46, %v6019_v26 }
 0x5da   : > { %vm5857_vm3 = vweird.f32 %v13305_v34  ;;  %v13655_v12 = vmul.u32.u64.low %v13623_v57, %v6020_v22  ;;  %v13656_v16 = vmul.u32.u64.high %v13623_v57, %v6020_v22, %v13655_v12  ;;  %v5942_v25 = vshll.u32 %v13602_v45, %v5940_v2 }
 0x5db   : > { %v13659_v35 = vmul.u32.u64.low %v13623_v57, %v6016_v42  ;;  %v13660_v15 = vmul.u32.u64.high %v13623_v57, %v6016_v42, %v13659_v35  ;;  %v5943_v6 = vshrl.u32 %v13599_v60, %v5941_v51  ;;  %v5946_v7 = vadd.s32 127, %v5945_v10 }
 0x5dc   : > { %vm6088_vm4 = vcmp.gt.s32.totalorder %v6087_v49, 0  ;;  %v6012_v38 = vsel %vm6006_vm14, %v6009_v5, %v6011_v48  ;;  %v6084_v36 = vand.u32 8388607, %v6077_v8  ;;  %v1006_v14 = vmul.f32 %v13288_v55, %v895_v23 }
 0x5dd   : > { %v6089_v54 = vsel %vm6088_vm4, %v6087_v49, 0  ;;  %v8643_v28 = vpop.eup %8642  ;;  %v5944_v63 = vor.u32 %v5943_v6, %v5942_v25  ;;  %v5947_v4 = vshll.u32 %v5946_v7, 23  ;;  %v13671_v37 = vmul.f32 %v13288_v55, %v899_v21 }
 0x5de   : > { %v6091_v50 = vand.u32 31, %v6089_v54  ;;  %v8645_v45 = vpop.eup %8644  ;;  %v5865_v60 = vxor.u32 2147483648, %v8643_v28  ;;  %v5958_v18 = vsel %vm13632_vm9, 0, %v13627_v62  ;;  %vm6030_vm5 = vc.u32 %v13656_v16, %v13659_v35 }
 0x5df   : > { %v6031_v47 = vadd.s32 1, %v13660_v15  ;;  %v5862_v31 = vxor.u32 2147483648, %v8645_v45  ;;  %v5948_v59 = vor.u32 4788187, %v5947_v4  ;;  %v6028_v1 = vmul.u32 %v13623_v57, %v6012_v38 }
 0x5e0   : > { %v6092_v49 = vsub.s32 32, %v6091_v50  ;;  %v5866_v55 = vsel %vm5864_vm0, %v5865_v60, %v8645_v45  ;;  %v6085_v13 = vor.u32 8388608, %v6084_v36  ;;  %v13684_v56 = vadd.f32 %v1006_v14, %v13584_v40 }
 0x5e1   : > { %v6032_v19 = vsel %vm6030_vm5, %v6031_v47, %v13660_v15  ;;  %v5863_v62 = vsel %vm5861_vm1, %v8643_v28, %v5862_v31  ;;  %v5949_v3 = vand.u32 2147483647, %v5948_v59  ;;  %v5951_v11 = vcvt.s32.f32 %v5944_v63 }
 0x5e2   : > { %v6033_v32 = vadd.s32 %v6032_v19, %v6028_v1  ;;  %v5867_v57 = vsel %vm5860_vm2, %v5863_v62, %v5866_v55  ;;  %v5962_v46 = vadd.s32 3, %v5958_v18  ;;  %v6095_v30 = vshrl.u32 %v15257_v39, %v6092_v49 }
 0x5e3   : > { %v6098_v33 = vshrl.u32 %v15258_v27, %v6092_v49  ;;  %v5868_v2 = vsel %vm5857_vm3, nan, %v5867_v57  ;;  %v5952_v5 = vmul.f32 %v5951_v11, %v5949_v3  ;;  %v6101_v42 = vshrl.u32 %v15259_v44, %v6092_v49  ;;  %v13727_v57 = vld [vmem:[%s15172_s2] ss:$0 sm:$0xff] }
 0x5e4   : > { %v6034_v40 = vadd.s32 536870912, %v6033_v32  ;;  %7786 = vst [vmem:[%s9666_s10 + $0x168] sm:$0xff] %v5868_v2  ;;  %v6090_v26 = vshrl.u32 %v6089_v54, 5  ;;  %v6094_v51 = vshll.u32 %v15256_v0, %v6091_v50  ;;  %v6097_v10 = vshll.u32 %v15257_v39, %v6091_v50 }
 0x5e5   : > { %v6104_v58 = vshrl.u32 %v15260_v53, %v6092_v49  ;;  %v5953_v48 = vxor.u32 2147483648, %v5952_v5  ;;  %v6100_v23 = vshll.u32 %v15258_v27, %v6091_v50  ;;  %v6103_v12 = vshll.u32 %v15259_v44, %v6091_v50 }
 0x5e6   : > { %v6035_v22 = vshrl.u32 %v6034_v40, 30  ;;  %v6096_v34 = vor.u32 %v6095_v30, %v6094_v51  ;;  %v6099_v15 = vor.u32 %v6098_v33, %v6097_v10  ;;  %v6106_v21 = vshll.u32 %v15260_v53, %v6091_v50 }
 0x5e7   : > { %v6107_v25 = vshrl.u32 %v15261_v41, %v6092_v49  ;;  %v5954_v6 = vsel %vm5871_vm10, %v5953_v48, %v5952_v5  ;;  %v6102_v38 = vor.u32 %v6101_v42, %v6100_v23  ;;  %v6105_v36 = vor.u32 %v6104_v58, %v6103_v12 }
 0x5e8   : > { %v6036_v7 = vshll.u32 %v6035_v22, 30  ;;  %v5957_v54 = vsel %vm13632_vm9, %v13364_v17, %v5954_v6  ;;  %v13708_v14 = vand.u32 3, %v5962_v46  ;;  %v13710_v63 = vshll.u32 %v6085_v13, 8 }
 0x5e9   : > { %v6108_v28 = vor.u32 %v6107_v25, %v6106_v21  ;;  %8646 = vcosq.f32 %v5957_v54  ;;  %v6093_v50 = vshrl.u32 %v15256_v0, %v6092_v49  ;;  %vm6109_vm6 = vcmp.lt.s32.totalorder %v6090_v26, 1 }
 0x5ea   : > { %v13712_v4 = vsub.s32 %v6033_v32, %v6036_v7  ;;  %8648 = vsinq.f32 %v5957_v54  ;;  %vm6110_vm7 = vcmp.lt.s32.totalorder %v6090_v26, 2  ;;  %vm6112_vm8 = vcmp.lt.s32.totalorder %v6090_v26, 4 }
 0x5eb   : > { %v6117_v45 = vsel %vm6109_vm6, %v6096_v34, %v6099_v15  ;;  %vm6111_vm10 = vcmp.lt.s32.totalorder %v6090_v26, 3  ;;  %v6114_v61 = vsel %vm6112_vm8, %v6102_v38, 2102212464  ;;  %v6118_v18 = vsel %vm6112_vm8, %v6105_v36, 920167782 }
 0x5ec   : > { %v6039_v60 = vsub.s32 0, %v13712_v4  ;;  %v6059_v47 = vsub.s32 4, %v6035_v22  ;;  %v6119_v31 = vsel %vm6111_vm10, %v6102_v38, %v6118_v18  ;;  %v6121_v59 = vsel %vm6109_vm6, %v6099_v15, %v6102_v38 }
 0x5ed   : > { %v6122_v1 = vsel %vm6112_vm8, %v6108_v28, 1326507024  ;;  %v6113_v19 = vsel %vm6109_vm6, %v6093_v50, %v6096_v34  ;;  %v6120_v13 = vsel %vm6110_vm7, %v6117_v45, %v6119_v31  ;;  %v6115_v62 = vsel %vm6111_vm10, %v6099_v15, %v6114_v61 }
 0x5ee   : > { %v8080_v55 = vmin.u32 %v6039_v60, %v13712_v4  ;;  %v6123_v49 = vsel %vm6111_vm10, %v6105_v36, %v6122_v1  ;;  %v13720_v11 = vmul.u32.u64.low %v13710_v63, %v6120_v13  ;;  %v13721_v32 = vmul.u32.u64.high %v13710_v63, %v6120_v13, %v13720_v11 }
 0x5ef   : > { %v6124_v3 = vsel %vm6110_vm7, %v6121_v59, %v6123_v49  ;;  %v682_v46 = vadd.f32 %v13727_v57, %v13592_v29  ;;  %vm13733_vm9 = vcmp.le.f32.partialorder %v5973_v9, 0.7853982  ;;  %vm5975_vm12 = vcmp.lt.s32.totalorder %v13497_v43, 0 }
 0x5f0   : > { %v6041_v33 = vclz %v8080_v55  ;;  %v6060_v2 = vsel %vm5975_vm12, %v6059_v47, %v6035_v22  ;;  %v13741_v5 = vmul.u32.u64.low %v13710_v63, %v6124_v3  ;;  %v13742_v40 = vmul.u32.u64.high %v13710_v63, %v6124_v3, %v13741_v5 }
 0x5f1   : > { %v6184_v42 = vand.u32 2139095040, %v13684_v56  ;;  %vm5964_vm11 = vcmp.lt.s32.totalorder %v13708_v14, 2  ;;  %v6116_v9 = vsel %vm6110_vm7, %v6113_v19, %v6115_v62  ;;  %v13748_v51 = vadd.f32 %v13671_v37, %v682_v46  ;;  %v15399_v62 = vld [vmem:[#allocation47_spill] sm:$0xff] }
 0x5f2   : > { %v8081_v29 = vadd.s32 4294967294, %v6041_v33  ;;  %vm5965_vm13 = vcmp.eq.s32.totalorder %v13708_v14, 0  ;;  %vm5968_vm0 = vcmp.eq.s32.totalorder %v13708_v14, 2  ;;  %v6135_v10 = vadd.s32 1, %v13721_v32  ;;  %v15398_v14 = vld [vmem:[#allocation46_spill] sm:$0xff] }
 0x5f3   : > { %v6185_v58 = vshrl.u32 %v6184_v42, 23  ;;  %v8647_v48 = vpop.eup %8646  ;;  %v6029_v22 = vadd.s32 %v13659_v35, %v13656_v16  ;;  %v6062_v23 = vsel %vm13733_vm9, 0, %v6060_v2  ;;  %v6181_v26 = vand.u32 2147483647, %v13684_v56 }
 0x5f4   : > { %vm8082_vm15 = vcmp.lt.s32.totalorder %v8081_v29, 0  ;;  %v8649_v12 = vpop.eup %8648  ;;  %v5969_v37 = vxor.u32 2147483648, %v8647_v48  ;;  %v6132_v15 = vmul.u32 %v13710_v63, %v6116_v9  ;;  %vm6134_vm14 = vc.u32 %v13742_v40, %v13720_v11 }
 0x5f5   : > { %v6044_v34 = vsel %vm8082_vm15, 0, %v8081_v29  ;;  %v5966_v21 = vxor.u32 2147483648, %v8649_v12  ;;  %v6288_v7 = vand.u32 2139095040, %v13748_v51  ;;  %v6136_v38 = vsel %vm6134_vm14, %v6135_v10, %v13721_v32 }
 0x5f6   : > { %v6045_v25 = vsub.s32 32, %v6044_v34  ;;  %v6049_v6 = vsub.s32 4294967266, %v6044_v34  ;;  %v5970_v16 = vsel %vm5968_vm0, %v5969_v37, %v8649_v12  ;;  %v6046_v35 = vshll.u32 %v13712_v4, %v6044_v34 }
 0x5f7   : > { %v8087_v36 = vadd.s32 4294967169, %v6185_v58  ;;  %v5967_v54 = vsel %vm5965_vm13, %v8647_v48, %v5966_v21  ;;  %v6137_v50 = vadd.s32 %v6136_v38, %v6132_v15  ;;  %vm5961_vm1 = vweird.f32 %v13364_v17 }
 0x5f8   : > { %v6047_v28 = vshrl.u32 %v6029_v22, %v6045_v25  ;;  %v6050_v63 = vadd.s32 127, %v6049_v6  ;;  %v5971_v45 = vsel %vm5964_vm11, %v5967_v54, %v5970_v16  ;;  %v6066_v60 = vadd.s32 3, %v6062_v23 }
 0x5f9   : > { %v6191_v61 = vadd.s32 1, %v8087_v36  ;;  %v5972_v18 = vsel %vm5961_vm1, nan, %v5971_v45  ;;  %v6138_v4 = vadd.s32 536870912, %v6137_v50  ;;  %v6188_v59 = vand.u32 8388607, %v6181_v26 }
 0x5fa   : > { %v6048_v47 = vor.u32 %v6047_v28, %v6046_v35  ;;  %v6051_v31 = vshll.u32 %v6050_v63, 23  ;;  %7787 = vst [vmem:[%s9666_s10 + $0x170] sm:$0xff] %v5972_v18  ;;  %v6289_v13 = vshrl.u32 %v6288_v7, 23  ;;  %v13776_v17 = vadd.f32 %v13727_v57, %v13588_v52 }
 0x5fb   : > { %vm6192_vm2 = vcmp.gt.s32.totalorder %v6191_v61, 0  ;;  %v6139_v55 = vshrl.u32 %v6138_v4, 30  ;;  %v13780_v49 = vmul.f32 %v13397_v20, %v15398_v14  ;;  %v13784_v3 = vmul.f32 %v13397_v20, %v15399_v62 }
 0x5fc   : > { %v6052_v1 = vor.u32 4788187, %v6051_v31  ;;  %v6193_v19 = vsel %vm6192_vm2, %v6191_v61, 0  ;;  %v6055_v33 = vcvt.s32.f32 %v6048_v47  ;;  %v13786_v2 = vand.u32 3, %v6066_v60 }
 0x5fd   : > { %v6195_v32 = vand.u32 31, %v6193_v19  ;;  %vm6079_vm3 = vcmp.lt.s32.totalorder %v13556_v24, 0  ;;  %v6140_v5 = vshll.u32 %v6139_v55, 30  ;;  %v13791_v52 = vadd.s32 %v13720_v11, %v13742_v40 }
 0x5fe   : > { %v6053_v46 = vand.u32 2147483647, %v6052_v1  ;;  %v6189_v42 = vor.u32 8388608, %v6188_v59  ;;  %v6285_v9 = vand.u32 2147483647, %v13748_v51  ;;  %v13796_v20 = vshrl.u32 %v6193_v19, 5 }
 0x5ff   : > { %v6196_v29 = vsub.s32 32, %v6195_v32  ;;  %v13794_v58 = vsub.s32 %v6137_v50, %v6140_v5  ;;  %v8091_v48 = vadd.s32 4294967169, %v6289_v13  ;;  %v6163_v22 = vsub.s32 4, %v6139_v55 }
 0x600   : > { %v6056_v10 = vmul.f32 %v6055_v33, %v6053_v46  ;;  %v6198_v23 = vshll.u32 %v15256_v0, %v6195_v32  ;;  %v6201_v40 = vshll.u32 %v15257_v39, %v6195_v32  ;;  %v6204_v25 = vshll.u32 %v15258_v27, %v6195_v32 }
 0x601   : > { %v6199_v12 = vshrl.u32 %v15257_v39, %v6196_v29  ;;  %v6202_v37 = vshrl.u32 %v15258_v27, %v6196_v29  ;;  %v6143_v11 = vsub.s32 0, %v13794_v58  ;;  %v6205_v15 = vshrl.u32 %v15259_v44, %v6196_v29 }
 0x602   : > { %v6057_v34 = vxor.u32 2147483648, %v6056_v10  ;;  %v6207_v6 = vshll.u32 %v15259_v44, %v6195_v32  ;;  %v6208_v7 = vshrl.u32 %v15260_v53, %v6196_v29  ;;  %v6210_v36 = vshll.u32 %v15260_v53, %v6195_v32 }
 0x603   : > { %v6200_v21 = vor.u32 %v6199_v12, %v6198_v23  ;;  %v8084_v35 = vmin.u32 %v6143_v11, %v13794_v58  ;;  %v6203_v38 = vor.u32 %v6202_v37, %v6201_v40  ;;  %v6206_v28 = vor.u32 %v6205_v15, %v6204_v25  ;;  %v907_v37 = vpop.permute.xlu1 %906 }
 0x604   : > { %v6058_v16 = vsel %vm5975_vm12, %v6057_v34, %v6056_v10  ;;  %v6209_v63 = vor.u32 %v6208_v7, %v6207_v6  ;;  %v6211_v50 = vshrl.u32 %v15261_v41, %v6196_v29  ;;  %v13815_v60 = vshll.u32 %v6189_v42, 8  ;;  %v903_v10 = vpop.permute.xlu0 %902  ;;  %v13864_v6 = vld [vmem:[%s15171_s1 + $0x1] ss:$0 sm:$0xff] }
 0x605   : > { %v6061_v54 = vsel %vm13733_vm9, %v13497_v43, %v6058_v16  ;;  %v6145_v45 = vclz %v8084_v35  ;;  %v6295_v61 = vadd.s32 1, %v8091_v48  ;;  %v13819_v18 = vsel %vm6079_vm3, %v6163_v22, %v6139_v55 }
 0x606   : > { %8650 = vcosq.f32 %v6061_v54  ;;  %v6197_v47 = vshrl.u32 %v15256_v0, %v6196_v29  ;;  %v6212_v31 = vor.u32 %v6211_v50, %v6210_v36  ;;  %vm13824_vm4 = vcmp.le.f32.partialorder %v6077_v8, 0.7853982 }
 0x607   : > { %8652 = vsinq.f32 %v6061_v54  ;;  %v8085_v4 = vadd.s32 4294967294, %v6145_v45  ;;  %vm6213_vm5 = vcmp.lt.s32.totalorder %v13796_v20, 1  ;;  %vm6215_vm6 = vcmp.lt.s32.totalorder %v13796_v20, 3 }
 0x608   : > { %vm6216_vm7 = vcmp.lt.s32.totalorder %v13796_v20, 4  ;;  %v6221_v1 = vsel %vm6213_vm5, %v6200_v21, %v6203_v38  ;;  %v6225_v19 = vsel %vm6213_vm5, %v6203_v38, %v6206_v28  ;;  %vm6072_vm8 = vcmp.eq.s32.totalorder %v13786_v2, 2 }
 0x609   : > { %v6218_v59 = vsel %vm6216_vm7, %v6206_v28, 2102212464  ;;  %v6222_v55 = vsel %vm6216_vm7, %v6209_v63, 920167782  ;;  %vm8086_vm10 = vcmp.lt.s32.totalorder %v8085_v4, 0  ;;  %vm6214_vm9 = vcmp.lt.s32.totalorder %v13796_v20, 2 }
 0x60a   : > { %v6223_v8 = vsel %vm6215_vm6, %v6206_v28, %v6222_v55  ;;  %v6226_v13 = vsel %vm6216_vm7, %v6212_v31, 1326507024  ;;  %vm6069_vm12 = vcmp.eq.s32.totalorder %v13786_v2, 0  ;;  %v6148_v14 = vsel %vm8086_vm10, 0, %v8085_v4 }
 0x60b   : > { %v6217_v62 = vsel %vm6213_vm5, %v6197_v47, %v6200_v21  ;;  %v6224_v32 = vsel %vm6214_vm9, %v6221_v1, %v6223_v8  ;;  %v6227_v46 = vsel %vm6215_vm6, %v6209_v63, %v6226_v13  ;;  %vm6068_vm11 = vcmp.lt.s32.totalorder %v13786_v2, 2 }
 0x60c   : > { %v6149_v33 = vsub.s32 32, %v6148_v14  ;;  %v6153_v5 = vsub.s32 4294967266, %v6148_v14  ;;  %v6219_v42 = vsel %vm6215_vm6, %v6203_v38, %v6218_v59  ;;  %v6228_v29 = vsel %vm6214_vm9, %v6225_v19, %v6227_v46 }
 0x60d   : > { %vm6065_vm13 = vweird.f32 %v13497_v43  ;;  %v13847_v48 = vmul.u32.u64.low %v13815_v60, %v6228_v29  ;;  %v13848_v22 = vmul.u32.u64.high %v13815_v60, %v6228_v29, %v13847_v48  ;;  %v6150_v34 = vshll.u32 %v13794_v58, %v6148_v14 }
 0x60e   : > { %v13851_v23 = vmul.u32.u64.low %v13815_v60, %v6224_v32  ;;  %v13852_v12 = vmul.u32.u64.high %v13815_v60, %v6224_v32, %v13851_v23  ;;  %v6151_v11 = vshrl.u32 %v13791_v52, %v6149_v33  ;;  %v6154_v40 = vadd.s32 127, %v6153_v5 }
 0x60f   : > { %vm6296_vm0 = vcmp.gt.s32.totalorder %v6295_v61, 0  ;;  %v6220_v15 = vsel %vm6214_vm9, %v6217_v62, %v6219_v42  ;;  %v6292_v21 = vand.u32 8388607, %v6285_v9  ;;  %v1008_v7 = vmul.f32 %v13864_v6, %v903_v10 }
 0x610   : > { %v6297_v25 = vsel %vm6296_vm0, %v6295_v61, 0  ;;  %v8651_v16 = vpop.eup %8650  ;;  %v6152_v58 = vor.u32 %v6151_v11, %v6150_v34  ;;  %v6155_v35 = vshll.u32 %v6154_v40, 23  ;;  %v13868_v38 = vmul.f32 %v13864_v6, %v907_v37 }
 0x611   : > { %v6299_v52 = vand.u32 31, %v6297_v25  ;;  %v8653_v20 = vpop.eup %8652  ;;  %v6073_v36 = vxor.u32 2147483648, %v8651_v16  ;;  %v6166_v54 = vsel %vm13824_vm4, 0, %v13819_v18  ;;  %vm6238_vm15 = vc.u32 %v13848_v22, %v13851_v23 }
 0x612   : > { %v6239_v28 = vadd.s32 1, %v13852_v12  ;;  %v6070_v63 = vxor.u32 2147483648, %v8653_v20  ;;  %v6156_v50 = vor.u32 4788187, %v6155_v35  ;;  %v6236_v45 = vmul.u32 %v13815_v60, %v6220_v15 }
 0x613   : > { %v6300_v61 = vsub.s32 32, %v6299_v52  ;;  %v6074_v47 = vsel %vm6072_vm8, %v6073_v36, %v8653_v20  ;;  %v6293_v4 = vor.u32 8388608, %v6292_v21  ;;  %v13881_v59 = vadd.f32 %v1008_v7, %v13776_v17 }
 0x614   : > { %v6240_v31 = vsel %vm6238_vm15, %v6239_v28, %v13852_v12  ;;  %v6071_v18 = vsel %vm6069_vm12, %v8651_v16, %v6070_v63  ;;  %v6157_v1 = vand.u32 2147483647, %v6156_v50  ;;  %v6159_v55 = vcvt.s32.f32 %v6152_v58 }
 0x615   : > { %v6241_v19 = vadd.s32 %v6240_v31, %v6236_v45  ;;  %v6075_v60 = vsel %vm6068_vm11, %v6071_v18, %v6074_v47  ;;  %v6170_v8 = vadd.s32 3, %v6166_v54  ;;  %v6303_v13 = vshrl.u32 %v15257_v39, %v6300_v61 }
 0x616   : > { %v6306_v14 = vshrl.u32 %v15258_v27, %v6300_v61  ;;  %v6076_v62 = vsel %vm6065_vm13, nan, %v6075_v60  ;;  %v6160_v32 = vmul.f32 %v6159_v55, %v6157_v1  ;;  %v6309_v46 = vshrl.u32 %v15259_v44, %v6300_v61 }
 0x617   : > { %v6242_v17 = vadd.s32 536870912, %v6241_v19  ;;  %7788 = vst [vmem:[%s9666_s10 + $0x178] sm:$0xff] %v6076_v62  ;;  %v6298_v33 = vshrl.u32 %v6297_v25, 5  ;;  %v6302_v5 = vshll.u32 %v15256_v0, %v6299_v52  ;;  %v6305_v42 = vshll.u32 %v15257_v39, %v6299_v52 }
 0x618   : > { %v6312_v2 = vshrl.u32 %v15260_v53, %v6300_v61  ;;  %v6161_v29 = vxor.u32 2147483648, %v6160_v32  ;;  %v6308_v48 = vshll.u32 %v15258_v27, %v6299_v52  ;;  %v6311_v12 = vshll.u32 %v15259_v44, %v6299_v52 }
 0x619   : > { %v6243_v10 = vshrl.u32 %v6242_v17, 30  ;;  %v6304_v43 = vor.u32 %v6303_v13, %v6302_v5  ;;  %v6307_v37 = vor.u32 %v6306_v14, %v6305_v42  ;;  %v6314_v34 = vshll.u32 %v15260_v53, %v6299_v52 }
 0x61a   : > { %v6315_v11 = vshrl.u32 %v15261_v41, %v6300_v61  ;;  %v6162_v40 = vsel %vm6079_vm3, %v6161_v29, %v6160_v32  ;;  %v6310_v21 = vor.u32 %v6309_v46, %v6308_v48  ;;  %v6313_v25 = vor.u32 %v6312_v2, %v6311_v12 }
 0x61b   : > { %v6244_v15 = vshll.u32 %v6243_v10, 30  ;;  %v6165_v7 = vsel %vm13824_vm4, %v13556_v24, %v6162_v40  ;;  %v13905_v16 = vand.u32 3, %v6170_v8  ;;  %v13907_v35 = vshll.u32 %v6293_v4, 8 }
 0x61c   : > { %v6316_v58 = vor.u32 %v6315_v11, %v6314_v34  ;;  %8654 = vcosq.f32 %v6165_v7  ;;  %v6301_v52 = vshrl.u32 %v15256_v0, %v6300_v61  ;;  %vm6317_vm14 = vcmp.lt.s32.totalorder %v6298_v33, 1 }
 0x61d   : > { %v13909_v20 = vsub.s32 %v6241_v19, %v6244_v15  ;;  %8656 = vsinq.f32 %v6165_v7  ;;  %vm6318_vm1 = vcmp.lt.s32.totalorder %v6298_v33, 2  ;;  %vm6320_vm2 = vcmp.lt.s32.totalorder %v6298_v33, 4 }
 0x61e   : > { %v6325_v36 = vsel %vm6317_vm14, %v6304_v43, %v6307_v37  ;;  %vm6319_vm3 = vcmp.lt.s32.totalorder %v6298_v33, 3  ;;  %v6322_v30 = vsel %vm6320_vm2, %v6310_v21, 2102212464  ;;  %v6326_v28 = vsel %vm6320_vm2, %v6313_v25, 920167782 }
 0x61f   : > { %v6247_v54 = vsub.s32 0, %v13909_v20  ;;  %v6267_v63 = vsub.s32 4, %v6243_v10  ;;  %v6327_v50 = vsel %vm6319_vm3, %v6310_v21, %v6326_v28  ;;  %v6329_v45 = vsel %vm6317_vm14, %v6307_v37, %v6310_v21 }
 0x620   : > { %v6330_v47 = vsel %vm6320_vm2, %v6316_v58, 1326507024  ;;  %v6321_v4 = vsel %vm6317_vm14, %v6301_v52, %v6304_v43  ;;  %v6328_v18 = vsel %vm6318_vm1, %v6325_v36, %v6327_v50  ;;  %v6323_v1 = vsel %vm6319_vm3, %v6307_v37, %v6322_v30 }
 0x621   : > { %v8088_v31 = vmin.u32 %v6247_v54, %v13909_v20  ;;  %v6331_v61 = vsel %vm6319_vm3, %v6313_v25, %v6330_v47  ;;  %v13917_v19 = vmul.u32.u64.low %v13907_v35, %v6328_v18  ;;  %v13918_v60 = vmul.u32.u64.high %v13907_v35, %v6328_v18, %v13917_v19 }
 0x622   : > { %v6332_v55 = vsel %vm6318_vm1, %v6329_v45, %v6331_v61  ;;  %v684_v8 = vadd.f32 %v13727_v57, %v13784_v3  ;;  %vm13925_vm4 = vcmp.le.f32.partialorder %v6181_v26, 0.7853982  ;;  %vm6183_vm5 = vcmp.lt.s32.totalorder %v13684_v56, 0  ;;  %v15404_v61 = vld [vmem:[#allocation48_spill] sm:$0xff] }
 0x623   : > { %v6249_v14 = vclz %v8088_v31  ;;  %v6268_v62 = vsel %vm6183_vm5, %v6267_v63, %v6243_v10  ;;  %v13933_v32 = vmul.u32.u64.low %v13907_v35, %v6332_v55  ;;  %v13934_v17 = vmul.u32.u64.high %v13907_v35, %v6332_v55, %v13933_v32  ;;  %v15405_v55 = vld [vmem:[#allocation49_spill] sm:$0xff] }
 0x624   : > { %v6392_v46 = vand.u32 2139095040, %v13881_v59  ;;  %vm6172_vm6 = vcmp.lt.s32.totalorder %v13905_v16, 2  ;;  %v6324_v26 = vsel %vm6318_vm1, %v6321_v4, %v6323_v1  ;;  %v13940_v5 = vadd.f32 %v13868_v38, %v684_v8 }
 0x625   : > { %v8089_v3 = vadd.s32 4294967294, %v6249_v14  ;;  %vm6173_vm7 = vcmp.eq.s32.totalorder %v13905_v16, 0  ;;  %vm6176_vm8 = vcmp.eq.s32.totalorder %v13905_v16, 2  ;;  %v6343_v42 = vadd.s32 1, %v13918_v60  ;;  %v13973_v16 = vld [vmem:[%s15171_s1] ss:$0 sm:$0xff] }
 0x626   : > { %v6393_v2 = vshrl.u32 %v6392_v46, 23  ;;  %v8655_v29 = vpop.eup %8654  ;;  %v6237_v10 = vadd.s32 %v13851_v23, %v13848_v22  ;;  %v6270_v48 = vsel %vm13925_vm4, 0, %v6268_v62  ;;  %v6389_v33 = vand.u32 2147483647, %v13881_v59 }
 0x627   : > { %vm8090_vm10 = vcmp.lt.s32.totalorder %v8089_v3, 0  ;;  %v8657_v12 = vpop.eup %8656  ;;  %v6177_v38 = vxor.u32 2147483648, %v8655_v29  ;;  %v6340_v37 = vmul.u32 %v13907_v35, %v6324_v26  ;;  %vm6342_vm9 = vc.u32 %v13934_v17, %v13917_v19 }
 0x628   : > { %v6252_v43 = vsel %vm8090_vm10, 0, %v8089_v3  ;;  %v6174_v34 = vxor.u32 2147483648, %v8657_v12  ;;  %v6496_v15 = vand.u32 2139095040, %v13940_v5  ;;  %v6344_v21 = vsel %vm6342_vm9, %v6343_v42, %v13918_v60 }
 0x629   : > { %v6253_v11 = vsub.s32 32, %v6252_v43  ;;  %v6257_v40 = vsub.s32 4294967266, %v6252_v43  ;;  %v6178_v22 = vsel %vm6176_vm8, %v6177_v38, %v8657_v12  ;;  %v6254_v23 = vshll.u32 %v13909_v20, %v6252_v43 }
 0x62a   : > { %v8095_v25 = vadd.s32 4294967169, %v6393_v2  ;;  %v6175_v7 = vsel %vm6173_vm7, %v8655_v29, %v6174_v34  ;;  %v6345_v52 = vadd.s32 %v6344_v21, %v6340_v37  ;;  %vm6169_vm12 = vweird.f32 %v13556_v24 }
 0x62b   : > { %v6255_v58 = vshrl.u32 %v6237_v10, %v6253_v11  ;;  %v6258_v35 = vadd.s32 127, %v6257_v40  ;;  %v6179_v36 = vsel %vm6172_vm6, %v6175_v7, %v6178_v22  ;;  %v6274_v54 = vadd.s32 3, %v6270_v48 }
 0x62c   : > { %v6399_v30 = vadd.s32 1, %v8095_v25  ;;  %v6180_v28 = vsel %vm6169_vm12, nan, %v6179_v36  ;;  %v6346_v20 = vadd.s32 536870912, %v6345_v52  ;;  %v6396_v45 = vand.u32 8388607, %v6389_v33 }
 0x62d   : > { %v6256_v63 = vor.u32 %v6255_v58, %v6254_v23  ;;  %v6259_v50 = vshll.u32 %v6258_v35, 23  ;;  %7789 = vst [vmem:[%s9666_s10 + $0x180] sm:$0xff] %v6180_v28  ;;  %v6497_v18 = vshrl.u32 %v6496_v15, 23  ;;  %v13968_v24 = vadd.f32 %v13727_v57, %v13780_v49 }
 0x62e   : > { %vm6400_vm11 = vcmp.gt.s32.totalorder %v6399_v30, 0  ;;  %v6347_v31 = vshrl.u32 %v6346_v20, 30  ;;  %v13977_v1 = vmul.f32 %v13973_v16, %v15404_v61  ;;  %v13981_v60 = vmul.f32 %v13973_v16, %v15405_v55 }
 0x62f   : > { %v6260_v47 = vor.u32 4788187, %v6259_v50  ;;  %v6401_v4 = vsel %vm6400_vm11, %v6399_v30, 0  ;;  %v6263_v62 = vcvt.s32.f32 %v6256_v63  ;;  %v13983_v32 = vand.u32 3, %v6274_v54 }
 0x630   : > { %v6403_v8 = vand.u32 31, %v6401_v4  ;;  %vm6287_vm13 = vcmp.lt.s32.totalorder %v13748_v51, 0  ;;  %v6348_v49 = vshll.u32 %v6347_v31, 30  ;;  %v13988_v46 = vadd.s32 %v13917_v19, %v13934_v17 }
 0x631   : > { %v6261_v14 = vand.u32 2147483647, %v6260_v47  ;;  %v6397_v3 = vor.u32 8388608, %v6396_v45  ;;  %v6493_v42 = vand.u32 2147483647, %v13940_v5  ;;  %v13993_v10 = vshrl.u32 %v6401_v4, 5 }
 0x632   : > { %v6404_v26 = vsub.s32 32, %v6403_v8  ;;  %v13991_v29 = vsub.s32 %v6345_v52, %v6348_v49  ;;  %v8099_v48 = vadd.s32 4294967169, %v6497_v18  ;;  %v6371_v12 = vsub.s32 4, %v6347_v31 }
 0x633   : > { %v6264_v2 = vmul.f32 %v6263_v62, %v6261_v14  ;;  %v6406_v38 = vshll.u32 %v15256_v0, %v6403_v8  ;;  %v6409_v17 = vshll.u32 %v15257_v39, %v6403_v8  ;;  %v6412_v15 = vshll.u32 %v15258_v27, %v6403_v8 }
 0x634   : > { %v6407_v43 = vshrl.u32 %v15257_v39, %v6404_v26  ;;  %v6410_v37 = vshrl.u32 %v15258_v27, %v6404_v26  ;;  %v6351_v19 = vsub.s32 0, %v13991_v29  ;;  %v6413_v11 = vshrl.u32 %v15259_v44, %v6404_v26 }
 0x635   : > { %v6265_v34 = vxor.u32 2147483648, %v6264_v2  ;;  %v6415_v22 = vshll.u32 %v15259_v44, %v6403_v8  ;;  %v6416_v23 = vshrl.u32 %v15260_v53, %v6404_v26  ;;  %v6418_v58 = vshll.u32 %v15260_v53, %v6403_v8 }
 0x636   : > { %v6408_v40 = vor.u32 %v6407_v43, %v6406_v38  ;;  %v8092_v25 = vmin.u32 %v6351_v19, %v13991_v29  ;;  %v6411_v7 = vor.u32 %v6410_v37, %v6409_v17  ;;  %v6414_v52 = vor.u32 %v6413_v11, %v6412_v15  ;;  %v915_v19 = vpop.permute.xlu1 %914 }
 0x637   : > { %v6266_v21 = vsel %vm6183_vm5, %v6265_v34, %v6264_v2  ;;  %v6417_v36 = vor.u32 %v6416_v23, %v6415_v22  ;;  %v6419_v54 = vshrl.u32 %v15261_v41, %v6404_v26  ;;  %v14012_v28 = vshll.u32 %v6397_v3, 8 }
 0x638   : > { %v6269_v35 = vsel %vm13925_vm4, %v13684_v56, %v6266_v21  ;;  %v6353_v30 = vclz %v8092_v25  ;;  %v6503_v63 = vadd.s32 1, %v8099_v48  ;;  %v14016_v50 = vsel %vm6287_vm13, %v6371_v12, %v6347_v31  ;;  %v911_v12 = vpop.permute.xlu0 %910 }
 0x639   : > { %8658 = vcosq.f32 %v6269_v35  ;;  %v6405_v20 = vshrl.u32 %v15256_v0, %v6404_v26  ;;  %v6420_v45 = vor.u32 %v6419_v54, %v6418_v58  ;;  %vm14021_vm0 = vcmp.le.f32.partialorder %v6285_v9, 0.7853982 }
 0x63a   : > { %8660 = vsinq.f32 %v6269_v35  ;;  %v8093_v47 = vadd.s32 4294967294, %v6353_v30  ;;  %vm6421_vm15 = vcmp.lt.s32.totalorder %v13993_v10, 1  ;;  %vm6423_vm14 = vcmp.lt.s32.totalorder %v13993_v10, 3 }
 0x63b   : > { %vm6424_vm1 = vcmp.lt.s32.totalorder %v13993_v10, 4  ;;  %v6429_v18 = vsel %vm6421_vm15, %v6408_v40, %v6411_v7  ;;  %v6433_v61 = vsel %vm6421_vm15, %v6411_v7, %v6414_v52  ;;  %vm6280_vm2 = vcmp.eq.s32.totalorder %v13983_v32, 2 }
 0x63c   : > { %v6426_v4 = vsel %vm6424_vm1, %v6414_v52, 2102212464  ;;  %v6430_v31 = vsel %vm6424_vm1, %v6417_v36, 920167782  ;;  %vm8094_vm3 = vcmp.lt.s32.totalorder %v8093_v47, 0  ;;  %vm6422_vm4 = vcmp.lt.s32.totalorder %v13993_v10, 2 }
 0x63d   : > { %v6431_v9 = vsel %vm6423_vm14, %v6414_v52, %v6430_v31  ;;  %v6434_v55 = vsel %vm6424_vm1, %v6420_v45, 1326507024  ;;  %vm6277_vm5 = vcmp.eq.s32.totalorder %v13983_v32, 0  ;;  %v6356_v8 = vsel %vm8094_vm3, 0, %v8093_v47 }
 0x63e   : > { %v6425_v14 = vsel %vm6421_vm15, %v6405_v20, %v6408_v40  ;;  %v6432_v62 = vsel %vm6422_vm4, %v6429_v18, %v6431_v9  ;;  %v6435_v49 = vsel %vm6423_vm14, %v6417_v36, %v6434_v55  ;;  %vm6276_vm6 = vcmp.lt.s32.totalorder %v13983_v32, 2 }
 0x63f   : > { %v6357_v3 = vsub.s32 32, %v6356_v8  ;;  %v6361_v26 = vsub.s32 4294967266, %v6356_v8  ;;  %v6427_v2 = vsel %vm6423_vm14, %v6411_v7, %v6426_v4  ;;  %v6436_v48 = vsel %vm6422_vm4, %v6433_v61, %v6435_v49 }
 0x640   : > { %vm6273_vm7 = vweird.f32 %v13684_v56  ;;  %v14044_v38 = vmul.u32.u64.low %v14012_v28, %v6436_v48  ;;  %v14045_v43 = vmul.u32.u64.high %v14012_v28, %v6436_v48, %v14044_v38  ;;  %v6358_v17 = vshll.u32 %v13991_v29, %v6356_v8 }
 0x641   : > { %v14048_v37 = vmul.u32.u64.low %v14012_v28, %v6432_v62  ;;  %v14049_v34 = vmul.u32.u64.high %v14012_v28, %v6432_v62, %v14048_v37  ;;  %v6359_v11 = vshrl.u32 %v13988_v46, %v6357_v3  ;;  %v6362_v40 = vadd.s32 127, %v6361_v26 }
 0x642   : > { %vm6504_vm8 = vcmp.gt.s32.totalorder %v6503_v63, 0  ;;  %v6428_v15 = vsel %vm6422_vm4, %v6425_v14, %v6427_v2  ;;  %v6500_v22 = vand.u32 8388607, %v6493_v42  ;;  %v1010_v21 = vmul.f32 %v13864_v6, %v911_v12 }
 0x643   : > { %v6505_v23 = vsel %vm6504_vm8, %v6503_v63, 0  ;;  %v8659_v25 = vpop.eup %8658  ;;  %v6360_v7 = vor.u32 %v6359_v11, %v6358_v17  ;;  %v6363_v58 = vshll.u32 %v6362_v40, 23  ;;  %v14060_v52 = vmul.f32 %v13864_v6, %v915_v19 }
 0x644   : > { %v6507_v35 = vand.u32 31, %v6505_v23  ;;  %v8661_v29 = vpop.eup %8660  ;;  %v6281_v46 = vxor.u32 2147483648, %v8659_v25  ;;  %v6374_v10 = vsel %vm14021_vm0, 0, %v14016_v50  ;;  %vm6446_vm10 = vc.u32 %v14045_v43, %v14048_v37 }
 0x645   : > { %v6447_v36 = vadd.s32 1, %v14049_v34  ;;  %v6278_v54 = vxor.u32 2147483648, %v8661_v29  ;;  %v6364_v30 = vor.u32 4788187, %v6363_v58  ;;  %v6444_v63 = vmul.u32 %v14012_v28, %v6428_v15 }
 0x646   : > { %v6508_v20 = vsub.s32 32, %v6507_v35  ;;  %v6282_v45 = vsel %vm6280_vm2, %v6281_v46, %v8661_v29  ;;  %v6501_v4 = vor.u32 8388608, %v6500_v22  ;;  %v14073_v18 = vadd.f32 %v1010_v21, %v13968_v24 }
 0x647   : > { %v6448_v47 = vsel %vm6446_vm10, %v6447_v36, %v14049_v34  ;;  %v6279_v50 = vsel %vm6277_vm5, %v8659_v25, %v6278_v54  ;;  %v6365_v31 = vand.u32 2147483647, %v6364_v30  ;;  %v6367_v61 = vcvt.s32.f32 %v6360_v7 }
 0x648   : > { %v6449_v9 = vadd.s32 %v6448_v47, %v6444_v63  ;;  %v6283_v28 = vsel %vm6276_vm6, %v6279_v50, %v6282_v45  ;;  %v6378_v55 = vadd.s32 3, %v6374_v10  ;;  %v6511_v8 = vshrl.u32 %v15257_v39, %v6508_v20 }
 0x649   : > { %v6514_v14 = vshrl.u32 %v15258_v27, %v6508_v20  ;;  %v6284_v62 = vsel %vm6273_vm7, nan, %v6283_v28  ;;  %v6368_v49 = vmul.f32 %v6367_v61, %v6365_v31  ;;  %v6517_v3 = vshrl.u32 %v15259_v44, %v6508_v20 }
 0x64a   : > { %v6450_v24 = vadd.s32 536870912, %v6449_v9  ;;  %7790 = vst [vmem:[%s9666_s10 + $0x188] sm:$0xff] %v6284_v62  ;;  %v6506_v26 = vshrl.u32 %v6505_v23, 5  ;;  %v6510_v2 = vshll.u32 %v15256_v0, %v6507_v35  ;;  %v6513_v48 = vshll.u32 %v15257_v39, %v6507_v35 }
 0x64b   : > { %v6520_v32 = vshrl.u32 %v15260_v53, %v6508_v20  ;;  %v6369_v12 = vxor.u32 2147483648, %v6368_v49  ;;  %v6516_v34 = vshll.u32 %v15258_v27, %v6507_v35  ;;  %v6519_v19 = vshll.u32 %v15259_v44, %v6507_v35 }
 0x64c   : > { %v6451_v38 = vshrl.u32 %v6450_v24, 30  ;;  %v6512_v56 = vor.u32 %v6511_v8, %v6510_v2  ;;  %v6515_v17 = vor.u32 %v6514_v14, %v6513_v48  ;;  %v6522_v11 = vshll.u32 %v15260_v53, %v6507_v35 }
 0x64d   : > { %v6523_v40 = vshrl.u32 %v15261_v41, %v6508_v20  ;;  %v6370_v15 = vsel %vm6287_vm13, %v6369_v12, %v6368_v49  ;;  %v6518_v23 = vor.u32 %v6517_v3, %v6516_v34  ;;  %v6521_v21 = vor.u32 %v6520_v32, %v6519_v19 }
 0x64e   : > { %v6452_v22 = vshll.u32 %v6451_v38, 30  ;;  %v6373_v25 = vsel %vm14021_vm0, %v13748_v51, %v6370_v15  ;;  %v14097_v7 = vand.u32 3, %v6378_v55  ;;  %v14099_v29 = vshll.u32 %v6501_v4, 8 }
 0x64f   : > { %v6524_v58 = vor.u32 %v6523_v40, %v6522_v11  ;;  %8662 = vcosq.f32 %v6373_v25  ;;  %v6509_v35 = vshrl.u32 %v15256_v0, %v6508_v20  ;;  %vm6525_vm9 = vcmp.lt.s32.totalorder %v6506_v26, 1 }
 0x650   : > { %v14101_v46 = vsub.s32 %v6449_v9, %v6452_v22  ;;  %8664 = vsinq.f32 %v6373_v25  ;;  %vm6526_vm12 = vcmp.lt.s32.totalorder %v6506_v26, 2  ;;  %vm6528_vm11 = vcmp.lt.s32.totalorder %v6506_v26, 4 }
 0x651   : > { %v6533_v10 = vsel %vm6525_vm9, %v6512_v56, %v6515_v17  ;;  %vm6527_vm13 = vcmp.lt.s32.totalorder %v6506_v26, 3  ;;  %v6530_v13 = vsel %vm6528_vm11, %v6518_v23, 2102212464  ;;  %v6534_v54 = vsel %vm6528_vm11, %v6521_v21, 920167782 }
 0x652   : > { %v6455_v36 = vsub.s32 0, %v14101_v46  ;;  %v6475_v30 = vsub.s32 4, %v6451_v38  ;;  %v6535_v63 = vsel %vm6527_vm13, %v6518_v23, %v6534_v54  ;;  %v6537_v45 = vsel %vm6525_vm9, %v6515_v17, %v6518_v23 }
 0x653   : > { %v6538_v47 = vsel %vm6528_vm11, %v6524_v58, 1326507024  ;;  %v6529_v50 = vsel %vm6525_vm9, %v6509_v35, %v6512_v56  ;;  %v6536_v31 = vsel %vm6526_vm12, %v6533_v10, %v6535_v63  ;;  %v6531_v61 = vsel %vm6527_vm13, %v6515_v17, %v6530_v13 }
 0x654   : > { %v8096_v4 = vmin.u32 %v6455_v36, %v14101_v46  ;;  %v6539_v20 = vsel %vm6527_vm13, %v6521_v21, %v6538_v47  ;;  %v14109_v28 = vmul.u32.u64.low %v14099_v29, %v6536_v31  ;;  %v14110_v55 = vmul.u32.u64.high %v14099_v29, %v6536_v31, %v14109_v28 }
 0x655   : > { %v6540_v9 = vsel %vm6526_vm12, %v6537_v45, %v6539_v20  ;;  %v686_v8 = vadd.f32 %v13727_v57, %v13981_v60  ;;  %vm14117_vm0 = vcmp.le.f32.partialorder %v6389_v33, 0.7853982  ;;  %vm6391_vm15 = vcmp.lt.s32.totalorder %v13881_v59, 0 }
 0x656   : > { %v6457_v62 = vclz %v8096_v4  ;;  %v6476_v49 = vsel %vm6391_vm15, %v6475_v30, %v6451_v38  ;;  %v14125_v24 = vmul.u32.u64.low %v14099_v29, %v6540_v9  ;;  %v14126_v3 = vmul.u32.u64.high %v14099_v29, %v6540_v9, %v14125_v24  ;;  %v15411_v9 = vld [vmem:[#allocation51_spill] sm:$0xff] }
 0x657   : > { %v6600_v2 = vand.u32 2139095040, %v14073_v18  ;;  %vm6380_vm14 = vcmp.lt.s32.totalorder %v14097_v7, 2  ;;  %v6532_v33 = vsel %vm6526_vm12, %v6529_v50, %v6531_v61  ;;  %v14132_v48 = vadd.f32 %v14060_v52, %v686_v8 }
 0x658   : > { %v8097_v60 = vadd.s32 4294967294, %v6457_v62  ;;  %vm6381_vm1 = vcmp.eq.s32.totalorder %v14097_v7, 0  ;;  %vm6384_vm2 = vcmp.eq.s32.totalorder %v14097_v7, 2  ;;  %v6551_v32 = vadd.s32 1, %v14110_v55  ;;  %v15410_v7 = vld [vmem:[#allocation50_spill] sm:$0xff] }
 0x659   : > { %v6601_v12 = vshrl.u32 %v6600_v2, 23  ;;  %v8663_v38 = vpop.eup %8662  ;;  %v6445_v34 = vadd.s32 %v14048_v37, %v14045_v43  ;;  %v6478_v19 = vsel %vm14117_vm0, 0, %v6476_v49  ;;  %v6597_v26 = vand.u32 2147483647, %v14073_v18 }
 0x65a   : > { %vm8098_vm3 = vcmp.lt.s32.totalorder %v8097_v60, 0  ;;  %v8665_v56 = vpop.eup %8664  ;;  %v6385_v52 = vxor.u32 2147483648, %v8663_v38  ;;  %v6548_v11 = vmul.u32 %v14099_v29, %v6532_v33  ;;  %vm6550_vm4 = vc.u32 %v14126_v3, %v14109_v28 }
 0x65b   : > { %v6460_v17 = vsel %vm8098_vm3, 0, %v8097_v60  ;;  %v6382_v40 = vxor.u32 2147483648, %v8665_v56  ;;  %v6704_v23 = vand.u32 2139095040, %v14132_v48  ;;  %v6552_v21 = vsel %vm6550_vm4, %v6551_v32, %v14110_v55 }
 0x65c   : > { %v6461_v15 = vsub.s32 32, %v6460_v17  ;;  %v6465_v22 = vsub.s32 4294967266, %v6460_v17  ;;  %v6386_v43 = vsel %vm6384_vm2, %v6385_v52, %v8665_v56  ;;  %v6462_v37 = vshll.u32 %v14101_v46, %v6460_v17 }
 0x65d   : > { %v8103_v25 = vadd.s32 4294967169, %v6601_v12  ;;  %v6383_v58 = vsel %vm6381_vm1, %v8663_v38, %v6382_v40  ;;  %v6553_v10 = vadd.s32 %v6552_v21, %v6548_v11  ;;  %vm6377_vm5 = vweird.f32 %v13748_v51 }
 0x65e   : > { %v6463_v29 = vshrl.u32 %v6445_v34, %v6461_v15  ;;  %v6466_v35 = vadd.s32 127, %v6465_v22  ;;  %v6387_v36 = vsel %vm6380_vm14, %v6383_v58, %v6386_v43  ;;  %v6482_v13 = vadd.s32 3, %v6478_v19 }
 0x65f   : > { %v6607_v54 = vadd.s32 1, %v8103_v25  ;;  %v6388_v30 = vsel %vm6377_vm5, nan, %v6387_v36  ;;  %v6554_v46 = vadd.s32 536870912, %v6553_v10  ;;  %v6604_v47 = vand.u32 8388607, %v6597_v26 }
 0x660   : > { %v6464_v63 = vor.u32 %v6463_v29, %v6462_v37  ;;  %v6467_v45 = vshll.u32 %v6466_v35, 23  ;;  %7791 = vst [vmem:[%s9666_s10 + $0x190] sm:$0xff] %v6388_v30  ;;  %v6705_v20 = vshrl.u32 %v6704_v23, 23  ;;  %v14160_v51 = vadd.f32 %v13727_v57, %v13977_v1 }
 0x661   : > { %vm6608_vm6 = vcmp.gt.s32.totalorder %v6607_v54, 0  ;;  %v6555_v50 = vshrl.u32 %v6554_v46, 30  ;;  %v14164_v61 = vmul.f32 %v13973_v16, %v15410_v7  ;;  %v14168_v55 = vmul.f32 %v13973_v16, %v15411_v9 }
 0x662   : > { %v6468_v4 = vor.u32 4788187, %v6467_v45  ;;  %v6609_v31 = vsel %vm6608_vm6, %v6607_v54, 0  ;;  %v6471_v49 = vcvt.s32.f32 %v6464_v63  ;;  %v14170_v24 = vand.u32 3, %v6482_v13 }
 0x663   : > { %v6611_v8 = vand.u32 31, %v6609_v31  ;;  %vm6495_vm7 = vcmp.lt.s32.totalorder %v13940_v5, 0  ;;  %v6556_v2 = vshll.u32 %v6555_v50, 30  ;;  %v14175_v57 = vadd.s32 %v14109_v28, %v14126_v3 }
 0x664   : > { %v6469_v62 = vand.u32 2147483647, %v6468_v4  ;;  %v6605_v1 = vor.u32 8388608, %v6604_v47  ;;  %v6701_v33 = vand.u32 2147483647, %v14132_v48  ;;  %v14180_v38 = vshrl.u32 %v6609_v31, 5 }
 0x665   : > { %v6612_v60 = vsub.s32 32, %v6611_v8  ;;  %v14178_v12 = vsub.s32 %v6553_v10, %v6556_v2  ;;  %v8107_v34 = vadd.s32 4294967169, %v6705_v20  ;;  %v6579_v19 = vsub.s32 4, %v6555_v50 }
 0x666   : > { %v6472_v32 = vmul.f32 %v6471_v49, %v6469_v62  ;;  %v6614_v56 = vshll.u32 %v15256_v0, %v6611_v8  ;;  %v6617_v3 = vshll.u32 %v15257_v39, %v6611_v8  ;;  %v6620_v22 = vshll.u32 %v15258_v27, %v6611_v8 }
 0x667   : > { %v6615_v52 = vshrl.u32 %v15257_v39, %v6612_v60  ;;  %v6618_v17 = vshrl.u32 %v15258_v27, %v6612_v60  ;;  %v6559_v28 = vsub.s32 0, %v14178_v12  ;;  %v6621_v40 = vshrl.u32 %v15259_v44, %v6612_v60 }
 0x668   : > { %v6473_v11 = vxor.u32 2147483648, %v6472_v32  ;;  %v6623_v23 = vshll.u32 %v15259_v44, %v6611_v8  ;;  %v6624_v43 = vshrl.u32 %v15260_v53, %v6612_v60  ;;  %v6626_v58 = vshll.u32 %v15260_v53, %v6611_v8 }
 0x669   : > { %v6616_v15 = vor.u32 %v6615_v52, %v6614_v56  ;;  %v8100_v21 = vmin.u32 %v6559_v28, %v14178_v12  ;;  %v6619_v25 = vor.u32 %v6618_v17, %v6617_v3  ;;  %v6622_v35 = vor.u32 %v6621_v40, %v6620_v22 }
 0x66a   : > { %v6474_v37 = vsel %vm6391_vm15, %v6473_v11, %v6472_v32  ;;  %v6625_v10 = vor.u32 %v6624_v43, %v6623_v23  ;;  %v6627_v36 = vshrl.u32 %v15261_v41, %v6612_v60  ;;  %v14199_v54 = vshll.u32 %v6605_v1, 8  ;;  %v923_v11 = vpop.permute.xlu1 %922 }
 0x66b   : > { %v6477_v29 = vsel %vm14117_vm0, %v13881_v59, %v6474_v37  ;;  %v6561_v13 = vclz %v8100_v21  ;;  %v6711_v30 = vadd.s32 1, %v8107_v34  ;;  %v14203_v63 = vsel %vm6495_vm7, %v6579_v19, %v6555_v50  ;;  %v919_v34 = vpop.permute.xlu0 %918 }
 0x66c   : > { %8666 = vcosq.f32 %v6477_v29  ;;  %v6613_v45 = vshrl.u32 %v15256_v0, %v6612_v60  ;;  %v6628_v46 = vor.u32 %v6627_v36, %v6626_v58  ;;  %vm14208_vm8 = vcmp.le.f32.partialorder %v6493_v42, 0.7853982 }
 0x66d   : > { %8668 = vsinq.f32 %v6477_v29  ;;  %v8101_v47 = vadd.s32 4294967294, %v6561_v13  ;;  %vm6629_vm10 = vcmp.lt.s32.totalorder %v14180_v38, 1  ;;  %vm6631_vm9 = vcmp.lt.s32.totalorder %v14180_v38, 3 }
 0x66e   : > { %vm6632_vm12 = vcmp.lt.s32.totalorder %v14180_v38, 4  ;;  %v6637_v31 = vsel %vm6629_vm10, %v6616_v15, %v6619_v25  ;;  %v6641_v20 = vsel %vm6629_vm10, %v6619_v25, %v6622_v35  ;;  %vm6488_vm11 = vcmp.eq.s32.totalorder %v14170_v24, 2 }
 0x66f   : > { %v6634_v4 = vsel %vm6632_vm12, %v6622_v35, 2102212464  ;;  %v6638_v50 = vsel %vm6632_vm12, %v6625_v10, 920167782  ;;  %vm8102_vm13 = vcmp.lt.s32.totalorder %v8101_v47, 0  ;;  %vm6630_vm0 = vcmp.lt.s32.totalorder %v14180_v38, 2 }
 0x670   : > { %v6639_v42 = vsel %vm6631_vm9, %v6622_v35, %v6638_v50  ;;  %v6642_v7 = vsel %vm6632_vm12, %v6628_v46, 1326507024  ;;  %vm6485_vm15 = vcmp.eq.s32.totalorder %v14170_v24, 0  ;;  %v6564_v9 = vsel %vm8102_vm13, 0, %v8101_v47 }
 0x671   : > { %v6633_v8 = vsel %vm6629_vm10, %v6613_v45, %v6616_v15  ;;  %v6640_v62 = vsel %vm6630_vm0, %v6637_v31, %v6639_v42  ;;  %v6643_v49 = vsel %vm6631_vm9, %v6625_v10, %v6642_v7  ;;  %vm6484_vm14 = vcmp.lt.s32.totalorder %v14170_v24, 2 }
 0x672   : > { %v6565_v2 = vsub.s32 32, %v6564_v9  ;;  %v6569_v1 = vsub.s32 4294967266, %v6564_v9  ;;  %v6635_v60 = vsel %vm6631_vm9, %v6619_v25, %v6634_v4  ;;  %v6644_v32 = vsel %vm6630_vm0, %v6641_v20, %v6643_v49 }
 0x673   : > { %vm6481_vm1 = vweird.f32 %v13881_v59  ;;  %v14231_v19 = vmul.u32.u64.low %v14199_v54, %v6644_v32  ;;  %v14232_v56 = vmul.u32.u64.high %v14199_v54, %v6644_v32, %v14231_v19  ;;  %v6566_v28 = vshll.u32 %v14178_v12, %v6564_v9 }
 0x674   : > { %v14235_v52 = vmul.u32.u64.low %v14199_v54, %v6640_v62  ;;  %v14236_v17 = vmul.u32.u64.high %v14199_v54, %v6640_v62, %v14235_v52  ;;  %v6567_v3 = vshrl.u32 %v14175_v57, %v6565_v2  ;;  %v6570_v40 = vadd.s32 127, %v6569_v1 }
 0x675   : > { %vm6712_vm2 = vcmp.gt.s32.totalorder %v6711_v30, 0  ;;  %v6636_v15 = vsel %vm6630_vm0, %v6633_v8, %v6635_v60  ;;  %v6708_v22 = vand.u32 8388607, %v6701_v33  ;;  %v1012_v43 = vmul.f32 %v13864_v6, %v919_v34 }
 0x676   : > { %v6713_v23 = vsel %vm6712_vm2, %v6711_v30, 0  ;;  %v8667_v37 = vpop.eup %8666  ;;  %v6568_v21 = vor.u32 %v6567_v3, %v6566_v28  ;;  %v6571_v25 = vshll.u32 %v6570_v40, 23  ;;  %v14247_v29 = vmul.f32 %v13864_v6, %v923_v11 }
 0x677   : > { %v6715_v58 = vand.u32 31, %v6713_v23  ;;  %v8669_v12 = vpop.eup %8668  ;;  %v6489_v57 = vxor.u32 2147483648, %v8667_v37  ;;  %v6582_v38 = vsel %vm14208_vm8, 0, %v14203_v63  ;;  %vm6654_vm3 = vc.u32 %v14232_v56, %v14235_v52 }
 0x678   : > { %v6655_v35 = vadd.s32 1, %v14236_v17  ;;  %v6486_v10 = vxor.u32 2147483648, %v8669_v12  ;;  %v6572_v36 = vor.u32 4788187, %v6571_v25  ;;  %v6652_v13 = vmul.u32 %v14199_v54, %v6636_v15 }
 0x679   : > { %v6716_v30 = vsub.s32 32, %v6715_v58  ;;  %v6490_v6 = vsel %vm6488_vm11, %v6489_v57, %v8669_v12  ;;  %v6709_v46 = vor.u32 8388608, %v6708_v22  ;;  %v14260_v47 = vadd.f32 %v1012_v43, %v14160_v51 }
 0x67a   : > { %v6656_v45 = vsel %vm6654_vm3, %v6655_v35, %v14236_v17  ;;  %v6487_v63 = vsel %vm6485_vm15, %v8667_v37, %v6486_v10  ;;  %v6573_v4 = vand.u32 2147483647, %v6572_v36  ;;  %v6575_v31 = vcvt.s32.f32 %v6568_v21 }
 0x67b   : > { %v6657_v50 = vadd.s32 %v6656_v45, %v6652_v13  ;;  %v6491_v54 = vsel %vm6484_vm14, %v6487_v63, %v6490_v6  ;;  %v6586_v20 = vadd.s32 3, %v6582_v38  ;;  %v6719_v42 = vshrl.u32 %v15257_v39, %v6716_v30 }
 0x67c   : > { %v6722_v7 = vshrl.u32 %v15258_v27, %v6716_v30  ;;  %v6492_v9 = vsel %vm6481_vm1, nan, %v6491_v54  ;;  %v6576_v8 = vmul.f32 %v6575_v31, %v6573_v4  ;;  %v6725_v62 = vshrl.u32 %v15259_v44, %v6716_v30  ;;  %v14303_v54 = vld [vmem:[%s15172_s2] ss:$0 sm:$0xff] }
 0x67d   : > { %v6658_v51 = vadd.s32 536870912, %v6657_v50  ;;  %7792 = vst [vmem:[%s9666_s10 + $0x198] sm:$0xff] %v6492_v9  ;;  %v6714_v49 = vshrl.u32 %v6713_v23, 5  ;;  %v6718_v2 = vshll.u32 %v15256_v0, %v6715_v58  ;;  %v6721_v1 = vshll.u32 %v15257_v39, %v6715_v58 }
 0x67e   : > { %v6728_v24 = vshrl.u32 %v15260_v53, %v6716_v30  ;;  %v6577_v60 = vxor.u32 2147483648, %v6576_v8  ;;  %v6724_v34 = vshll.u32 %v15258_v27, %v6715_v58  ;;  %v6727_v19 = vshll.u32 %v15259_v44, %v6715_v58 }
 0x67f   : > { %v6659_v32 = vshrl.u32 %v6658_v51, 30  ;;  %v6720_v59 = vor.u32 %v6719_v42, %v6718_v2  ;;  %v6723_v17 = vor.u32 %v6722_v7, %v6721_v1  ;;  %v6730_v11 = vshll.u32 %v15260_v53, %v6715_v58 }
 0x680   : > { %v6731_v28 = vshrl.u32 %v15261_v41, %v6716_v30  ;;  %v6578_v3 = vsel %vm6495_vm7, %v6577_v60, %v6576_v8  ;;  %v6726_v15 = vor.u32 %v6725_v62, %v6724_v34  ;;  %v6729_v22 = vor.u32 %v6728_v24, %v6727_v19 }
 0x681   : > { %v6660_v40 = vshll.u32 %v6659_v32, 30  ;;  %v6581_v23 = vsel %vm14208_vm8, %v13940_v5, %v6578_v3  ;;  %v14284_v43 = vand.u32 3, %v6586_v20  ;;  %v14286_v21 = vshll.u32 %v6709_v46, 8 }
 0x682   : > { %v6732_v37 = vor.u32 %v6731_v28, %v6730_v11  ;;  %8670 = vcosq.f32 %v6581_v23  ;;  %v6717_v58 = vshrl.u32 %v15256_v0, %v6716_v30  ;;  %vm6733_vm4 = vcmp.lt.s32.totalorder %v6714_v49, 1 }
 0x683   : > { %v14288_v25 = vsub.s32 %v6657_v50, %v6660_v40  ;;  %8672 = vsinq.f32 %v6581_v23  ;;  %vm6734_vm5 = vcmp.lt.s32.totalorder %v6714_v49, 2  ;;  %vm6736_vm6 = vcmp.lt.s32.totalorder %v6714_v49, 4 }
 0x684   : > { %v6741_v12 = vsel %vm6733_vm4, %v6720_v59, %v6723_v17  ;;  %vm6735_vm7 = vcmp.lt.s32.totalorder %v6714_v49, 3  ;;  %v6738_v14 = vsel %vm6736_vm6, %v6726_v15, 2102212464  ;;  %v6742_v38 = vsel %vm6736_vm6, %v6729_v22, 920167782 }
 0x685   : > { %v6663_v57 = vsub.s32 0, %v14288_v25  ;;  %v6683_v35 = vsub.s32 4, %v6659_v32  ;;  %v6743_v10 = vsel %vm6735_vm7, %v6726_v15, %v6742_v38  ;;  %v6745_v36 = vsel %vm6733_vm4, %v6723_v17, %v6726_v15 }
 0x686   : > { %v6746_v13 = vsel %vm6736_vm6, %v6732_v37, 1326507024  ;;  %v6737_v45 = vsel %vm6733_vm4, %v6717_v58, %v6720_v59  ;;  %v6744_v46 = vsel %vm6734_vm5, %v6741_v12, %v6743_v10  ;;  %v6739_v63 = vsel %vm6735_vm7, %v6723_v17, %v6738_v14 }
 0x687   : > { %v8104_v6 = vmin.u32 %v6663_v57, %v14288_v25  ;;  %v6747_v30 = vsel %vm6735_vm7, %v6729_v22, %v6746_v13  ;;  %v14296_v31 = vmul.u32.u64.low %v14286_v21, %v6744_v46  ;;  %v14297_v50 = vmul.u32.u64.high %v14286_v21, %v6744_v46, %v14296_v31 }
 0x688   : > { %v6748_v4 = vsel %vm6734_vm5, %v6745_v36, %v6747_v30  ;;  %v688_v20 = vadd.f32 %v14303_v54, %v14168_v55  ;;  %vm14309_vm8 = vcmp.le.f32.partialorder %v6597_v26, 0.7853982  ;;  %vm6599_vm10 = vcmp.lt.s32.totalorder %v14073_v18, 0 }
 0x689   : > { %v6665_v7 = vclz %v8104_v6  ;;  %v6684_v9 = vsel %vm6599_vm10, %v6683_v35, %v6659_v32  ;;  %v14317_v8 = vmul.u32.u64.low %v14286_v21, %v6748_v4  ;;  %v14318_v51 = vmul.u32.u64.high %v14286_v21, %v6748_v4, %v14317_v8 }
 0x68a   : > { %v6808_v62 = vand.u32 2139095040, %v14260_v47  ;;  %vm6588_vm9 = vcmp.lt.s32.totalorder %v14284_v43, 2  ;;  %v6740_v26 = vsel %vm6734_vm5, %v6737_v45, %v6739_v63  ;;  %v14324_v2 = vadd.f32 %v14247_v29, %v688_v20  ;;  %v15417_v63 = vld [vmem:[#allocation52_spill] sm:$0xff] }
 0x68b   : > { %v8105_v55 = vadd.s32 4294967294, %v6665_v7  ;;  %vm6589_vm12 = vcmp.eq.s32.totalorder %v14284_v43, 0  ;;  %vm6592_vm11 = vcmp.eq.s32.totalorder %v14284_v43, 2  ;;  %v6759_v1 = vadd.s32 1, %v14297_v50  ;;  %v15416_v43 = vld [vmem:[#allocation5_spill] sm:$0xff] }
 0x68c   : > { %v6809_v24 = vshrl.u32 %v6808_v62, 23  ;;  %v8671_v60 = vpop.eup %8670  ;;  %v6653_v32 = vadd.s32 %v14235_v52, %v14232_v56  ;;  %v6686_v34 = vsel %vm14309_vm8, 0, %v6684_v9  ;;  %v6805_v49 = vand.u32 2147483647, %v14260_v47 }
 0x68d   : > { %vm8106_vm13 = vcmp.lt.s32.totalorder %v8105_v55, 0  ;;  %v8673_v19 = vpop.eup %8672  ;;  %v6593_v29 = vxor.u32 2147483648, %v8671_v60  ;;  %v6756_v17 = vmul.u32 %v14286_v21, %v6740_v26  ;;  %vm6758_vm0 = vc.u32 %v14318_v51, %v14296_v31 }
 0x68e   : > { %v6668_v59 = vsel %vm8106_vm13, 0, %v8105_v55  ;;  %v6590_v11 = vxor.u32 2147483648, %v8673_v19  ;;  %v6912_v40 = vand.u32 2139095040, %v14324_v2  ;;  %v6760_v15 = vsel %vm6758_vm0, %v6759_v1, %v14297_v50 }
 0x68f   : > { %v6669_v28 = vsub.s32 32, %v6668_v59  ;;  %v6673_v3 = vsub.s32 4294967266, %v6668_v59  ;;  %v6594_v56 = vsel %vm6592_vm11, %v6593_v29, %v8673_v19  ;;  %v6670_v52 = vshll.u32 %v14288_v25, %v6668_v59 }
 0x690   : > { %v8111_v22 = vadd.s32 4294967169, %v6809_v24  ;;  %v6591_v23 = vsel %vm6589_vm12, %v8671_v60, %v6590_v11  ;;  %v6761_v58 = vadd.s32 %v6760_v15, %v6756_v17  ;;  %vm6585_vm15 = vweird.f32 %v13940_v5 }
 0x691   : > { %v6671_v37 = vshrl.u32 %v6653_v32, %v6669_v28  ;;  %v6674_v21 = vadd.s32 127, %v6673_v3  ;;  %v6595_v12 = vsel %vm6588_vm9, %v6591_v23, %v6594_v56  ;;  %v6690_v57 = vadd.s32 3, %v6686_v34 }
 0x692   : > { %v6815_v14 = vadd.s32 1, %v8111_v22  ;;  %v6596_v38 = vsel %vm6585_vm15, nan, %v6595_v12  ;;  %v6762_v25 = vadd.s32 536870912, %v6761_v58  ;;  %v6812_v36 = vand.u32 8388607, %v6805_v49 }
 0x693   : > { %v6672_v35 = vor.u32 %v6671_v37, %v6670_v52  ;;  %v6675_v10 = vshll.u32 %v6674_v21, 23  ;;  %7793 = vst [vmem:[%s9666_s10 + $0x1a0] sm:$0xff] %v6596_v38  ;;  %v6913_v46 = vshrl.u32 %v6912_v40, 23  ;;  %v14352_v5 = vadd.f32 %v14303_v54, %v14164_v61 }
 0x694   : > { %vm6816_vm14 = vcmp.gt.s32.totalorder %v6815_v14, 0  ;;  %v6763_v6 = vshrl.u32 %v6762_v25, 30  ;;  %v14356_v30 = vmul.f32 %v13973_v16, %v15416_v43  ;;  %v14360_v4 = vmul.f32 %v13973_v16, %v15417_v63 }
 0x695   : > { %v6676_v13 = vor.u32 4788187, %v6675_v10  ;;  %v6817_v45 = vsel %vm6816_vm14, %v6815_v14, 0  ;;  %v6679_v7 = vcvt.s32.f32 %v6672_v35  ;;  %v14362_v9 = vand.u32 3, %v6690_v57 }
 0x696   : > { %v6819_v50 = vand.u32 31, %v6817_v45  ;;  %vm6703_vm1 = vcmp.lt.s32.totalorder %v14132_v48, 0  ;;  %v6764_v8 = vshll.u32 %v6763_v6, 30  ;;  %v14367_v61 = vadd.s32 %v14296_v31, %v14318_v51 }
 0x697   : > { %v6677_v20 = vand.u32 2147483647, %v6676_v13  ;;  %v6813_v62 = vor.u32 8388608, %v6812_v36  ;;  %v6909_v26 = vand.u32 2147483647, %v14324_v2  ;;  %v14372_v16 = vshrl.u32 %v6817_v45, 5 }
 0x698   : > { %v6820_v55 = vsub.s32 32, %v6819_v50  ;;  %v14370_v24 = vsub.s32 %v6761_v58, %v6764_v8  ;;  %v8115_v60 = vadd.s32 4294967169, %v6913_v46  ;;  %v6787_v32 = vsub.s32 4, %v6763_v6 }
 0x699   : > { %v6680_v1 = vmul.f32 %v6679_v7, %v6677_v20  ;;  %v6822_v34 = vshll.u32 %v15256_v0, %v6819_v50  ;;  %v6825_v51 = vshll.u32 %v15257_v39, %v6819_v50  ;;  %v6828_v28 = vshll.u32 %v15258_v27, %v6819_v50 }
 0x69a   : > { %v6823_v19 = vshrl.u32 %v15257_v39, %v6820_v55  ;;  %v6826_v29 = vshrl.u32 %v15258_v27, %v6820_v55  ;;  %v6767_v31 = vsub.s32 0, %v14370_v24  ;;  %v6829_v17 = vshrl.u32 %v15259_v44, %v6820_v55 }
 0x69b   : > { %v6681_v59 = vxor.u32 2147483648, %v6680_v1  ;;  %v6831_v3 = vshll.u32 %v15259_v44, %v6819_v50  ;;  %v6832_v40 = vshrl.u32 %v15260_v53, %v6820_v55  ;;  %v6834_v22 = vshll.u32 %v15260_v53, %v6819_v50 }
 0x69c   : > { %v6824_v11 = vor.u32 %v6823_v19, %v6822_v34  ;;  %v8108_v52 = vmin.u32 %v6767_v31, %v14370_v24  ;;  %v6827_v15 = vor.u32 %v6826_v29, %v6825_v51  ;;  %v6830_v37 = vor.u32 %v6829_v17, %v6828_v28  ;;  %v931_v29 = vpop.permute.xlu1 %930 }
 0x69d   : > { %v6682_v56 = vsel %vm6599_vm10, %v6681_v59, %v6680_v1  ;;  %v6833_v21 = vor.u32 %v6832_v40, %v6831_v3  ;;  %v6835_v58 = vshrl.u32 %v15261_v41, %v6820_v55  ;;  %v14391_v57 = vshll.u32 %v6813_v62, 8  ;;  %v927_v1 = vpop.permute.xlu0 %926  ;;  %v14440_v3 = vld [vmem:[%s15171_s1 + $0x1] ss:$0 sm:$0xff] }
 0x69e   : > { %v6685_v23 = vsel %vm14309_vm8, %v14073_v18, %v6682_v56  ;;  %v6769_v12 = vclz %v8108_v52  ;;  %v6919_v14 = vadd.s32 1, %v8115_v60  ;;  %v14395_v38 = vsel %vm6703_vm1, %v6787_v32, %v6763_v6 }
 0x69f   : > { %8674 = vcosq.f32 %v6685_v23  ;;  %v6821_v35 = vshrl.u32 %v15256_v0, %v6820_v55  ;;  %v6836_v10 = vor.u32 %v6835_v58, %v6834_v22  ;;  %vm14400_vm2 = vcmp.le.f32.partialorder %v6701_v33, 0.7853982 }
 0x6a0   : > { %8676 = vsinq.f32 %v6685_v23  ;;  %v8109_v25 = vadd.s32 4294967294, %v6769_v12  ;;  %vm6837_vm3 = vcmp.lt.s32.totalorder %v14372_v16, 1  ;;  %vm6839_vm4 = vcmp.lt.s32.totalorder %v14372_v16, 3 }
 0x6a1   : > { %vm6840_vm5 = vcmp.lt.s32.totalorder %v14372_v16, 4  ;;  %v6845_v13 = vsel %vm6837_vm3, %v6824_v11, %v6827_v15  ;;  %v6849_v45 = vsel %vm6837_vm3, %v6827_v15, %v6830_v37  ;;  %vm6696_vm6 = vcmp.eq.s32.totalorder %v14362_v9, 2 }
 0x6a2   : > { %v6842_v36 = vsel %vm6840_vm5, %v6830_v37, 2102212464  ;;  %v6846_v6 = vsel %vm6840_vm5, %v6833_v21, 920167782  ;;  %vm8110_vm7 = vcmp.lt.s32.totalorder %v8109_v25, 0  ;;  %vm6838_vm8 = vcmp.lt.s32.totalorder %v14372_v16, 2 }
 0x6a3   : > { %v6847_v33 = vsel %vm6839_vm4, %v6830_v37, %v6846_v6  ;;  %v6850_v46 = vsel %vm6840_vm5, %v6836_v10, 1326507024  ;;  %vm6693_vm10 = vcmp.eq.s32.totalorder %v14362_v9, 0  ;;  %v6772_v43 = vsel %vm8110_vm7, 0, %v8109_v25 }
 0x6a4   : > { %v6841_v63 = vsel %vm6837_vm3, %v6821_v35, %v6824_v11  ;;  %v6848_v50 = vsel %vm6838_vm8, %v6845_v13, %v6847_v33  ;;  %v6851_v20 = vsel %vm6839_vm4, %v6833_v21, %v6850_v46  ;;  %vm6692_vm9 = vcmp.lt.s32.totalorder %v14362_v9, 2 }
 0x6a5   : > { %v6773_v7 = vsub.s32 32, %v6772_v43  ;;  %v6777_v8 = vsub.s32 4294967266, %v6772_v43  ;;  %v6843_v62 = vsel %vm6839_vm4, %v6827_v15, %v6842_v36  ;;  %v6852_v55 = vsel %vm6838_vm8, %v6849_v45, %v6851_v20 }
 0x6a6   : > { %vm6689_vm12 = vweird.f32 %v14073_v18  ;;  %v14423_v60 = vmul.u32.u64.low %v14391_v57, %v6852_v55  ;;  %v14424_v32 = vmul.u32.u64.high %v14391_v57, %v6852_v55, %v14423_v60  ;;  %v6774_v59 = vshll.u32 %v14370_v24, %v6772_v43 }
 0x6a7   : > { %v14427_v34 = vmul.u32.u64.low %v14391_v57, %v6848_v50  ;;  %v14428_v19 = vmul.u32.u64.high %v14391_v57, %v6848_v50, %v14427_v34  ;;  %v6775_v31 = vshrl.u32 %v14367_v61, %v6773_v7  ;;  %v6778_v51 = vadd.s32 127, %v6777_v8 }
 0x6a8   : > { %vm6920_vm11 = vcmp.gt.s32.totalorder %v6919_v14, 0  ;;  %v6844_v17 = vsel %vm6838_vm8, %v6841_v63, %v6843_v62  ;;  %v6916_v11 = vand.u32 8388607, %v6909_v26  ;;  %v1014_v40 = vmul.f32 %v14440_v3, %v927_v1 }
 0x6a9   : > { %v6921_v28 = vsel %vm6920_vm11, %v6919_v14, 0  ;;  %v8675_v56 = vpop.eup %8674  ;;  %v6776_v24 = vor.u32 %v6775_v31, %v6774_v59  ;;  %v6779_v52 = vshll.u32 %v6778_v51, 23  ;;  %v14444_v15 = vmul.f32 %v14440_v3, %v931_v29 }
 0x6aa   : > { %v6923_v61 = vand.u32 31, %v6921_v28  ;;  %v8677_v16 = vpop.eup %8676  ;;  %v6697_v22 = vxor.u32 2147483648, %v8675_v56  ;;  %v6790_v23 = vsel %vm14400_vm2, 0, %v14395_v38  ;;  %vm6862_vm13 = vc.u32 %v14424_v32, %v14427_v34 }
 0x6ab   : > { %v6863_v37 = vadd.s32 1, %v14428_v19  ;;  %v6694_v21 = vxor.u32 2147483648, %v8677_v16  ;;  %v6780_v58 = vor.u32 4788187, %v6779_v52  ;;  %v6860_v12 = vmul.u32 %v14391_v57, %v6844_v17 }
 0x6ac   : > { %v6924_v14 = vsub.s32 32, %v6923_v61  ;;  %v6698_v35 = vsel %vm6696_vm6, %v6697_v22, %v8677_v16  ;;  %v6917_v25 = vor.u32 8388608, %v6916_v11  ;;  %v14457_v36 = vadd.f32 %v1014_v40, %v14352_v5 }
 0x6ad   : > { %v6864_v10 = vsel %vm6862_vm13, %v6863_v37, %v14428_v19  ;;  %v6695_v38 = vsel %vm6693_vm10, %v8675_v56, %v6694_v21  ;;  %v6781_v13 = vand.u32 2147483647, %v6780_v58  ;;  %v6783_v6 = vcvt.s32.f32 %v6776_v24 }
 0x6ae   : > { %v6865_v45 = vadd.s32 %v6864_v10, %v6860_v12  ;;  %v6699_v57 = vsel %vm6692_vm9, %v6695_v38, %v6698_v35  ;;  %v6794_v33 = vadd.s32 3, %v6790_v23  ;;  %v6927_v46 = vshrl.u32 %v15257_v39, %v6924_v14 }
 0x6af   : > { %v6930_v43 = vshrl.u32 %v15258_v27, %v6924_v14  ;;  %v6700_v63 = vsel %vm6689_vm12, nan, %v6699_v57  ;;  %v6784_v50 = vmul.f32 %v6783_v6, %v6781_v13  ;;  %v6933_v20 = vshrl.u32 %v15259_v44, %v6924_v14 }
 0x6b0   : > { %v6866_v5 = vadd.s32 536870912, %v6865_v45  ;;  %7794 = vst [vmem:[%s9666_s10 + $0x1a8] sm:$0xff] %v6700_v63  ;;  %v6922_v7 = vshrl.u32 %v6921_v28, 5  ;;  %v6926_v8 = vshll.u32 %v15256_v0, %v6923_v61  ;;  %v6929_v62 = vshll.u32 %v15257_v39, %v6923_v61 }
 0x6b1   : > { %v6936_v9 = vshrl.u32 %v15260_v53, %v6924_v14  ;;  %v6785_v55 = vxor.u32 2147483648, %v6784_v50  ;;  %v6932_v60 = vshll.u32 %v15258_v27, %v6923_v61  ;;  %v6935_v19 = vshll.u32 %v15259_v44, %v6923_v61 }
 0x6b2   : > { %v6867_v1 = vshrl.u32 %v6866_v5, 30  ;;  %v6928_v18 = vor.u32 %v6927_v46, %v6926_v8  ;;  %v6931_v29 = vor.u32 %v6930_v43, %v6929_v62  ;;  %v6938_v59 = vshll.u32 %v15260_v53, %v6923_v61 }
 0x6b3   : > { %v6939_v31 = vshrl.u32 %v15261_v41, %v6924_v14  ;;  %v6786_v51 = vsel %vm6703_vm1, %v6785_v55, %v6784_v50  ;;  %v6934_v11 = vor.u32 %v6933_v20, %v6932_v60  ;;  %v6937_v28 = vor.u32 %v6936_v9, %v6935_v19 }
 0x6b4   : > { %v6868_v17 = vshll.u32 %v6867_v1, 30  ;;  %v6789_v40 = vsel %vm14400_vm2, %v14132_v48, %v6786_v51  ;;  %v14481_v56 = vand.u32 3, %v6794_v33  ;;  %v14483_v52 = vshll.u32 %v6917_v25, 8 }
 0x6b5   : > { %v6940_v24 = vor.u32 %v6939_v31, %v6938_v59  ;;  %8678 = vcosq.f32 %v6789_v40  ;;  %v6925_v61 = vshrl.u32 %v15256_v0, %v6924_v14  ;;  %vm6941_vm0 = vcmp.lt.s32.totalorder %v6922_v7, 1 }
 0x6b6   : > { %v14485_v16 = vsub.s32 %v6865_v45, %v6868_v17  ;;  %8680 = vsinq.f32 %v6789_v40  ;;  %vm6942_vm15 = vcmp.lt.s32.totalorder %v6922_v7, 2  ;;  %vm6944_vm14 = vcmp.lt.s32.totalorder %v6922_v7, 4 }
 0x6b7   : > { %v6949_v22 = vsel %vm6941_vm0, %v6928_v18, %v6931_v29  ;;  %vm6943_vm1 = vcmp.lt.s32.totalorder %v6922_v7, 3  ;;  %v6946_v42 = vsel %vm6944_vm14, %v6934_v11, 2102212464  ;;  %v6950_v37 = vsel %vm6944_vm14, %v6937_v28, 920167782 }
 0x6b8   : > { %v6871_v23 = vsub.s32 0, %v14485_v16  ;;  %v6891_v21 = vsub.s32 4, %v6867_v1  ;;  %v6951_v58 = vsel %vm6943_vm1, %v6934_v11, %v6950_v37  ;;  %v6953_v12 = vsel %vm6941_vm0, %v6931_v29, %v6934_v11 }
 0x6b9   : > { %v6954_v35 = vsel %vm6944_vm14, %v6940_v24, 1326507024  ;;  %v6945_v25 = vsel %vm6941_vm0, %v6925_v61, %v6928_v18  ;;  %v6952_v38 = vsel %vm6942_vm15, %v6949_v22, %v6951_v58  ;;  %v6947_v13 = vsel %vm6943_vm1, %v6931_v29, %v6946_v42 }
 0x6ba   : > { %v8112_v10 = vmin.u32 %v6871_v23, %v14485_v16  ;;  %v6955_v14 = vsel %vm6943_vm1, %v6937_v28, %v6954_v35  ;;  %v14493_v45 = vmul.u32.u64.low %v14483_v52, %v6952_v38  ;;  %v14494_v57 = vmul.u32.u64.high %v14483_v52, %v6952_v38, %v14493_v45 }
 0x6bb   : > { %v6956_v6 = vsel %vm6942_vm15, %v6953_v12, %v6955_v14  ;;  %v690_v33 = vadd.f32 %v14303_v54, %v14360_v4  ;;  %vm14501_vm2 = vcmp.le.f32.partialorder %v6805_v49, 0.7853982  ;;  %vm6807_vm3 = vcmp.lt.s32.totalorder %v14260_v47, 0  ;;  %v15422_v14 = vld [vmem:[#allocation7_spill] sm:$0xff] }
 0x6bc   : > { %v6873_v43 = vclz %v8112_v10  ;;  %v6892_v63 = vsel %vm6807_vm3, %v6891_v21, %v6867_v1  ;;  %v14509_v50 = vmul.u32.u64.low %v14483_v52, %v6956_v6  ;;  %v14510_v5 = vmul.u32.u64.high %v14483_v52, %v6956_v6, %v14509_v50  ;;  %v15423_v6 = vld [vmem:[#allocation6_spill] sm:$0xff] }
 0x6bd   : > { %v7016_v20 = vand.u32 2139095040, %v14457_v36  ;;  %vm6796_vm4 = vcmp.lt.s32.totalorder %v14481_v56, 2  ;;  %v6948_v49 = vsel %vm6942_vm15, %v6945_v25, %v6947_v13  ;;  %v14516_v8 = vadd.f32 %v14444_v15, %v690_v33 }
 0x6be   : > { %v8113_v4 = vadd.s32 4294967294, %v6873_v43  ;;  %vm6797_vm5 = vcmp.eq.s32.totalorder %v14481_v56, 0  ;;  %vm6800_vm6 = vcmp.eq.s32.totalorder %v14481_v56, 2  ;;  %v6967_v62 = vadd.s32 1, %v14494_v57  ;;  %v14549_v56 = vld [vmem:[%s15171_s1] ss:$0 sm:$0xff] }
 0x6bf   : > { %v7017_v9 = vshrl.u32 %v7016_v20, 23  ;;  %v8679_v55 = vpop.eup %8678  ;;  %v6861_v1 = vadd.s32 %v14427_v34, %v14424_v32  ;;  %v6894_v60 = vsel %vm14501_vm2, 0, %v6892_v63  ;;  %v7013_v7 = vand.u32 2147483647, %v14457_v36 }
 0x6c0   : > { %vm8114_vm7 = vcmp.lt.s32.totalorder %v8113_v4, 0  ;;  %v8681_v19 = vpop.eup %8680  ;;  %v6801_v15 = vxor.u32 2147483648, %v8679_v55  ;;  %v6964_v29 = vmul.u32 %v14483_v52, %v6948_v49  ;;  %vm6966_vm8 = vc.u32 %v14510_v5, %v14493_v45 }
 0x6c1   : > { %v6876_v18 = vsel %vm8114_vm7, 0, %v8113_v4  ;;  %v6798_v59 = vxor.u32 2147483648, %v8681_v19  ;;  %v7120_v17 = vand.u32 2139095040, %v14516_v8  ;;  %v6968_v11 = vsel %vm6966_vm8, %v6967_v62, %v14494_v57 }
 0x6c2   : > { %v6877_v31 = vsub.s32 32, %v6876_v18  ;;  %v6881_v51 = vsub.s32 4294967266, %v6876_v18  ;;  %v6802_v32 = vsel %vm6800_vm6, %v6801_v15, %v8681_v19  ;;  %v6878_v34 = vshll.u32 %v14485_v16, %v6876_v18 }
 0x6c3   : > { %v8119_v28 = vadd.s32 4294967169, %v7017_v9  ;;  %v6799_v40 = vsel %vm6797_vm5, %v8679_v55, %v6798_v59  ;;  %v6969_v61 = vadd.s32 %v6968_v11, %v6964_v29  ;;  %vm6793_vm10 = vweird.f32 %v14132_v48 }
 0x6c4   : > { %v6879_v24 = vshrl.u32 %v6861_v1, %v6877_v31  ;;  %v6882_v52 = vadd.s32 127, %v6881_v51  ;;  %v6803_v22 = vsel %vm6796_vm4, %v6799_v40, %v6802_v32  ;;  %v6898_v23 = vadd.s32 3, %v6894_v60 }
 0x6c5   : > { %v7023_v42 = vadd.s32 1, %v8119_v28  ;;  %v6804_v37 = vsel %vm6793_vm10, nan, %v6803_v22  ;;  %v6970_v16 = vadd.s32 536870912, %v6969_v61  ;;  %v7020_v12 = vand.u32 8388607, %v7013_v7 }
 0x6c6   : > { %v6880_v21 = vor.u32 %v6879_v24, %v6878_v34  ;;  %v6883_v58 = vshll.u32 %v6882_v52, 23  ;;  %7795 = vst [vmem:[%s9666_s10 + $0x1b0] sm:$0xff] %v6804_v37  ;;  %v7121_v38 = vshrl.u32 %v7120_v17, 23  ;;  %v14544_v48 = vadd.f32 %v14303_v54, %v14356_v30 }
 0x6c7   : > { %vm7024_vm9 = vcmp.gt.s32.totalorder %v7023_v42, 0  ;;  %v6971_v10 = vshrl.u32 %v6970_v16, 30  ;;  %v14553_v13 = vmul.f32 %v14549_v56, %v15422_v14  ;;  %v14557_v57 = vmul.f32 %v14549_v56, %v15423_v6 }
 0x6c8   : > { %v6884_v35 = vor.u32 4788187, %v6883_v58  ;;  %v7025_v25 = vsel %vm7024_vm9, %v7023_v42, 0  ;;  %v6887_v63 = vcvt.s32.f32 %v6880_v21  ;;  %v14559_v50 = vand.u32 3, %v6898_v23 }
 0x6c9   : > { %v7027_v33 = vand.u32 31, %v7025_v25  ;;  %vm6911_vm12 = vcmp.lt.s32.totalorder %v14324_v2, 0  ;;  %v6972_v30 = vshll.u32 %v6971_v10, 30  ;;  %v14564_v20 = vadd.s32 %v14493_v45, %v14510_v5 }
 0x6ca   : > { %v6885_v43 = vand.u32 2147483647, %v6884_v35  ;;  %v7021_v4 = vor.u32 8388608, %v7020_v12  ;;  %v7117_v62 = vand.u32 2147483647, %v14516_v8  ;;  %v14569_v1 = vshrl.u32 %v7025_v25, 5 }
 0x6cb   : > { %v7028_v49 = vsub.s32 32, %v7027_v33  ;;  %v14567_v55 = vsub.s32 %v6969_v61, %v6972_v30  ;;  %v8123_v60 = vadd.s32 4294967169, %v7121_v38  ;;  %v6995_v19 = vsub.s32 4, %v6971_v10 }
 0x6cc   : > { %v6888_v9 = vmul.f32 %v6887_v63, %v6885_v43  ;;  %v7030_v15 = vshll.u32 %v15256_v0, %v7027_v33  ;;  %v7033_v5 = vshll.u32 %v15257_v39, %v7027_v33  ;;  %v7036_v17 = vshll.u32 %v15258_v27, %v7027_v33 }
 0x6cd   : > { %v7031_v18 = vshrl.u32 %v15257_v39, %v7028_v49  ;;  %v7034_v29 = vshrl.u32 %v15258_v27, %v7028_v49  ;;  %v6975_v45 = vsub.s32 0, %v14567_v55  ;;  %v7037_v31 = vshrl.u32 %v15259_v44, %v7028_v49 }
 0x6ce   : > { %v6889_v59 = vxor.u32 2147483648, %v6888_v9  ;;  %v7039_v32 = vshll.u32 %v15259_v44, %v7027_v33  ;;  %v7040_v34 = vshrl.u32 %v15260_v53, %v7028_v49  ;;  %v7042_v24 = vshll.u32 %v15260_v53, %v7027_v33 }
 0x6cf   : > { %v7032_v51 = vor.u32 %v7031_v18, %v7030_v15  ;;  %v8116_v28 = vmin.u32 %v6975_v45, %v14567_v55  ;;  %v7035_v40 = vor.u32 %v7034_v29, %v7033_v5  ;;  %v7038_v61 = vor.u32 %v7037_v31, %v7036_v17  ;;  %v939_v45 = vpop.permute.xlu1 %938 }
 0x6d0   : > { %v6890_v11 = vsel %vm6807_vm3, %v6889_v59, %v6888_v9  ;;  %v7041_v22 = vor.u32 %v7040_v34, %v7039_v32  ;;  %v7043_v23 = vshrl.u32 %v15261_v41, %v7028_v49  ;;  %v14588_v37 = vshll.u32 %v7021_v4, 8 }
 0x6d1   : > { %v6893_v52 = vsel %vm14501_vm2, %v14260_v47, %v6890_v11  ;;  %v6977_v42 = vclz %v8116_v28  ;;  %v7127_v21 = vadd.s32 1, %v8123_v60  ;;  %v14592_v58 = vsel %vm6911_vm12, %v6995_v19, %v6971_v10  ;;  %v935_v19 = vpop.permute.xlu0 %934 }
 0x6d2   : > { %8682 = vcosq.f32 %v6893_v52  ;;  %v7029_v16 = vshrl.u32 %v15256_v0, %v7028_v49  ;;  %v7044_v12 = vor.u32 %v7043_v23, %v7042_v24  ;;  %vm14597_vm11 = vcmp.le.f32.partialorder %v6909_v26, 0.7853982 }
 0x6d3   : > { %8684 = vsinq.f32 %v6893_v52  ;;  %v8117_v35 = vadd.s32 4294967294, %v6977_v42  ;;  %vm7045_vm13 = vcmp.lt.s32.totalorder %v14569_v1, 1  ;;  %vm7047_vm0 = vcmp.lt.s32.totalorder %v14569_v1, 3 }
 0x6d4   : > { %vm7048_vm15 = vcmp.lt.s32.totalorder %v14569_v1, 4  ;;  %v7053_v38 = vsel %vm7045_vm13, %v7032_v51, %v7035_v40  ;;  %v7057_v14 = vsel %vm7045_vm13, %v7035_v40, %v7038_v61  ;;  %vm6904_vm14 = vcmp.eq.s32.totalorder %v14559_v50, 2 }
 0x6d5   : > { %v7050_v25 = vsel %vm7048_vm15, %v7038_v61, 2102212464  ;;  %v7054_v10 = vsel %vm7048_vm15, %v7041_v22, 920167782  ;;  %vm8118_vm1 = vcmp.lt.s32.totalorder %v8117_v35, 0  ;;  %vm7046_vm2 = vcmp.lt.s32.totalorder %v14569_v1, 2 }
 0x6d6   : > { %v7055_v26 = vsel %vm7047_vm0, %v7038_v61, %v7054_v10  ;;  %v7058_v6 = vsel %vm7048_vm15, %v7044_v12, 1326507024  ;;  %vm6901_vm3 = vcmp.eq.s32.totalorder %v14559_v50, 0  ;;  %v6980_v33 = vsel %vm8118_vm1, 0, %v8117_v35 }
 0x6d7   : > { %v7049_v43 = vsel %vm7045_vm13, %v7029_v16, %v7032_v51  ;;  %v7056_v63 = vsel %vm7046_vm2, %v7053_v38, %v7055_v26  ;;  %v7059_v30 = vsel %vm7047_vm0, %v7041_v22, %v7058_v6  ;;  %vm6900_vm4 = vcmp.lt.s32.totalorder %v14559_v50, 2 }
 0x6d8   : > { %v6981_v4 = vsub.s32 32, %v6980_v33  ;;  %v6985_v49 = vsub.s32 4294967266, %v6980_v33  ;;  %v7051_v9 = vsel %vm7047_vm0, %v7035_v40, %v7050_v25  ;;  %v7060_v60 = vsel %vm7046_vm2, %v7057_v14, %v7059_v30 }
 0x6d9   : > { %vm6897_vm5 = vweird.f32 %v14260_v47  ;;  %v14620_v15 = vmul.u32.u64.low %v14588_v37, %v7060_v60  ;;  %v14621_v18 = vmul.u32.u64.high %v14588_v37, %v7060_v60, %v14620_v15  ;;  %v6982_v5 = vshll.u32 %v14567_v55, %v6980_v33 }
 0x6da   : > { %v14624_v29 = vmul.u32.u64.low %v14588_v37, %v7056_v63  ;;  %v14625_v59 = vmul.u32.u64.high %v14588_v37, %v7056_v63, %v14624_v29  ;;  %v6983_v31 = vshrl.u32 %v14564_v20, %v6981_v4  ;;  %v6986_v51 = vadd.s32 127, %v6985_v49 }
 0x6db   : > { %vm7128_vm6 = vcmp.gt.s32.totalorder %v7127_v21, 0  ;;  %v7052_v17 = vsel %vm7046_vm2, %v7049_v43, %v7051_v9  ;;  %v7124_v32 = vand.u32 8388607, %v7117_v62  ;;  %v1016_v11 = vmul.f32 %v14440_v3, %v935_v19 }
 0x6dc   : > { %v7129_v34 = vsel %vm7128_vm6, %v7127_v21, 0  ;;  %v8683_v28 = vpop.eup %8682  ;;  %v6984_v40 = vor.u32 %v6983_v31, %v6982_v5  ;;  %v6987_v24 = vshll.u32 %v6986_v51, 23  ;;  %v14636_v61 = vmul.f32 %v14440_v3, %v939_v45 }
 0x6dd   : > { %v7131_v52 = vand.u32 31, %v7129_v34  ;;  %v8685_v55 = vpop.eup %8684  ;;  %v6905_v20 = vxor.u32 2147483648, %v8683_v28  ;;  %v6998_v1 = vsel %vm14597_vm11, 0, %v14592_v58  ;;  %vm7070_vm7 = vc.u32 %v14621_v18, %v14624_v29 }
 0x6de   : > { %v7071_v22 = vadd.s32 1, %v14625_v59  ;;  %v6902_v23 = vxor.u32 2147483648, %v8685_v55  ;;  %v6988_v42 = vor.u32 4788187, %v6987_v24  ;;  %v7068_v21 = vmul.u32 %v14588_v37, %v7052_v17 }
 0x6df   : > { %v7132_v16 = vsub.s32 32, %v7131_v52  ;;  %v6906_v12 = vsel %vm6904_vm14, %v6905_v20, %v8685_v55  ;;  %v7125_v25 = vor.u32 8388608, %v7124_v32  ;;  %v14649_v38 = vadd.f32 %v1016_v11, %v14544_v48 }
 0x6e0   : > { %v7072_v35 = vsel %vm7070_vm7, %v7071_v22, %v14625_v59  ;;  %v6903_v58 = vsel %vm6901_vm3, %v8683_v28, %v6902_v23  ;;  %v6989_v10 = vand.u32 2147483647, %v6988_v42  ;;  %v6991_v14 = vcvt.s32.f32 %v6984_v40 }
 0x6e1   : > { %v7073_v26 = vadd.s32 %v7072_v35, %v7068_v21  ;;  %v6907_v37 = vsel %vm6900_vm4, %v6903_v58, %v6906_v12  ;;  %v7002_v6 = vadd.s32 3, %v6998_v1  ;;  %v7135_v33 = vshrl.u32 %v15257_v39, %v7132_v16 }
 0x6e2   : > { %v7138_v43 = vshrl.u32 %v15258_v27, %v7132_v16  ;;  %v6908_v63 = vsel %vm6897_vm5, nan, %v6907_v37  ;;  %v6992_v30 = vmul.f32 %v6991_v14, %v6989_v10  ;;  %v7141_v4 = vshrl.u32 %v15259_v44, %v7132_v16 }
 0x6e3   : > { %v7074_v48 = vadd.s32 536870912, %v7073_v26  ;;  %7796 = vst [vmem:[%s9666_s10 + $0x1b8] sm:$0xff] %v6908_v63  ;;  %v7130_v49 = vshrl.u32 %v7129_v34, 5  ;;  %v7134_v9 = vshll.u32 %v15256_v0, %v7131_v52  ;;  %v7137_v60 = vshll.u32 %v15257_v39, %v7131_v52 }
 0x6e4   : > { %v7144_v50 = vshrl.u32 %v15260_v53, %v7132_v16  ;;  %v6993_v19 = vxor.u32 2147483648, %v6992_v30  ;;  %v7140_v59 = vshll.u32 %v15258_v27, %v7131_v52  ;;  %v7143_v45 = vshll.u32 %v15259_v44, %v7131_v52 }
 0x6e5   : > { %v7075_v15 = vshrl.u32 %v7074_v48, 30  ;;  %v7136_v47 = vor.u32 %v7135_v33, %v7134_v9  ;;  %v7139_v5 = vor.u32 %v7138_v43, %v7137_v60  ;;  %v7146_v31 = vshll.u32 %v15260_v53, %v7131_v52 }
 0x6e6   : > { %v7147_v51 = vshrl.u32 %v15261_v41, %v7132_v16  ;;  %v6994_v17 = vsel %vm6911_vm12, %v6993_v19, %v6992_v30  ;;  %v7142_v34 = vor.u32 %v7141_v4, %v7140_v59  ;;  %v7145_v11 = vor.u32 %v7144_v50, %v7143_v45 }
 0x6e7   : > { %v7076_v32 = vshll.u32 %v7075_v15, 30  ;;  %v6997_v28 = vsel %vm14597_vm11, %v14324_v2, %v6994_v17  ;;  %v14673_v40 = vand.u32 3, %v7002_v6  ;;  %v14675_v55 = vshll.u32 %v7125_v25, 8 }
 0x6e8   : > { %v7148_v24 = vor.u32 %v7147_v51, %v7146_v31  ;;  %8686 = vcosq.f32 %v6997_v28  ;;  %v7133_v52 = vshrl.u32 %v15256_v0, %v7132_v16  ;;  %vm7149_vm8 = vcmp.lt.s32.totalorder %v7130_v49, 1 }
 0x6e9   : > { %v14677_v20 = vsub.s32 %v7073_v26, %v7076_v32  ;;  %8688 = vsinq.f32 %v6997_v28  ;;  %vm7150_vm10 = vcmp.lt.s32.totalorder %v7130_v49, 2  ;;  %vm7152_vm9 = vcmp.lt.s32.totalorder %v7130_v49, 4 }
 0x6ea   : > { %v7157_v1 = vsel %vm7149_vm8, %v7136_v47, %v7139_v5  ;;  %vm7151_vm12 = vcmp.lt.s32.totalorder %v7130_v49, 3  ;;  %v7154_v46 = vsel %vm7152_vm9, %v7142_v34, 2102212464  ;;  %v7158_v23 = vsel %vm7152_vm9, %v7145_v11, 920167782 }
 0x6eb   : > { %v7079_v22 = vsub.s32 0, %v14677_v20  ;;  %v7099_v42 = vsub.s32 4, %v7075_v15  ;;  %v7159_v21 = vsel %vm7151_vm12, %v7142_v34, %v7158_v23  ;;  %v7161_v12 = vsel %vm7149_vm8, %v7139_v5, %v7142_v34 }
 0x6ec   : > { %v7162_v35 = vsel %vm7152_vm9, %v7148_v24, 1326507024  ;;  %v7153_v58 = vsel %vm7149_vm8, %v7133_v52, %v7136_v47  ;;  %v7160_v10 = vsel %vm7150_vm10, %v7157_v1, %v7159_v21  ;;  %v7155_v14 = vsel %vm7151_vm12, %v7139_v5, %v7154_v46 }
 0x6ed   : > { %v8120_v25 = vmin.u32 %v7079_v22, %v14677_v20  ;;  %v7163_v16 = vsel %vm7151_vm12, %v7145_v11, %v7162_v35  ;;  %v14685_v37 = vmul.u32.u64.low %v14675_v55, %v7160_v10  ;;  %v14686_v6 = vmul.u32.u64.high %v14675_v55, %v7160_v10, %v14685_v37 }
 0x6ee   : > { %v7164_v26 = vsel %vm7150_vm10, %v7161_v12, %v7163_v16  ;;  %v692_v33 = vadd.f32 %v14303_v54, %v14557_v57  ;;  %vm14693_vm11 = vcmp.le.f32.partialorder %v7013_v7, 0.7853982  ;;  %vm7015_vm13 = vcmp.lt.s32.totalorder %v14457_v36, 0 }
 0x6ef   : > { %v7081_v63 = vclz %v8120_v25  ;;  %v7100_v30 = vsel %vm7015_vm13, %v7099_v42, %v7075_v15  ;;  %v14701_v48 = vmul.u32.u64.low %v14675_v55, %v7164_v26  ;;  %v14702_v4 = vmul.u32.u64.high %v14675_v55, %v7164_v26, %v14701_v48 }
 0x6f0   : > { %v7224_v9 = vand.u32 2139095040, %v14649_v38  ;;  %vm7004_vm0 = vcmp.lt.s32.totalorder %v14673_v40, 2  ;;  %v7156_v7 = vsel %vm7150_vm10, %v7153_v58, %v7155_v14  ;;  %v14708_v60 = vadd.f32 %v14636_v61, %v692_v33 }
 0x6f1   : > { %v8121_v57 = vadd.s32 4294967294, %v7081_v63  ;;  %vm7005_vm15 = vcmp.eq.s32.totalorder %v14673_v40, 0  ;;  %vm7008_vm14 = vcmp.eq.s32.totalorder %v14673_v40, 2  ;;  %v7175_v50 = vadd.s32 1, %v14686_v6  ;;  %v15428_v40 = vld [vmem:[#allocation8_spill] sm:$0xff] }
 0x6f2   : > { %v7225_v19 = vshrl.u32 %v7224_v9, 23  ;;  %v8687_v15 = vpop.eup %8686  ;;  %v7069_v59 = vadd.s32 %v14624_v29, %v14621_v18  ;;  %v7102_v45 = vsel %vm14693_vm11, 0, %v7100_v30  ;;  %v7221_v49 = vand.u32 2147483647, %v14649_v38 }
 0x6f3   : > { %vm8122_vm1 = vcmp.lt.s32.totalorder %v8121_v57, 0  ;;  %v8689_v47 = vpop.eup %8688  ;;  %v7009_v61 = vxor.u32 2147483648, %v8687_v15  ;;  %v7172_v31 = vmul.u32 %v14675_v55, %v7156_v7  ;;  %vm7174_vm2 = vc.u32 %v14702_v4, %v14685_v37 }
 0x6f4   : > { %v7084_v5 = vsel %vm8122_vm1, 0, %v8121_v57  ;;  %v7006_v51 = vxor.u32 2147483648, %v8689_v47  ;;  %v7328_v34 = vand.u32 2139095040, %v14708_v60  ;;  %v7176_v11 = vsel %vm7174_vm2, %v7175_v50, %v14686_v6 }
 0x6f5   : > { %v7085_v17 = vsub.s32 32, %v7084_v5  ;;  %v7089_v32 = vsub.s32 4294967266, %v7084_v5  ;;  %v7010_v18 = vsel %vm7008_vm14, %v7009_v61, %v8689_v47  ;;  %v7086_v29 = vshll.u32 %v14677_v20, %v7084_v5 }
 0x6f6   : > { %v8127_v28 = vadd.s32 4294967169, %v7225_v19  ;;  %v7007_v24 = vsel %vm7005_vm15, %v8687_v15, %v7006_v51  ;;  %v7177_v1 = vadd.s32 %v7176_v11, %v7172_v31  ;;  %vm7001_vm3 = vweird.f32 %v14324_v2 }
 0x6f7   : > { %v7087_v55 = vshrl.u32 %v7069_v59, %v7085_v17  ;;  %v7090_v52 = vadd.s32 127, %v7089_v32  ;;  %v7011_v22 = vsel %vm7004_vm0, %v7007_v24, %v7010_v18  ;;  %v7106_v46 = vadd.s32 3, %v7102_v45 }
 0x6f8   : > { %v7231_v23 = vadd.s32 1, %v8127_v28  ;;  %v7012_v42 = vsel %vm7001_vm3, nan, %v7011_v22  ;;  %v7178_v20 = vadd.s32 536870912, %v7177_v1  ;;  %v7228_v35 = vand.u32 8388607, %v7221_v49 }
 0x6f9   : > { %v7088_v21 = vor.u32 %v7087_v55, %v7086_v29  ;;  %v7091_v12 = vshll.u32 %v7090_v52, 23  ;;  %7797 = vst [vmem:[%s9666_s10 + $0x1c0] sm:$0xff] %v7012_v42  ;;  %v7329_v16 = vshrl.u32 %v7328_v34, 23  ;;  %v14736_v2 = vadd.f32 %v14303_v54, %v14553_v13 }
 0x6fa   : > { %vm7232_vm4 = vcmp.gt.s32.totalorder %v7231_v23, 0  ;;  %v7179_v58 = vshrl.u32 %v7178_v20, 30  ;;  %v14740_v14 = vmul.f32 %v14549_v56, %v15428_v40  ;;  %v14742_v63 = vand.u32 3, %v7106_v46 }
 0x6fb   : > { %v7092_v25 = vor.u32 4788187, %v7091_v12  ;;  %v7233_v10 = vsel %vm7232_vm4, %v7231_v23, 0  ;;  %v7095_v33 = vcvt.s32.f32 %v7088_v21  ;;  %vm7119_vm5 = vcmp.lt.s32.totalorder %v14516_v8, 0 }
 0x6fc   : > { %v7235_v26 = vand.u32 31, %v7233_v10  ;;  %v7180_v30 = vshll.u32 %v7179_v58, 30  ;;  %v14747_v48 = vadd.s32 %v14685_v37, %v14702_v4  ;;  %v7229_v9 = vor.u32 8388608, %v7228_v35 }
 0x6fd   : > { %v7093_v6 = vand.u32 2147483647, %v7092_v25  ;;  %v7325_v54 = vand.u32 2147483647, %v14708_v60  ;;  %v14752_v50 = vshrl.u32 %v7233_v10, 5  ;;  %v8131_v19 = vadd.s32 4294967169, %v7329_v16 }
 0x6fe   : > { %v7236_v57 = vsub.s32 32, %v7235_v26  ;;  %v14750_v7 = vsub.s32 %v7177_v1, %v7180_v30  ;;  %v7203_v15 = vsub.s32 4, %v7179_v58  ;;  %v7238_v59 = vshll.u32 %v15256_v0, %v7235_v26 }
 0x6ff   : > { %v7096_v13 = vmul.f32 %v7095_v33, %v7093_v6  ;;  %v7241_v4 = vshll.u32 %v15257_v39, %v7235_v26  ;;  %v7244_v51 = vshll.u32 %v15258_v27, %v7235_v26  ;;  %v7247_v17 = vshll.u32 %v15259_v44, %v7235_v26 }
 0x700   : > { %v7239_v45 = vshrl.u32 %v15257_v39, %v7236_v57  ;;  %v7242_v47 = vshrl.u32 %v15258_v27, %v7236_v57  ;;  %v7183_v37 = vsub.s32 0, %v14750_v7  ;;  %v7245_v5 = vshrl.u32 %v15259_v44, %v7236_v57 }
 0x701   : > { %v7097_v61 = vxor.u32 2147483648, %v7096_v13  ;;  %v7248_v32 = vshrl.u32 %v15260_v53, %v7236_v57  ;;  %v7250_v11 = vshll.u32 %v15260_v53, %v7235_v26  ;;  %v7251_v52 = vshrl.u32 %v15261_v41, %v7236_v57 }
 0x702   : > { %v7240_v31 = vor.u32 %v7239_v45, %v7238_v59  ;;  %v8124_v18 = vmin.u32 %v7183_v37, %v14750_v7  ;;  %v7243_v29 = vor.u32 %v7242_v47, %v7241_v4  ;;  %v7246_v24 = vor.u32 %v7245_v5, %v7244_v51  ;;  %v947_v47 = vpop.permute.xlu1 %946 }
 0x703   : > { %v7098_v34 = vsel %vm7015_vm13, %v7097_v61, %v7096_v13  ;;  %v7249_v55 = vor.u32 %v7248_v32, %v7247_v17  ;;  %v14771_v22 = vshll.u32 %v7229_v9, 8  ;;  %v7335_v46 = vadd.s32 1, %v8131_v19  ;;  %v943_v13 = vpop.permute.xlu0 %942 }
 0x704   : > { %v7101_v28 = vsel %vm14693_vm11, %v14457_v36, %v7098_v34  ;;  %v7185_v1 = vclz %v8124_v18  ;;  %v14775_v23 = vsel %vm7119_vm5, %v7203_v15, %v7179_v58  ;;  %v7237_v42 = vshrl.u32 %v15256_v0, %v7236_v57 }
 0x705   : > { %8690 = vcosq.f32 %v7101_v28  ;;  %v7252_v21 = vor.u32 %v7251_v52, %v7250_v11  ;;  %vm14780_vm6 = vcmp.le.f32.partialorder %v7117_v62, 0.7853982  ;;  %vm7253_vm7 = vcmp.lt.s32.totalorder %v14752_v50, 1 }
 0x706   : > { %8692 = vsinq.f32 %v7101_v28  ;;  %v8125_v12 = vadd.s32 4294967294, %v7185_v1  ;;  %vm7255_vm8 = vcmp.lt.s32.totalorder %v14752_v50, 3  ;;  %vm7256_vm10 = vcmp.lt.s32.totalorder %v14752_v50, 4 }
 0x707   : > { %v7258_v20 = vsel %vm7256_vm10, %v7246_v24, 2102212464  ;;  %v7261_v35 = vsel %vm7253_vm7, %v7240_v31, %v7243_v29  ;;  %v7262_v25 = vsel %vm7256_vm10, %v7249_v55, 920167782  ;;  %v7265_v58 = vsel %vm7253_vm7, %v7243_v29, %v7246_v24 }
 0x708   : > { %vm7112_vm9 = vcmp.eq.s32.totalorder %v14742_v63, 2  ;;  %vm8126_vm12 = vcmp.lt.s32.totalorder %v8125_v12, 0  ;;  %vm7254_vm11 = vcmp.lt.s32.totalorder %v14752_v50, 2  ;;  %v7263_v62 = vsel %vm7255_vm8, %v7246_v24, %v7262_v25 }
 0x709   : > { %v7266_v10 = vsel %vm7256_vm10, %v7252_v21, 1326507024  ;;  %vm7109_vm13 = vcmp.eq.s32.totalorder %v14742_v63, 0  ;;  %v7188_v16 = vsel %vm8126_vm12, 0, %v8125_v12  ;;  %v7257_v40 = vsel %vm7253_vm7, %v7237_v42, %v7240_v31 }
 0x70a   : > { %v7264_v26 = vsel %vm7254_vm11, %v7261_v35, %v7263_v62  ;;  %v7267_v6 = vsel %vm7255_vm8, %v7249_v55, %v7266_v10  ;;  %vm7108_vm0 = vcmp.lt.s32.totalorder %v14742_v63, 2  ;;  %v7189_v33 = vsub.s32 32, %v7188_v16 }
 0x70b   : > { %v7193_v30 = vsub.s32 4294967266, %v7188_v16  ;;  %v7259_v9 = vsel %vm7255_vm8, %v7243_v29, %v7258_v20  ;;  %v7268_v57 = vsel %vm7254_vm11, %v7265_v58, %v7267_v6  ;;  %vm7105_vm15 = vweird.f32 %v14457_v36 }
 0x70c   : > { %v14803_v19 = vmul.u32.u64.low %v14771_v22, %v7268_v57  ;;  %v14804_v15 = vmul.u32.u64.high %v14771_v22, %v7268_v57, %v14803_v19  ;;  %v14807_v59 = vmul.u32.u64.low %v14771_v22, %v7264_v26  ;;  %v14808_v45 = vmul.u32.u64.high %v14771_v22, %v7264_v26, %v14807_v59 }
 0x70d   : > { %v7190_v61 = vshll.u32 %v14750_v7, %v7188_v16  ;;  %v7191_v37 = vshrl.u32 %v14747_v48, %v7189_v33  ;;  %v7194_v4 = vadd.s32 127, %v7193_v30  ;;  %vm7336_vm14 = vcmp.gt.s32.totalorder %v7335_v46, 0 }
 0x70e   : > { %v7260_v5 = vsel %vm7254_vm11, %v7257_v40, %v7259_v9  ;;  %v7332_v31 = vand.u32 8388607, %v7325_v54  ;;  %v7337_v51 = vsel %vm7336_vm14, %v7335_v46, 0  ;;  %v1018_v17 = vmul.f32 %v14440_v3, %v943_v13 }
 0x70f   : > { %v8691_v32 = vpop.eup %8690  ;;  %v7192_v34 = vor.u32 %v7191_v37, %v7190_v61  ;;  %v7195_v18 = vshll.u32 %v7194_v4, 23  ;;  %v7339_v29 = vand.u32 31, %v7337_v51  ;;  %v14819_v11 = vmul.f32 %v14440_v3, %v947_v47 }
 0x710   : > { %v8693_v7 = vpop.eup %8692  ;;  %v7113_v48 = vxor.u32 2147483648, %v8691_v32  ;;  %v7206_v50 = vsel %vm14780_vm6, 0, %v14775_v23  ;;  %vm7278_vm1 = vc.u32 %v14804_v15, %v14807_v59  ;;  %v7279_v28 = vadd.s32 1, %v14808_v45 }
 0x711   : > { %v7110_v24 = vxor.u32 2147483648, %v8693_v7  ;;  %v7196_v55 = vor.u32 4788187, %v7195_v18  ;;  %v7276_v52 = vmul.u32 %v14771_v22, %v7260_v5  ;;  %v7340_v1 = vsub.s32 32, %v7339_v29 }
 0x712   : > { %v7114_v3 = vsel %vm7112_vm9, %v7113_v48, %v8693_v7  ;;  %v7280_v46 = vsel %vm7278_vm1, %v7279_v28, %v14808_v45  ;;  %v7333_v42 = vor.u32 8388608, %v7332_v31  ;;  %v14832_v21 = vadd.f32 %v1018_v17, %v14736_v2 }
 0x713   : > { %v7111_v23 = vsel %vm7109_vm13, %v8691_v32, %v7110_v24  ;;  %v7197_v12 = vand.u32 2147483647, %v7196_v55  ;;  %v7199_v20 = vcvt.s32.f32 %v7192_v34  ;;  %v7281_v35 = vadd.s32 %v7280_v46, %v7276_v52 }
 0x714   : > { %v7115_v22 = vsel %vm7108_vm0, %v7111_v23, %v7114_v3  ;;  %v7210_v25 = vadd.s32 3, %v7206_v50  ;;  %v7343_v58 = vshrl.u32 %v15257_v39, %v7340_v1  ;;  %v7346_v62 = vshrl.u32 %v15258_v27, %v7340_v1 }
 0x715   : > { %v7116_v10 = vsel %vm7105_vm15, nan, %v7115_v22  ;;  %v7200_v16 = vmul.f32 %v7199_v20, %v7197_v12  ;;  %v7282_v2 = vadd.s32 536870912, %v7281_v35  ;;  %v7349_v40 = vshrl.u32 %v15259_v44, %v7340_v1 }
 0x716   : > { %7798 = vst [vmem:[%s9666_s10 + $0x1c8] sm:$0xff] %v7116_v10  ;;  %v7338_v26 = vshrl.u32 %v7337_v51, 5  ;;  %v7342_v6 = vshll.u32 %v15256_v0, %v7339_v29  ;;  %v7345_v33 = vshll.u32 %v15257_v39, %v7339_v29  ;;  %v7352_v63 = vshrl.u32 %v15260_v53, %v7340_v1 }
 0x717   : > { %v7201_v30 = vxor.u32 2147483648, %v7200_v16  ;;  %v7283_v9 = vshrl.u32 %v7282_v2, 30  ;;  %v7348_v57 = vshll.u32 %v15258_v27, %v7339_v29  ;;  %v7351_v13 = vshll.u32 %v15259_v44, %v7339_v29 }
 0x718   : > { %v7344_v36 = vor.u32 %v7343_v58, %v7342_v6  ;;  %v7347_v19 = vor.u32 %v7346_v62, %v7345_v33  ;;  %v7354_v45 = vshll.u32 %v15260_v53, %v7339_v29  ;;  %v7355_v47 = vshrl.u32 %v15261_v41, %v7340_v1 }
 0x719   : > { %v7202_v61 = vsel %vm7119_vm5, %v7201_v30, %v7200_v16  ;;  %v7284_v37 = vshll.u32 %v7283_v9, 30  ;;  %v7350_v4 = vor.u32 %v7349_v40, %v7348_v57  ;;  %v7353_v5 = vor.u32 %v7352_v63, %v7351_v13 }
 0x71a   : > { %v7205_v31 = vsel %vm14780_vm6, %v14516_v8, %v7202_v61  ;;  %v14856_v51 = vand.u32 3, %v7210_v25  ;;  %v7356_v17 = vor.u32 %v7355_v47, %v7354_v45  ;;  %v14858_v32 = vshll.u32 %v7333_v42, 8 }
 0x71b   : > { %8694 = vcosq.f32 %v7205_v31  ;;  %v14860_v34 = vsub.s32 %v7281_v35, %v7284_v37  ;;  %v7341_v18 = vshrl.u32 %v15256_v0, %v7340_v1  ;;  %vm7357_vm2 = vcmp.lt.s32.totalorder %v7338_v26, 1  ;;  %v8747_v35 = vld [vmem:[%s15172_s2] ss:$0 sm:$0xff] }
 0x71c   : > { %8696 = vsinq.f32 %v7205_v31  ;;  %vm7358_vm3 = vcmp.lt.s32.totalorder %v7338_v26, 2  ;;  %vm7360_vm4 = vcmp.lt.s32.totalorder %v7338_v26, 4  ;;  %v7365_v29 = vsel %vm7357_vm2, %v7344_v36, %v7347_v19 }
 0x71d   : > { %v7287_v7 = vsub.s32 0, %v14860_v34  ;;  %vm7359_vm5 = vcmp.lt.s32.totalorder %v7338_v26, 3  ;;  %v7362_v43 = vsel %vm7360_vm4, %v7350_v4, 2102212464  ;;  %v7366_v48 = vsel %vm7360_vm4, %v7353_v5, 920167782 }
 0x71e   : > { %v7307_v50 = vsub.s32 4, %v7283_v9  ;;  %v7367_v28 = vsel %vm7359_vm5, %v7350_v4, %v7366_v48  ;;  %v7369_v24 = vsel %vm7357_vm2, %v7347_v19, %v7350_v4  ;;  %v7370_v55 = vsel %vm7360_vm4, %v7356_v17, 1326507024 }
 0x71f   : > { %v8128_v52 = vmin.u32 %v7287_v7, %v14860_v34  ;;  %v7361_v3 = vsel %vm7357_vm2, %v7341_v18, %v7344_v36  ;;  %v7368_v46 = vsel %vm7358_vm3, %v7365_v29, %v7367_v28  ;;  %v7371_v1 = vsel %vm7359_vm5, %v7353_v5, %v7370_v55  ;;  %v15433_v18 = vld [vmem:[#allocation9_spill] sm:$0xff] }
 0x720   : > { %v7363_v42 = vsel %vm7359_vm5, %v7347_v19, %v7362_v43  ;;  %v7372_v23 = vsel %vm7358_vm3, %v7369_v24, %v7371_v1  ;;  %v14868_v12 = vmul.u32.u64.low %v14858_v32, %v7368_v46  ;;  %v14869_v20 = vmul.u32.u64.high %v14858_v32, %v7368_v46, %v14868_v12 }
 0x721   : > { %v694_v22 = vadd.f32 %v8747_v35, %v14740_v14  ;;  %vm14878_vm6 = vcmp.le.f32.partialorder %v7221_v49, 0.7853982  ;;  %vm7223_vm7 = vcmp.lt.s32.totalorder %v14649_v38, 0  ;;  %v7289_v58 = vclz %v8128_v52 }
 0x722   : > { %v7308_v62 = vsel %vm7223_vm7, %v7307_v50, %v7283_v9  ;;  %v14886_v10 = vmul.u32.u64.low %v14858_v32, %v7372_v23  ;;  %v14887_v16 = vmul.u32.u64.high %v14858_v32, %v7372_v23, %v14886_v10  ;;  %v7432_v2 = vand.u32 2139095040, %v14832_v21 }
 0x723   : > { %vm7212_vm8 = vcmp.lt.s32.totalorder %v14856_v51, 2  ;;  %v8129_v14 = vadd.s32 4294967294, %v7289_v58  ;;  %v7364_v49 = vsel %vm7358_vm3, %v7361_v3, %v7363_v42  ;;  %v14893_v40 = vadd.f32 %v14819_v11, %v694_v22 }
 0x724   : > { %vm7213_vm10 = vcmp.eq.s32.totalorder %v14856_v51, 0  ;;  %vm7216_vm9 = vcmp.eq.s32.totalorder %v14856_v51, 2  ;;  %v7383_v6 = vadd.s32 1, %v14869_v20  ;;  %v7433_v33 = vshrl.u32 %v7432_v2, 23 }
 0x725   : > { %v8695_v63 = vpop.eup %8694  ;;  %v7277_v30 = vadd.s32 %v14807_v59, %v14804_v15  ;;  %vm8130_vm12 = vcmp.lt.s32.totalorder %v8129_v14, 0  ;;  %v7310_v9 = vsel %vm14878_vm6, 0, %v7308_v62  ;;  %v7429_v26 = vand.u32 2147483647, %v14832_v21 }
 0x726   : > { %v8697_v57 = vpop.eup %8696  ;;  %v7217_v11 = vxor.u32 2147483648, %v8695_v63  ;;  %v7292_v13 = vsel %vm8130_vm12, 0, %v8129_v14  ;;  %v7380_v36 = vmul.u32 %v14858_v32, %v7364_v49  ;;  %vm7382_vm11 = vc.u32 %v14887_v16, %v14868_v12 }
 0x727   : > { %v7214_v19 = vxor.u32 2147483648, %v8697_v57  ;;  %v7293_v45 = vsub.s32 32, %v7292_v13  ;;  %v7297_v47 = vsub.s32 4294967266, %v7292_v13  ;;  %v7536_v61 = vand.u32 2139095040, %v14893_v40 }
 0x728   : > { %v7218_v15 = vsel %vm7216_vm9, %v7217_v11, %v8697_v57  ;;  %v7294_v59 = vshll.u32 %v14860_v34, %v7292_v13  ;;  %v7384_v37 = vsel %vm7382_vm11, %v7383_v6, %v14869_v20  ;;  %v8135_v4 = vadd.s32 4294967169, %v7433_v33 }
 0x729   : > { %v7215_v5 = vsel %vm7213_vm10, %v8695_v63, %v7214_v19  ;;  %v7295_v31 = vshrl.u32 %v7277_v30, %v7293_v45  ;;  %v7298_v17 = vadd.s32 127, %v7297_v47  ;;  %v7385_v32 = vadd.s32 %v7384_v37, %v7380_v36 }
 0x72a   : > { %v625_v29 = vmul.f32 %v14549_v56, %v15433_v18  ;;  %vm7209_vm13 = vweird.f32 %v14516_v8  ;;  %v7219_v7 = vsel %vm7212_vm8, %v7215_v5, %v7218_v15  ;;  %v7439_v43 = vadd.s32 1, %v8135_v4 }
 0x72b   : > { %v7220_v48 = vsel %vm7209_vm13, nan, %v7219_v7  ;;  %v7296_v34 = vor.u32 %v7295_v31, %v7294_v59  ;;  %v7299_v50 = vshll.u32 %v7298_v17, 23  ;;  %v7386_v28 = vadd.s32 536870912, %v7385_v32 }
 0x72c   : > { %7799 = vst [vmem:[%s9666_s10 + $0x1d0] sm:$0xff] %v7220_v48  ;;  %v7314_v24 = vadd.s32 3, %v7310_v9  ;;  %v7436_v55 = vand.u32 8388607, %v7429_v26  ;;  %vm7440_vm0 = vcmp.gt.s32.totalorder %v7439_v43, 0  ;;  %v7537_v46 = vshrl.u32 %v7536_v61, 23 }
 0x72d   : > { %v7300_v52 = vor.u32 4788187, %v7299_v50  ;;  %v14921_v3 = vshrl.u32 %v7386_v28, 30  ;;  %v7441_v56 = vsel %vm7440_vm0, %v7439_v43, 0  ;;  %v14923_v1 = vadd.f32 %v8747_v35, %v625_v29 }
 0x72e   : > { %v7443_v8 = vand.u32 31, %v7441_v56  ;;  %v7303_v42 = vcvt.s32.f32 %v7296_v34  ;;  %v14926_v20 = vand.u32 3, %v7314_v24  ;;  %v7437_v22 = vor.u32 8388608, %v7436_v55 }
 0x72f   : > { %v7301_v51 = vand.u32 2147483647, %v7300_v52  ;;  %v7388_v23 = vshll.u32 %v14921_v3, 30  ;;  %v7533_v62 = vand.u32 2147483647, %v14893_v40  ;;  %v7381_v2 = vadd.s32 %v14868_v12, %v14887_v16 }
 0x730   : > { %v7444_v58 = vsub.s32 32, %v7443_v8  ;;  %v8139_v49 = vadd.s32 4294967169, %v7537_v46  ;;  %v7442_v6 = vshrl.u32 %v7441_v56, 5  ;;  %v7446_v35 = vshll.u32 %v15256_v0, %v7443_v8 }
 0x731   : > { %v7304_v10 = vmul.f32 %v7303_v42, %v7301_v51  ;;  %v14931_v14 = vsub.s32 %v7385_v32, %v7388_v23  ;;  %v7449_v57 = vshll.u32 %v15257_v39, %v7443_v8  ;;  %v7452_v12 = vshll.u32 %v15258_v27, %v7443_v8 }
 0x732   : > { %v7447_v33 = vshrl.u32 %v15257_v39, %v7444_v58  ;;  %v7450_v63 = vshrl.u32 %v15258_v27, %v7444_v58  ;;  %v7453_v11 = vshrl.u32 %v15259_v44, %v7444_v58  ;;  %v7455_v16 = vshll.u32 %v15259_v44, %v7443_v8 }
 0x733   : > { %v7305_v30 = vxor.u32 2147483648, %v7304_v10  ;;  %v7391_v9 = vsub.s32 0, %v14931_v14  ;;  %v7456_v36 = vshrl.u32 %v15260_v53, %v7444_v58  ;;  %v7458_v61 = vshll.u32 %v15260_v53, %v7443_v8 }
 0x734   : > { %v7448_v13 = vor.u32 %v7447_v33, %v7446_v35  ;;  %v7451_v47 = vor.u32 %v7450_v63, %v7449_v57  ;;  %v7454_v59 = vor.u32 %v7453_v11, %v7452_v12  ;;  %v7459_v4 = vshrl.u32 %v15261_v41, %v7444_v58 }
 0x735   : > { %v7306_v19 = vsel %vm7223_vm7, %v7305_v30, %v7304_v10  ;;  %v8132_v45 = vmin.u32 %v7391_v9, %v14931_v14  ;;  %v7457_v37 = vor.u32 %v7456_v36, %v7455_v16  ;;  %v14950_v31 = vshll.u32 %v7437_v22, 8  ;;  %v951_v16 = vpop.permute.xlu0 %950 }
 0x736   : > { %v7309_v15 = vsel %vm14878_vm6, %v14649_v38, %v7306_v19  ;;  %v7543_v17 = vadd.s32 1, %v8139_v49  ;;  %v7411_v32 = vsub.s32 4, %v14921_v3  ;;  %v7445_v18 = vshrl.u32 %v15256_v0, %v7444_v58 }
 0x737   : > { %8698 = vcosq.f32 %v7309_v15  ;;  %v7393_v5 = vclz %v8132_v45  ;;  %v7460_v29 = vor.u32 %v7459_v4, %v7458_v61  ;;  %vm7327_vm15 = vcmp.lt.s32.totalorder %v14708_v60, 0  ;;  %v8748_v4 = vld [vmem:[%s15171_s1 + $0x1] ss:$0 sm:$0xff] }
 0x738   : > { %8700 = vsinq.f32 %v7309_v15  ;;  %vm7461_vm14 = vcmp.lt.s32.totalorder %v7442_v6, 1  ;;  %vm7463_vm1 = vcmp.lt.s32.totalorder %v7442_v6, 3  ;;  %vm7464_vm2 = vcmp.lt.s32.totalorder %v7442_v6, 4 }
 0x739   : > { %v8133_v7 = vadd.s32 4294967294, %v7393_v5  ;;  %v7466_v25 = vsel %vm7464_vm2, %v7454_v59, 2102212464  ;;  %v7469_v43 = vsel %vm7461_vm14, %v7448_v13, %v7451_v47  ;;  %v7470_v48 = vsel %vm7464_vm2, %v7457_v37, 920167782 }
 0x73a   : > { %v7473_v34 = vsel %vm7461_vm14, %v7451_v47, %v7454_v59  ;;  %vm7462_vm4 = vcmp.lt.s32.totalorder %v7442_v6, 2  ;;  %v7471_v50 = vsel %vm7463_vm1, %v7454_v59, %v7470_v48  ;;  %v7474_v28 = vsel %vm7464_vm2, %v7460_v29, 1326507024 }
 0x73b   : > { %vm8134_vm3 = vcmp.lt.s32.totalorder %v8133_v7, 0  ;;  %v7465_v55 = vsel %vm7461_vm14, %v7445_v18, %v7448_v13  ;;  %v7472_v52 = vsel %vm7462_vm4, %v7469_v43, %v7471_v50  ;;  %v7475_v56 = vsel %vm7463_vm1, %v7457_v37, %v7474_v28 }
 0x73c   : > { %v7396_v24 = vsel %vm8134_vm3, 0, %v8133_v7  ;;  %vm7316_vm5 = vcmp.lt.s32.totalorder %v14926_v20, 2  ;;  %vm14961_vm6 = vcmp.le.f32.partialorder %v7325_v54, 0.7853982  ;;  %v7467_v42 = vsel %vm7463_vm1, %v7451_v47, %v7466_v25 }
 0x73d   : > { %v7397_v8 = vsub.s32 32, %v7396_v24  ;;  %v7401_v51 = vsub.s32 4294967266, %v7396_v24  ;;  %v7476_v23 = vsel %vm7462_vm4, %v7473_v34, %v7475_v56  ;;  %vm7313_vm7 = vweird.f32 %v14649_v38 }
 0x73e   : > { %v14969_v22 = vmul.u32.u64.low %v14950_v31, %v7476_v23  ;;  %v14970_v58 = vmul.u32.u64.high %v14950_v31, %v7476_v23, %v14969_v22  ;;  %v14973_v10 = vmul.u32.u64.low %v14950_v31, %v7472_v52  ;;  %v14974_v49 = vmul.u32.u64.high %v14950_v31, %v7472_v52, %v14973_v10 }
 0x73f   : > { %v7398_v54 = vshll.u32 %v14931_v14, %v7396_v24  ;;  %v7399_v35 = vshrl.u32 %v7381_v2, %v7397_v8  ;;  %v7402_v33 = vadd.s32 127, %v7401_v51  ;;  %vm7544_vm8 = vcmp.gt.s32.totalorder %v7543_v17, 0 }
 0x740   : > { %vm7317_vm10 = vcmp.eq.s32.totalorder %v14926_v20, 0  ;;  %v7468_v63 = vsel %vm7462_vm4, %v7465_v55, %v7467_v42  ;;  %v7540_v30 = vand.u32 8388607, %v7533_v62  ;;  %v7545_v9 = vsel %vm7544_vm8, %v7543_v17, 0 }
 0x741   : > { %v8699_v57 = vpop.eup %8698  ;;  %vm7320_vm9 = vcmp.eq.s32.totalorder %v14926_v20, 2  ;;  %v7400_v11 = vor.u32 %v7399_v35, %v7398_v54  ;;  %v7403_v13 = vshll.u32 %v7402_v33, 23  ;;  %v7547_v12 = vand.u32 31, %v7545_v9 }
 0x742   : > { %v8701_v36 = vpop.eup %8700  ;;  %v7321_v14 = vxor.u32 2147483648, %v8699_v57  ;;  %v7412_v2 = vsel %vm7327_vm15, %v7411_v32, %v14921_v3  ;;  %vm7486_vm12 = vc.u32 %v14970_v58, %v14973_v10  ;;  %v7487_v6 = vadd.s32 1, %v14974_v49 }
 0x743   : > { %v7318_v19 = vxor.u32 2147483648, %v8701_v36  ;;  %v7404_v45 = vor.u32 4788187, %v7403_v13  ;;  %v7484_v47 = vmul.u32 %v14950_v31, %v7468_v63  ;;  %v7548_v61 = vsub.s32 32, %v7547_v12 }
 0x744   : > { %v7322_v15 = vsel %vm7320_vm9, %v7321_v14, %v8701_v36  ;;  %v7488_v59 = vsel %vm7486_vm12, %v7487_v6, %v14974_v49  ;;  %v7541_v37 = vor.u32 8388608, %v7540_v30  ;;  %v1020_v3 = vmul.f32 %v8748_v4, %v951_v16 }
 0x745   : > { %v7319_v5 = vsel %vm7317_vm10, %v8699_v57, %v7318_v19  ;;  %v7405_v17 = vand.u32 2147483647, %v7404_v45  ;;  %v7407_v32 = vcvt.s32.f32 %v7400_v11  ;;  %v7489_v18 = vadd.s32 %v7488_v59, %v7484_v47 }
 0x746   : > { %v7323_v31 = vsel %vm7316_vm5, %v7319_v5, %v7322_v15  ;;  %v7414_v29 = vsel %vm14961_vm6, 0, %v7412_v2  ;;  %v7551_v7 = vshrl.u32 %v15257_v39, %v7548_v61  ;;  %v7554_v25 = vshrl.u32 %v15258_v27, %v7548_v61 }
 0x747   : > { %v7324_v43 = vsel %vm7313_vm7, nan, %v7323_v31  ;;  %v7408_v48 = vmul.f32 %v7407_v32, %v7405_v17  ;;  %v7490_v34 = vadd.s32 536870912, %v7489_v18  ;;  %v7546_v50 = vshrl.u32 %v7545_v9, 5 }
 0x748   : > { %7800 = vst [vmem:[%s9666_s10 + $0x1d8] sm:$0xff] %v7324_v43  ;;  %v7550_v28 = vshll.u32 %v15256_v0, %v7547_v12  ;;  %v7553_v24 = vshll.u32 %v15257_v39, %v7547_v12  ;;  %v7557_v20 = vshrl.u32 %v15259_v44, %v7548_v61  ;;  %v7560_v55 = vshrl.u32 %v15260_v53, %v7548_v61 }
 0x749   : > { %v7409_v52 = vxor.u32 2147483648, %v7408_v48  ;;  %v15009_v56 = vshrl.u32 %v7490_v34, 30  ;;  %v7556_v8 = vshll.u32 %v15258_v27, %v7547_v12  ;;  %v7559_v38 = vshll.u32 %v15259_v44, %v7547_v12 }
 0x74a   : > { %v7552_v51 = vor.u32 %v7551_v7, %v7550_v28  ;;  %v7555_v42 = vor.u32 %v7554_v25, %v7553_v24  ;;  %v7562_v23 = vshll.u32 %v15260_v53, %v7547_v12  ;;  %v7563_v22 = vshrl.u32 %v15261_v41, %v7548_v61 }
 0x74b   : > { %v7410_v49 = vsel %vm7327_vm15, %v7409_v52, %v7408_v48  ;;  %v7492_v54 = vshll.u32 %v15009_v56, 30  ;;  %v7561_v35 = vor.u32 %v7560_v55, %v7559_v38  ;;  %v7558_v63 = vor.u32 %v7557_v20, %v7556_v8 }
 0x74c   : > { %v7413_v33 = vsel %vm14961_vm6, %v14708_v60, %v7410_v49  ;;  %v7564_v30 = vor.u32 %v7563_v22, %v7562_v23  ;;  %v15022_v9 = vadd.f32 %v1020_v3, %v14923_v1  ;;  %v7418_v57 = vadd.s32 3, %v7414_v29 }
 0x74d   : > { %8702 = vcosq.f32 %v7413_v33  ;;  %v7493_v11 = vsub.s32 %v7489_v18, %v7492_v54  ;;  %vm7565_vm11 = vcmp.lt.s32.totalorder %v7546_v50, 1  ;;  %vm7568_vm13 = vcmp.lt.s32.totalorder %v7546_v50, 4 }
 0x74e   : > { %8704 = vsinq.f32 %v7413_v33  ;;  %v7573_v13 = vsel %vm7565_vm11, %v7552_v51, %v7555_v42  ;;  %v7581_v12 = vshll.u32 %v7541_v37, 8  ;;  %vm7566_vm0 = vcmp.lt.s32.totalorder %v7546_v50, 2 }
 0x74f   : > { %v7495_v16 = vsub.s32 0, %v7493_v11  ;;  %vm7567_vm15 = vcmp.lt.s32.totalorder %v7546_v50, 3  ;;  %v7574_v36 = vsel %vm7568_vm13, %v7561_v35, 920167782  ;;  %v7570_v46 = vsel %vm7568_vm13, %v7558_v63, 2102212464 }
 0x750   : > { %v7575_v14 = vsel %vm7567_vm15, %v7558_v63, %v7574_v36  ;;  %v7577_v2 = vsel %vm7565_vm11, %v7555_v42, %v7558_v63  ;;  %v7578_v6 = vsel %vm7568_vm13, %v7564_v30, 1326507024  ;;  %v7549_v19 = vshrl.u32 %v15256_v0, %v7548_v61 }
 0x751   : > { %v8136_v1 = vmin.u32 %v7495_v16, %v7493_v11  ;;  %v7576_v45 = vsel %vm7566_vm0, %v7573_v13, %v7575_v14  ;;  %v7579_v47 = vsel %vm7567_vm15, %v7561_v35, %v7578_v6  ;;  %v7419_v15 = vand.u32 3, %v7418_v57 }
 0x752   : > { %v7580_v59 = vsel %vm7566_vm0, %v7577_v2, %v7579_v47  ;;  %v15029_v4 = vmul.u32.u64.low %v7581_v12, %v7576_v45  ;;  %v15030_v37 = vmul.u32.u64.high %v7581_v12, %v7576_v45, %v15029_v4  ;;  %v7569_v5 = vsel %vm7565_vm11, %v7549_v19, %v7552_v51 }
 0x753   : > { %v7497_v3 = vclz %v8136_v1  ;;  %v7571_v17 = vsel %vm7567_vm15, %v7555_v42, %v7570_v46  ;;  %v15034_v32 = vmul.u32.u64.low %v7581_v12, %v7580_v59  ;;  %v15035_v18 = vmul.u32.u64.high %v7581_v12, %v7580_v59, %v15034_v32 }
 0x754   : > { %v7640_v31 = vand.u32 2139095040, %v15022_v9  ;;  %vm7420_vm14 = vcmp.lt.s32.totalorder %v7419_v15, 2  ;;  %v7572_v29 = vsel %vm7566_vm0, %v7569_v5, %v7571_v17  ;;  %v7591_v7 = vadd.s32 1, %v15030_v37 }
 0x755   : > { %v8137_v61 = vadd.s32 4294967294, %v7497_v3  ;;  %vm7421_vm1 = vcmp.eq.s32.totalorder %v7419_v15, 0  ;;  %vm7424_vm2 = vcmp.eq.s32.totalorder %v7419_v15, 2  ;;  %v7637_v48 = vand.u32 2147483647, %v15022_v9 }
 0x756   : > { %v7641_v25 = vshrl.u32 %v7640_v31, 23  ;;  %v7485_v24 = vadd.s32 %v14973_v10, %v14970_v58  ;;  %vm7590_vm4 = vc.u32 %v15035_v18, %v15029_v4  ;;  %v7588_v8 = vmul.u32 %v7581_v12, %v7572_v29 }
 0x757   : > { %v8703_v43 = vpop.eup %8702  ;;  %vm8138_vm3 = vcmp.lt.s32.totalorder %v8137_v61, 0  ;;  %v7592_v42 = vsel %vm7590_vm4, %v7591_v7, %v15030_v37  ;;  %vm7417_vm5 = vweird.f32 %v14708_v60  ;;  %v7515_v10 = vsub.s32 4, %v15009_v56 }
 0x758   : > { %v8705_v34 = vpop.eup %8704  ;;  %v7425_v28 = vxor.u32 2147483648, %v8703_v43  ;;  %v7500_v20 = vsel %vm8138_vm3, 0, %v8137_v61  ;;  %v8143_v23 = vadd.s32 4294967169, %v7641_v25  ;;  %v7593_v35 = vadd.s32 %v7592_v42, %v7588_v8 }
 0x759   : > { %v7422_v50 = vxor.u32 2147483648, %v8705_v34  ;;  %v7501_v55 = vsub.s32 32, %v7500_v20  ;;  %v7505_v52 = vsub.s32 4294967266, %v7500_v20  ;;  %v7502_v51 = vshll.u32 %v7493_v11, %v7500_v20 }
 0x75a   : > { %v7426_v38 = vsel %vm7424_vm2, %v7425_v28, %v8705_v34  ;;  %v7647_v33 = vadd.s32 1, %v8143_v23  ;;  %v7594_v13 = vadd.s32 536870912, %v7593_v35  ;;  %vm7431_vm6 = vcmp.lt.s32.totalorder %v14832_v21, 0 }
 0x75b   : > { %v7423_v22 = vsel %vm7421_vm1, %v8703_v43, %v7422_v50  ;;  %v7503_v49 = vshrl.u32 %v7485_v24, %v7501_v55  ;;  %v7506_v54 = vadd.s32 127, %v7505_v52  ;;  %v7644_v16 = vand.u32 8388607, %v7637_v48 }
 0x75c   : > { %v7427_v58 = vsel %vm7420_vm14, %v7423_v22, %v7426_v38  ;;  %vm7648_vm7 = vcmp.gt.s32.totalorder %v7647_v33, 0  ;;  %v15052_v12 = vshrl.u32 %v7594_v13, 30  ;;  %v7516_v36 = vsel %vm7431_vm6, %v7515_v10, %v15009_v56 }
 0x75d   : > { %v7428_v63 = vsel %vm7417_vm5, nan, %v7427_v58  ;;  %v7504_v30 = vor.u32 %v7503_v49, %v7502_v51  ;;  %v7507_v57 = vshll.u32 %v7506_v54, 23  ;;  %v7649_v60 = vsel %vm7648_vm7, %v7647_v33, 0 }
 0x75e   : > { %7801 = vst [vmem:[%s9666_s10 + $0x1e0] sm:$0xff] %v7428_v63  ;;  %v7651_v46 = vand.u32 31, %v7649_v60  ;;  %v7596_v6 = vshll.u32 %v15052_v12, 30  ;;  %vm15062_vm8 = vcmp.le.f32.partialorder %v7429_v26, 0.7853982  ;;  %v7645_v59 = vor.u32 8388608, %v7644_v16 }
 0x75f   : > { %v7508_v11 = vor.u32 4788187, %v7507_v57  ;;  %v7511_v2 = vcvt.s32.f32 %v7504_v30  ;;  %v7518_v47 = vsel %vm15062_vm8, 0, %v7516_v36  ;;  %v7650_v37 = vshrl.u32 %v7649_v60, 5 }
 0x760   : > { %v7652_v19 = vsub.s32 32, %v7651_v46  ;;  %v7597_v15 = vsub.s32 %v7593_v35, %v7596_v6  ;;  %v7654_v56 = vshll.u32 %v15256_v0, %v7651_v46  ;;  %v7657_v26 = vshll.u32 %v15257_v39, %v7651_v46 }
 0x761   : > { %v7509_v14 = vand.u32 2147483647, %v7508_v11  ;;  %v7660_v29 = vshll.u32 %v15258_v27, %v7651_v46  ;;  %v7663_v7 = vshll.u32 %v15259_v44, %v7651_v46  ;;  %v7666_v24 = vshll.u32 %v15260_v53, %v7651_v46 }
 0x762   : > { %v7655_v3 = vshrl.u32 %v15257_v39, %v7652_v19  ;;  %v7658_v5 = vshrl.u32 %v15258_v27, %v7652_v19  ;;  %v7599_v32 = vsub.s32 0, %v7597_v15  ;;  %v7661_v31 = vshrl.u32 %v15259_v44, %v7652_v19 }
 0x763   : > { %v7512_v45 = vmul.f32 %v7511_v2, %v7509_v14  ;;  %v7664_v25 = vshrl.u32 %v15260_v53, %v7652_v19  ;;  %v7667_v55 = vshrl.u32 %v15261_v41, %v7652_v19  ;;  %v7522_v27 = vadd.s32 3, %v7518_v47 }
 0x764   : > { %v7656_v61 = vor.u32 %v7655_v3, %v7654_v56  ;;  %v8140_v34 = vmin.u32 %v7599_v32, %v7597_v15  ;;  %v7659_v28 = vor.u32 %v7658_v5, %v7657_v26  ;;  %v7662_v20 = vor.u32 %v7661_v31, %v7660_v29 }
 0x765   : > { %v7513_v17 = vxor.u32 2147483648, %v7512_v45  ;;  %v7665_v50 = vor.u32 %v7664_v25, %v7663_v7  ;;  %v7589_v44 = vadd.s32 %v15029_v4, %v15035_v18  ;;  %v7653_v8 = vshrl.u32 %v15256_v0, %v7652_v19 }
 0x766   : > { %v7601_v52 = vclz %v8140_v34  ;;  %v7668_v38 = vor.u32 %v7667_v55, %v7666_v24  ;;  %v7685_v51 = vshll.u32 %v7645_v59, 8  ;;  %vm7669_vm10 = vcmp.lt.s32.totalorder %v7650_v37, 1 }
 0x767   : > { %v7514_v43 = vsel %vm7431_vm6, %v7513_v17, %v7512_v45  ;;  %vm7671_vm9 = vcmp.lt.s32.totalorder %v7650_v37, 3  ;;  %vm7672_vm12 = vcmp.lt.s32.totalorder %v7650_v37, 4  ;;  %v7677_v23 = vsel %vm7669_vm10, %v7656_v61, %v7659_v28 }
 0x768   : > { %v7517_v39 = vsel %vm15062_vm8, %v14832_v21, %v7514_v43  ;;  %v8141_v53 = vadd.s32 4294967294, %v7601_v52  ;;  %v7674_v42 = vsel %vm7672_vm12, %v7662_v20, 2102212464  ;;  %v7678_v22 = vsel %vm7672_vm12, %v7665_v50, 920167782 }
 0x769   : > { %8706 = vcosq.f32 %v7517_v39  ;;  %v7681_v49 = vsel %vm7669_vm10, %v7659_v28, %v7662_v20  ;;  %vm7670_vm13 = vcmp.lt.s32.totalorder %v7650_v37, 2  ;;  %v7679_v41 = vsel %vm7671_vm9, %v7662_v20, %v7678_v22 }
 0x76a   : > { %8708 = vsinq.f32 %v7517_v39  ;;  %vm8142_vm11 = vcmp.lt.s32.totalorder %v8141_v53, 0  ;;  %v7682_v54 = vsel %vm7672_vm12, %v7668_v38, 1326507024  ;;  %v7673_v18 = vsel %vm7669_vm10, %v7653_v8, %v7656_v61 }
 0x76b   : > { %v7604_v4 = vsel %vm8142_vm11, 0, %v8141_v53  ;;  %v7680_v35 = vsel %vm7670_vm13, %v7677_v23, %v7679_v41  ;;  %v7683_v0 = vsel %vm7671_vm9, %v7665_v50, %v7682_v54  ;;  %v7675_v33 = vsel %vm7671_vm9, %v7659_v28, %v7674_v42 }
 0x76c   : > { %v7605_v58 = vsub.s32 32, %v7604_v4  ;;  %v7609_v10 = vsub.s32 4294967266, %v7604_v4  ;;  %v7684_v63 = vsel %vm7670_vm13, %v7681_v49, %v7683_v0  ;;  %v7523_v16 = vand.u32 3, %v7522_v27 }
 0x76d   : > { %v15091_v30 = vmul.u32.u64.low %v7685_v51, %v7684_v63  ;;  %v15092_v57 = vmul.u32.u64.high %v7685_v51, %v7684_v63, %v15091_v30  ;;  %v15094_v13 = vmul.u32.u64.low %v7685_v51, %v7680_v35  ;;  %v15095_v11 = vmul.u32.u64.high %v7685_v51, %v7680_v35, %v15094_v13 }
 0x76e   : > { %v7606_v60 = vshll.u32 %v7597_v15, %v7604_v4  ;;  %v7607_v36 = vshrl.u32 %v7589_v44, %v7605_v58  ;;  %v7610_v46 = vadd.s32 127, %v7609_v10  ;;  %v7676_v14 = vsel %vm7670_vm13, %v7673_v18, %v7675_v33 }
 0x76f   : > { %vm7694_vm0 = vc.u32 %v15092_v57, %v15094_v13  ;;  %v7695_v47 = vadd.s32 1, %v15095_v11  ;;  %vm7528_vm15 = vcmp.eq.s32.totalorder %v7523_v16, 2  ;;  %v7692_v3 = vmul.u32 %v7685_v51, %v7676_v14 }
 0x770   : > { %v7608_v6 = vor.u32 %v7607_v36, %v7606_v60  ;;  %v7611_v1 = vshll.u32 %v7610_v46, 23  ;;  %vm7524_vm14 = vcmp.lt.s32.totalorder %v7523_v16, 2  ;;  %vm7525_vm1 = vcmp.eq.s32.totalorder %v7523_v16, 0 }
 0x771   : > { %v7696_v37 = vsel %vm7694_vm0, %v7695_v47, %v15095_v11  ;;  %vm7521_vm2 = vweird.f32 %v14832_v21  ;;  %v7619_v61 = vsub.s32 4, %v15052_v12  ;;  %vm7535_vm3 = vcmp.lt.s32.totalorder %v14893_v40, 0 }
 0x772   : > { %v7612_v56 = vor.u32 4788187, %v7611_v1  ;;  %v7615_v32 = vcvt.s32.f32 %v7608_v6  ;;  %v7697_v26 = vadd.s32 %v7696_v37, %v7692_v3  ;;  %vm7534_vm4 = vcmp.le.f32.partialorder %v7533_v62, 0.7853982 }
 0x773   : > { %v8707_v2 = vpop.eup %8706  ;;  %v7620_v28 = vsel %vm7535_vm3, %v7619_v61, %v15052_v12  ;;  %v7693_v23 = vadd.s32 %v15094_v13, %v15092_v57  ;;  %vm7625_vm10 = vweird.f32 %v14893_v40  ;;  %vm7639_vm9 = vcmp.lt.s32.totalorder %v15022_v9, 0 }
 0x774   : > { %v8709_v19 = vpop.eup %8708  ;;  %v7529_v45 = vxor.u32 2147483648, %v8707_v2  ;;  %v7613_v17 = vand.u32 2147483647, %v7612_v56  ;;  %v7698_v25 = vadd.s32 536870912, %v7697_v26  ;;  %v7622_v20 = vsel %vm7534_vm4, 0, %v7620_v28 }
 0x775   : > { %v7526_v59 = vxor.u32 2147483648, %v8709_v19  ;;  %v7626_v27 = vadd.s32 3, %v7622_v20  ;;  %vm7638_vm12 = vcmp.le.f32.partialorder %v7637_v48, 0.7853982 }
 0x776   : > { %v7530_v15 = vsel %vm7528_vm15, %v7529_v45, %v8709_v19  ;;  %v7616_v7 = vmul.f32 %v7615_v32, %v7613_v17  ;;  %v7699_v34 = vshrl.u32 %v7698_v25, 30  ;;  %vm7729_vm15 = vweird.f32 %v15022_v9 }
 0x777   : > { %v7527_v5 = vsel %vm7525_vm1, %v8707_v2, %v7526_v59  ;;  %v7627_v8 = vand.u32 3, %v7626_v27 }
 0x778   : > { %v7531_v31 = vsel %vm7524_vm14, %v7527_v5, %v7530_v15  ;;  %v7617_v43 = vxor.u32 2147483648, %v7616_v7  ;;  %v7700_v39 = vshll.u32 %v7699_v34, 30  ;;  %v7723_v13 = vsub.s32 4, %v7699_v34 }
 0x779   : > { %v7532_v29 = vsel %vm7521_vm2, nan, %v7531_v31  ;;  %vm7632_vm6 = vcmp.eq.s32.totalorder %v7627_v8, 2  ;;  %vm7628_vm7 = vcmp.lt.s32.totalorder %v7627_v8, 2  ;;  %vm7629_vm8 = vcmp.eq.s32.totalorder %v7627_v8, 0 }
 0x77a   : > { %7802 = vst [vmem:[%s9666_s10 + $0x1e8] sm:$0xff] %v7532_v29  ;;  %v7618_v24 = vsel %vm7535_vm3, %v7617_v43, %v7616_v7  ;;  %v7701_v50 = vsub.s32 %v7697_v26, %v7700_v39 }
 0x77b   : > { %v7621_v21 = vsel %vm7534_vm4, %v14893_v40, %v7618_v24  ;;  %v7724_v40 = vsel %vm7639_vm9, %v7723_v13, %v7699_v34 }
 0x77c   : > { %8710 = vcosq.f32 %v7621_v21  ;;  %v7703_v55 = vsub.s32 0, %v7701_v50  ;;  %v7726_v46 = vsel %vm7638_vm12, 0, %v7724_v40 }
 0x77d   : > { %8712 = vsinq.f32 %v7621_v21  ;;  %v7730_v14 = vadd.s32 3, %v7726_v46 }
 0x77e   : > { %v8144_v44 = vmin.u32 %v7703_v55, %v7701_v50 }
 0x77f   : > { %v7731_v2 = vand.u32 3, %v7730_v14 }
 0x780   : > { %v7705_v52 = vclz %v8144_v44 }
 0x781   : > { %vm7736_vm11 = vcmp.eq.s32.totalorder %v7731_v2, 2  ;;  %vm7733_vm13 = vcmp.eq.s32.totalorder %v7731_v2, 0  ;;  %vm7732_vm0 = vcmp.lt.s32.totalorder %v7731_v2, 2 }
 0x782   : > { %v8145_v38 = vadd.s32 4294967294, %v7705_v52 }
 0x784   : > { %vm8146_vm5 = vcmp.lt.s32.totalorder %v8145_v38, 0 }
 0x785   : > { %v7708_v62 = vsel %vm8146_vm5, 0, %v8145_v38 }
 0x786   : > { %v8711_v51 = vpop.eup %8710  ;;  %v7709_v22 = vsub.s32 32, %v7708_v62  ;;  %v7713_v49 = vsub.s32 4294967266, %v7708_v62  ;;  %v7710_v4 = vshll.u32 %v7701_v50, %v7708_v62 }
 0x787   : > { %v8713_v12 = vpop.eup %8712  ;;  %v7633_v53 = vxor.u32 2147483648, %v8711_v51 }
 0x788   : > { %v7630_v42 = vxor.u32 2147483648, %v8713_v12  ;;  %v7711_v18 = vshrl.u32 %v7693_v23, %v7709_v22  ;;  %v7714_v35 = vadd.s32 127, %v7713_v49 }
 0x789   : > { %v7634_v41 = vsel %vm7632_vm6, %v7633_v53, %v8713_v12 }
 0x78a   : > { %v7631_v54 = vsel %vm7629_vm8, %v8711_v51, %v7630_v42  ;;  %v7712_v10 = vor.u32 %v7711_v18, %v7710_v4  ;;  %v7715_v33 = vshll.u32 %v7714_v35, 23 }
 0x78b   : > { %v7635_v0 = vsel %vm7628_vm7, %v7631_v54, %v7634_v41 }
 0x78c   : > { %v7636_v58 = vsel %vm7625_vm10, nan, %v7635_v0  ;;  %v7716_v63 = vor.u32 4788187, %v7715_v33  ;;  %v7719_v11 = vcvt.s32.f32 %v7712_v10 }
 0x78d   : > { %7803 = vst [vmem:[%s9666_s10 + $0x1f0] sm:$0xff] %v7636_v58 }
 0x78e   : > { %v7717_v30 = vand.u32 2147483647, %v7716_v63 }
 0x790   : > { %v7720_v57 = vmul.f32 %v7719_v11, %v7717_v30 }
 0x792   : > { %v7721_v16 = vxor.u32 2147483648, %v7720_v57 }
 0x794   : > { %v7722_v60 = vsel %vm7639_vm9, %v7721_v16, %v7720_v57 }
 0x795   : > { %v7725_v36 = vsel %vm7638_vm12, %v15022_v9, %v7722_v60 }
 0x796   : > { %8714 = vcosq.f32 %v7725_v36 }
 0x797   : > { %8716 = vsinq.f32 %v7725_v36 }
 0x7a0   : > { %v8715_v6 = vpop.eup %8714 }
 0x7a1   : > { %v8717_v1 = vpop.eup %8716  ;;  %v7737_v19 = vxor.u32 2147483648, %v8715_v6 }
 0x7a2   : > { %v7734_v45 = vxor.u32 2147483648, %v8717_v1 }
 0x7a3   : > { %v7738_v48 = vsel %vm7736_vm11, %v7737_v19, %v8717_v1 }
 0x7a4   : > { %v7735_v47 = vsel %vm7733_vm13, %v8715_v6, %v7734_v45 }
 0x7a5   : > { %v7739_v59 = vsel %vm7732_vm0, %v7735_v47, %v7738_v48 }
 0x7a6   : > { %v7740_v56 = vsel %vm7729_vm15, nan, %v7739_v59 }
 0x7a7   : > { %7804 = vst [vmem:[%s9666_s10 + $0x1f8] sm:$0xff] %v7740_v56 }
 0x7a8   : > { %8762 = shalt.err (!%p8759_p3)
}
 0x7a9   : > { %s8763_s8 = scalar_lea.hbm %s15121_s19, 8192  ;;  %s8767_s28 = scalar_lea.hbm %s15173_s3, 16384 }
 0x7aa   : > { %p8764_p4 = scmp.ne.s32.totalorder %s15121_s19, %s8763_s8  ;;  %p8768_p9 = scmp.lt.u32.totalorder %s15121_s19, %s15173_s3 }
 0x7ab   : > { %p8769_p10 = scmp.lt.u32.totalorder %s8767_s28, %s8763_s8  ;;  %p8771_p12 = scmp.lt.u32.totalorder %s8763_s8, %s15121_s19 }
 0x7ac   : > { %p8765_p7 = pnand %p8764_p4, %p8882_p5 }
 0x7ad   : > { %p8770_p11 = por %p8769_p10, %p8768_p9 }
 0x7ae   : > { %p8766_p8 = pneg %p8765_p7 }
 0x7af   : > { %p8772_p13 = por %p8771_p12, %p8770_p11 }
 0x7b1   : > { %p8773_p0 = pnand %p8772_p13, %p8766_p8 }
 0x7b3   : > { %8776 = shalt.err (!%p8773_p0)
}
 0x7b4   : > { %s8822_s4 = smov 128   ;;  %s8823_s5 = smov 8  }
 0x7b5   : > { %8409 = dma.vmem_to_hbm [thread:$0]  (%p8882_p5), %s15123_s9, 8192, %s15121_s19, %s15129_s16, %s8822_s4, %s8822_s4, %s8823_s5  }
 0x7b6 PF: > { %p8415_p1 = scmp.ge.s32.totalorder %s8811_s15, 2  ;;  %s7834_s6 = sand.u32 1, %s8799_s12  }
 0x7b7   : > { %s7835_s7 = scalar_lea.sflag [#allocation3], %s7834_s6 }
 0x7b8   : > { %p8412_p2 = pnand %p8415_p1, %p8886_p6 }
 0x7ba   : > { %8794 = dma.done.wait (!%p8412_p2), %s7835_s7, 8192  }
 0x7bb   : > { %8796 = vsyncadd (!%p8412_p2), %s7835_s7, 4294959104  ;;  %p13_p3 = scmp.ge.s32.totalorder %s8869_s18, 4   ;;  %s15438_s12 = smov %s8803_s13 }
 0x7bc   : > { %s15439_s13 = smov %s8807_s14  ;;  %s15440_s14 = smov %s8880_s21 }
 0x7bd   : > { %s15441_s15 = smov %s8869_s18  ;;  %15 = sbr.rel (!%p13_p3) target bundleno = 3 (0x3), region = 67 }
 0x7c4   :  { %7840 = vsyncpa [#allocation3], 1 }
 0x7c5   :  { %7842 = vsyncpa [#allocation3 + $0x1], 1 }

</bundles_post_ra>
